<compile_context>
chip_gen: v7x
topology: tpu7x:2x2x1
jax: 0.10.0
libtpu: 0.0.40
codegen_flags: <defaults>
</compile_context>

<pallas_src>
import numpy as np
import jax
import jax.numpy as jnp
from jax import lax
from jax.experimental import pallas as pl
from jax.experimental.pallas import tpu as pltpu

IMG_SHAPE = (1, 28, 28)
LATENT_DIM = 2 ** 8                   # 256
IMG_FLAT = int(np.prod(IMG_SHAPE))    # 784
IMG_FLAT_PAD = 896                    # 7 * 128 -> lane-dense output slab
BN_EPS = 0.8                          # nn.BatchNorm1d(C, 0.8) => eps = 0.8


def _generator_kernel(
    # auto-DMA'd (VMEM) inputs
    x_ref,
    w1_ref, b1_ref,
    w2_ref, b2_ref, g2_ref, bt2_ref,
    w3_ref, b3_ref, g3_ref, bt3_ref,
    b4_ref, g4_ref, bt4_ref,
    b5_ref,
    # raw HBM refs for the two big weights (manually copied, overlapped)
    w4_hbm, w5_hbm,
    # output
    o_ref,
    # scratch
    w4_vmem, w5_vmem, dma_sem,
):
    # Kick off the big weight DMAs immediately so they overlap with the
    # compute of layers 1-3 (grid=() provides no automatic pipelining).
    cp4 = pltpu.make_async_copy(w4_hbm, w4_vmem, dma_sem.at[0])
    cp5 = pltpu.make_async_copy(w5_hbm, w5_vmem, dma_sem.at[1])
    cp4.start()
    cp5.start()

    inv_b = 1.0 / x_ref.shape[0]      # static 1/B

    def bn_relu(z, g_ref, bt_ref):
        # BatchNorm1d (training mode): batch mean, biased batch variance,
        # single reduction pass (E[z^2] - E[z]^2), eps = 0.8; then ReLU.
        s = jnp.sum(z, axis=0, keepdims=True)
        sq = jnp.sum(z * z, axis=0, keepdims=True)
        mean = s * inv_b
        var = sq * inv_b - mean * mean
        zn = (z - mean) * lax.rsqrt(var + BN_EPS)
        zn = zn * g_ref[...] + bt_ref[...]
        return jnp.maximum(zn, 0.0)

    # ---- Block 1: Linear(256,128) + ReLU (no norm) --------------------------
    x = x_ref[...].astype(jnp.bfloat16)
    h = jnp.dot(x, w1_ref[...], preferred_element_type=jnp.float32) + b1_ref[...]
    h = jnp.maximum(h, 0.0)

    # ---- Block 2: Linear(128,256) + BN + ReLU --------------------------------
    z = jnp.dot(h.astype(jnp.bfloat16), w2_ref[...],
                preferred_element_type=jnp.float32) + b2_ref[...]
    h = bn_relu(z, g2_ref, bt2_ref)

    # ---- Block 3: Linear(256,512) + BN + ReLU --------------------------------
    z = jnp.dot(h.astype(jnp.bfloat16), w3_ref[...],
                preferred_element_type=jnp.float32) + b3_ref[...]
    h = bn_relu(z, g3_ref, bt3_ref)

    # ---- Block 4: Linear(512,1024) + BN + ReLU -------------------------------
    cp4.wait()
    z = jnp.dot(h.astype(jnp.bfloat16), w4_vmem[...],
                preferred_element_type=jnp.float32) + b4_ref[...]
    h = bn_relu(z, g4_ref, bt4_ref)

    # ---- Head: Linear(1024, 784 padded to 896) + Tanh ------------------------
    cp5.wait()
    out = jnp.dot(h.astype(jnp.bfloat16), w5_vmem[...],
                  preferred_element_type=jnp.float32) + b5_ref[...]
    o_ref[...] = jnp.tanh(out)        # padded cols: tanh(0)=0, sliced off outside


def _full_spec(shape):
    # whole-array block (single grid point)
    return pl.BlockSpec(shape, lambda: (0,) * len(shape))


def generator_forward(x, params):
    """x: (B, LATENT_DIM) float32 -> (B, 1, 28, 28) float32. B multiple of 8."""
    B = x.shape[0]

    small = [
        params["w1"], params["b1"],
        params["w2"], params["b2"], params["g2"], params["bt2"],
        params["w3"], params["b3"], params["g3"], params["bt3"],
        params["b4"], params["g4"], params["bt4"],
        params["b5"],
    ]
    big = [params["w4"], params["w5"]]   # stay in HBM, manually prefetched

    in_specs = (
        [_full_spec(x.shape)]
        + [_full_spec(p.shape) for p in small]
        + [pl.BlockSpec(memory_space=pl.ANY) for _ in big]
    )

    out = pl.pallas_call(
        _generator_kernel,
        out_shape=jax.ShapeDtypeStruct((B, IMG_FLAT_PAD), jnp.float32),
        grid=(),
        in_specs=in_specs,
        out_specs=_full_spec((B, IMG_FLAT_PAD)),
        scratch_shapes=[
            pltpu.VMEM((512, 1024), jnp.bfloat16),          # w4 landing buffer
            pltpu.VMEM((1024, IMG_FLAT_PAD), jnp.bfloat16),  # w5 landing buffer
            pltpu.SemaphoreType.DMA((2,)),
        ],
        compiler_params=pltpu.CompilerParams(
            vmem_limit_bytes=32 * 1024 * 1024),
    )(x, *small, *big)

    return out[:, :IMG_FLAT].reshape(B, *IMG_SHAPE)


def init_params(key):
    """Deterministic synthetic parameters.

    Linear weights stored transposed as (in_features, out_features) in bf16;
    biases and BN affine params in f32. The last layer is padded 784 -> 896
    with zero columns so the kernel's output store is lane-dense.
    """
    dims = [(LATENT_DIM, 128), (128, 256), (256, 512), (512, 1024), (1024, IMG_FLAT)]
    params = {}
    keys = jax.random.split(key, len(dims) * 2)
    for i, (din, dout) in enumerate(dims):
        limit = 1.0 / np.sqrt(din)  # PyTorch default uniform(-1/sqrt(in), 1/sqrt(in))
        w = jax.random.uniform(keys[2 * i], (din, dout), jnp.float32, -limit, limit)
        b = jax.random.uniform(keys[2 * i + 1], (1, dout), jnp.float32, -limit, limit)
        if dout == IMG_FLAT:
            w = jnp.pad(w, ((0, 0), (0, IMG_FLAT_PAD - IMG_FLAT)))
            b = jnp.pad(b, ((0, 0), (0, IMG_FLAT_PAD - IMG_FLAT)))
        params[f"w{i+1}"] = w.astype(jnp.bfloat16)   # bf16: half the HBM traffic
        params[f"b{i+1}"] = b                        # f32
    for i, d in zip((2, 3, 4), (256, 512, 1024)):
        params[f"g{i}"] = jnp.ones((1, d), jnp.float32)
        params[f"bt{i}"] = jnp.zeros((1, d), jnp.float32)
    return params


def _reference_forward(x, params):
    """Pure-JAX f32 reference of the PyTorch module (train-mode BN)."""
    def bn_relu(z, g, bt):
        mean = jnp.mean(z, axis=0, keepdims=True)
        var = jnp.mean((z - mean) ** 2, axis=0, keepdims=True)
        zn = (z - mean) / jnp.sqrt(var + BN_EPS)
        return jnp.maximum(zn * g + bt, 0.0)

    h = jnp.maximum(x @ params["w1"].astype(jnp.float32) + params["b1"], 0.0)
    h = bn_relu(h @ params["w2"].astype(jnp.float32) + params["b2"],
                params["g2"], params["bt2"])
    h = bn_relu(h @ params["w3"].astype(jnp.float32) + params["b3"],
                params["g3"], params["bt3"])
    h = bn_relu(h @ params["w4"].astype(jnp.float32) + params["b4"],
                params["g4"], params["bt4"])
    out = jnp.tanh(h @ params["w5"].astype(jnp.float32) + params["b5"])
    return out[:, :IMG_FLAT].reshape(x.shape[0], *IMG_SHAPE)


if __name__ == "__main__":
    key = jax.random.PRNGKey(0)
    pkey, xkey = jax.random.split(key)
    params = init_params(pkey)

    # Batch: multiple of 8 (sublanes); 128 fills MXU rows on v5e (half on v6e/v7x).
    B = 128
    x = jax.random.normal(xkey, (B, LATENT_DIM), dtype=jnp.float32)

    out = generator_forward(x, params)
    out = jax.block_until_ready(out)
    assert out.shape == (B, 1, 28, 28), out.shape
    assert out.dtype == jnp.float32

    ref = _reference_forward(x, params)
    err = float(jnp.max(jnp.abs(out - ref)))
    # bf16 matmul operands (f32 accumulation) vs f32 reference -> small drift.
    assert err < 8e-2, f"max |err| = {err}"

    print("KERNEL_OK")
</pallas_src>

<mosaic_0001>
module attributes {stable_mosaic.version = 11 : i64} {
  func.func @_generator_kernel(%arg0: memref<128x256xf32, #tpu.memory_space<vmem>>, %arg1: memref<256x128xbf16, #tpu.memory_space<vmem>>, %arg2: memref<1x128xf32, #tpu.memory_space<vmem>>, %arg3: memref<128x256xbf16, #tpu.memory_space<vmem>>, %arg4: memref<1x256xf32, #tpu.memory_space<vmem>>, %arg5: memref<1x256xf32, #tpu.memory_space<vmem>>, %arg6: memref<1x256xf32, #tpu.memory_space<vmem>>, %arg7: memref<256x512xbf16, #tpu.memory_space<vmem>>, %arg8: memref<1x512xf32, #tpu.memory_space<vmem>>, %arg9: memref<1x512xf32, #tpu.memory_space<vmem>>, %arg10: memref<1x512xf32, #tpu.memory_space<vmem>>, %arg11: memref<1x1024xf32, #tpu.memory_space<vmem>>, %arg12: memref<1x1024xf32, #tpu.memory_space<vmem>>, %arg13: memref<1x1024xf32, #tpu.memory_space<vmem>>, %arg14: memref<1x896xf32, #tpu.memory_space<vmem>>, %arg15: memref<512x1024xbf16, #tpu.memory_space<any>>, %arg16: memref<1024x896xbf16, #tpu.memory_space<any>>, %arg17: memref<128x896xf32, #tpu.memory_space<vmem>>, %arg18: memref<512x1024xbf16, #tpu.memory_space<vmem>>, %arg19: memref<1024x896xbf16, #tpu.memory_space<vmem>>, %arg20: memref<2x!tpu.dma_semaphore, #tpu.memory_space<semaphore_mem>>) attributes {dimension_semantics = [], scalar_prefetch = 0 : i64, scratch_operands = 3 : i64, tpu.core_type = #tpu.core_type<tc>} {
    %c0_i32 = arith.constant 0 : i32
    %0 = tpu.memref_slice %arg20[%c0_i32] : memref<2x!tpu.dma_semaphore, #tpu.memory_space<semaphore_mem>> -> memref<1x!tpu.dma_semaphore, #tpu.memory_space<semaphore_mem>>
    %1 = tpu.memref_squeeze %0 : memref<1x!tpu.dma_semaphore, #tpu.memory_space<semaphore_mem>> -> memref<!tpu.dma_semaphore, #tpu.memory_space<semaphore_mem>>
    tpu.enqueue_dma source(%arg15 : memref<512x1024xbf16, #tpu.memory_space<any>>) target(%arg18 : memref<512x1024xbf16, #tpu.memory_space<vmem>>) target_semaphore(%1 : memref<!tpu.dma_semaphore, #tpu.memory_space<semaphore_mem>>)
    %c1_i32 = arith.constant 1 : i32
    %2 = tpu.memref_slice %arg20[%c1_i32] : memref<2x!tpu.dma_semaphore, #tpu.memory_space<semaphore_mem>> -> memref<1x!tpu.dma_semaphore, #tpu.memory_space<semaphore_mem>>
    %3 = tpu.memref_squeeze %2 : memref<1x!tpu.dma_semaphore, #tpu.memory_space<semaphore_mem>> -> memref<!tpu.dma_semaphore, #tpu.memory_space<semaphore_mem>>
    tpu.enqueue_dma source(%arg16 : memref<1024x896xbf16, #tpu.memory_space<any>>) target(%arg19 : memref<1024x896xbf16, #tpu.memory_space<vmem>>) target_semaphore(%3 : memref<!tpu.dma_semaphore, #tpu.memory_space<semaphore_mem>>)
    %c0 = arith.constant 0 : index
    %c0_0 = arith.constant 0 : index
    %4 = vector.load %arg0[%c0, %c0_0] : memref<128x256xf32, #tpu.memory_space<vmem>>, vector<128x256xf32>
    %5 = arith.truncf %4 : vector<128x256xf32> to vector<128x256xbf16>
    %c0_1 = arith.constant 0 : index
    %c0_2 = arith.constant 0 : index
    %6 = vector.load %arg1[%c0_1, %c0_2] : memref<256x128xbf16, #tpu.memory_space<vmem>>, vector<256x128xbf16>
    %cst = arith.constant dense<0.000000e+00> : vector<128x128xf32>
    %7 = tpu.matmul %5, %6, %cst {dimension_numbers = #tpu.dot_dimension_numbers<[1], [0], [0], [1], [0, 0, 1, 1], [], []>} : vector<128x256xbf16>, vector<256x128xbf16>, vector<128x128xf32> -> vector<128x128xf32>
    %c0_3 = arith.constant 0 : index
    %c0_4 = arith.constant 0 : index
    %8 = vector.load %arg2[%c0_3, %c0_4] : memref<1x128xf32, #tpu.memory_space<vmem>>, vector<1x128xf32>
    %9 = vector.broadcast %8 : vector<1x128xf32> to vector<128x128xf32>
    %10 = arith.addf %7, %9 : vector<128x128xf32>
    %cst_5 = arith.constant 0.000000e+00 : f32
    %11 = vector.broadcast %cst_5 : f32 to vector<128x128xf32>
    %12 = arith.maximumf %10, %11 : vector<128x128xf32>
    %13 = arith.truncf %12 : vector<128x128xf32> to vector<128x128xbf16>
    %c0_6 = arith.constant 0 : index
    %c0_7 = arith.constant 0 : index
    %14 = vector.load %arg3[%c0_6, %c0_7] : memref<128x256xbf16, #tpu.memory_space<vmem>>, vector<128x256xbf16>
    %cst_8 = arith.constant dense<0.000000e+00> : vector<128x256xf32>
    %15 = tpu.matmul %13, %14, %cst_8 {dimension_numbers = #tpu.dot_dimension_numbers<[1], [0], [0], [1], [0, 0, 1, 1], [], []>} : vector<128x128xbf16>, vector<128x256xbf16>, vector<128x256xf32> -> vector<128x256xf32>
    %c0_9 = arith.constant 0 : index
    %c0_10 = arith.constant 0 : index
    %16 = vector.load %arg4[%c0_9, %c0_10] : memref<1x256xf32, #tpu.memory_space<vmem>>, vector<1x256xf32>
    %17 = vector.broadcast %16 : vector<1x256xf32> to vector<128x256xf32>
    %18 = arith.addf %15, %17 : vector<128x256xf32>
    %cst_11 = arith.constant dense<0.000000e+00> : vector<256xf32>
    %19 = vector.multi_reduction <add>, %18, %cst_11 [0] : vector<128x256xf32> to vector<256xf32>
    %20 = vector.shape_cast %19 : vector<256xf32> to vector<1x256xf32>
    %21 = arith.mulf %18, %18 : vector<128x256xf32>
    %cst_12 = arith.constant dense<0.000000e+00> : vector<256xf32>
    %22 = vector.multi_reduction <add>, %21, %cst_12 [0] : vector<128x256xf32> to vector<256xf32>
    %23 = vector.shape_cast %22 : vector<256xf32> to vector<1x256xf32>
    %cst_13 = arith.constant 7.812500e-03 : f32
    %24 = vector.broadcast %cst_13 : f32 to vector<1x256xf32>
    %25 = arith.mulf %20, %24 : vector<1x256xf32>
    %cst_14 = arith.constant 7.812500e-03 : f32
    %26 = vector.broadcast %cst_14 : f32 to vector<1x256xf32>
    %27 = arith.mulf %23, %26 : vector<1x256xf32>
    %28 = arith.mulf %25, %25 : vector<1x256xf32>
    %29 = arith.subf %27, %28 : vector<1x256xf32>
    %30 = vector.broadcast %25 : vector<1x256xf32> to vector<128x256xf32>
    %31 = arith.subf %18, %30 : vector<128x256xf32>
    %cst_15 = arith.constant 8.000000e-01 : f32
    %32 = vector.broadcast %cst_15 : f32 to vector<1x256xf32>
    %33 = arith.addf %29, %32 : vector<1x256xf32>
    %34 = math.rsqrt %33 : vector<1x256xf32>
    %35 = vector.broadcast %34 : vector<1x256xf32> to vector<128x256xf32>
    %36 = arith.mulf %31, %35 : vector<128x256xf32>
    %c0_16 = arith.constant 0 : index
    %c0_17 = arith.constant 0 : index
    %37 = vector.load %arg5[%c0_16, %c0_17] : memref<1x256xf32, #tpu.memory_space<vmem>>, vector<1x256xf32>
    %38 = vector.broadcast %37 : vector<1x256xf32> to vector<128x256xf32>
    %39 = arith.mulf %36, %38 : vector<128x256xf32>
    %c0_18 = arith.constant 0 : index
    %c0_19 = arith.constant 0 : index
    %40 = vector.load %arg6[%c0_18, %c0_19] : memref<1x256xf32, #tpu.memory_space<vmem>>, vector<1x256xf32>
    %41 = vector.broadcast %40 : vector<1x256xf32> to vector<128x256xf32>
    %42 = arith.addf %39, %41 : vector<128x256xf32>
    %cst_20 = arith.constant 0.000000e+00 : f32
    %43 = vector.broadcast %cst_20 : f32 to vector<128x256xf32>
    %44 = arith.maximumf %42, %43 : vector<128x256xf32>
    %45 = arith.truncf %44 : vector<128x256xf32> to vector<128x256xbf16>
    %c0_21 = arith.constant 0 : index
    %c0_22 = arith.constant 0 : index
    %46 = vector.load %arg7[%c0_21, %c0_22] : memref<256x512xbf16, #tpu.memory_space<vmem>>, vector<256x512xbf16>
    %cst_23 = arith.constant dense<0.000000e+00> : vector<128x512xf32>
    %47 = tpu.matmul %45, %46, %cst_23 {dimension_numbers = #tpu.dot_dimension_numbers<[1], [0], [0], [1], [0, 0, 1, 1], [], []>} : vector<128x256xbf16>, vector<256x512xbf16>, vector<128x512xf32> -> vector<128x512xf32>
    %c0_24 = arith.constant 0 : index
    %c0_25 = arith.constant 0 : index
    %48 = vector.load %arg8[%c0_24, %c0_25] : memref<1x512xf32, #tpu.memory_space<vmem>>, vector<1x512xf32>
    %49 = vector.broadcast %48 : vector<1x512xf32> to vector<128x512xf32>
    %50 = arith.addf %47, %49 : vector<128x512xf32>
    %cst_26 = arith.constant dense<0.000000e+00> : vector<512xf32>
    %51 = vector.multi_reduction <add>, %50, %cst_26 [0] : vector<128x512xf32> to vector<512xf32>
    %52 = vector.shape_cast %51 : vector<512xf32> to vector<1x512xf32>
    %53 = arith.mulf %50, %50 : vector<128x512xf32>
    %cst_27 = arith.constant dense<0.000000e+00> : vector<512xf32>
    %54 = vector.multi_reduction <add>, %53, %cst_27 [0] : vector<128x512xf32> to vector<512xf32>
    %55 = vector.shape_cast %54 : vector<512xf32> to vector<1x512xf32>
    %cst_28 = arith.constant 7.812500e-03 : f32
    %56 = vector.broadcast %cst_28 : f32 to vector<1x512xf32>
    %57 = arith.mulf %52, %56 : vector<1x512xf32>
    %cst_29 = arith.constant 7.812500e-03 : f32
    %58 = vector.broadcast %cst_29 : f32 to vector<1x512xf32>
    %59 = arith.mulf %55, %58 : vector<1x512xf32>
    %60 = arith.mulf %57, %57 : vector<1x512xf32>
    %61 = arith.subf %59, %60 : vector<1x512xf32>
    %62 = vector.broadcast %57 : vector<1x512xf32> to vector<128x512xf32>
    %63 = arith.subf %50, %62 : vector<128x512xf32>
    %cst_30 = arith.constant 8.000000e-01 : f32
    %64 = vector.broadcast %cst_30 : f32 to vector<1x512xf32>
    %65 = arith.addf %61, %64 : vector<1x512xf32>
    %66 = math.rsqrt %65 : vector<1x512xf32>
    %67 = vector.broadcast %66 : vector<1x512xf32> to vector<128x512xf32>
    %68 = arith.mulf %63, %67 : vector<128x512xf32>
    %c0_31 = arith.constant 0 : index
    %c0_32 = arith.constant 0 : index
    %69 = vector.load %arg9[%c0_31, %c0_32] : memref<1x512xf32, #tpu.memory_space<vmem>>, vector<1x512xf32>
    %70 = vector.broadcast %69 : vector<1x512xf32> to vector<128x512xf32>
    %71 = arith.mulf %68, %70 : vector<128x512xf32>
    %c0_33 = arith.constant 0 : index
    %c0_34 = arith.constant 0 : index
    %72 = vector.load %arg10[%c0_33, %c0_34] : memref<1x512xf32, #tpu.memory_space<vmem>>, vector<1x512xf32>
    %73 = vector.broadcast %72 : vector<1x512xf32> to vector<128x512xf32>
    %74 = arith.addf %71, %73 : vector<128x512xf32>
    %cst_35 = arith.constant 0.000000e+00 : f32
    %75 = vector.broadcast %cst_35 : f32 to vector<128x512xf32>
    %76 = arith.maximumf %74, %75 : vector<128x512xf32>
    %c0_i32_36 = arith.constant 0 : i32
    %77 = tpu.memref_slice %arg20[%c0_i32_36] : memref<2x!tpu.dma_semaphore, #tpu.memory_space<semaphore_mem>> -> memref<1x!tpu.dma_semaphore, #tpu.memory_space<semaphore_mem>>
    %78 = tpu.memref_squeeze %77 : memref<1x!tpu.dma_semaphore, #tpu.memory_space<semaphore_mem>> -> memref<!tpu.dma_semaphore, #tpu.memory_space<semaphore_mem>>
    tpu.wait_dma2 semaphore(%78 : memref<!tpu.dma_semaphore, #tpu.memory_space<semaphore_mem>>) src(%arg15 : memref<512x1024xbf16, #tpu.memory_space<any>>) dst(%arg18 : memref<512x1024xbf16, #tpu.memory_space<vmem>>)
    %79 = arith.truncf %76 : vector<128x512xf32> to vector<128x512xbf16>
    %c0_37 = arith.constant 0 : index
    %c0_38 = arith.constant 0 : index
    %80 = vector.load %arg18[%c0_37, %c0_38] : memref<512x1024xbf16, #tpu.memory_space<vmem>>, vector<512x1024xbf16>
    %cst_39 = arith.constant dense<0.000000e+00> : vector<128x1024xf32>
    %81 = tpu.matmul %79, %80, %cst_39 {dimension_numbers = #tpu.dot_dimension_numbers<[1], [0], [0], [1], [0, 0, 1, 1], [], []>} : vector<128x512xbf16>, vector<512x1024xbf16>, vector<128x1024xf32> -> vector<128x1024xf32>
    %c0_40 = arith.constant 0 : index
    %c0_41 = arith.constant 0 : index
    %82 = vector.load %arg11[%c0_40, %c0_41] : memref<1x1024xf32, #tpu.memory_space<vmem>>, vector<1x1024xf32>
    %83 = vector.broadcast %82 : vector<1x1024xf32> to vector<128x1024xf32>
    %84 = arith.addf %81, %83 : vector<128x1024xf32>
    %cst_42 = arith.constant dense<0.000000e+00> : vector<1024xf32>
    %85 = vector.multi_reduction <add>, %84, %cst_42 [0] : vector<128x1024xf32> to vector<1024xf32>
    %86 = vector.shape_cast %85 : vector<1024xf32> to vector<1x1024xf32>
    %87 = arith.mulf %84, %84 : vector<128x1024xf32>
    %cst_43 = arith.constant dense<0.000000e+00> : vector<1024xf32>
    %88 = vector.multi_reduction <add>, %87, %cst_43 [0] : vector<128x1024xf32> to vector<1024xf32>
    %89 = vector.shape_cast %88 : vector<1024xf32> to vector<1x1024xf32>
    %cst_44 = arith.constant 7.812500e-03 : f32
    %90 = vector.broadcast %cst_44 : f32 to vector<1x1024xf32>
    %91 = arith.mulf %86, %90 : vector<1x1024xf32>
    %cst_45 = arith.constant 7.812500e-03 : f32
    %92 = vector.broadcast %cst_45 : f32 to vector<1x1024xf32>
    %93 = arith.mulf %89, %92 : vector<1x1024xf32>
    %94 = arith.mulf %91, %91 : vector<1x1024xf32>
    %95 = arith.subf %93, %94 : vector<1x1024xf32>
    %96 = vector.broadcast %91 : vector<1x1024xf32> to vector<128x1024xf32>
    %97 = arith.subf %84, %96 : vector<128x1024xf32>
    %cst_46 = arith.constant 8.000000e-01 : f32
    %98 = vector.broadcast %cst_46 : f32 to vector<1x1024xf32>
    %99 = arith.addf %95, %98 : vector<1x1024xf32>
    %100 = math.rsqrt %99 : vector<1x1024xf32>
    %101 = vector.broadcast %100 : vector<1x1024xf32> to vector<128x1024xf32>
    %102 = arith.mulf %97, %101 : vector<128x1024xf32>
    %c0_47 = arith.constant 0 : index
    %c0_48 = arith.constant 0 : index
    %103 = vector.load %arg12[%c0_47, %c0_48] : memref<1x1024xf32, #tpu.memory_space<vmem>>, vector<1x1024xf32>
    %104 = vector.broadcast %103 : vector<1x1024xf32> to vector<128x1024xf32>
    %105 = arith.mulf %102, %104 : vector<128x1024xf32>
    %c0_49 = arith.constant 0 : index
    %c0_50 = arith.constant 0 : index
    %106 = vector.load %arg13[%c0_49, %c0_50] : memref<1x1024xf32, #tpu.memory_space<vmem>>, vector<1x1024xf32>
    %107 = vector.broadcast %106 : vector<1x1024xf32> to vector<128x1024xf32>
    %108 = arith.addf %105, %107 : vector<128x1024xf32>
    %cst_51 = arith.constant 0.000000e+00 : f32
    %109 = vector.broadcast %cst_51 : f32 to vector<128x1024xf32>
    %110 = arith.maximumf %108, %109 : vector<128x1024xf32>
    %c1_i32_52 = arith.constant 1 : i32
    %111 = tpu.memref_slice %arg20[%c1_i32_52] : memref<2x!tpu.dma_semaphore, #tpu.memory_space<semaphore_mem>> -> memref<1x!tpu.dma_semaphore, #tpu.memory_space<semaphore_mem>>
    %112 = tpu.memref_squeeze %111 : memref<1x!tpu.dma_semaphore, #tpu.memory_space<semaphore_mem>> -> memref<!tpu.dma_semaphore, #tpu.memory_space<semaphore_mem>>
    tpu.wait_dma2 semaphore(%112 : memref<!tpu.dma_semaphore, #tpu.memory_space<semaphore_mem>>) src(%arg16 : memref<1024x896xbf16, #tpu.memory_space<any>>) dst(%arg19 : memref<1024x896xbf16, #tpu.memory_space<vmem>>)
    %113 = arith.truncf %110 : vector<128x1024xf32> to vector<128x1024xbf16>
    %c0_53 = arith.constant 0 : index
    %c0_54 = arith.constant 0 : index
    %114 = vector.load %arg19[%c0_53, %c0_54] : memref<1024x896xbf16, #tpu.memory_space<vmem>>, vector<1024x896xbf16>
    %cst_55 = arith.constant dense<0.000000e+00> : vector<128x896xf32>
    %115 = tpu.matmul %113, %114, %cst_55 {dimension_numbers = #tpu.dot_dimension_numbers<[1], [0], [0], [1], [0, 0, 1, 1], [], []>} : vector<128x1024xbf16>, vector<1024x896xbf16>, vector<128x896xf32> -> vector<128x896xf32>
    %c0_56 = arith.constant 0 : index
    %c0_57 = arith.constant 0 : index
    %116 = vector.load %arg14[%c0_56, %c0_57] : memref<1x896xf32, #tpu.memory_space<vmem>>, vector<1x896xf32>
    %117 = vector.broadcast %116 : vector<1x896xf32> to vector<128x896xf32>
    %118 = arith.addf %115, %117 : vector<128x896xf32>
    %119 = math.tanh %118 : vector<128x896xf32>
    %c0_58 = arith.constant 0 : index
    %c0_59 = arith.constant 0 : index
    %120 = vector.load %arg17[%c0_58, %c0_59] : memref<128x896xf32, #tpu.memory_space<vmem>>, vector<128x896xf32>
    tpu.vector_store %arg17[%c0_58, %c0_59], %119 {strides = array<i32>} : memref<128x896xf32, #tpu.memory_space<vmem>>, vector<128x896xf32>,
    return
  }
}

</mosaic_0001>

<bundles_post_ra>
// kernel: tpu_custom_call.1
= control target key start
LH: loop header
LB: loop body
LE: loop exit
PB: predicated region body
PF: predicated region fallthrough
CT: control target
= control target key end

     0   :  { %s14762_s0 = inlined_call_operand.hbm [shape: f32[128,256], index: 0, kind: input, shape index: {}]   ;;  %s14763_s1 = inlined_call_operand.hbm [shape: bf16[256,128], index: 1, kind: input, shape index: {}]   ;;  %s14764_s2 = inlined_call_operand.hbm [shape: f32[1,128], index: 2, kind: input, shape index: {}]   ;;  %s14765_s3 = inlined_call_operand.hbm [shape: bf16[128,256], index: 3, kind: input, shape index: {}]   ;;  %s14766_s4 = inlined_call_operand.hbm [shape: f32[1,256], index: 4, kind: input, shape index: {}]   ;;  %s14767_s5 = inlined_call_operand.hbm [shape: f32[1,256], index: 5, kind: input, shape index: {}]   ;;  %s14768_s6 = inlined_call_operand.hbm [shape: f32[1,256], index: 6, kind: input, shape index: {}]   ;;  %s14769_s7 = inlined_call_operand.hbm [shape: bf16[256,512], index: 7, kind: input, shape index: {}]   ;;  %s14770_s8 = inlined_call_operand.hbm [shape: f32[1,512], index: 8, kind: input, shape index: {}]   ;;  %s14771_s9 = inlined_call_operand.hbm [shape: f32[1,512], index: 9, kind: input, shape index: {}]   ;;  %s14772_s10 = inlined_call_operand.hbm [shape: f32[1,512], index: 10, kind: input, shape index: {}]   ;;  %s14773_s11 = inlined_call_operand.hbm [shape: f32[1,1024], index: 11, kind: input, shape index: {}]   ;;  %s14774_s12 = inlined_call_operand.hbm [shape: f32[1,1024], index: 12, kind: input, shape index: {}]   ;;  %s14775_s13 = inlined_call_operand.hbm [shape: f32[1,1024], index: 13, kind: input, shape index: {}]   ;;  %s14776_s14 = inlined_call_operand.hbm [shape: f32[1,896], index: 14, kind: input, shape index: {}]   ;;  %s14777_s15 = inlined_call_operand.hbm [shape: bf16[512,1024], index: 15, kind: input, shape index: {}]   ;;  %s14778_s16 = inlined_call_operand.hbm [shape: bf16[1024,896], index: 16, kind: input, shape index: {}]   ;;  %s14779_s17 = inlined_call_operand.hbm [shape: f32[128,896], index: 17, kind: output, shape index: {}]  }
   0x1   :  { %15192 = sst [smem:[#allocation177_spill]] %s14762_s0 }
   0x2   :  { %15193 = sst [smem:[#allocation178_spill]] %s14763_s1 }
   0x3   :  { %15194 = sst [smem:[#allocation179_spill]] %s14779_s17 }
   0x4   :  { %22 = vsyncpa [#allocation6], 0 }
   0x5   :  { %23 = vsyncpa [#allocation9], 0 }
   0x6   :  { %24 = vsyncpa [#allocation12], 0 }
   0x7   :  { %25 = vsyncpa [#allocation15], 0 }
   0x8   :  { %26 = vsyncpa [#allocation18], 0 }
   0x9   :  { %27 = vsyncpa [#allocation21], 0 }
   0xa   :  { %28 = vsyncpa [#allocation24], 0 }
   0xb   :  { %29 = vsyncpa [#allocation27], 0 }
   0xc   :  { %30 = vsyncpa [#allocation7], 0  ;;  %s9307_s24 = smov [#allocation8]   ;;  %s15195_s28 = sld [smem:[#allocation178_spill]] }
   0xd   :  { %s48_s25 = sshll.u32 %s9307_s24, 4  ;;  %s49_s25 = int_to_ptr.vmem [resolvable:$true] %s48_s25 }
  0x12   :  { %s8933_s29 = scalar_lea.hbm %s15195_s28, 2048 }
  0x13   :  { %p8934_p0 = scmp.ne.s32.totalorder %s15195_s28, %s8933_s29  ;;  %p8937_p1 = scmp.lt.u32.totalorder %s8933_s29, %s15195_s28 }
  0x15   :  { %p8939_p2 = pnand %p8937_p1, %p8934_p0 }
  0x17   :  { %8942 = shalt.err (!%p8939_p2)
}
  0x18   :  { %s8943_s1 = scalar_lea.vmem %s49_s25, 2048  ;;  %p8948_p4 = scmp.lt.s32.totalorder %s49_s25, %s49_s25 }
  0x19   :  { %p8944_p3 = scmp.ne.s32.totalorder %s49_s25, %s8943_s1  ;;  %p8949_p5 = scmp.lt.s32.totalorder %s8943_s1, %s8943_s1 }
  0x1b   :  { %p8950_p6 = por %p8949_p5, %p8948_p4 }
  0x1d   :  { %p8951_p7 = pnand %p8950_p6, %p8944_p3 }
  0x1f   :  { %8954 = shalt.err (!%p8951_p7)
}
  0x20   :  { %s9308_s20 = smov 64   ;;  %s14783_s21 = smov 4  }
  0x21   :  { %54 = dma.hbm_to_vmem [thread:$0]  %s15195_s28, 2048, %s49_s25, [#allocation9], %s9308_s20, %s9308_s20, %s14783_s21  }
  0x22   :  { %s9310_s24 = smov [#allocation11]   ;;  %s8955_s0 = scalar_lea.hbm %s14765_s3, 2048 }
  0x23   :  { %s70_s26 = sshll.u32 %s9310_s24, 4  ;;  %p8956_p8 = scmp.ne.s32.totalorder %s14765_s3, %s8955_s0  ;;  %s71_s26 = int_to_ptr.vmem [resolvable:$true] %s70_s26 }
  0x24   :  { %p8959_p9 = scmp.lt.u32.totalorder %s8955_s0, %s14765_s3 }
  0x26   :  { %p8961_p10 = pnand %p8959_p9, %p8956_p8 }
  0x28   :  { %8964 = shalt.err (!%p8961_p10)
}
  0x29   :  { %s8965_s17 = scalar_lea.vmem %s71_s26, 2048  ;;  %p8970_p12 = scmp.lt.s32.totalorder %s71_s26, %s71_s26 }
  0x2a   :  { %p8966_p11 = scmp.ne.s32.totalorder %s71_s26, %s8965_s17  ;;  %p8971_p13 = scmp.lt.s32.totalorder %s8965_s17, %s8965_s17 }
  0x2c   :  { %p8972_p0 = por %p8971_p13, %p8970_p12 }
  0x2e   :  { %p8973_p1 = pnand %p8972_p0, %p8966_p11 }
  0x30   :  { %8976 = shalt.err (!%p8973_p1)
}
  0x31   :  { %s9311_s25 = smov 128   ;;  %s9312_s28 = smov 8  }
  0x32   :  { %76 = dma.hbm_to_vmem [thread:$0]  %s14765_s3, 2048, %s71_s26, [#allocation12], %s9311_s25, %s9311_s25, %s9312_s28  }
  0x33   :  { %s9313_s24 = smov [#allocation14]   ;;  %s8977_s30 = scalar_lea.hbm %s14767_s5, 32 }
  0x34   :  { %s93_s27 = sshll.u32 %s9313_s24, 4  ;;  %p8978_p2 = scmp.ne.s32.totalorder %s14767_s5, %s8977_s30  ;;  %s94_s27 = int_to_ptr.vmem [resolvable:$true] %s93_s27 }
  0x35   :  { %p8981_p3 = scmp.lt.u32.totalorder %s8977_s30, %s14767_s5 }
  0x37   :  { %p8983_p4 = pnand %p8981_p3, %p8978_p2 }
  0x39   :  { %8986 = shalt.err (!%p8983_p4)
}
  0x3a   :  { %s8987_s21 = scalar_lea.vmem %s94_s27, 32  ;;  %p8992_p6 = scmp.lt.s32.totalorder %s94_s27, %s94_s27 }
  0x3b   :  { %p8988_p5 = scmp.ne.s32.totalorder %s94_s27, %s8987_s21  ;;  %p8993_p7 = scmp.lt.s32.totalorder %s8987_s21, %s8987_s21 }
  0x3d   :  { %p8994_p8 = por %p8993_p7, %p8992_p6 }
  0x3f   :  { %p8995_p9 = pnand %p8994_p8, %p8988_p5 }
  0x41   :  { %8998 = shalt.err (!%p8995_p9)
}
  0x42   :  { %96 = dma.hbm_to_vmem [thread:$0]  %s14767_s5, 32, %s94_s27, [#allocation15]  }
  0x43   :  { %s9314_s22 = smov [#allocation17]   ;;  %s9315_s24 = smov [#allocation20]  }
  0x44   :  { %s112_s23 = sshll.u32 %s9314_s22, 4  ;;  %s135_s29 = sshll.u32 %s9315_s24, 4  ;;  %s113_s23 = int_to_ptr.vmem [resolvable:$true] %s112_s23  ;;  %s136_s29 = int_to_ptr.vmem [resolvable:$true] %s135_s29 }
  0x45   :  { %s8999_s17 = scalar_lea.hbm %s14769_s7, 8192 }
  0x46   :  { %p9000_p10 = scmp.ne.s32.totalorder %s14769_s7, %s8999_s17  ;;  %p9003_p11 = scmp.lt.u32.totalorder %s8999_s17, %s14769_s7 }
  0x48   :  { %p9005_p12 = pnand %p9003_p11, %p9000_p10 }
  0x4a   :  { %9008 = shalt.err (!%p9005_p12)
}
  0x4b   :  { %s9009_s5 = scalar_lea.vmem %s113_s23, 8192  ;;  %p9014_p0 = scmp.lt.s32.totalorder %s113_s23, %s113_s23 }
  0x4c   :  { %p9010_p13 = scmp.ne.s32.totalorder %s113_s23, %s9009_s5  ;;  %p9015_p1 = scmp.lt.s32.totalorder %s9009_s5, %s9009_s5 }
  0x4e   :  { %p9016_p2 = por %p9015_p1, %p9014_p0 }
  0x50   :  { %p9017_p3 = pnand %p9016_p2, %p9010_p13 }
  0x52   :  { %9020 = shalt.err (!%p9017_p3)
}
  0x53   :  { %s9316_s27 = smov 256   ;;  %s9317_s3 = smov 16  }
  0x54   :  { %118 = dma.hbm_to_vmem [thread:$0]  %s14769_s7, 8192, %s113_s23, [#allocation18], %s9316_s27, %s9316_s27, %s9317_s3  }
  0x55   :  { %s9021_s30 = scalar_lea.hbm %s14771_s9, 64 }
  0x56   :  { %p9022_p4 = scmp.ne.s32.totalorder %s14771_s9, %s9021_s30  ;;  %p9025_p5 = scmp.lt.u32.totalorder %s9021_s30, %s14771_s9 }
  0x58   :  { %p9027_p6 = pnand %p9025_p5, %p9022_p4 }
  0x5a   :  { %9030 = shalt.err (!%p9027_p6)
}
  0x5b   :  { %s9031_s1 = scalar_lea.vmem %s136_s29, 64  ;;  %p9036_p8 = scmp.lt.s32.totalorder %s136_s29, %s136_s29 }
  0x5c   :  { %p9032_p7 = scmp.ne.s32.totalorder %s136_s29, %s9031_s1  ;;  %p9037_p9 = scmp.lt.s32.totalorder %s9031_s1, %s9031_s1 }
  0x5e   :  { %p9038_p10 = por %p9037_p9, %p9036_p8 }
  0x60   :  { %p9039_p11 = pnand %p9038_p10, %p9032_p7 }
  0x62   :  { %9042 = shalt.err (!%p9039_p11)
}
  0x63   :  { %138 = dma.hbm_to_vmem [thread:$0]  %s14771_s9, 64, %s136_s29, [#allocation21]  }
  0x64   :  { %s9318_s5 = smov [#allocation23]   ;;  %s9319_s22 = smov [#allocation26]  }
  0x65   :  { %s155_s26 = sshll.u32 %s9318_s5, 4  ;;  %s175_s24 = sshll.u32 %s9319_s22, 4  ;;  %s156_s26 = int_to_ptr.vmem [resolvable:$true] %s155_s26  ;;  %s176_s24 = int_to_ptr.vmem [resolvable:$true] %s175_s24 }
  0x66   :  { %s9043_s17 = scalar_lea.hbm %s14773_s11, 128 }
  0x67   :  { %p9044_p12 = scmp.ne.s32.totalorder %s14773_s11, %s9043_s17  ;;  %p9047_p13 = scmp.lt.u32.totalorder %s9043_s17, %s14773_s11 }
  0x69   :  { %p9049_p0 = pnand %p9047_p13, %p9044_p12 }
  0x6b   :  { %9052 = shalt.err (!%p9049_p0)
}
  0x6c   :  { %s9053_s9 = scalar_lea.vmem %s156_s26, 128  ;;  %p9058_p2 = scmp.lt.s32.totalorder %s156_s26, %s156_s26 }
  0x6d   :  { %p9054_p1 = scmp.ne.s32.totalorder %s156_s26, %s9053_s9  ;;  %p9059_p3 = scmp.lt.s32.totalorder %s9053_s9, %s9053_s9 }
  0x6f   :  { %p9060_p4 = por %p9059_p3, %p9058_p2 }
  0x71   :  { %p9061_p5 = pnand %p9060_p4, %p9054_p1 }
  0x73   :  { %9064 = shalt.err (!%p9061_p5)
}
  0x74   :  { %158 = dma.hbm_to_vmem [thread:$0]  %s14773_s11, 128, %s156_s26, [#allocation24]  }
  0x75   :  { %s9065_s22 = scalar_lea.hbm %s14775_s13, 128 }
  0x76   :  { %p9066_p6 = scmp.ne.s32.totalorder %s14775_s13, %s9065_s22  ;;  %p9069_p7 = scmp.lt.u32.totalorder %s9065_s22, %s14775_s13 }
  0x78   :  { %p9071_p8 = pnand %p9069_p7, %p9066_p6 }
  0x7a   :  { %9074 = shalt.err (!%p9071_p8)
}
  0x7b   :  { %s9075_s19 = scalar_lea.vmem %s176_s24, 128  ;;  %p9080_p10 = scmp.lt.s32.totalorder %s176_s24, %s176_s24 }
  0x7c   :  { %p9076_p9 = scmp.ne.s32.totalorder %s176_s24, %s9075_s19  ;;  %p9081_p11 = scmp.lt.s32.totalorder %s9075_s19, %s9075_s19 }
  0x7e   :  { %p9082_p12 = por %p9081_p11, %p9080_p10 }
  0x80   :  { %p9083_p13 = pnand %p9082_p12, %p9076_p9 }
  0x82   :  { %9086 = shalt.err (!%p9083_p13)
}
  0x83   :  { %178 = dma.hbm_to_vmem [thread:$0]  %s14775_s13, 128, %s176_s24, [#allocation27]  }
  0x84   :  { %s9320_s21 = smov [#allocation5]   ;;  %s9321_s9 = smov [#allocation10]  }
  0x85   :  { %s36_s1 = sshll.u32 %s9320_s21, 4  ;;  %s61_s29 = sshll.u32 %s9321_s9, 4  ;;  %s37_s1 = int_to_ptr.vmem [resolvable:$true] %s36_s1  ;;  %s62_s29 = int_to_ptr.vmem [resolvable:$true] %s61_s29 }
  0x86   :  { %s15196_s5 = sld [smem:[#allocation177_spill]] }
  0x8c   :  { %s9087_s22 = scalar_lea.hbm %s15196_s5, 4096 }
  0x8d   :  { %p9088_p0 = scmp.ne.s32.totalorder %s15196_s5, %s9087_s22  ;;  %p9091_p1 = scmp.lt.u32.totalorder %s9087_s22, %s15196_s5 }
  0x8f   :  { %p9093_p2 = pnand %p9091_p1, %p9088_p0 }
  0x91   :  { %9096 = shalt.err (!%p9093_p2)
}
  0x92   :  { %s9097_s13 = scalar_lea.vmem %s37_s1, 4096  ;;  %p9102_p4 = scmp.lt.s32.totalorder %s37_s1, %s37_s1 }
  0x93   :  { %p9098_p3 = scmp.ne.s32.totalorder %s37_s1, %s9097_s13  ;;  %p9103_p5 = scmp.lt.s32.totalorder %s9097_s13, %s9097_s13 }
  0x95   :  { %p9104_p6 = por %p9103_p5, %p9102_p4 }
  0x97   :  { %p9105_p7 = pnand %p9104_p6, %p9098_p3 }
  0x99   :  { %9108 = shalt.err (!%p9105_p7)
}
  0x9a   :  { %42 = dma.hbm_to_vmem [thread:$0]  %s15196_s5, 4096, %s37_s1, [#allocation6], %s9316_s27, %s9316_s27, %s9317_s3  }
  0x9b   :  { %s9109_s21 = scalar_lea.hbm %s14764_s2, 16 }
  0x9c   :  { %p9110_p8 = scmp.ne.s32.totalorder %s14764_s2, %s9109_s21  ;;  %p9113_p9 = scmp.lt.u32.totalorder %s9109_s21, %s14764_s2 }
  0x9e   :  { %p9115_p10 = pnand %p9113_p9, %p9110_p8 }
  0xa0   :  { %9118 = shalt.err (!%p9115_p10)
}
  0xa1   :  { %s9119_s0 = scalar_lea.vmem %s62_s29, 16  ;;  %s9123_s30 = scalar_lea.vmem %s62_s29, 32 }
  0xa2   :  { %p9120_p11 = scmp.ne.s32.totalorder %s62_s29, %s9119_s0  ;;  %p9124_p12 = scmp.lt.s32.totalorder %s62_s29, %s62_s29 }
  0xa3   :  { %p9125_p13 = scmp.lt.s32.totalorder %s9123_s30, %s9119_s0 }
  0xa5   :  { %p9126_p0 = por %p9125_p13, %p9124_p12 }
  0xa7   :  { %p9127_p1 = pnand %p9126_p0, %p9120_p11 }
  0xa9   :  { %9130 = shalt.err (!%p9127_p1)
}
  0xaa   :  { %64 = dma.hbm_to_vmem [thread:$0]  %s14764_s2, 16, %s62_s29, [#allocation9]  }
  0xab   :  { %s9322_s1 = smov [#allocation13]   ;;  %s9323_s17 = smov [#allocation16]  }
  0xac   :  { %s83_s5 = sshll.u32 %s9322_s1, 4  ;;  %s103_s18 = sshll.u32 %s9323_s17, 4  ;;  %s84_s5 = int_to_ptr.vmem [resolvable:$true] %s83_s5  ;;  %s104_s18 = int_to_ptr.vmem [resolvable:$true] %s103_s18 }
  0xad   :  { %s9131_s19 = scalar_lea.hbm %s14766_s4, 32 }
  0xae   :  { %p9132_p2 = scmp.ne.s32.totalorder %s14766_s4, %s9131_s19  ;;  %p9135_p3 = scmp.lt.u32.totalorder %s9131_s19, %s14766_s4 }
  0xb0   :  { %p9137_p4 = pnand %p9135_p3, %p9132_p2 }
  0xb2   :  { %9140 = shalt.err (!%p9137_p4)
}
  0xb3   :  { %s9141_s2 = scalar_lea.vmem %s84_s5, 32  ;;  %p9146_p6 = scmp.lt.s32.totalorder %s84_s5, %s84_s5 }
  0xb4   :  { %p9142_p5 = scmp.ne.s32.totalorder %s84_s5, %s9141_s2  ;;  %p9147_p7 = scmp.lt.s32.totalorder %s9141_s2, %s9141_s2 }
  0xb6   :  { %p9148_p8 = por %p9147_p7, %p9146_p6 }
  0xb8   :  { %p9149_p9 = pnand %p9148_p8, %p9142_p5 }
  0xba   :  { %9152 = shalt.err (!%p9149_p9)
}
  0xbb   :  { %86 = dma.hbm_to_vmem [thread:$0]  %s14766_s4, 32, %s84_s5, [#allocation12]  }
  0xbc   :  { %s9153_s0 = scalar_lea.hbm %s14768_s6, 32 }
  0xbd   :  { %p9154_p10 = scmp.ne.s32.totalorder %s14768_s6, %s9153_s0  ;;  %p9157_p11 = scmp.lt.u32.totalorder %s9153_s0, %s14768_s6 }
  0xbf   :  { %p9159_p12 = pnand %p9157_p11, %p9154_p10 }
  0xc1   :  { %9162 = shalt.err (!%p9159_p12)
}
  0xc2   :  { %s9163_s17 = scalar_lea.vmem %s104_s18, 32  ;;  %p9168_p0 = scmp.lt.s32.totalorder %s104_s18, %s104_s18 }
  0xc3   :  { %p9164_p13 = scmp.ne.s32.totalorder %s104_s18, %s9163_s17  ;;  %p9169_p1 = scmp.lt.s32.totalorder %s9163_s17, %s9163_s17 }
  0xc5   :  { %p9170_p2 = por %p9169_p1, %p9168_p0 }
  0xc7   :  { %p9171_p3 = pnand %p9170_p2, %p9164_p13 }
  0xc9   :  { %9174 = shalt.err (!%p9171_p3)
}
  0xca   :  { %106 = dma.hbm_to_vmem [thread:$0]  %s14768_s6, 32, %s104_s18, [#allocation15]  }
  0xcb   :  { %s9324_s13 = smov [#allocation19]   ;;  %s9325_s19 = smov [#allocation22]  }
  0xcc   :  { %s125_s24 = sshll.u32 %s9324_s13, 4  ;;  %s145_s11 = sshll.u32 %s9325_s19, 4  ;;  %s126_s24 = int_to_ptr.vmem [resolvable:$true] %s125_s24  ;;  %s146_s11 = int_to_ptr.vmem [resolvable:$true] %s145_s11 }
  0xcd   :  { %s9175_s9 = scalar_lea.hbm %s14770_s8, 64 }
  0xce   :  { %p9176_p4 = scmp.ne.s32.totalorder %s14770_s8, %s9175_s9  ;;  %p9179_p5 = scmp.lt.u32.totalorder %s9175_s9, %s14770_s8 }
  0xd0   :  { %p9181_p6 = pnand %p9179_p5, %p9176_p4 }
  0xd2   :  { %9184 = shalt.err (!%p9181_p6)
}
  0xd3   :  { %s9185_s6 = scalar_lea.vmem %s126_s24, 64  ;;  %p9190_p8 = scmp.lt.s32.totalorder %s126_s24, %s126_s24 }
  0xd4   :  { %p9186_p7 = scmp.ne.s32.totalorder %s126_s24, %s9185_s6  ;;  %p9191_p9 = scmp.lt.s32.totalorder %s9185_s6, %s9185_s6 }
  0xd6   :  { %p9192_p10 = por %p9191_p9, %p9190_p8 }
  0xd8   :  { %p9193_p11 = pnand %p9192_p10, %p9186_p7 }
  0xda   :  { %9196 = shalt.err (!%p9193_p11)
}
  0xdb   :  { %128 = dma.hbm_to_vmem [thread:$0]  %s14770_s8, 64, %s126_s24, [#allocation18]  }
  0xdc   :  { %s9197_s27 = scalar_lea.hbm %s14772_s10, 64 }
  0xdd   :  { %p9198_p12 = scmp.ne.s32.totalorder %s14772_s10, %s9197_s27  ;;  %p9201_p13 = scmp.lt.u32.totalorder %s9197_s27, %s14772_s10 }
  0xdf   :  { %p9203_p0 = pnand %p9201_p13, %p9198_p12 }
  0xe1   :  { %9206 = shalt.err (!%p9203_p0)
}
  0xe2   :  { %s9207_s5 = scalar_lea.vmem %s146_s11, 64  ;;  %p9212_p2 = scmp.lt.s32.totalorder %s146_s11, %s146_s11 }
  0xe3   :  { %p9208_p1 = scmp.ne.s32.totalorder %s146_s11, %s9207_s5  ;;  %p9213_p3 = scmp.lt.s32.totalorder %s9207_s5, %s9207_s5 }
  0xe5   :  { %p9214_p4 = por %p9213_p3, %p9212_p2 }
  0xe7   :  { %p9215_p5 = pnand %p9214_p4, %p9208_p1 }
  0xe9   :  { %9218 = shalt.err (!%p9215_p5)
}
  0xea   :  { %148 = dma.hbm_to_vmem [thread:$0]  %s14772_s10, 64, %s146_s11, [#allocation21]  }
  0xeb   :  { %s9326_s24 = smov [#allocation25]   ;;  %s9327_s26 = smov [#allocation28]  }
  0xec   :  { %s165_s19 = sshll.u32 %s9326_s24, 4  ;;  %s185_s21 = sshll.u32 %s9327_s26, 4  ;;  %s166_s19 = int_to_ptr.vmem [resolvable:$true] %s165_s19  ;;  %s186_s21 = int_to_ptr.vmem [resolvable:$true] %s185_s21 }
  0xed   :  { %s9219_s29 = scalar_lea.hbm %s14774_s12, 128 }
  0xee   :  { %p9220_p6 = scmp.ne.s32.totalorder %s14774_s12, %s9219_s29  ;;  %p9223_p7 = scmp.lt.u32.totalorder %s9219_s29, %s14774_s12 }
  0xf0   :  { %p9225_p8 = pnand %p9223_p7, %p9220_p6 }
  0xf2   :  { %9228 = shalt.err (!%p9225_p8)
}
  0xf3   :  { %s9229_s10 = scalar_lea.vmem %s166_s19, 128  ;;  %p9234_p10 = scmp.lt.s32.totalorder %s166_s19, %s166_s19 }
  0xf4   :  { %p9230_p9 = scmp.ne.s32.totalorder %s166_s19, %s9229_s10  ;;  %p9235_p11 = scmp.lt.s32.totalorder %s9229_s10, %s9229_s10 }
  0xf6   :  { %p9236_p12 = por %p9235_p11, %p9234_p10 }
  0xf8   :  { %p9237_p13 = pnand %p9236_p12, %p9230_p9 }
  0xfa   :  { %9240 = shalt.err (!%p9237_p13)
}
  0xfb   :  { %168 = dma.hbm_to_vmem [thread:$0]  %s14774_s12, 128, %s166_s19, [#allocation24]  }
  0xfc   :  { %s9241_s27 = scalar_lea.hbm %s14776_s14, 112 }
  0xfd   :  { %p9242_p0 = scmp.ne.s32.totalorder %s14776_s14, %s9241_s27  ;;  %p9245_p1 = scmp.lt.u32.totalorder %s9241_s27, %s14776_s14 }
  0xff   :  { %p9247_p2 = pnand %p9245_p1, %p9242_p0 }
 0x101   :  { %9250 = shalt.err (!%p9247_p2)
}
 0x102   :  { %s9251_s5 = scalar_lea.vmem %s186_s21, 112  ;;  %s9255_s8 = scalar_lea.vmem %s186_s21, 128 }
 0x103   :  { %p9252_p3 = scmp.ne.s32.totalorder %s186_s21, %s9251_s5  ;;  %p9256_p4 = scmp.lt.s32.totalorder %s186_s21, %s186_s21 }
 0x104   :  { %p9257_p5 = scmp.lt.s32.totalorder %s9255_s8, %s9251_s5 }
 0x106   :  { %p9258_p6 = por %p9257_p5, %p9256_p4 }
 0x108   :  { %p9259_p7 = pnand %p9258_p6, %p9252_p3 }
 0x10a   :  { %9262 = shalt.err (!%p9259_p7)
}
 0x10b   :  { %188 = dma.hbm_to_vmem [thread:$0]  %s14776_s14, 112, %s186_s21, [#allocation27]  }
 0x10c   :  { %9285 = dma.done.wait [#allocation6], 4096  }
 0x10d   :  { %9286 = vsyncadd [#allocation6], 4294963200 }
 0x10e   :  { %9287 = dma.done.wait [#allocation9], 2064  }
 0x10f   :  { %9288 = vsyncadd [#allocation9], 4294965232 }
 0x110   :  { %9289 = dma.done.wait [#allocation12], 2080  }
 0x111   :  { %9290 = vsyncadd [#allocation12], 4294965216 }
 0x112   :  { %9291 = dma.done.wait [#allocation15], 64  }
 0x113   :  { %9292 = vsyncadd [#allocation15], 4294967232 }
 0x114   :  { %9293 = dma.done.wait [#allocation18], 8256  }
 0x115   :  { %9294 = vsyncadd [#allocation18], 4294959040 }
 0x116   :  { %9295 = dma.done.wait [#allocation21], 128  }
 0x117   :  { %9296 = vsyncadd [#allocation21], 4294967168 }
 0x118   :  { %9297 = dma.done.wait [#allocation24], 256  }
 0x119   :  { %9298 = vsyncadd [#allocation24], 4294967040 }
 0x11a   :  { %9299 = dma.done.wait [#allocation27], 240  }
 0x11b   :  { %9300 = vsyncadd [#allocation27], 4294967056  ;;  %s239_s24 = sld [smem:[#allocation0]]   ;;  %s9328_s19 = smov 1024  }
 0x11c   :  { %251 = sst [smem:[#allocation31]] %s9328_s19  ;;  %s9329_s14 = smov [#allocation2]  }
 0x11d   :  { %253 = sst [smem:[#allocation31 + $0x1]] %s9328_s19  ;;  %s247_s26 = sshll.u32 %s9329_s14, 4  ;;  %s248_s26 = int_to_ptr.vmem [resolvable:$true] %s247_s26 }
 0x11e   :  { %255 = sst [smem:[#allocation31 + $0x2]] %s9312_s28  ;;  %s9330_s21 = smov 512  }
 0x11f   :  { %257 = sst [smem:[#allocation31 + $0x3]] %s9308_s20  ;;  %s15197_s29 = smov 4  }
 0x120   :  { %259 = sst [smem:[#allocation31 + $0x4]] %s9311_s25  ;;  %s9331_s7 = smov 2  }
 0x121   :  { %263 = sst [smem:[#allocation31 + $0x6]] %s9330_s21  ;;  %s7442_s9 = sshll.u32 %s239_s24, 26 }
 0x122   :  { %265 = sst [smem:[#allocation31 + $0x7]] %s9308_s20  ;;  %s7443_s2 = sadd.s32 134217728, %s7442_s9 }
 0x123   :  { %267 = sst [smem:[#allocation31 + $0x8]] %s15197_s29  ;;  %s9332_s23 = smov [#allocation4]  }
 0x124   :  { %261 = sst [smem:[#allocation31 + $0x5]] %s9331_s7  ;;  %s9333_s6 = smov [#allocation30]  }
 0x125   :  { %269 = dma.general %s14777_s15, 32768, %s248_s26, %s9332_s23, %s9333_s6, [#allocation31], %s7443_s2, 0  }
 0x126   :  { %s9334_s10 = smov 896   ;;  %s9335_s11 = smov 7  }
 0x127   :  { %286 = sst [smem:[#allocation33]] %s9334_s10  ;;  %s9336_s22 = smov [#allocation3]  }
 0x128   :  { %288 = sst [smem:[#allocation33 + $0x1]] %s9334_s10  ;;  %s282_s0 = sshll.u32 %s9336_s22, 4  ;;  %s283_s0 = int_to_ptr.vmem [resolvable:$true] %s282_s0 }
 0x129   :  { %290 = sst [smem:[#allocation33 + $0x2]] %s9335_s11  ;;  %s9337_s30 = smov 448  }
 0x12a   :  { %292 = sst [smem:[#allocation33 + $0x3]] %s9308_s20  ;;  %s9338_s15 = smov [#allocation4 + $0x1]  }
 0x12b   :  { %294 = sst [smem:[#allocation33 + $0x4]] %s9311_s25  ;;  %s9339_s27 = smov [#allocation32]  }
 0x12c   :  { %296 = sst [smem:[#allocation33 + $0x5]] %s9331_s7 }
 0x12d   :  { %298 = sst [smem:[#allocation33 + $0x6]] %s9337_s30 }
 0x12e   :  { %300 = sst [smem:[#allocation33 + $0x7]] %s9308_s20 }
 0x12f   :  { %302 = sst [smem:[#allocation33 + $0x8]] %s15197_s29 }
 0x130   :  { %304 = dma.general %s14778_s16, 57344, %s283_s0, %s9338_s15, %s9339_s27, [#allocation33], %s7443_s2, 0  }
 0x131   :  { %v8541_v0 = vld [vmem:[#allocation8 + $0x40] sm:$0xff]   ;;  %v8543_v2 = vld [vmem:[#allocation8 + $0x48] sm:$0xff]   ;;  %v8545_v4 = vld [vmem:[#allocation8 + $0x50] sm:$0xff]  }
 0x132   :  { %v8542_v1 = vld [vmem:[#allocation8] sm:$0xff]   ;;  %7545 = vmatprep.subr.bf16.mxu0 %v8541_v0  ;;  %v8544_v3 = vld [vmem:[#allocation8 + $0x8] sm:$0xff]   ;;  %v8546_v5 = vld [vmem:[#allocation8 + $0x10] sm:$0xff]  }
 0x133   :  { %7546 = vmatpush3.bf16.msra.mxu0 %v8542_v1  ;;  %v8547_v6 = vld [vmem:[#allocation8 + $0x58] sm:$0xff]   ;;  %v8549_v8 = vld [vmem:[#allocation8 + $0x60] sm:$0xff]   ;;  %v8551_v10 = vld [vmem:[#allocation8 + $0x68] sm:$0xff]  }
 0x134   :  { %7547 = vmatprep.subr.bf16.mxu0 %v8543_v2  ;;  %v8548_v7 = vld [vmem:[#allocation8 + $0x18] sm:$0xff]   ;;  %v8550_v9 = vld [vmem:[#allocation8 + $0x20] sm:$0xff]   ;;  %v306_v11 = vld [vmem:[#allocation5 + $0x8] sm:$0xff] }
 0x135   :  { %v308_v12 = vld [vmem:[#allocation5 + $0x18] sm:$0xff]  ;;  %v8552_v14 = vld [vmem:[#allocation8 + $0x28] sm:$0xff]   ;;  %v8553_v15 = vld [vmem:[#allocation8 + $0x70] sm:$0xff]  }
 0x136   :  { %v338_v13 = vpack.c.bf16 %v308_v12, %v306_v11  ;;  %v8554_v16 = vld [vmem:[#allocation8 + $0x30] sm:$0xff]   ;;  %v8555_v17 = vld [vmem:[#allocation8 + $0x78] sm:$0xff]   ;;  %v305_v19 = vld [vmem:[#allocation5] sm:$0xff] }
 0x137   :  { %7548 = vmatpush3.bf16.msra.mxu0 %v8544_v3  ;;  %v8556_v18 = vld [vmem:[#allocation8 + $0x38] sm:$0xff]   ;;  %v307_v20 = vld [vmem:[#allocation5 + $0x10] sm:$0xff]  ;;  %v310_v21 = vld [vmem:[#allocation5 + $0x28] sm:$0xff] }
 0x138   :  { %7549 = vmatprep.subr.bf16.mxu0 %v8545_v4  ;;  %520 = vmatprep.mubr.bf16.mxu0 %v338_v13  ;;  %v312_v22 = vld [vmem:[#allocation5 + $0x38] sm:$0xff]  ;;  %v8557_v23 = vld [vmem:[#allocation11 + $0x4] ss:$8 sps:$4 sm:$0xff]   ;;  %v8559_v24 = vld [vmem:[#allocation11] ss:$8 sps:$4 sm:$0xff]   ;;  %v337_v26 = vpack.c.bf16 %v307_v20, %v305_v19 }
 0x139   :  { %v8560_v25 = vld [vmem:[#allocation11 + $0x14] ss:$8 sps:$4 sm:$0xff]   ;;  %717 = vmatprep.subr.bf16.mxu1 %v8557_v23  ;;  %v8562_v27 = vld [vmem:[#allocation11 + $0x10] ss:$8 sps:$4 sm:$0xff]   ;;  %v340_v28 = vpack.c.bf16 %v312_v22, %v310_v21  ;;  %v8563_v29 = vld [vmem:[#allocation11 + $0x24] ss:$8 sps:$4 sm:$0xff]  }
 0x13a   :  { %718 = vmatpush1.bf16.msra.mxu1 %v8559_v24  ;;  %v8565_v30 = vld [vmem:[#allocation11 + $0x20] ss:$8 sps:$4 sm:$0xff]   ;;  %v311_v32 = vld [vmem:[#allocation5 + $0x30] sm:$0xff]  ;;  %v316_v35 = vld [vmem:[#allocation5 + $0x58] sm:$0xff] }
 0x13b   :  { %7550 = vmatpush3.bf16.msra.mxu0 %v8546_v5  ;;  %719 = vmatprep.subr.bf16.mxu1 %v8560_v25  ;;  %v309_v31 = vld [vmem:[#allocation5 + $0x20] sm:$0xff]  ;;  %v314_v34 = vld [vmem:[#allocation5 + $0x48] sm:$0xff]  ;;  %v8568_v36 = vld [vmem:[#allocation11 + $0x30] ss:$8 sps:$4 sm:$0xff]  }
 0x13c   :  { %7551 = vmatprep.subr.bf16.mxu0 %v8547_v6  ;;  %v8566_v33 = vld [vmem:[#allocation11 + $0x34] ss:$8 sps:$4 sm:$0xff]   ;;  %v8569_v37 = vld [vmem:[#allocation11 + $0x44] ss:$8 sps:$4 sm:$0xff]   ;;  %v339_v38 = vpack.c.bf16 %v311_v32, %v309_v31  ;;  %v342_v39 = vpack.c.bf16 %v316_v35, %v314_v34  ;;  %v8571_v40 = vld [vmem:[#allocation11 + $0x40] ss:$8 sps:$4 sm:$0xff]  }
 0x13d   :  { %v313_v41 = vld [vmem:[#allocation5 + $0x40] sm:$0xff]  ;;  %v315_v42 = vld [vmem:[#allocation5 + $0x50] sm:$0xff]  ;;  %v318_v43 = vld [vmem:[#allocation5 + $0x68] sm:$0xff] }
 0x13e   :  { %720 = vmatpush1.bf16.msra.mxu1 %v8562_v27  ;;  %v320_v44 = vld [vmem:[#allocation5 + $0x78] sm:$0xff]  ;;  %v341_v45 = vpack.c.bf16 %v315_v42, %v313_v41  ;;  %v317_v47 = vld [vmem:[#allocation5 + $0x60] sm:$0xff]  ;;  %v319_v48 = vld [vmem:[#allocation5 + $0x70] sm:$0xff] }
 0x13f   :  { %7552 = vmatpush3.bf16.msra.mxu0 %v8548_v7  ;;  %721 = vmatprep.subr.bf16.mxu1 %v8563_v29  ;;  %v344_v46 = vpack.c.bf16 %v320_v44, %v318_v43  ;;  %v322_v49 = vld [vmem:[#allocation5 + $0x88] sm:$0xff]  ;;  %v324_v50 = vld [vmem:[#allocation5 + $0x98] sm:$0xff]  ;;  %v343_v51 = vpack.c.bf16 %v319_v48, %v317_v47  ;;  %v321_v53 = vld [vmem:[#allocation5 + $0x80] sm:$0xff] }
 0x140   :  { %7553 = vmatprep.subr.bf16.mxu0 %v8549_v8  ;;  %v346_v52 = vpack.c.bf16 %v324_v50, %v322_v49  ;;  %v323_v54 = vld [vmem:[#allocation5 + $0x90] sm:$0xff]  ;;  %v326_v55 = vld [vmem:[#allocation5 + $0xa8] sm:$0xff]  ;;  %v328_v56 = vld [vmem:[#allocation5 + $0xb8] sm:$0xff] }
 0x141   :  { %v345_v57 = vpack.c.bf16 %v323_v54, %v321_v53  ;;  %v348_v58 = vpack.c.bf16 %v328_v56, %v326_v55  ;;  %v325_v59 = vld [vmem:[#allocation5 + $0xa0] sm:$0xff]  ;;  %v327_v60 = vld [vmem:[#allocation5 + $0xb0] sm:$0xff]  ;;  %v330_v61 = vld [vmem:[#allocation5 + $0xc8] sm:$0xff] }
 0x142   :  { %722 = vmatpush1.bf16.msra.mxu1 %v8565_v30  ;;  %v332_v62 = vld [vmem:[#allocation5 + $0xd8] sm:$0xff]  ;;  %v347_v63 = vpack.c.bf16 %v327_v60, %v325_v59  ;;  %v329_v1 = vld [vmem:[#allocation5 + $0xc0] sm:$0xff]  ;;  %v331_v2 = vld [vmem:[#allocation5 + $0xd0] sm:$0xff] }
 0x143   :  { %7554 = vmatpush3.bf16.msra.mxu0 %v8550_v9  ;;  %723 = vmatprep.subr.bf16.mxu1 %v8566_v33  ;;  %v350_v0 = vpack.c.bf16 %v332_v62, %v330_v61  ;;  %v334_v3 = vld [vmem:[#allocation5 + $0xe8] sm:$0xff]  ;;  %v336_v4 = vld [vmem:[#allocation5 + $0xf8] sm:$0xff]  ;;  %v349_v5 = vpack.c.bf16 %v331_v2, %v329_v1  ;;  %v333_v7 = vld [vmem:[#allocation5 + $0xe0] sm:$0xff] }
 0x144   :  { %7555 = vmatprep.subr.bf16.mxu0 %v8551_v10  ;;  %v352_v6 = vpack.c.bf16 %v336_v4, %v334_v3  ;;  %v335_v8 = vld [vmem:[#allocation5 + $0xf0] sm:$0xff]  ;;  %v8577_v13 = vld [vmem:[#allocation11 + $0x60] ss:$8 sps:$4 sm:$0xff]  }
 0x145   :  { %v351_v9 = vpack.c.bf16 %v335_v8, %v333_v7  ;;  %v8572_v10 = vld [vmem:[#allocation11 + $0x54] ss:$8 sps:$4 sm:$0xff]   ;;  %v8574_v11 = vld [vmem:[#allocation11 + $0x50] ss:$8 sps:$4 sm:$0xff]   ;;  %v8575_v12 = vld [vmem:[#allocation11 + $0x64] ss:$8 sps:$4 sm:$0xff]  }
 0x146   :  { %724 = vmatpush1.bf16.msra.mxu1 %v8568_v36 }
 0x147   :  { %7556 = vmatpush3.bf16.msra.mxu0 %v8552_v14  ;;  %725 = vmatprep.subr.bf16.mxu1 %v8569_v37  ;;  %v8578_v14 = vld [vmem:[#allocation11 + $0x74] ss:$8 sps:$4 sm:$0xff]  }
 0x148   :  { %7557 = vmatprep.subr.bf16.mxu0 %v8553_v15  ;;  %v8580_v15 = vld [vmem:[#allocation11 + $0x70] ss:$8 sps:$4 sm:$0xff]  }
 0x14a   :  { %726 = vmatpush1.bf16.msra.mxu1 %v8571_v40 }
 0x14b   :  { %7558 = vmatpush3.bf16.msra.mxu0 %v8554_v16  ;;  %727 = vmatprep.subr.bf16.mxu1 %v8572_v10  ;;  %v9340_v16 = vmov 0  }
 0x14c   :  { %7559 = vmatprep.subr.bf16.mxu0 %v8555_v17  ;;  %749 = vmatprep.mubr.bf16.mxu1 %v9340_v16 }
 0x14e   :  { %728 = vmatpush1.bf16.msra.mxu1 %v8574_v11 }
 0x14f   :  { %7560 = vmatpush3.bf16.msra.mxu0 %v8556_v18  ;;  %729 = vmatprep.subr.bf16.mxu1 %v8575_v12  ;;  %v9643_v18 = vld [vmem:[#allocation10] ss:$0 sm:$0xff] }
 0x152   :  { %521 = vmatmul.mubr.bf16.vlgmr.msra.gmra.mrb[0].mxu0 %v337_v26  ;;  %730 = vmatpush1.bf16.msra.mxu1 %v8577_v13 }
 0x153   :  { %528 = vmatprep.mubr.bf16.mxu0 %v340_v28  ;;  %731 = vmatprep.subr.bf16.mxu1 %v8578_v14 }
 0x156   :  { %732 = vmatpush1.bf16.msra.mxu1 %v8580_v15 }
 0x15a   :  { %529 = vmatmul.mubr.bf16.gmra.mrb[4].mxu0 %v339_v38 }
 0x15b   :  { %536 = vmatprep.mubr.bf16.mxu0 %v342_v39 }
 0x162   :  { %537 = vmatmul.mubr.bf16.gmra.mrb[8].mxu0 %v341_v45 }
 0x163   :  { %544 = vmatprep.mubr.bf16.mxu0 %v344_v46 }
 0x16a   :  { %545 = vmatmul.mubr.bf16.gmra.mrb[12].mxu0 %v343_v51 }
 0x16b   :  { %552 = vmatprep.mubr.bf16.mxu0 %v346_v52 }
 0x172   :  { %553 = vmatmul.mubr.bf16.gmra.mrb[16].mxu0 %v345_v57 }
 0x173   :  { %560 = vmatprep.mubr.bf16.mxu0 %v348_v58 }
 0x17a   :  { %561 = vmatmul.mubr.bf16.gmra.mrb[20].mxu0 %v347_v63 }
 0x17b   :  { %568 = vmatprep.mubr.bf16.mxu0 %v350_v0 }
 0x182   :  { %569 = vmatmul.mubr.bf16.gmra.mrb[24].mxu0 %v349_v5 }
 0x183   :  { %576 = vmatprep.mubr.bf16.mxu0 %v352_v6 }
 0x18a   :  { %577 = vmatmul.mubr.bf16.gmra.mrb[28].mxu0 %v351_v9 }
 0x225   :  { %v7561_v17 = vpop.f32.mrb[0].mxu0 }
 0x226   :  { %v7562_v19 = vpop.f32.mrb[1].mxu0 }
 0x227   :  { %v7563_v20 = vadd.f32 %v7562_v19, %v7561_v17  ;;  %v7564_v21 = vpop.f32.mrb[2].mxu0 }
 0x228   :  { %v7565_v22 = vpop.f32.mrb[3].mxu0 }
 0x229   :  { %v523_v23 = vadd.f32 %v7563_v20, %v9643_v18  ;;  %v7566_v24 = vadd.f32 %v7565_v22, %v7564_v21 }
 0x22b   :  { %v526_v25 = vadd.f32 %v7566_v24, %v9643_v18  ;;  %v585_v26 = vmax.f32 %v523_v23, 0.0 }
 0x22d   :  { %v586_v27 = vmax.f32 %v526_v25, 0.0  ;;  %v7567_v28 = vpop.f32.mrb[4].mxu0 }
 0x22e   :  { %v7568_v29 = vpop.f32.mrb[5].mxu0 }
 0x22f   :  { %v7569_v30 = vadd.f32 %v7568_v29, %v7567_v28  ;;  %v7570_v31 = vpop.f32.mrb[6].mxu0  ;;  %v601_v32 = vpack.c.bf16 %v586_v27, %v585_v26 }
 0x230   :  { %v7571_v33 = vpop.f32.mrb[7].mxu0 }
 0x231   :  { %v531_v34 = vadd.f32 %v7569_v30, %v9643_v18  ;;  %v7572_v35 = vadd.f32 %v7571_v33, %v7570_v31  ;;  %750 = vmatmul.mubr.bf16.vlgmr.msra.gmra.mrb[0].mxu1 %v601_v32 }
 0x232   :  { %759 = vmatprep.mubr.bf16.mxu1 %v9340_v16 }
 0x233   :  { %v534_v36 = vadd.f32 %v7572_v35, %v9643_v18  ;;  %v587_v37 = vmax.f32 %v531_v34, 0.0 }
 0x235   :  { %v588_v38 = vmax.f32 %v534_v36, 0.0  ;;  %v7573_v39 = vpop.f32.mrb[8].mxu0 }
 0x236   :  { %v7574_v40 = vpop.f32.mrb[9].mxu0 }
 0x237   :  { %v7575_v41 = vadd.f32 %v7574_v40, %v7573_v39  ;;  %v7576_v42 = vpop.f32.mrb[10].mxu0  ;;  %v602_v43 = vpack.c.bf16 %v588_v38, %v587_v37 }
 0x238   :  { %v7577_v44 = vpop.f32.mrb[11].mxu0 }
 0x239   :  { %v539_v45 = vadd.f32 %v7575_v41, %v9643_v18  ;;  %v7578_v46 = vadd.f32 %v7577_v44, %v7576_v42  ;;  %760 = vmatmul.mubr.bf16.gmra.mrb[4].mxu1 %v602_v43  ;;  %v8583_v44 = vld [vmem:[#allocation17 + $0x4] ss:$16 sps:$4 sm:$0xff]  }
 0x23a   :  { %769 = vmatprep.mubr.bf16.mxu1 %v9340_v16  ;;  %1564 = vmatprep.subr.bf16.mxu0 %v8583_v44  ;;  %v627_v44 = vlaneseq }
 0x23b   :  { %v542_v47 = vadd.f32 %v7578_v46, %v9643_v18  ;;  %v589_v48 = vmax.f32 %v539_v45, 0.0  ;;  %v8586_v45 = vld [vmem:[#allocation17 + $0xc] ss:$16 sps:$4 sm:$0xff]   ;;  %v8581_v46 = vld [vmem:[#allocation17] ss:$16 sps:$4 sm:$0xff]  }
 0x23c   :  { %1677 = vmatprep.subr.bf16.mxu1 %v8586_v45  ;;  %1565 = vmatpush1.bf16.msra.mxu0 %v8581_v46  ;;  %v9668_v45 = vshrl.u32 %v627_v44, 7 }
 0x23d   :  { %v590_v49 = vmax.f32 %v542_v47, 0.0  ;;  %v7579_v50 = vpop.f32.mrb[12].mxu0  ;;  %v8584_v47 = vld [vmem:[#allocation17 + $0x8] ss:$16 sps:$4 sm:$0xff]  }
 0x23e   :  { %v7580_v51 = vpop.f32.mrb[13].mxu0  ;;  %1678 = vmatpush1.bf16.msra.mxu1 %v8584_v47  ;;  %15198 = vst [vmem:[#allocation45_spill] sm:$0xff] %v9668_v45  ;;  %v9671_v46 = vsub.s32 0, %v9668_v45  ;;  %v625_v47 = vld [vmem:[#allocation13] sm:$0x3] }
 0x23f   :  { %v7581_v52 = vadd.f32 %v7580_v51, %v7579_v50  ;;  %v7582_v53 = vpop.f32.mrb[14].mxu0  ;;  %v603_v54 = vpack.c.bf16 %v590_v49, %v589_v48  ;;  %v8589_v48 = vld [vmem:[#allocation17 + $0x24] ss:$16 sps:$4 sm:$0xff]   ;;  %v8592_v49 = vld [vmem:[#allocation17 + $0x2c] ss:$16 sps:$4 sm:$0xff]  }
 0x240   :  { %v7583_v55 = vpop.f32.mrb[15].mxu0  ;;  %v8587_v50 = vld [vmem:[#allocation17 + $0x20] ss:$16 sps:$4 sm:$0xff]   ;;  %v8590_v51 = vld [vmem:[#allocation17 + $0x28] ss:$16 sps:$4 sm:$0xff]   ;;  %1566 = vmatprep.subr.bf16.mxu0 %v8589_v48  ;;  %1679 = vmatprep.subr.bf16.mxu1 %v8592_v49  ;;  %15199 = vst [vmem:[#allocation46_spill] sm:$0xff] %v9671_v46  ;;  %v9677_v49 = vrot.slane %v625_v47, %v9671_v46 }
 0x241   :  { %v547_v56 = vadd.f32 %v7581_v52, %v9643_v18  ;;  %v7584_v57 = vadd.f32 %v7583_v55, %v7582_v53  ;;  %770 = vmatmul.mubr.bf16.gmra.mrb[8].mxu1 %v603_v54  ;;  %1567 = vmatpush1.bf16.msra.mxu0 %v8587_v50  ;;  %v8593_v52 = vld [vmem:[#allocation17 + $0x40] ss:$16 sps:$4 sm:$0xff]   ;;  %v8596_v53 = vld [vmem:[#allocation17 + $0x48] ss:$16 sps:$4 sm:$0xff]   ;;  %v8601_v54 = vld [vmem:[#allocation17 + $0x64] ss:$16 sps:$4 sm:$0xff]  }
 0x242   :  { %779 = vmatprep.mubr.bf16.mxu1 %v9340_v16  ;;  %1680 = vmatpush1.bf16.msra.mxu1 %v8590_v51  ;;  %v8604_v55 = vld [vmem:[#allocation17 + $0x6c] ss:$16 sps:$4 sm:$0xff]   ;;  %v9674_v48 = vsub.s32 1, %v9668_v45 }
 0x243   :  { %v550_v58 = vadd.f32 %v7584_v57, %v9643_v18  ;;  %v591_v59 = vmax.f32 %v547_v56, 0.0  ;;  %v8599_v56 = vld [vmem:[#allocation17 + $0x60] ss:$16 sps:$4 sm:$0xff]   ;;  %v8602_v57 = vld [vmem:[#allocation17 + $0x68] ss:$16 sps:$4 sm:$0xff]  }
 0x244   :  { %15200 = vst [vmem:[#allocation47_spill] sm:$0xff] %v9674_v48  ;;  %v9680_v50 = vrot.slane %v625_v47, %v9674_v48 }
 0x245   :  { %v592_v60 = vmax.f32 %v550_v58, 0.0  ;;  %v7585_v61 = vpop.f32.mrb[16].mxu0  ;;  %v8607_v58 = vld [vmem:[#allocation17 + $0x84] ss:$16 sps:$4 sm:$0xff]  }
 0x246   :  { %v7586_v62 = vpop.f32.mrb[17].mxu0 }
 0x247   :  { %v7587_v63 = vadd.f32 %v7586_v62, %v7585_v61  ;;  %v7588_v0 = vpop.f32.mrb[18].mxu0  ;;  %v604_v1 = vpack.c.bf16 %v592_v60, %v591_v59  ;;  %v8610_v59 = vld [vmem:[#allocation17 + $0x8c] ss:$16 sps:$4 sm:$0xff]   ;;  %v8605_v60 = vld [vmem:[#allocation17 + $0x80] ss:$16 sps:$4 sm:$0xff]  }
 0x248   :  { %v7589_v2 = vpop.f32.mrb[19].mxu0  ;;  %v8608_v61 = vld [vmem:[#allocation17 + $0x88] ss:$16 sps:$4 sm:$0xff]   ;;  %v8613_v62 = vld [vmem:[#allocation17 + $0xa4] ss:$16 sps:$4 sm:$0xff]  }
 0x249   :  { %v555_v3 = vadd.f32 %v7587_v63, %v9643_v18  ;;  %v7590_v4 = vadd.f32 %v7589_v2, %v7588_v0  ;;  %780 = vmatmul.mubr.bf16.gmra.mrb[12].mxu1 %v604_v1  ;;  %v8616_v63 = vld [vmem:[#allocation17 + $0xac] ss:$16 sps:$4 sm:$0xff]   ;;  %v8611_v0 = vld [vmem:[#allocation17 + $0xa0] ss:$16 sps:$4 sm:$0xff]   ;;  %v8614_v1 = vld [vmem:[#allocation17 + $0xa8] ss:$16 sps:$4 sm:$0xff]  }
 0x24a   :  { %789 = vmatprep.mubr.bf16.mxu1 %v9340_v16  ;;  %v8619_v2 = vld [vmem:[#allocation17 + $0xc4] ss:$16 sps:$4 sm:$0xff]  }
 0x24b   :  { %v558_v5 = vadd.f32 %v7590_v4, %v9643_v18  ;;  %v593_v6 = vmax.f32 %v555_v3, 0.0  ;;  %v8622_v3 = vld [vmem:[#allocation17 + $0xcc] ss:$16 sps:$4 sm:$0xff]   ;;  %v8617_v4 = vld [vmem:[#allocation17 + $0xc0] ss:$16 sps:$4 sm:$0xff]  }
 0x24d   :  { %v594_v7 = vmax.f32 %v558_v5, 0.0  ;;  %v7591_v8 = vpop.f32.mrb[20].mxu0  ;;  %v8620_v5 = vld [vmem:[#allocation17 + $0xc8] ss:$16 sps:$4 sm:$0xff]  }
 0x24e   :  { %v7592_v9 = vpop.f32.mrb[21].mxu0 }
 0x24f   :  { %v7593_v10 = vadd.f32 %v7592_v9, %v7591_v8  ;;  %v7594_v11 = vpop.f32.mrb[22].mxu0  ;;  %v605_v12 = vpack.c.bf16 %v594_v7, %v593_v6  ;;  %v8625_v6 = vld [vmem:[#allocation17 + $0xe4] ss:$16 sps:$4 sm:$0xff]   ;;  %v8628_v7 = vld [vmem:[#allocation17 + $0xec] ss:$16 sps:$4 sm:$0xff]  }
 0x250   :  { %v7595_v13 = vpop.f32.mrb[23].mxu0  ;;  %v8623_v8 = vld [vmem:[#allocation17 + $0xe0] ss:$16 sps:$4 sm:$0xff]   ;;  %v8626_v9 = vld [vmem:[#allocation17 + $0xe8] ss:$16 sps:$4 sm:$0xff]  }
 0x251   :  { %v563_v14 = vadd.f32 %v7593_v10, %v9643_v18  ;;  %v7596_v15 = vadd.f32 %v7595_v13, %v7594_v11  ;;  %790 = vmatmul.mubr.bf16.gmra.mrb[16].mxu1 %v605_v12  ;;  %v8631_v10 = vld [vmem:[#allocation17 + $0x104] ss:$16 sps:$4 sm:$0xff]   ;;  %v8634_v11 = vld [vmem:[#allocation17 + $0x10c] ss:$16 sps:$4 sm:$0xff]   ;;  %v8629_v12 = vld [vmem:[#allocation17 + $0x100] ss:$16 sps:$4 sm:$0xff]  }
 0x252   :  { %799 = vmatprep.mubr.bf16.mxu1 %v9340_v16  ;;  %v8632_v13 = vld [vmem:[#allocation17 + $0x108] ss:$16 sps:$4 sm:$0xff]  }
 0x253   :  { %v566_v17 = vadd.f32 %v7596_v15, %v9643_v18  ;;  %v595_v19 = vmax.f32 %v563_v14, 0.0  ;;  %v8637_v14 = vld [vmem:[#allocation17 + $0x124] ss:$16 sps:$4 sm:$0xff]   ;;  %v8640_v15 = vld [vmem:[#allocation17 + $0x12c] ss:$16 sps:$4 sm:$0xff]  }
 0x255   :  { %v596_v20 = vmax.f32 %v566_v17, 0.0  ;;  %v7597_v21 = vpop.f32.mrb[24].mxu0  ;;  %v8635_v17 = vld [vmem:[#allocation17 + $0x120] ss:$16 sps:$4 sm:$0xff]  }
 0x256   :  { %v7598_v22 = vpop.f32.mrb[25].mxu0 }
 0x257   :  { %v7599_v23 = vadd.f32 %v7598_v22, %v7597_v21  ;;  %v7600_v24 = vpop.f32.mrb[26].mxu0  ;;  %v606_v25 = vpack.c.bf16 %v596_v20, %v595_v19  ;;  %v8638_v19 = vld [vmem:[#allocation17 + $0x128] ss:$16 sps:$4 sm:$0xff]   ;;  %v8643_v20 = vld [vmem:[#allocation17 + $0x144] ss:$16 sps:$4 sm:$0xff]  }
 0x258   :  { %v7601_v26 = vpop.f32.mrb[27].mxu0  ;;  %v8646_v21 = vld [vmem:[#allocation17 + $0x14c] ss:$16 sps:$4 sm:$0xff]   ;;  %v8641_v22 = vld [vmem:[#allocation17 + $0x140] ss:$16 sps:$4 sm:$0xff]  }
 0x259   :  { %v571_v27 = vadd.f32 %v7599_v23, %v9643_v18  ;;  %v7602_v28 = vadd.f32 %v7601_v26, %v7600_v24  ;;  %800 = vmatmul.mubr.bf16.gmra.mrb[20].mxu1 %v606_v25  ;;  %v8644_v23 = vld [vmem:[#allocation17 + $0x148] ss:$16 sps:$4 sm:$0xff]   ;;  %v8649_v24 = vld [vmem:[#allocation17 + $0x164] ss:$16 sps:$4 sm:$0xff]   ;;  %v8652_v25 = vld [vmem:[#allocation17 + $0x16c] ss:$16 sps:$4 sm:$0xff]  }
 0x25a   :  { %809 = vmatprep.mubr.bf16.mxu1 %v9340_v16  ;;  %v8647_v26 = vld [vmem:[#allocation17 + $0x160] ss:$16 sps:$4 sm:$0xff]  }
 0x25b   :  { %v574_v29 = vadd.f32 %v7602_v28, %v9643_v18  ;;  %v597_v30 = vmax.f32 %v571_v27, 0.0  ;;  %v8650_v27 = vld [vmem:[#allocation17 + $0x168] ss:$16 sps:$4 sm:$0xff]   ;;  %v8655_v28 = vld [vmem:[#allocation17 + $0x184] ss:$16 sps:$4 sm:$0xff]  }
 0x25d   :  { %v598_v31 = vmax.f32 %v574_v29, 0.0  ;;  %v7603_v32 = vpop.f32.mrb[28].mxu0  ;;  %v8658_v29 = vld [vmem:[#allocation17 + $0x18c] ss:$16 sps:$4 sm:$0xff]  }
 0x25e   :  { %v7604_v33 = vpop.f32.mrb[29].mxu0 }
 0x25f   :  { %v7605_v34 = vadd.f32 %v7604_v33, %v7603_v32  ;;  %v7606_v35 = vpop.f32.mrb[30].mxu0  ;;  %v607_v36 = vpack.c.bf16 %v598_v31, %v597_v30  ;;  %v8653_v30 = vld [vmem:[#allocation17 + $0x180] ss:$16 sps:$4 sm:$0xff]   ;;  %v8656_v31 = vld [vmem:[#allocation17 + $0x188] ss:$16 sps:$4 sm:$0xff]  }
 0x260   :  { %v7607_v37 = vpop.f32.mrb[31].mxu0  ;;  %v8661_v32 = vld [vmem:[#allocation17 + $0x1a4] ss:$16 sps:$4 sm:$0xff]   ;;  %v8664_v33 = vld [vmem:[#allocation17 + $0x1ac] ss:$16 sps:$4 sm:$0xff]  }
 0x261   :  { %v579_v38 = vadd.f32 %v7605_v34, %v9643_v18  ;;  %v7608_v39 = vadd.f32 %v7607_v37, %v7606_v35  ;;  %810 = vmatmul.mubr.bf16.gmra.mrb[24].mxu1 %v607_v36  ;;  %v8659_v34 = vld [vmem:[#allocation17 + $0x1a0] ss:$16 sps:$4 sm:$0xff]   ;;  %v8662_v35 = vld [vmem:[#allocation17 + $0x1a8] ss:$16 sps:$4 sm:$0xff]   ;;  %v8667_v37 = vld [vmem:[#allocation17 + $0x1c4] ss:$16 sps:$4 sm:$0xff]  }
 0x262   :  { %819 = vmatprep.mubr.bf16.mxu1 %v9340_v16  ;;  %v8595_v16 = vld [vmem:[#allocation17 + $0x44] ss:$16 sps:$4 sm:$0xff]   ;;  %v8665_v36 = vld [vmem:[#allocation17 + $0x1c0] ss:$16 sps:$4 sm:$0xff]  }
 0x263   :  { %v582_v40 = vadd.f32 %v7608_v39, %v9643_v18  ;;  %v599_v41 = vmax.f32 %v579_v38, 0.0  ;;  %v8598_v18 = vld [vmem:[#allocation17 + $0x4c] ss:$16 sps:$4 sm:$0xff]   ;;  %1568 = vmatprep.subr.bf16.mxu0 %v8595_v16  ;;  %v8668_v38 = vld [vmem:[#allocation17 + $0x1c8] ss:$16 sps:$4 sm:$0xff]  }
 0x264   :  { %1681 = vmatprep.subr.bf16.mxu1 %v8598_v18  ;;  %1569 = vmatpush1.bf16.msra.mxu0 %v8593_v52  ;;  %v8670_v39 = vld [vmem:[#allocation17 + $0x1cc] ss:$16 sps:$4 sm:$0xff]  }
 0x265   :  { %v600_v42 = vmax.f32 %v582_v40, 0.0  ;;  %1682 = vmatpush1.bf16.msra.mxu1 %v8596_v53  ;;  %1570 = vmatprep.subr.bf16.mxu0 %v8601_v54  ;;  %v8673_v40 = vld [vmem:[#allocation17 + $0x1e4] ss:$16 sps:$4 sm:$0xff]  }
 0x266   :  { %1683 = vmatprep.subr.bf16.mxu1 %v8604_v55 }
 0x267   :  { %v608_v43 = vpack.c.bf16 %v600_v42, %v599_v41  ;;  %v8676_v41 = vld [vmem:[#allocation17 + $0x1ec] ss:$16 sps:$4 sm:$0xff]   ;;  %v8671_v42 = vld [vmem:[#allocation17 + $0x1e0] ss:$16 sps:$4 sm:$0xff]  }
 0x268   :  { %1571 = vmatpush1.bf16.msra.mxu0 %v8599_v56 }
 0x269   :  { %820 = vmatmul.mubr.bf16.gmra.mrb[28].mxu1 %v608_v43  ;;  %1572 = vmatprep.subr.bf16.mxu0 %v8607_v58  ;;  %v8674_v43 = vld [vmem:[#allocation17 + $0x1e8] ss:$16 sps:$4 sm:$0xff]  }
 0x26a   :  { %1684 = vmatpush1.bf16.msra.mxu1 %v8602_v57 }
 0x26b   :  { %1685 = vmatprep.subr.bf16.mxu1 %v8610_v59 }
 0x26c   :  { %1573 = vmatpush1.bf16.msra.mxu0 %v8605_v60 }
 0x26d   :  { %1574 = vmatprep.subr.bf16.mxu0 %v8613_v62 }
 0x26e   :  { %1686 = vmatpush1.bf16.msra.mxu1 %v8608_v61 }
 0x26f   :  { %1687 = vmatprep.subr.bf16.mxu1 %v8616_v63 }
 0x270   :  { %1575 = vmatpush1.bf16.msra.mxu0 %v8611_v0 }
 0x271   :  { %1576 = vmatprep.subr.bf16.mxu0 %v8619_v2 }
 0x272   :  { %1688 = vmatpush1.bf16.msra.mxu1 %v8614_v1 }
 0x273   :  { %1689 = vmatprep.subr.bf16.mxu1 %v8622_v3 }
 0x274   :  { %1577 = vmatpush1.bf16.msra.mxu0 %v8617_v4 }
 0x275   :  { %1578 = vmatprep.subr.bf16.mxu0 %v8625_v6 }
 0x276   :  { %1690 = vmatpush1.bf16.msra.mxu1 %v8620_v5 }
 0x277   :  { %1691 = vmatprep.subr.bf16.mxu1 %v8628_v7 }
 0x278   :  { %1579 = vmatpush1.bf16.msra.mxu0 %v8623_v8 }
 0x279   :  { %1580 = vmatprep.subr.bf16.mxu0 %v8631_v10 }
 0x27a   :  { %1692 = vmatpush1.bf16.msra.mxu1 %v8626_v9 }
 0x27b   :  { %1693 = vmatprep.subr.bf16.mxu1 %v8634_v11 }
 0x27c   :  { %1581 = vmatpush1.bf16.msra.mxu0 %v8629_v12 }
 0x27d   :  { %1582 = vmatprep.subr.bf16.mxu0 %v8637_v14 }
 0x27e   :  { %1694 = vmatpush1.bf16.msra.mxu1 %v8632_v13 }
 0x27f   :  { %1695 = vmatprep.subr.bf16.mxu1 %v8640_v15 }
 0x280   :  { %1583 = vmatpush1.bf16.msra.mxu0 %v8635_v17 }
 0x281   :  { %1584 = vmatprep.subr.bf16.mxu0 %v8643_v20 }
 0x282   :  { %1696 = vmatpush1.bf16.msra.mxu1 %v8638_v19 }
 0x283   :  { %1697 = vmatprep.subr.bf16.mxu1 %v8646_v21 }
 0x284   :  { %1585 = vmatpush1.bf16.msra.mxu0 %v8641_v22 }
 0x285   :  { %1586 = vmatprep.subr.bf16.mxu0 %v8649_v24 }
 0x286   :  { %1698 = vmatpush1.bf16.msra.mxu1 %v8644_v23 }
 0x287   :  { %1699 = vmatprep.subr.bf16.mxu1 %v8652_v25 }
 0x288   :  { %1587 = vmatpush1.bf16.msra.mxu0 %v8647_v26 }
 0x289   :  { %1588 = vmatprep.subr.bf16.mxu0 %v8655_v28 }
 0x28a   :  { %1700 = vmatpush1.bf16.msra.mxu1 %v8650_v27 }
 0x28b   :  { %1701 = vmatprep.subr.bf16.mxu1 %v8658_v29 }
 0x28c   :  { %1589 = vmatpush1.bf16.msra.mxu0 %v8653_v30 }
 0x28d   :  { %1590 = vmatprep.subr.bf16.mxu0 %v8661_v32 }
 0x28e   :  { %1702 = vmatpush1.bf16.msra.mxu1 %v8656_v31 }
 0x28f   :  { %1703 = vmatprep.subr.bf16.mxu1 %v8664_v33 }
 0x290   :  { %1591 = vmatpush1.bf16.msra.mxu0 %v8659_v34 }
 0x291   :  { %1592 = vmatprep.subr.bf16.mxu0 %v8667_v37 }
 0x292   :  { %1704 = vmatpush1.bf16.msra.mxu1 %v8662_v35 }
 0x293   :  { %1705 = vmatprep.subr.bf16.mxu1 %v8670_v39 }
 0x294   :  { %1593 = vmatpush1.bf16.msra.mxu0 %v8665_v36 }
 0x295   :  { %1594 = vmatprep.subr.bf16.mxu0 %v8673_v40 }
 0x296   :  { %1706 = vmatpush1.bf16.msra.mxu1 %v8668_v38 }
 0x297   :  { %1707 = vmatprep.subr.bf16.mxu1 %v8676_v41 }
 0x298   :  { %1595 = vmatpush1.bf16.msra.mxu0 %v8671_v42 }
 0x29a   :  { %1708 = vmatpush1.bf16.msra.mxu1 %v8674_v43 }
 0x304   :  { %v751_v51 = vpop.f32.mrb[0].mxu1 }
 0x305   :  { %v9683_v16 = vadd.f32 %v751_v51, %v9677_v49  ;;  %v753_v18 = vpop.f32.mrb[1].mxu1 }
 0x306   :  { %v9686_v52 = vadd.f32 %v753_v18, %v9680_v50  ;;  %v755_v53 = vpop.f32.mrb[2].mxu1 }
 0x307   :  { %v9689_v54 = vadd.f32 %v755_v53, %v9677_v49  ;;  %v757_v55 = vpop.f32.mrb[3].mxu1  ;;  %v872_v57 = vmul.f32 %v9683_v16, %v9683_v16 }
 0x308   :  { %v9692_v56 = vadd.f32 %v757_v55, %v9680_v50  ;;  %v873_v60 = vmul.f32 %v9686_v52, %v9686_v52 }
 0x309   :  { %v830_v58 = vadd.f32 %v9689_v54, %v9683_v16  ;;  %v874_v59 = vmul.f32 %v9689_v54, %v9689_v54 }
 0x30a   :  { %v851_v61 = vadd.f32 %v9692_v56, %v9686_v52  ;;  %v875_v62 = vmul.f32 %v9692_v56, %v9692_v56 }
 0x30b   :  { %v904_v63 = vadd.f32 %v874_v59, %v872_v57 }
 0x30c   :  { %v925_v0 = vadd.f32 %v875_v62, %v873_v60  ;;  %v761_v1 = vpop.f32.mrb[4].mxu1 }
 0x30d   :  { %v9707_v2 = vadd.f32 %v761_v1, %v9677_v49  ;;  %v763_v3 = vpop.f32.mrb[5].mxu1 }
 0x30e   :  { %v9710_v4 = vadd.f32 %v763_v3, %v9680_v50  ;;  %v765_v5 = vpop.f32.mrb[6].mxu1 }
 0x30f   :  { %v831_v6 = vadd.f32 %v830_v58, %v9707_v2  ;;  %v876_v7 = vmul.f32 %v9707_v2, %v9707_v2  ;;  %v9716_v8 = vadd.f32 %v765_v5, %v9677_v49  ;;  %v767_v9 = vpop.f32.mrb[7].mxu1 }
 0x310   :  { %v852_v10 = vadd.f32 %v851_v61, %v9710_v4  ;;  %v877_v11 = vmul.f32 %v9710_v4, %v9710_v4  ;;  %v9722_v12 = vadd.f32 %v767_v9, %v9680_v50 }
 0x311   :  { %v905_v13 = vadd.f32 %v904_v63, %v876_v7  ;;  %v832_v14 = vadd.f32 %v831_v6, %v9716_v8  ;;  %v878_v15 = vmul.f32 %v9716_v8, %v9716_v8 }
 0x312   :  { %v926_v17 = vadd.f32 %v925_v0, %v877_v11  ;;  %v853_v19 = vadd.f32 %v852_v10, %v9722_v12  ;;  %v879_v20 = vmul.f32 %v9722_v12, %v9722_v12 }
 0x313   :  { %v906_v21 = vadd.f32 %v905_v13, %v878_v15 }
 0x314   :  { %v927_v22 = vadd.f32 %v926_v17, %v879_v20  ;;  %v771_v23 = vpop.f32.mrb[8].mxu1 }
 0x315   :  { %v9731_v24 = vadd.f32 %v771_v23, %v9677_v49  ;;  %v773_v25 = vpop.f32.mrb[9].mxu1 }
 0x316   :  { %v9734_v26 = vadd.f32 %v773_v25, %v9680_v50  ;;  %v775_v27 = vpop.f32.mrb[10].mxu1 }
 0x317   :  { %v833_v28 = vadd.f32 %v832_v14, %v9731_v24  ;;  %v880_v29 = vmul.f32 %v9731_v24, %v9731_v24  ;;  %v9740_v30 = vadd.f32 %v775_v27, %v9677_v49  ;;  %v777_v31 = vpop.f32.mrb[11].mxu1 }
 0x318   :  { %v854_v32 = vadd.f32 %v853_v19, %v9734_v26  ;;  %v881_v33 = vmul.f32 %v9734_v26, %v9734_v26  ;;  %v9746_v34 = vadd.f32 %v777_v31, %v9680_v50 }
 0x319   :  { %v907_v35 = vadd.f32 %v906_v21, %v880_v29  ;;  %v834_v36 = vadd.f32 %v833_v28, %v9740_v30  ;;  %v882_v37 = vmul.f32 %v9740_v30, %v9740_v30 }
 0x31a   :  { %v928_v38 = vadd.f32 %v927_v22, %v881_v33  ;;  %v855_v39 = vadd.f32 %v854_v32, %v9746_v34  ;;  %v883_v40 = vmul.f32 %v9746_v34, %v9746_v34 }
 0x31b   :  { %v908_v41 = vadd.f32 %v907_v35, %v882_v37 }
 0x31c   :  { %v929_v42 = vadd.f32 %v928_v38, %v883_v40  ;;  %v781_v43 = vpop.f32.mrb[12].mxu1 }
 0x31d   :  { %v9755_v44 = vadd.f32 %v781_v43, %v9677_v49  ;;  %v783_v47 = vpop.f32.mrb[13].mxu1 }
 0x31e   :  { %v9758_v51 = vadd.f32 %v783_v47, %v9680_v50  ;;  %v785_v18 = vpop.f32.mrb[14].mxu1 }
 0x31f   :  { %v835_v53 = vadd.f32 %v834_v36, %v9755_v44  ;;  %v884_v55 = vmul.f32 %v9755_v44, %v9755_v44  ;;  %v9764_v57 = vadd.f32 %v785_v18, %v9677_v49  ;;  %v787_v58 = vpop.f32.mrb[15].mxu1 }
 0x320   :  { %v856_v59 = vadd.f32 %v855_v39, %v9758_v51  ;;  %v885_v60 = vmul.f32 %v9758_v51, %v9758_v51  ;;  %v9770_v61 = vadd.f32 %v787_v58, %v9680_v50 }
 0x321   :  { %v909_v62 = vadd.f32 %v908_v41, %v884_v55  ;;  %v836_v63 = vadd.f32 %v835_v53, %v9764_v57  ;;  %v886_v0 = vmul.f32 %v9764_v57, %v9764_v57 }
 0x322   :  { %v930_v1 = vadd.f32 %v929_v42, %v885_v60  ;;  %v857_v3 = vadd.f32 %v856_v59, %v9770_v61  ;;  %v887_v5 = vmul.f32 %v9770_v61, %v9770_v61 }
 0x323   :  { %v910_v6 = vadd.f32 %v909_v62, %v886_v0 }
 0x324   :  { %v931_v7 = vadd.f32 %v930_v1, %v887_v5  ;;  %v791_v9 = vpop.f32.mrb[16].mxu1 }
 0x325   :  { %v9779_v10 = vadd.f32 %v791_v9, %v9677_v49  ;;  %v793_v11 = vpop.f32.mrb[17].mxu1 }
 0x326   :  { %v9782_v13 = vadd.f32 %v793_v11, %v9680_v50  ;;  %v795_v14 = vpop.f32.mrb[18].mxu1 }
 0x327   :  { %v837_v15 = vadd.f32 %v836_v63, %v9779_v10  ;;  %v888_v17 = vmul.f32 %v9779_v10, %v9779_v10  ;;  %v9788_v19 = vadd.f32 %v795_v14, %v9677_v49  ;;  %v797_v20 = vpop.f32.mrb[19].mxu1 }
 0x328   :  { %v858_v21 = vadd.f32 %v857_v3, %v9782_v13  ;;  %v889_v22 = vmul.f32 %v9782_v13, %v9782_v13  ;;  %v9794_v23 = vadd.f32 %v797_v20, %v9680_v50 }
 0x329   :  { %v911_v25 = vadd.f32 %v910_v6, %v888_v17  ;;  %v838_v27 = vadd.f32 %v837_v15, %v9788_v19  ;;  %v890_v28 = vmul.f32 %v9788_v19, %v9788_v19 }
 0x32a   :  { %v932_v29 = vadd.f32 %v931_v7, %v889_v22  ;;  %v859_v31 = vadd.f32 %v858_v21, %v9794_v23  ;;  %v891_v32 = vmul.f32 %v9794_v23, %v9794_v23 }
 0x32b   :  { %v912_v33 = vadd.f32 %v911_v25, %v890_v28 }
 0x32c   :  { %v933_v35 = vadd.f32 %v932_v29, %v891_v32  ;;  %v801_v36 = vpop.f32.mrb[20].mxu1 }
 0x32d   :  { %v9803_v37 = vadd.f32 %v801_v36, %v9677_v49  ;;  %v803_v38 = vpop.f32.mrb[21].mxu1 }
 0x32e   :  { %v9806_v39 = vadd.f32 %v803_v38, %v9680_v50  ;;  %v805_v40 = vpop.f32.mrb[22].mxu1 }
 0x32f   :  { %v839_v41 = vadd.f32 %v838_v27, %v9803_v37  ;;  %v892_v42 = vmul.f32 %v9803_v37, %v9803_v37  ;;  %v9812_v43 = vadd.f32 %v805_v40, %v9677_v49  ;;  %v807_v47 = vpop.f32.mrb[23].mxu1 }
 0x330   :  { %v860_v18 = vadd.f32 %v859_v31, %v9806_v39  ;;  %v893_v53 = vmul.f32 %v9806_v39, %v9806_v39  ;;  %v9818_v55 = vadd.f32 %v807_v47, %v9680_v50 }
 0x331   :  { %v913_v58 = vadd.f32 %v912_v33, %v892_v42  ;;  %v840_v59 = vadd.f32 %v839_v41, %v9812_v43  ;;  %v894_v60 = vmul.f32 %v9812_v43, %v9812_v43 }
 0x332   :  { %v934_v62 = vadd.f32 %v933_v35, %v893_v53  ;;  %v861_v63 = vadd.f32 %v860_v18, %v9818_v55  ;;  %v895_v0 = vmul.f32 %v9818_v55, %v9818_v55 }
 0x333   :  { %v914_v1 = vadd.f32 %v913_v58, %v894_v60 }
 0x334   :  { %v935_v3 = vadd.f32 %v934_v62, %v895_v0  ;;  %v811_v5 = vpop.f32.mrb[24].mxu1 }
 0x335   :  { %v9827_v6 = vadd.f32 %v811_v5, %v9677_v49  ;;  %v813_v7 = vpop.f32.mrb[25].mxu1 }
 0x336   :  { %v9830_v9 = vadd.f32 %v813_v7, %v9680_v50  ;;  %v815_v11 = vpop.f32.mrb[26].mxu1 }
 0x337   :  { %v841_v14 = vadd.f32 %v840_v59, %v9827_v6  ;;  %v896_v15 = vmul.f32 %v9827_v6, %v9827_v6  ;;  %v9836_v17 = vadd.f32 %v815_v11, %v9677_v49  ;;  %v817_v20 = vpop.f32.mrb[27].mxu1 }
 0x338   :  { %v862_v21 = vadd.f32 %v861_v63, %v9830_v9  ;;  %v897_v22 = vmul.f32 %v9830_v9, %v9830_v9  ;;  %v9842_v25 = vadd.f32 %v817_v20, %v9680_v50 }
 0x339   :  { %v915_v27 = vadd.f32 %v914_v1, %v896_v15  ;;  %v842_v28 = vadd.f32 %v841_v14, %v9836_v17  ;;  %v898_v29 = vmul.f32 %v9836_v17, %v9836_v17 }
 0x33a   :  { %v936_v31 = vadd.f32 %v935_v3, %v897_v22  ;;  %v863_v32 = vadd.f32 %v862_v21, %v9842_v25  ;;  %v899_v33 = vmul.f32 %v9842_v25, %v9842_v25 }
 0x33b   :  { %v916_v35 = vadd.f32 %v915_v27, %v898_v29 }
 0x33c   :  { %v937_v36 = vadd.f32 %v936_v31, %v899_v33  ;;  %v821_v38 = vpop.f32.mrb[28].mxu1 }
 0x33d   :  { %v9851_v40 = vadd.f32 %v821_v38, %v9677_v49  ;;  %v823_v41 = vpop.f32.mrb[29].mxu1 }
 0x33e   :  { %v9854_v42 = vadd.f32 %v823_v41, %v9680_v50  ;;  %v825_v47 = vpop.f32.mrb[30].mxu1 }
 0x33f   :  { %v843_v18 = vadd.f32 %v842_v28, %v9851_v40  ;;  %v900_v53 = vmul.f32 %v9851_v40, %v9851_v40  ;;  %v9860_v58 = vadd.f32 %v825_v47, %v9677_v49  ;;  %v827_v59 = vpop.f32.mrb[31].mxu1 }
 0x340   :  { %v864_v60 = vadd.f32 %v863_v32, %v9854_v42  ;;  %v901_v62 = vmul.f32 %v9854_v42, %v9854_v42  ;;  %v9866_v63 = vadd.f32 %v827_v59, %v9680_v50 }
 0x341   :  { %v917_v0 = vadd.f32 %v916_v35, %v900_v53  ;;  %v844_v1 = vadd.f32 %v843_v18, %v9860_v58  ;;  %v902_v3 = vmul.f32 %v9860_v58, %v9860_v58 }
 0x342   :  { %v938_v5 = vadd.f32 %v937_v36, %v901_v62  ;;  %v865_v7 = vadd.f32 %v864_v60, %v9866_v63  ;;  %v903_v49 = vmul.f32 %v9866_v63, %v9866_v63 }
 0x343   :  { %v845_v11 = vrot.slane %v844_v1, 4  ;;  %v918_v14 = vadd.f32 %v917_v0, %v902_v3 }
 0x344   :  { %v866_v15 = vrot.slane %v865_v7, 4  ;;  %v939_v20 = vadd.f32 %v938_v5, %v903_v49 }
 0x345   :  { %v846_v21 = vadd.f32 %v845_v11, %v844_v1  ;;  %v919_v22 = vrot.slane %v918_v14, 4 }
 0x346   :  { %v867_v50 = vadd.f32 %v866_v15, %v865_v7  ;;  %v940_v27 = vrot.slane %v939_v20, 4 }
 0x347   :  { %v847_v28 = vrot.slane %v846_v21, 2  ;;  %v920_v29 = vadd.f32 %v919_v22, %v918_v14 }
 0x348   :  { %v868_v31 = vrot.slane %v867_v50, 2  ;;  %v941_v32 = vadd.f32 %v940_v27, %v939_v20 }
 0x349   :  { %v848_v33 = vadd.f32 %v847_v28, %v846_v21  ;;  %v921_v35 = vrot.slane %v920_v29, 2 }
 0x34a   :  { %v869_v36 = vadd.f32 %v868_v31, %v867_v50  ;;  %v942_v38 = vrot.slane %v941_v32, 2 }
 0x34b   :  { %v849_v41 = vrot.slane %v848_v33, 1  ;;  %v922_v47 = vadd.f32 %v921_v35, %v920_v29 }
 0x34c   :  { %v870_v18 = vrot.slane %v869_v36, 1  ;;  %v943_v53 = vadd.f32 %v942_v38, %v941_v32 }
 0x34d   :  { %v850_v59 = vadd.f32 %v849_v41, %v848_v33  ;;  %v923_v60 = vrot.slane %v922_v47, 1 }
 0x34e   :  { %v871_v62 = vadd.f32 %v870_v18, %v869_v36  ;;  %v944_v0 = vrot.slane %v943_v53, 1 }
 0x34f   :  { %v924_v1 = vadd.f32 %v923_v60, %v922_v47  ;;  %v9874_v3 = vmul.f32 0.0078125, %v850_v59 }
 0x350   :  { %v945_v5 = vadd.f32 %v944_v0, %v943_v53  ;;  %v9876_v7 = vmul.f32 0.0078125, %v871_v62 }
 0x351   :  { %v948_v49 = vmul.f32 0.0078125, %v924_v1  ;;  %v950_v11 = vmul.f32 %v9874_v3, %v9874_v3  ;;  %v984_v14 = vsub.f32 %v9860_v58, %v9874_v3  ;;  %v954_v15 = vsub.f32 %v9683_v16, %v9874_v3 }
 0x352   :  { %v949_v20 = vmul.f32 0.0078125, %v945_v5  ;;  %v951_v21 = vmul.f32 %v9876_v7, %v9876_v7  ;;  %v985_v22 = vsub.f32 %v9866_v63, %v9876_v7  ;;  %v955_v50 = vsub.f32 %v9686_v52, %v9876_v7 }
 0x353   :  { %v952_v27 = vsub.f32 %v948_v49, %v950_v11  ;;  %v957_v28 = vsub.f32 %v9692_v56, %v9876_v7  ;;  %v956_v58 = vsub.f32 %v9689_v54, %v9874_v3  ;;  %v959_v16 = vsub.f32 %v9710_v4, %v9876_v7 }
 0x354   :  { %v953_v29 = vsub.f32 %v949_v20, %v951_v21  ;;  %v961_v31 = vsub.f32 %v9722_v12, %v9876_v7  ;;  %v960_v63 = vsub.f32 %v9716_v8, %v9874_v3  ;;  %v963_v52 = vsub.f32 %v9734_v26, %v9876_v7  ;;  %v1022_v21 = vld [vmem:[#allocation14] sm:$0x3] }
 0x355   :  { %v986_v32 = vadd.f32 0.8, %v952_v27  ;;  %v965_v56 = vsub.f32 %v9746_v34, %v9876_v7  ;;  %v962_v54 = vsub.f32 %v9731_v24, %v9874_v3  ;;  %v964_v4 = vsub.f32 %v9740_v30, %v9874_v3  ;;  %v1066_v27 = vld [vmem:[#allocation16] sm:$0x3] }
 0x356   :  { %v987_v33 = vadd.f32 0.8, %v953_v29  ;;  %v967_v12 = vsub.f32 %v9758_v51, %v9876_v7  ;;  %v969_v8 = vsub.f32 %v9770_v61, %v9876_v7  ;;  %v9945_v29 = vrot.slane %v1022_v21, %v9671_v46 }
 0x357   :  { %8677 = vrsqrt.f32 %v986_v32  ;;  %v958_v32 = vsub.f32 %v9707_v2, %v9874_v3  ;;  %v9952_v5 = vrot.slane %v1022_v21, %v9674_v48  ;;  %v9955_v49 = vrot.slane %v1066_v27, %v9671_v46 }
 0x358   :  { %8679 = vrsqrt.f32 %v987_v33  ;;  %v9958_v11 = vrot.slane %v1066_v27, %v9674_v48  ;;  %v15201_v61 = vsub.f32 %v9755_v44, %v9874_v3 }
 0x361   :  { %v9949_v33 = vpop.eup %8677 }
 0x362   :  { %v9960_v20 = vpop.eup %8679  ;;  %v9963_v1 = vmul.f32 %v9949_v33, %v984_v14  ;;  %v990_v0 = vmul.f32 %v9949_v33, %v954_v15  ;;  %v992_v2 = vmul.f32 %v9949_v33, %v956_v58  ;;  %v994_v62 = vmul.f32 %v9949_v33, %v958_v32 }
 0x363   :  { %v9969_v21 = vmul.f32 %v9960_v20, %v985_v22  ;;  %v991_v60 = vmul.f32 %v9960_v20, %v955_v50  ;;  %v993_v59 = vmul.f32 %v9960_v20, %v957_v28  ;;  %v995_v27 = vmul.f32 %v9960_v20, %v959_v16 }
 0x364   :  { %v1034_v53 = vmul.f32 %v9945_v29, %v990_v0  ;;  %v1036_v14 = vmul.f32 %v9945_v29, %v992_v2  ;;  %v997_v18 = vmul.f32 %v9960_v20, %v961_v31  ;;  %v996_v15 = vmul.f32 %v9949_v33, %v960_v63 }
 0x365   :  { %v1035_v58 = vmul.f32 %v9952_v5, %v991_v60  ;;  %v1037_v32 = vmul.f32 %v9952_v5, %v993_v59  ;;  %v1039_v22 = vmul.f32 %v9952_v5, %v995_v27  ;;  %v1038_v50 = vmul.f32 %v9945_v29, %v994_v62 }
 0x366   :  { %v1078_v28 = vadd.f32 %v9955_v49, %v1034_v53  ;;  %v1080_v16 = vadd.f32 %v9955_v49, %v1036_v14  ;;  %v1041_v0 = vmul.f32 %v9952_v5, %v997_v18  ;;  %v1040_v2 = vmul.f32 %v9945_v29, %v996_v15 }
 0x367   :  { %v1079_v31 = vadd.f32 %v9958_v11, %v1035_v58  ;;  %v1081_v63 = vadd.f32 %v9958_v11, %v1037_v32  ;;  %v1083_v60 = vadd.f32 %v9958_v11, %v1039_v22  ;;  %v1082_v59 = vadd.f32 %v9955_v49, %v1038_v50 }
 0x368   :  { %v1110_v47 = vmax.f32 %v1078_v28, 0.0  ;;  %v1112_v27 = vmax.f32 %v1080_v16, 0.0  ;;  %v1085_v62 = vadd.f32 %v9958_v11, %v1041_v0  ;;  %v1084_v53 = vadd.f32 %v9955_v49, %v1040_v2 }
 0x369   :  { %v1111_v41 = vmax.f32 %v1079_v31, 0.0  ;;  %v1113_v14 = vmax.f32 %v1081_v63, 0.0  ;;  %v1115_v38 = vmax.f32 %v1083_v60, 0.0  ;;  %v1114_v18 = vmax.f32 %v1082_v59, 0.0 }
 0x36a   :  { %v1142_v36 = vpack.c.bf16 %v1112_v27, %v1110_v47  ;;  %v1117_v15 = vmax.f32 %v1085_v62, 0.0  ;;  %v1116_v35 = vmax.f32 %v1084_v53, 0.0  ;;  %v999_v58 = vmul.f32 %v9960_v20, %v963_v52 }
 0x36b   :  { %v1143_v32 = vpack.c.bf16 %v1113_v14, %v1111_v41  ;;  %v1001_v22 = vmul.f32 %v9960_v20, %v965_v56  ;;  %v998_v50 = vmul.f32 %v9949_v33, %v962_v54  ;;  %v1000_v47 = vmul.f32 %v9949_v33, %v964_v4 }
 0x36c   :  { %v1145_v28 = vpack.c.bf16 %v1117_v15, %v1115_v38  ;;  %v1144_v26 = vpack.c.bf16 %v1116_v35, %v1114_v18  ;;  %v1043_v52 = vmul.f32 %v9952_v5, %v999_v58  ;;  %v1003_v34 = vmul.f32 %v9960_v20, %v967_v12 }
 0x36d   :  { %1596 = vmatprep.mubr.bf16.mxu0 %v1143_v32  ;;  %1709 = vmatprep.mubr.bf16.mxu1 %v1143_v32  ;;  %v1045_v24 = vmul.f32 %v9952_v5, %v1001_v22  ;;  %v1042_v56 = vmul.f32 %v9945_v29, %v998_v50  ;;  %v1044_v54 = vmul.f32 %v9945_v29, %v1000_v47 }
 0x36e   :  { %1597 = vmatmul.mubr.bf16.vlgmr.msra.gmra.mrb[32].mxu0 %v1142_v36  ;;  %1710 = vmatmul.mubr.bf16.vlgmr.msra.gmra.mrb[32].mxu1 %v1142_v36  ;;  %v1087_v30 = vadd.f32 %v9958_v11, %v1043_v52  ;;  %v1005_v4 = vmul.f32 %v9960_v20, %v969_v8  ;;  %v1047_v51 = vmul.f32 %v9952_v5, %v1003_v34 }
 0x36f   :  { %1606 = vmatprep.mubr.bf16.mxu0 %v1145_v28  ;;  %1719 = vmatprep.mubr.bf16.mxu1 %v1145_v28  ;;  %v1089_v12 = vadd.f32 %v9958_v11, %v1045_v24  ;;  %v1086_v35 = vadd.f32 %v9955_v49, %v1042_v56  ;;  %v1088_v38 = vadd.f32 %v9955_v49, %v1044_v54 }
 0x370   :  { %v1119_v41 = vmax.f32 %v1087_v30, 0.0  ;;  %v1049_v36 = vmul.f32 %v9952_v5, %v1005_v4  ;;  %v1091_v16 = vadd.f32 %v9958_v11, %v1047_v51  ;;  %v1002_v8 = vmul.f32 %v9949_v33, %v15201_v61 }
 0x371   :  { %v1121_v0 = vmax.f32 %v1089_v12, 0.0  ;;  %v1118_v2 = vmax.f32 %v1086_v35, 0.0  ;;  %v1120_v31 = vmax.f32 %v1088_v38, 0.0  ;;  %v15202_v63 = vsub.f32 %v9764_v57, %v9874_v3 }
 0x372   :  { %v1093_v59 = vadd.f32 %v9958_v11, %v1049_v36  ;;  %v1123_v27 = vmax.f32 %v1091_v16, 0.0  ;;  %v1046_v62 = vmul.f32 %v9945_v29, %v1002_v8  ;;  %v15203_v53 = vsub.f32 %v9782_v13, %v9876_v7 }
 0x373   :  { %v1004_v60 = vmul.f32 %v9949_v33, %v15202_v63  ;;  %v1147_v14 = vpack.c.bf16 %v1121_v0, %v1119_v41  ;;  %v1146_v18 = vpack.c.bf16 %v1120_v31, %v1118_v2  ;;  %v15204_v58 = vsub.f32 %v9794_v23, %v9876_v7 }
 0x374   :  { %v1007_v44 = vmul.f32 %v9960_v20, %v15203_v53  ;;  %v1125_v32 = vmax.f32 %v1093_v59, 0.0  ;;  %v1090_v22 = vadd.f32 %v9955_v49, %v1046_v62  ;;  %v15205_v47 = vsub.f32 %v9779_v10, %v9874_v3 }
 0x375   :  { %v1048_v15 = vmul.f32 %v9945_v29, %v1004_v60  ;;  %v1009_v57 = vmul.f32 %v9960_v20, %v15204_v58  ;;  %v15206_v34 = vsub.f32 %v9788_v19, %v9874_v3  ;;  %v15207_v24 = vsub.f32 %v9806_v39, %v9876_v7 }
 0x376   :  { %v1051_v50 = vmul.f32 %v9952_v5, %v1007_v44  ;;  %v1006_v13 = vmul.f32 %v9949_v33, %v15205_v47  ;;  %1607 = vmatmul.mubr.bf16.gmra.mrb[36].mxu0 %v1144_v26  ;;  %1720 = vmatmul.mubr.bf16.gmra.mrb[36].mxu1 %v1144_v26  ;;  %v1149_v54 = vpack.c.bf16 %v1125_v32, %v1123_v27  ;;  %v1122_v10 = vmax.f32 %v1090_v22, 0.0 }
 0x377   :  { %v1092_v28 = vadd.f32 %v9955_v49, %v1048_v15  ;;  %v1053_v52 = vmul.f32 %v9952_v5, %v1009_v57  ;;  %v1008_v23 = vmul.f32 %v9949_v33, %v15206_v34  ;;  %v1011_v56 = vmul.f32 %v9960_v20, %v15207_v24  ;;  %1616 = vmatprep.mubr.bf16.mxu0 %v1147_v14 }
 0x378   :  { %v1095_v30 = vadd.f32 %v9958_v11, %v1051_v50  ;;  %v1050_v4 = vmul.f32 %v9945_v29, %v1006_v13  ;;  %1729 = vmatprep.mubr.bf16.mxu1 %v1147_v14  ;;  %v15208_v39 = vsub.f32 %v9818_v55, %v9876_v7  ;;  %v15209_v36 = vsub.f32 %v9803_v37, %v9874_v3 }
 0x379   :  { %v1124_v51 = vmax.f32 %v1092_v28, 0.0  ;;  %v1097_v19 = vadd.f32 %v9958_v11, %v1053_v52  ;;  %v1052_v12 = vmul.f32 %v9945_v29, %v1008_v23  ;;  %v1055_v41 = vmul.f32 %v9952_v5, %v1011_v56 }
 0x37a   :  { %v1013_v35 = vmul.f32 %v9960_v20, %v15208_v39  ;;  %v1127_v38 = vmax.f32 %v1095_v30, 0.0  ;;  %v1094_v26 = vadd.f32 %v9955_v49, %v1050_v4  ;;  %v1010_v16 = vmul.f32 %v9949_v33, %v15209_v36 }
 0x37b   :  { %v1148_v61 = vpack.c.bf16 %v1124_v51, %v1122_v10  ;;  %v1129_v8 = vmax.f32 %v1097_v19, 0.0  ;;  %v1096_v0 = vadd.f32 %v9955_v49, %v1052_v12  ;;  %v1099_v55 = vadd.f32 %v9958_v11, %v1055_v41 }
 0x37c   :  { %v1057_v2 = vmul.f32 %v9952_v5, %v1013_v35  ;;  %v1126_v31 = vmax.f32 %v1094_v26, 0.0  ;;  %v15210_v63 = vsub.f32 %v9812_v43, %v9874_v3  ;;  %v1054_v59 = vmul.f32 %v9945_v29, %v1010_v16 }
 0x37d   :  { %v1151_v27 = vpack.c.bf16 %v1129_v8, %v1127_v38  ;;  %v1128_v37 = vmax.f32 %v1096_v0, 0.0  ;;  %v15211_v53 = vsub.f32 %v9830_v9, %v9876_v7  ;;  %v1131_v14 = vmax.f32 %v1099_v55, 0.0 }
 0x37e   :  { %v1012_v60 = vmul.f32 %v9949_v33, %v15210_v63  ;;  %v1101_v62 = vadd.f32 %v9958_v11, %v1057_v2  ;;  %v1098_v58 = vadd.f32 %v9955_v49, %v1054_v59  ;;  %v15212_v43 = vsub.f32 %v9842_v25, %v9876_v7  ;;  %1617 = vmatmul.mubr.bf16.gmra.mrb[40].mxu0 %v1146_v18 }
 0x37f   :  { %v1015_v44 = vmul.f32 %v9960_v20, %v15211_v53  ;;  %v1150_v32 = vpack.c.bf16 %v1128_v37, %v1126_v31  ;;  %v15213_v47 = vsub.f32 %v9827_v6, %v9874_v3  ;;  %1730 = vmatmul.mubr.bf16.gmra.mrb[40].mxu1 %v1146_v18  ;;  %v15214_v25 = vsub.f32 %v9836_v17, %v9874_v3 }
 0x380   :  { %v1056_v15 = vmul.f32 %v9945_v29, %v1012_v60  ;;  %v1017_v57 = vmul.f32 %v9960_v20, %v15212_v43  ;;  %v1133_v22 = vmax.f32 %v1101_v62, 0.0  ;;  %v1130_v28 = vmax.f32 %v1098_v58, 0.0  ;;  %1626 = vmatprep.mubr.bf16.mxu0 %v1149_v54  ;;  %1739 = vmatprep.mubr.bf16.mxu1 %v1149_v54 }
 0x381   :  { %v1059_v50 = vmul.f32 %v9952_v5, %v1015_v44  ;;  %v1014_v9 = vmul.f32 %v9949_v33, %v15213_v47  ;;  %v1016_v34 = vmul.f32 %v9949_v33, %v15214_v25  ;;  %v15215_v30 = vsub.f32 %v9854_v42, %v9876_v7 }
 0x382   :  { %v1100_v13 = vadd.f32 %v9955_v49, %v1056_v15  ;;  %v1061_v52 = vmul.f32 %v9952_v5, %v1017_v57  ;;  %v1153_v23 = vpack.c.bf16 %v1133_v22, %v1131_v14  ;;  %v1065_v54 = vmul.f32 %v9952_v5, %v9969_v21 }
 0x383   :  { %v1103_v24 = vadd.f32 %v9958_v11, %v1059_v50  ;;  %v1058_v6 = vmul.f32 %v9945_v29, %v1014_v9  ;;  %v1060_v10 = vmul.f32 %v9945_v29, %v1016_v34  ;;  %v1019_v4 = vmul.f32 %v9960_v20, %v15215_v30 }
 0x384   :  { %v1132_v56 = vmax.f32 %v1100_v13, 0.0  ;;  %v1105_v18 = vadd.f32 %v9958_v11, %v1061_v52  ;;  %v15216_v19 = vsub.f32 %v9851_v40, %v9874_v3  ;;  %v1109_v7 = vadd.f32 %v9958_v11, %v1065_v54 }
 0x385   :  { %v1135_v17 = vmax.f32 %v1103_v24, 0.0  ;;  %v1102_v51 = vadd.f32 %v9955_v49, %v1058_v6  ;;  %v1104_v38 = vadd.f32 %v9955_v49, %v1060_v10  ;;  %v1063_v26 = vmul.f32 %v9952_v5, %v1019_v4 }
 0x386   :  { %v1018_v12 = vmul.f32 %v9949_v33, %v15216_v19  ;;  %v1152_v39 = vpack.c.bf16 %v1132_v56, %v1130_v28  ;;  %v1137_v35 = vmax.f32 %v1105_v18, 0.0  ;;  %v1064_v41 = vmul.f32 %v9945_v29, %v9963_v1  ;;  %1627 = vmatmul.mubr.bf16.gmra.mrb[44].mxu0 %v1148_v61 }
 0x387   :  { %v1134_v42 = vmax.f32 %v1102_v51, 0.0  ;;  %v1136_v36 = vmax.f32 %v1104_v38, 0.0  ;;  %v1107_v40 = vadd.f32 %v9958_v11, %v1063_v26  ;;  %v1141_v3 = vmax.f32 %v1109_v7, 0.0  ;;  %1740 = vmatmul.mubr.bf16.gmra.mrb[44].mxu1 %v1148_v61  ;;  %1636 = vmatprep.mubr.bf16.mxu0 %v1151_v27 }
 0x388   :  { %v1062_v20 = vmul.f32 %v9945_v29, %v1018_v12  ;;  %v1155_v21 = vpack.c.bf16 %v1137_v35, %v1135_v17  ;;  %v1108_v16 = vadd.f32 %v9955_v49, %v1064_v41  ;;  %1749 = vmatprep.mubr.bf16.mxu1 %v1151_v27  ;;  %v10131_v1 = vsub.s32 2, %v9668_v45 }
 0x389   :  { %v1154_v5 = vpack.c.bf16 %v1136_v36, %v1134_v42  ;;  %v1139_v8 = vmax.f32 %v1107_v40, 0.0  ;;  %v10134_v11 = vsub.s32 3, %v9668_v45 }
 0x38a   :  { %v1106_v33 = vadd.f32 %v9955_v49, %v1062_v20  ;;  %v1140_v2 = vmax.f32 %v1108_v16, 0.0  ;;  %15217 = vst [vmem:[#allocation48_spill] sm:$0xff] %v10131_v1  ;;  %v1222_v49 = vld [vmem:[#allocation19] sm:$0xf] }
 0x38b   :  { %v1157_v31 = vpack.c.bf16 %v1141_v3, %v1139_v8  ;;  %15218 = vst [vmem:[#allocation49_spill] sm:$0xff] %v10134_v11  ;;  %v10137_v29 = vrot.slane %v1222_v49, %v9671_v46  ;;  %v10140_v61 = vrot.slane %v1222_v49, %v10131_v1  ;;  %v10143_v63 = vrot.slane %v1222_v49, %v9674_v48 }
 0x38c   :  { %v1138_v0 = vmax.f32 %v1106_v33, 0.0  ;;  %v10146_v60 = vrot.slane %v1222_v49, %v10134_v11 }
 0x38e   :  { %v1156_v55 = vpack.c.bf16 %v1140_v2, %v1138_v0  ;;  %1637 = vmatmul.mubr.bf16.gmra.mrb[48].mxu0 %v1150_v32 }
 0x38f   :  { %1750 = vmatmul.mubr.bf16.gmra.mrb[48].mxu1 %v1150_v32  ;;  %1646 = vmatprep.mubr.bf16.mxu0 %v1153_v23 }
 0x390   :  { %1759 = vmatprep.mubr.bf16.mxu1 %v1153_v23 }
 0x396   :  { %1647 = vmatmul.mubr.bf16.gmra.mrb[52].mxu0 %v1152_v39 }
 0x397   :  { %1760 = vmatmul.mubr.bf16.gmra.mrb[52].mxu1 %v1152_v39  ;;  %1656 = vmatprep.mubr.bf16.mxu0 %v1155_v21 }
 0x398   :  { %1769 = vmatprep.mubr.bf16.mxu1 %v1155_v21 }
 0x39e   :  { %1657 = vmatmul.mubr.bf16.gmra.mrb[56].mxu0 %v1154_v5 }
 0x39f   :  { %1770 = vmatmul.mubr.bf16.gmra.mrb[56].mxu1 %v1154_v5  ;;  %1666 = vmatprep.mubr.bf16.mxu0 %v1157_v31 }
 0x3a0   :  { %1779 = vmatprep.mubr.bf16.mxu1 %v1157_v31 }
 0x3a6   :  { %1667 = vmatmul.mubr.bf16.gmra.mrb[60].mxu0 %v1156_v55 }
 0x3a7   :  { %1780 = vmatmul.mubr.bf16.gmra.mrb[60].mxu1 %v1156_v55 }
 0x441   :  { %v1598_v59 = vpop.f32.mrb[32].mxu0  ;;  %v1711_v27 = vpop.f32.mrb[32].mxu1 }
 0x442   :  { %v10149_v37 = vadd.f32 %v1598_v59, %v10137_v29  ;;  %v10152_v62 = vadd.f32 %v1711_v27, %v10140_v61  ;;  %v1600_v53 = vpop.f32.mrb[33].mxu0  ;;  %v1713_v44 = vpop.f32.mrb[33].mxu1 }
 0x443   :  { %v10155_v14 = vadd.f32 %v1600_v53, %v10143_v63  ;;  %v10158_v15 = vadd.f32 %v1713_v44, %v10146_v60  ;;  %v1602_v58 = vpop.f32.mrb[34].mxu0  ;;  %v1715_v43 = vpop.f32.mrb[34].mxu1 }
 0x444   :  { %v1874_v57 = vmul.f32 %v10149_v37, %v10149_v37  ;;  %v1876_v32 = vmul.f32 %v10152_v62, %v10152_v62  ;;  %v10165_v22 = vadd.f32 %v1602_v58, %v10137_v29  ;;  %v10168_v50 = vadd.f32 %v1715_v43, %v10140_v61  ;;  %v1604_v47 = vpop.f32.mrb[35].mxu0  ;;  %v1717_v9 = vpop.f32.mrb[35].mxu1 }
 0x445   :  { %15219 = vst [vmem:[#allocation50_spill] sm:$0xff] %v10155_v14  ;;  %15220 = vst [vmem:[#allocation51_spill] sm:$0xff] %v10158_v15  ;;  %v1875_v13 = vmul.f32 %v10155_v14, %v10155_v14  ;;  %v1877_v28 = vmul.f32 %v10158_v15, %v10158_v15  ;;  %v10175_v52 = vadd.f32 %v1604_v47, %v10143_v63 }
 0x446   :  { %v10178_v25 = vadd.f32 %v1717_v9, %v10146_v60  ;;  %v1790_v34 = vadd.f32 %v10165_v22, %v10149_v37  ;;  %v1878_v23 = vmul.f32 %v10165_v22, %v10165_v22  ;;  %v1832_v24 = vadd.f32 %v10168_v50, %v10152_v62 }
 0x447   :  { %15221 = vst [vmem:[#allocation52_spill] sm:$0xff] %v10175_v52  ;;  %v1880_v6 = vmul.f32 %v10168_v50, %v10168_v50  ;;  %v1811_v56 = vadd.f32 %v10175_v52, %v10155_v14  ;;  %v1879_v18 = vmul.f32 %v10175_v52, %v10175_v52 }
 0x448   :  { %15222 = vst [vmem:[#allocation53_spill] sm:$0xff] %v10178_v25  ;;  %v1853_v10 = vadd.f32 %v10178_v25, %v10158_v15  ;;  %v1881_v30 = vmul.f32 %v10178_v25, %v10178_v25  ;;  %v1938_v4 = vadd.f32 %v1878_v23, %v1874_v57 }
 0x449   :  { %v1980_v17 = vadd.f32 %v1880_v6, %v1876_v32  ;;  %v1959_v51 = vadd.f32 %v1879_v18, %v1875_v13  ;;  %v1608_v19 = vpop.f32.mrb[36].mxu0  ;;  %v1721_v12 = vpop.f32.mrb[36].mxu1 }
 0x44a   :  { %v2001_v54 = vadd.f32 %v1881_v30, %v1877_v28  ;;  %v10197_v39 = vadd.f32 %v1608_v19, %v10137_v29  ;;  %v10200_v35 = vadd.f32 %v1721_v12, %v10140_v61  ;;  %v1610_v38 = vpop.f32.mrb[37].mxu0  ;;  %v1723_v26 = vpop.f32.mrb[37].mxu1 }
 0x44b   :  { %v10203_v42 = vadd.f32 %v1610_v38, %v10143_v63  ;;  %v10206_v7 = vadd.f32 %v1723_v26, %v10146_v60  ;;  %v1612_v20 = vpop.f32.mrb[38].mxu0  ;;  %v1725_v41 = vpop.f32.mrb[38].mxu1 }
 0x44c   :  { %v1791_v21 = vadd.f32 %v1790_v34, %v10197_v39  ;;  %v1882_v36 = vmul.f32 %v10197_v39, %v10197_v39  ;;  %v1833_v40 = vadd.f32 %v1832_v24, %v10200_v35  ;;  %v1884_v3 = vmul.f32 %v10200_v35, %v10200_v35  ;;  %v1614_v33 = vpop.f32.mrb[39].mxu0  ;;  %v1727_v16 = vpop.f32.mrb[39].mxu1 }
 0x44d   :  { %15223 = vst [vmem:[#allocation54_spill] sm:$0xff] %v10203_v42  ;;  %15224 = vst [vmem:[#allocation55_spill] sm:$0xff] %v10206_v7  ;;  %v1812_v5 = vadd.f32 %v1811_v56, %v10203_v42  ;;  %v1883_v8 = vmul.f32 %v10203_v42, %v10203_v42  ;;  %v1854_v0 = vadd.f32 %v1853_v10, %v10206_v7 }
 0x44e   :  { %v1885_v2 = vmul.f32 %v10206_v7, %v10206_v7  ;;  %v1939_v31 = vadd.f32 %v1938_v4, %v1882_v36  ;;  %v1981_v55 = vadd.f32 %v1980_v17, %v1884_v3  ;;  %v10221_v49 = vadd.f32 %v1612_v20, %v10137_v29 }
 0x44f   :  { %v10224_v59 = vadd.f32 %v1725_v41, %v10140_v61  ;;  %v1960_v27 = vadd.f32 %v1959_v51, %v1883_v8  ;;  %v10227_v44 = vadd.f32 %v1614_v33, %v10143_v63  ;;  %v10230_v58 = vadd.f32 %v1727_v16, %v10146_v60 }
 0x450   :  { %v2002_v53 = vadd.f32 %v2001_v54, %v1885_v2  ;;  %v1792_v43 = vadd.f32 %v1791_v21, %v10221_v49  ;;  %v1886_v57 = vmul.f32 %v10221_v49, %v10221_v49 }
 0x451   :  { %15225 = vst [vmem:[#allocation56_spill] sm:$0xff] %v10227_v44  ;;  %15226 = vst [vmem:[#allocation57_spill] sm:$0xff] %v10230_v58  ;;  %v1834_v32 = vadd.f32 %v1833_v40, %v10224_v59  ;;  %v1888_v47 = vmul.f32 %v10224_v59, %v10224_v59  ;;  %v1813_v9 = vadd.f32 %v1812_v5, %v10227_v44  ;;  %v1618_v23 = vpop.f32.mrb[40].mxu0 }
 0x452   :  { %v1887_v13 = vmul.f32 %v10227_v44, %v10227_v44  ;;  %v1855_v28 = vadd.f32 %v1854_v0, %v10230_v58  ;;  %v1889_v34 = vmul.f32 %v10230_v58, %v10230_v58  ;;  %v1731_v24 = vpop.f32.mrb[40].mxu1  ;;  %v1940_v6 = vadd.f32 %v1939_v31, %v1886_v57  ;;  %v1620_v30 = vpop.f32.mrb[41].mxu0 }
 0x453   :  { %v1982_v56 = vadd.f32 %v1981_v55, %v1888_v47  ;;  %v10245_v18 = vadd.f32 %v1618_v23, %v10137_v29  ;;  %v10248_v10 = vadd.f32 %v1731_v24, %v10140_v61  ;;  %v1733_v4 = vpop.f32.mrb[41].mxu1  ;;  %v10251_v54 = vadd.f32 %v1620_v30, %v10143_v63  ;;  %v1622_v12 = vpop.f32.mrb[42].mxu0 }
 0x454   :  { %v1961_v17 = vadd.f32 %v1960_v27, %v1887_v13  ;;  %v2003_v51 = vadd.f32 %v2002_v53, %v1889_v34  ;;  %v10254_v19 = vadd.f32 %v1733_v4, %v10146_v60  ;;  %v1735_v38 = vpop.f32.mrb[42].mxu1  ;;  %v1624_v36 = vpop.f32.mrb[43].mxu0  ;;  %v10269_v2 = vadd.f32 %v1622_v12, %v10137_v29 }
 0x455   :  { %15227 = vst [vmem:[#allocation58_spill] sm:$0xff] %v10251_v54  ;;  %v1793_v26 = vadd.f32 %v1792_v43, %v10245_v18  ;;  %v1890_v20 = vmul.f32 %v10245_v18, %v10245_v18  ;;  %v1835_v41 = vadd.f32 %v1834_v32, %v10248_v10  ;;  %v1892_v21 = vmul.f32 %v10248_v10, %v10248_v10  ;;  %v1737_v40 = vpop.f32.mrb[43].mxu1 }
 0x456   :  { %15228 = vst [vmem:[#allocation59_spill] sm:$0xff] %v10254_v19  ;;  %v1814_v3 = vadd.f32 %v1813_v9, %v10251_v54  ;;  %v1891_v33 = vmul.f32 %v10251_v54, %v10251_v54  ;;  %v1856_v16 = vadd.f32 %v1855_v28, %v10254_v19  ;;  %v1893_v5 = vmul.f32 %v10254_v19, %v10254_v19 }
 0x457   :  { %v1941_v8 = vadd.f32 %v1940_v6, %v1890_v20  ;;  %v1983_v0 = vadd.f32 %v1982_v56, %v1892_v21  ;;  %v10272_v31 = vadd.f32 %v1735_v38, %v10140_v61  ;;  %v10275_v53 = vadd.f32 %v1624_v36, %v10143_v63 }
 0x458   :  { %v1962_v55 = vadd.f32 %v1961_v17, %v1891_v33  ;;  %v2004_v27 = vadd.f32 %v2003_v51, %v1893_v5  ;;  %v10278_v43 = vadd.f32 %v1737_v40, %v10146_v60  ;;  %v1794_v57 = vadd.f32 %v1793_v26, %v10269_v2 }
 0x459   :  { %15229 = vst [vmem:[#allocation60_spill] sm:$0xff] %v10275_v53  ;;  %v1894_v32 = vmul.f32 %v10269_v2, %v10269_v2  ;;  %v1836_v47 = vadd.f32 %v1835_v41, %v10272_v31  ;;  %v1896_v9 = vmul.f32 %v10272_v31, %v10272_v31  ;;  %v1815_v13 = vadd.f32 %v1814_v3, %v10275_v53  ;;  %v1628_v24 = vpop.f32.mrb[44].mxu0 }
 0x45a   :  { %15230 = vst [vmem:[#allocation61_spill] sm:$0xff] %v10278_v43  ;;  %v1895_v28 = vmul.f32 %v10275_v53, %v10275_v53  ;;  %v1857_v34 = vadd.f32 %v1856_v16, %v10278_v43  ;;  %v1897_v23 = vmul.f32 %v10278_v43, %v10278_v43  ;;  %v1741_v6 = vpop.f32.mrb[44].mxu1  ;;  %v10293_v4 = vadd.f32 %v1628_v24, %v10137_v29  ;;  %v1630_v51 = vpop.f32.mrb[45].mxu0 }
 0x45b   :  { %v1942_v56 = vadd.f32 %v1941_v8, %v1894_v32  ;;  %v1984_v30 = vadd.f32 %v1983_v0, %v1896_v9  ;;  %v10296_v17 = vadd.f32 %v1741_v6, %v10140_v61  ;;  %v1743_v12 = vpop.f32.mrb[45].mxu1  ;;  %v10299_v20 = vadd.f32 %v1630_v51, %v10143_v63  ;;  %v1632_v21 = vpop.f32.mrb[46].mxu0 }
 0x45c   :  { %v1963_v38 = vadd.f32 %v1962_v55, %v1895_v28  ;;  %v2005_v26 = vadd.f32 %v2004_v27, %v1897_v23  ;;  %v10302_v41 = vadd.f32 %v1743_v12, %v10146_v60  ;;  %v1745_v36 = vpop.f32.mrb[46].mxu1  ;;  %v1795_v40 = vadd.f32 %v1794_v57, %v10293_v4  ;;  %v1634_v5 = vpop.f32.mrb[47].mxu0 }
 0x45d   :  { %15231 = vst [vmem:[#allocation62_spill] sm:$0xff] %v10299_v20  ;;  %v1898_v3 = vmul.f32 %v10293_v4, %v10293_v4  ;;  %v1837_v33 = vadd.f32 %v1836_v47, %v10296_v17  ;;  %v1900_v16 = vmul.f32 %v10296_v17, %v10296_v17  ;;  %v1747_v8 = vpop.f32.mrb[47].mxu1  ;;  %v1816_v0 = vadd.f32 %v1815_v13, %v10299_v20 }
 0x45e   :  { %15232 = vst [vmem:[#allocation63_spill] sm:$0xff] %v10302_v41  ;;  %v1899_v55 = vmul.f32 %v10299_v20, %v10299_v20  ;;  %v1858_v27 = vadd.f32 %v1857_v34, %v10302_v41  ;;  %v1901_v57 = vmul.f32 %v10302_v41, %v10302_v41  ;;  %v10317_v28 = vadd.f32 %v1632_v21, %v10137_v29 }
 0x45f   :  { %v1943_v32 = vadd.f32 %v1942_v56, %v1898_v3  ;;  %v1985_v9 = vadd.f32 %v1984_v30, %v1900_v16  ;;  %v10320_v47 = vadd.f32 %v1745_v36, %v10140_v61  ;;  %v10323_v13 = vadd.f32 %v1634_v5, %v10143_v63 }
 0x460   :  { %v1964_v23 = vadd.f32 %v1963_v38, %v1899_v55  ;;  %v2006_v24 = vadd.f32 %v2005_v26, %v1901_v57  ;;  %v10326_v6 = vadd.f32 %v1747_v8, %v10146_v60  ;;  %v1796_v34 = vadd.f32 %v1795_v40, %v10317_v28 }
 0x461   :  { %15233 = vst [vmem:[#allocation64_spill] sm:$0xff] %v10323_v13  ;;  %v1902_v56 = vmul.f32 %v10317_v28, %v10317_v28  ;;  %v1838_v30 = vadd.f32 %v1837_v33, %v10320_v47  ;;  %v1904_v51 = vmul.f32 %v10320_v47, %v10320_v47  ;;  %v1817_v12 = vadd.f32 %v1816_v0, %v10323_v13  ;;  %v1638_v36 = vpop.f32.mrb[48].mxu0 }
 0x462   :  { %15234 = vst [vmem:[#allocation65_spill] sm:$0xff] %v10326_v6  ;;  %v1903_v38 = vmul.f32 %v10323_v13, %v10323_v13  ;;  %v1859_v26 = vadd.f32 %v1858_v27, %v10326_v6  ;;  %v1905_v21 = vmul.f32 %v10326_v6, %v10326_v6  ;;  %v1751_v40 = vpop.f32.mrb[48].mxu1  ;;  %v10341_v5 = vadd.f32 %v1638_v36, %v10137_v29  ;;  %v1640_v8 = vpop.f32.mrb[49].mxu0 }
 0x463   :  { %v1944_v3 = vadd.f32 %v1943_v32, %v1902_v56  ;;  %v1986_v16 = vadd.f32 %v1985_v9, %v1904_v51  ;;  %v10344_v33 = vadd.f32 %v1751_v40, %v10140_v61  ;;  %v1753_v0 = vpop.f32.mrb[49].mxu1  ;;  %v10347_v45 = vadd.f32 %v1640_v8, %v10143_v63  ;;  %v1642_v48 = vpop.f32.mrb[50].mxu0 }
 0x464   :  { %v1965_v55 = vadd.f32 %v1964_v23, %v1903_v38  ;;  %v2007_v57 = vadd.f32 %v2006_v24, %v1905_v21  ;;  %v10350_v27 = vadd.f32 %v1753_v0, %v10146_v60  ;;  %v1755_v11 = vpop.f32.mrb[50].mxu1  ;;  %v1797_v32 = vadd.f32 %v1796_v34, %v10341_v5  ;;  %v1644_v23 = vpop.f32.mrb[51].mxu0 }
 0x465   :  { %15235 = vst [vmem:[#allocation66_spill] sm:$0xff] %v10347_v45  ;;  %v1906_v9 = vmul.f32 %v10341_v5, %v10341_v5  ;;  %v1839_v56 = vadd.f32 %v1838_v30, %v10344_v33  ;;  %v1908_v51 = vmul.f32 %v10344_v33, %v10344_v33  ;;  %v1757_v24 = vpop.f32.mrb[51].mxu1  ;;  %v1818_v38 = vadd.f32 %v1817_v12, %v10347_v45 }
 0x466   :  { %15236 = vst [vmem:[#allocation67_spill] sm:$0xff] %v10350_v27  ;;  %v1907_v21 = vmul.f32 %v10347_v45, %v10347_v45  ;;  %v1860_v36 = vadd.f32 %v1859_v26, %v10350_v27  ;;  %v1909_v34 = vmul.f32 %v10350_v27, %v10350_v27  ;;  %v10365_v0 = vadd.f32 %v1642_v48, %v10137_v29 }
 0x467   :  { %v1945_v40 = vadd.f32 %v1944_v3, %v1906_v9  ;;  %v1987_v8 = vadd.f32 %v1986_v16, %v1908_v51  ;;  %v10368_v30 = vadd.f32 %v1755_v11, %v10140_v61  ;;  %v10371_v12 = vadd.f32 %v1644_v23, %v10143_v63 }
 0x468   :  { %v1966_v6 = vadd.f32 %v1965_v55, %v1907_v21  ;;  %v2008_v41 = vadd.f32 %v2007_v57, %v1909_v34  ;;  %v10374_v43 = vadd.f32 %v1757_v24, %v10146_v60  ;;  %v1798_v26 = vadd.f32 %v1797_v32, %v10365_v0 }
 0x469   :  { %15237 = vst [vmem:[#allocation68_spill] sm:$0xff] %v10371_v12  ;;  %v1910_v3 = vmul.f32 %v10365_v0, %v10365_v0  ;;  %v1840_v16 = vadd.f32 %v1839_v56, %v10368_v30  ;;  %v1912_v48 = vmul.f32 %v10368_v30, %v10368_v30  ;;  %v1819_v11 = vadd.f32 %v1818_v38, %v10371_v12  ;;  %v1648_v51 = vpop.f32.mrb[52].mxu0 }
 0x46a   :  { %15238 = vst [vmem:[#allocation69_spill] sm:$0xff] %v10374_v43  ;;  %v1911_v55 = vmul.f32 %v10371_v12, %v10371_v12  ;;  %v1861_v57 = vadd.f32 %v1860_v36, %v10374_v43  ;;  %v1913_v9 = vmul.f32 %v10374_v43, %v10374_v43  ;;  %v1761_v32 = vpop.f32.mrb[52].mxu1  ;;  %v10389_v21 = vadd.f32 %v1648_v51, %v10137_v29  ;;  %v1650_v34 = vpop.f32.mrb[53].mxu0 }
 0x46b   :  { %v1946_v23 = vadd.f32 %v1945_v40, %v1910_v3  ;;  %v1988_v24 = vadd.f32 %v1987_v8, %v1912_v48  ;;  %v10392_v56 = vadd.f32 %v1761_v32, %v10140_v61  ;;  %v1763_v38 = vpop.f32.mrb[53].mxu1  ;;  %v10395_v58 = vadd.f32 %v1650_v34, %v10143_v63  ;;  %v1652_v43 = vpop.f32.mrb[54].mxu0 }
 0x46c   :  { %v1967_v27 = vadd.f32 %v1966_v6, %v1911_v55  ;;  %v2009_v19 = vadd.f32 %v2008_v41, %v1913_v9  ;;  %v10398_v36 = vadd.f32 %v1763_v38, %v10146_v60  ;;  %v1765_v7 = vpop.f32.mrb[54].mxu1  ;;  %v1799_v40 = vadd.f32 %v1798_v26, %v10389_v21  ;;  %v1654_v6 = vpop.f32.mrb[55].mxu0 }
 0x46d   :  { %15239 = vst [vmem:[#allocation70_spill] sm:$0xff] %v10395_v58  ;;  %v1914_v8 = vmul.f32 %v10389_v21, %v10389_v21  ;;  %v1841_v3 = vadd.f32 %v1840_v16, %v10392_v56  ;;  %v1916_v48 = vmul.f32 %v10392_v56, %v10392_v56  ;;  %v1767_v41 = vpop.f32.mrb[55].mxu1  ;;  %v1820_v55 = vadd.f32 %v1819_v11, %v10395_v58 }
 0x46e   :  { %15240 = vst [vmem:[#allocation71_spill] sm:$0xff] %v10398_v36  ;;  %v1915_v9 = vmul.f32 %v10395_v58, %v10395_v58  ;;  %v1862_v51 = vadd.f32 %v1861_v57, %v10398_v36  ;;  %v1917_v26 = vmul.f32 %v10398_v36, %v10398_v36  ;;  %v10413_v38 = vadd.f32 %v1652_v43, %v10137_v29 }
 0x46f   :  { %v1947_v32 = vadd.f32 %v1946_v23, %v1914_v8  ;;  %v1989_v34 = vadd.f32 %v1988_v24, %v1916_v48  ;;  %v10416_v16 = vadd.f32 %v1765_v7, %v10140_v61  ;;  %v10419_v11 = vadd.f32 %v1654_v6, %v10143_v63 }
 0x470   :  { %v1968_v25 = vadd.f32 %v1967_v27, %v1915_v9  ;;  %v2010_v15 = vadd.f32 %v2009_v19, %v1917_v26  ;;  %v10422_v46 = vadd.f32 %v1767_v41, %v10146_v60  ;;  %v1800_v57 = vadd.f32 %v1799_v40, %v10413_v38 }
 0x471   :  { %15241 = vst [vmem:[#allocation72_spill] sm:$0xff] %v10419_v11  ;;  %v1918_v23 = vmul.f32 %v10413_v38, %v10413_v38  ;;  %v1842_v24 = vadd.f32 %v1841_v3, %v10416_v16  ;;  %v1920_v43 = vmul.f32 %v10416_v16, %v10416_v16  ;;  %v1821_v7 = vadd.f32 %v1820_v55, %v10419_v11  ;;  %v1658_v48 = vpop.f32.mrb[56].mxu0 }
 0x472   :  { %15242 = vst [vmem:[#allocation73_spill] sm:$0xff] %v10422_v46  ;;  %v1919_v19 = vmul.f32 %v10419_v11, %v10419_v11  ;;  %v1863_v27 = vadd.f32 %v1862_v51, %v10422_v46  ;;  %v1921_v8 = vmul.f32 %v10422_v46, %v10422_v46  ;;  %v1771_v40 = vpop.f32.mrb[56].mxu1  ;;  %v10437_v9 = vadd.f32 %v1658_v48, %v10137_v29  ;;  %v1660_v26 = vpop.f32.mrb[57].mxu0 }
 0x473   :  { %v1948_v6 = vadd.f32 %v1947_v32, %v1918_v23  ;;  %v1990_v41 = vadd.f32 %v1989_v34, %v1920_v43  ;;  %v10440_v3 = vadd.f32 %v1771_v40, %v10140_v61  ;;  %v1773_v55 = vpop.f32.mrb[57].mxu1  ;;  %v10443_v11 = vadd.f32 %v1660_v26, %v10143_v63  ;;  %v1662_v46 = vpop.f32.mrb[58].mxu0 }
 0x474   :  { %v1969_v36 = vadd.f32 %v1968_v25, %v1919_v19  ;;  %v2011_v58 = vadd.f32 %v2010_v15, %v1921_v8  ;;  %v10446_v51 = vadd.f32 %v1773_v55, %v10146_v60  ;;  %v1775_v12 = vpop.f32.mrb[58].mxu1  ;;  %v1801_v32 = vadd.f32 %v1800_v57, %v10437_v9  ;;  %v1664_v25 = vpop.f32.mrb[59].mxu0 }
 0x475   :  { %15243 = vst [vmem:[#allocation74_spill] sm:$0xff] %v10443_v11  ;;  %v1922_v34 = vmul.f32 %v10437_v9, %v10437_v9  ;;  %v1843_v23 = vadd.f32 %v1842_v24, %v10440_v3  ;;  %v1924_v43 = vmul.f32 %v10440_v3, %v10440_v3  ;;  %v1777_v15 = vpop.f32.mrb[59].mxu1  ;;  %v1822_v19 = vadd.f32 %v1821_v7, %v10443_v11 }
 0x476   :  { %15244 = vst [vmem:[#allocation75_spill] sm:$0xff] %v10446_v51  ;;  %v1923_v8 = vmul.f32 %v10443_v11, %v10443_v11  ;;  %v1864_v48 = vadd.f32 %v1863_v27, %v10446_v51  ;;  %v1925_v57 = vmul.f32 %v10446_v51, %v10446_v51  ;;  %v10461_v55 = vadd.f32 %v1662_v46, %v10137_v29 }
 0x477   :  { %v1949_v40 = vadd.f32 %v1948_v6, %v1922_v34  ;;  %v1991_v26 = vadd.f32 %v1990_v41, %v1924_v43  ;;  %v10464_v24 = vadd.f32 %v1775_v12, %v10140_v61  ;;  %v10467_v7 = vadd.f32 %v1664_v25, %v10143_v63 }
 0x478   :  { %v1970_v45 = vadd.f32 %v1969_v36, %v1923_v8  ;;  %v2012_v13 = vadd.f32 %v2011_v58, %v1925_v57  ;;  %v10470_v11 = vadd.f32 %v1777_v15, %v10146_v60  ;;  %v1802_v27 = vadd.f32 %v1801_v32, %v10461_v55 }
 0x479   :  { %15245 = vst [vmem:[#allocation76_spill] sm:$0xff] %v10467_v7  ;;  %v1926_v6 = vmul.f32 %v10461_v55, %v10461_v55  ;;  %v1844_v41 = vadd.f32 %v1843_v23, %v10464_v24  ;;  %v1928_v46 = vmul.f32 %v10464_v24, %v10464_v24  ;;  %v1823_v12 = vadd.f32 %v1822_v19, %v10467_v7  ;;  %v1668_v43 = vpop.f32.mrb[60].mxu0 }
 0x47a   :  { %15246 = vst [vmem:[#allocation77_spill] sm:$0xff] %v10470_v11  ;;  %v1927_v58 = vmul.f32 %v10467_v7, %v10467_v7  ;;  %v1865_v36 = vadd.f32 %v1864_v48, %v10470_v11  ;;  %v1929_v34 = vmul.f32 %v10470_v11, %v10470_v11  ;;  %v1781_v32 = vpop.f32.mrb[60].mxu1  ;;  %v10485_v8 = vadd.f32 %v1668_v43, %v10137_v29  ;;  %v1670_v57 = vpop.f32.mrb[61].mxu0 }
 0x47b   :  { %v1950_v25 = vadd.f32 %v1949_v40, %v1926_v6  ;;  %v1992_v15 = vadd.f32 %v1991_v26, %v1928_v46  ;;  %v10488_v23 = vadd.f32 %v1781_v32, %v10140_v61  ;;  %v1783_v19 = vpop.f32.mrb[61].mxu1  ;;  %v10491_v7 = vadd.f32 %v1670_v57, %v10143_v63  ;;  %v1672_v11 = vpop.f32.mrb[62].mxu0 }
 0x47c   :  { %v1971_v51 = vadd.f32 %v1970_v45, %v1927_v58  ;;  %v2013_v20 = vadd.f32 %v2012_v13, %v1929_v34  ;;  %v10494_v48 = vadd.f32 %v1783_v19, %v10146_v60  ;;  %v1785_v53 = vpop.f32.mrb[62].mxu1  ;;  %v1803_v40 = vadd.f32 %v1802_v27, %v10485_v8  ;;  %v1674_v45 = vpop.f32.mrb[63].mxu0 }
 0x47d   :  { %15247 = vst [vmem:[#allocation78_spill] sm:$0xff] %v10491_v7  ;;  %v1930_v26 = vmul.f32 %v10485_v8, %v10485_v8  ;;  %v1845_v6 = vadd.f32 %v1844_v41, %v10488_v23  ;;  %v1932_v46 = vmul.f32 %v10488_v23, %v10488_v23  ;;  %v1787_v13 = vpop.f32.mrb[63].mxu1  ;;  %v1824_v58 = vadd.f32 %v1823_v12, %v10491_v7 }
 0x47e   :  { %15248 = vst [vmem:[#allocation79_spill] sm:$0xff] %v10494_v48  ;;  %v1931_v34 = vmul.f32 %v10491_v7, %v10491_v7  ;;  %v1866_v43 = vadd.f32 %v1865_v36, %v10494_v48  ;;  %v1933_v27 = vmul.f32 %v10494_v48, %v10494_v48  ;;  %v10509_v19 = vadd.f32 %v1672_v11, %v10137_v29 }
 0x47f   :  { %v1951_v32 = vadd.f32 %v1950_v25, %v1930_v26  ;;  %v1993_v57 = vadd.f32 %v1992_v15, %v1932_v46  ;;  %v10512_v41 = vadd.f32 %v1785_v53, %v10140_v61  ;;  %v10515_v12 = vadd.f32 %v1674_v45, %v10143_v63 }
 0x480   :  { %v1972_v54 = vadd.f32 %v1971_v51, %v1931_v34  ;;  %v2014_v44 = vadd.f32 %v2013_v20, %v1933_v27  ;;  %v1804_v7 = vadd.f32 %v1803_v40, %v10509_v19  ;;  %v1934_v36 = vmul.f32 %v10509_v19, %v10509_v19 }
 0x481   :  { %15249 = vst [vmem:[#allocation80_spill] sm:$0xff] %v10512_v41  ;;  %15250 = vst [vmem:[#allocation81_spill] sm:$0xff] %v10515_v12  ;;  %v1846_v48 = vadd.f32 %v1845_v6, %v10512_v41  ;;  %v1936_v25 = vmul.f32 %v10512_v41, %v10512_v41  ;;  %v1825_v29 = vadd.f32 %v1824_v58, %v10515_v12 }
 0x482   :  { %v1935_v61 = vmul.f32 %v10515_v12, %v10515_v12  ;;  %v10527_v53 = vadd.f32 %v1787_v13, %v10146_v60  ;;  %v1805_v63 = vrot.slane %v1804_v7, 4  ;;  %v1952_v20 = vadd.f32 %v1951_v32, %v1934_v36 }
 0x483   :  { %v1847_v11 = vrot.slane %v1846_v48, 4  ;;  %v1994_v51 = vadd.f32 %v1993_v57, %v1936_v25  ;;  %v1826_v15 = vrot.slane %v1825_v29, 4 }
 0x484   :  { %15251 = vst [vmem:[#allocation82_spill] sm:$0xff] %v10527_v53  ;;  %v1973_v40 = vadd.f32 %v1972_v54, %v1935_v61  ;;  %v1867_v26 = vadd.f32 %v1866_v43, %v10527_v53  ;;  %v1937_v6 = vmul.f32 %v10527_v53, %v10527_v53  ;;  %v1806_v46 = vadd.f32 %v1805_v63, %v1804_v7 }
 0x485   :  { %v1953_v45 = vrot.slane %v1952_v20, 4  ;;  %v1848_v58 = vadd.f32 %v1847_v11, %v1846_v48  ;;  %v1995_v34 = vrot.slane %v1994_v51, 4  ;;  %v1827_v27 = vadd.f32 %v1826_v15, %v1825_v29  ;;  %v10532_v29 = vld [vmem:[#allocation22] sm:$0xf] }
 0x486   :  { %v1974_v12 = vrot.slane %v1973_v40, 4  ;;  %v1868_v42 = vrot.slane %v1867_v26, 4  ;;  %v2015_v60 = vadd.f32 %v2014_v44, %v1937_v6  ;;  %v1807_v13 = vrot.slane %v1806_v46, 2 }
 0x487   :  { %v1954_v52 = vadd.f32 %v1953_v45, %v1952_v20  ;;  %v1849_v32 = vrot.slane %v1848_v58, 2  ;;  %v1996_v36 = vadd.f32 %v1995_v34, %v1994_v51  ;;  %v1828_v57 = vrot.slane %v1827_v27, 2 }
 0x488   :  { %v1975_v25 = vadd.f32 %v1974_v12, %v1973_v40  ;;  %v1869_v54 = vadd.f32 %v1868_v42, %v1867_v26  ;;  %v2016_v61 = vrot.slane %v2015_v60, 4  ;;  %v1808_v43 = vadd.f32 %v1807_v13, %v1806_v46 }
 0x489   :  { %v1955_v14 = vrot.slane %v1954_v52, 2  ;;  %v1850_v41 = vadd.f32 %v1849_v32, %v1848_v58  ;;  %v1997_v53 = vrot.slane %v1996_v36, 2  ;;  %v1829_v7 = vadd.f32 %v1828_v57, %v1827_v27 }
 0x48a   :  { %v1976_v63 = vrot.slane %v1975_v25, 2  ;;  %v1870_v48 = vrot.slane %v1869_v54, 2  ;;  %v2017_v11 = vadd.f32 %v2016_v61, %v2015_v60  ;;  %v1809_v15 = vrot.slane %v1808_v43, 1 }
 0x48b   :  { %v1956_v44 = vadd.f32 %v1955_v14, %v1954_v52  ;;  %v1851_v6 = vrot.slane %v1850_v41, 1  ;;  %v1998_v20 = vadd.f32 %v1997_v53, %v1996_v36  ;;  %v1830_v45 = vrot.slane %v1829_v7, 1 }
 0x48c   :  { %v1977_v51 = vadd.f32 %v1976_v63, %v1975_v25  ;;  %v1871_v34 = vadd.f32 %v1870_v48, %v1869_v54  ;;  %v2018_v12 = vrot.slane %v2017_v11, 2  ;;  %v1810_v42 = vadd.f32 %v1809_v15, %v1808_v43 }
 0x48d   :  { %v1957_v40 = vrot.slane %v1956_v44, 1  ;;  %v1852_v26 = vadd.f32 %v1851_v6, %v1850_v41  ;;  %v1999_v46 = vrot.slane %v1998_v20, 1  ;;  %v10536_v58 = vrot.slane %v10532_v29, %v10131_v1 }
 0x48e   :  { %v1831_v27 = vadd.f32 %v1830_v45, %v1829_v7  ;;  %v1978_v60 = vrot.slane %v1977_v51, 1  ;;  %v1872_v13 = vrot.slane %v1871_v34, 1  ;;  %v10538_v57 = vmul.f32 0.0078125, %v1810_v42 }
 0x48f   :  { %v1958_v32 = vadd.f32 %v1957_v40, %v1956_v44  ;;  %v2000_v14 = vadd.f32 %v1999_v46, %v1998_v20  ;;  %v10540_v52 = vadd.f32 %v2018_v12, %v2017_v11  ;;  %v10542_v53 = vmul.f32 0.0078125, %v1852_v26  ;;  %v15254_v26 = vld [vmem:[#allocation50_spill] sm:$0xff] }
 0x490   :  { %v1979_v36 = vadd.f32 %v1978_v60, %v1977_v51  ;;  %v10544_v25 = vmul.f32 0.0078125, %v1831_v27  ;;  %v10546_v41 = vadd.f32 %v1872_v13, %v1871_v34  ;;  %v2030_v61 = vmul.f32 %v10538_v57, %v10538_v57  ;;  %v10629_v51 = vld [vmem:[#allocation20] sm:$0xf]  ;;  %v15269_v40 = vld [vmem:[#allocation46_spill] sm:$0xff] }
 0x491   :  { %v2026_v54 = vmul.f32 0.0078125, %v1958_v32  ;;  %v2028_v60 = vmul.f32 0.0078125, %v2000_v14  ;;  %v2032_v13 = vmul.f32 %v10542_v53, %v10542_v53  ;;  %v2179_v63 = vrot.slane %v10629_v51, %v15269_v40 }
 0x492   :  { %15252 = vst [vmem:[#allocation83_spill] sm:$0xff] %v10544_v25  ;;  %v2265_v7 = vrot.slane %v10532_v29, %v15269_v40  ;;  %v10657_v43 = vrot.slane %v10629_v51, %v10131_v1  ;;  %v10667_v42 = vmul.f32 0.0078125, %v10546_v41  ;;  %v15271_v40 = vsub.f32 %v10149_v37, %v10538_v57 }
 0x493   :  { %v2034_v44 = vsub.f32 %v2026_v54, %v2030_v61  ;;  %v2036_v14 = vsub.f32 %v2028_v60, %v2032_v13  ;;  %v2031_v61 = vmul.f32 %v10544_v25, %v10544_v25  ;;  %v2020_v60 = vrot.slane %v10540_v52, 1 }
 0x494   :  { %v15272_v1 = vsub.f32 %v10165_v22, %v10538_v57  ;;  %v15275_v41 = vsub.f32 %v10245_v18, %v10538_v57  ;;  %v15276_v37 = vsub.f32 %v10269_v2, %v10538_v57  ;;  %v15277_v22 = vsub.f32 %v10293_v4, %v10538_v57 }
 0x495   :  { %v2102_v27 = vadd.f32 0.8, %v2034_v44  ;;  %v2027_v44 = vmul.f32 0.0078125, %v1979_v36  ;;  %v2104_v45 = vadd.f32 0.8, %v2036_v14  ;;  %v10664_v15 = vadd.f32 %v2020_v60, %v10540_v52 }
 0x496   :  { %v15280_v18 = vsub.f32 %v10365_v0, %v10538_v57  ;;  %v15281_v2 = vsub.f32 %v10389_v21, %v10538_v57  ;;  %v15282_v4 = vsub.f32 %v10413_v38, %v10538_v57  ;;  %v15285_v0 = vsub.f32 %v10485_v8, %v10538_v57 }
 0x497   :  { %8681 = vrsqrt.f32 %v2102_v27  ;;  %v15253_v27 = vld [vmem:[#allocation80_spill] sm:$0xff]  ;;  %v2035_v20 = vsub.f32 %v2027_v44, %v2031_v61  ;;  %v15273_v61 = vsub.f32 %v10197_v39, %v10538_v57  ;;  %v15278_v39 = vsub.f32 %v10317_v28, %v10538_v57 }
 0x498   :  { %8683 = vrsqrt.f32 %v2104_v45  ;;  %v15283_v28 = vsub.f32 %v10437_v9, %v10538_v57  ;;  %v15286_v21 = vsub.f32 %v10509_v19, %v10538_v57 }
 0x499   :  { %v10661_v14 = vadd.f32 0.8, %v2035_v20  ;;  %v15274_v20 = vsub.f32 %v10221_v49, %v10538_v57  ;;  %v15279_v49 = vsub.f32 %v10341_v5, %v10538_v57  ;;  %v15284_v5 = vsub.f32 %v10461_v55, %v10538_v57 }
 0x49b   :  { %8685 = vrsqrt.f32 %v10661_v14 }
 0x4a1   :  { %v8682_v6 = vpop.eup %8681 }
 0x4a2   :  { %v2110_v48 = vmul.f32 %v8682_v6, %v15271_v40  ;;  %v2114_v11 = vmul.f32 %v8682_v6, %v15272_v1  ;;  %v2118_v45 = vmul.f32 %v8682_v6, %v15273_v61  ;;  %v2122_v52 = vmul.f32 %v8682_v6, %v15274_v20 }
 0x4a3   :  { %v2126_v60 = vmul.f32 %v8682_v6, %v15275_v41  ;;  %v2130_v40 = vmul.f32 %v8682_v6, %v15276_v37  ;;  %v2134_v1 = vmul.f32 %v8682_v6, %v15277_v22  ;;  %v2138_v61 = vmul.f32 %v8682_v6, %v15278_v39 }
 0x4a4   :  { %v2142_v20 = vmul.f32 %v8682_v6, %v15279_v49  ;;  %v2146_v41 = vmul.f32 %v8682_v6, %v15280_v18  ;;  %v2150_v37 = vmul.f32 %v8682_v6, %v15281_v2  ;;  %v2154_v22 = vmul.f32 %v8682_v6, %v15282_v4 }
 0x4a5   :  { %v2158_v39 = vmul.f32 %v8682_v6, %v15283_v28  ;;  %v2162_v49 = vmul.f32 %v8682_v6, %v15284_v5  ;;  %v2166_v18 = vmul.f32 %v8682_v6, %v15285_v0  ;;  %v2170_v2 = vmul.f32 %v8682_v6, %v15286_v21 }
 0x4a6   :  { %v2196_v44 = vmul.f32 %v2179_v63, %v2110_v48  ;;  %v2200_v36 = vmul.f32 %v2179_v63, %v2114_v11  ;;  %v2204_v38 = vmul.f32 %v2179_v63, %v2118_v45  ;;  %v2208_v4 = vmul.f32 %v2179_v63, %v2122_v52  ;;  %v8684_v11 = vpop.eup %8683 }
 0x4a7   :  { %v2212_v34 = vmul.f32 %v2179_v63, %v2126_v60  ;;  %v2216_v12 = vmul.f32 %v2179_v63, %v2130_v40  ;;  %v2220_v9 = vmul.f32 %v2179_v63, %v2134_v1  ;;  %v2224_v28 = vmul.f32 %v2179_v63, %v2138_v61 }
 0x4a8   :  { %v2228_v46 = vmul.f32 %v2179_v63, %v2142_v20  ;;  %v2232_v54 = vmul.f32 %v2179_v63, %v2146_v41  ;;  %v2236_v55 = vmul.f32 %v2179_v63, %v2150_v37  ;;  %v2240_v5 = vmul.f32 %v2179_v63, %v2154_v22  ;;  %v15339_v37 = vld [vmem:[#allocation71_spill] sm:$0xff]  ;;  %v15342_v20 = vld [vmem:[#allocation77_spill] sm:$0xff] }
 0x4a9   :  { %v2244_v32 = vmul.f32 %v2179_v63, %v2158_v39  ;;  %v2248_v13 = vmul.f32 %v2179_v63, %v2162_v49  ;;  %v2252_v8 = vmul.f32 %v2179_v63, %v2166_v18  ;;  %v2256_v0 = vmul.f32 %v2179_v63, %v2170_v2  ;;  %v15336_v49 = vld [vmem:[#allocation65_spill] sm:$0xff]  ;;  %v15337_v39 = vld [vmem:[#allocation67_spill] sm:$0xff] }
 0x4aa   :  { %v10717_v25 = vadd.f32 %v2265_v7, %v2196_v44  ;;  %v10719_v19 = vadd.f32 %v2265_v7, %v2200_v36  ;;  %v10721_v57 = vadd.f32 %v2265_v7, %v2204_v38  ;;  %v10723_v48 = vadd.f32 %v2265_v7, %v2208_v4  ;;  %v15345_v22 = vld [vmem:[#allocation49_spill] sm:$0xff] }
 0x4ab   :  { %v10725_v6 = vadd.f32 %v2265_v7, %v2212_v34  ;;  %v10727_v45 = vadd.f32 %v2265_v7, %v2216_v12  ;;  %v10729_v52 = vadd.f32 %v2265_v7, %v2220_v9  ;;  %v10731_v60 = vadd.f32 %v2265_v7, %v2224_v28 }
 0x4ac   :  { %v10733_v40 = vadd.f32 %v2265_v7, %v2228_v46  ;;  %v10735_v63 = vadd.f32 %v2265_v7, %v2232_v54  ;;  %v10737_v44 = vadd.f32 %v2265_v7, %v2236_v55  ;;  %v10739_v36 = vadd.f32 %v2265_v7, %v2240_v5  ;;  %v15341_v46 = vld [vmem:[#allocation75_spill] sm:$0xff]  ;;  %v8686_v54 = vpop.eup %8685 }
 0x4ad   :  { %15287 = vst [vmem:[#allocation80_spill] sm:$0xff] %v10729_v52  ;;  %15288 = vst [vmem:[#allocation50_spill] sm:$0xff] %v10731_v60  ;;  %v10741_v1 = vadd.f32 %v2265_v7, %v2244_v32  ;;  %v10743_v61 = vadd.f32 %v2265_v7, %v2248_v13  ;;  %v10745_v34 = vadd.f32 %v2265_v7, %v2252_v8  ;;  %v15338_v32 = vld [vmem:[#allocation69_spill] sm:$0xff]  ;;  %v15344_v13 = vld [vmem:[#allocation82_spill] sm:$0xff] }
 0x4ae   :  { %15289 = vst [vmem:[#allocation84_spill] sm:$0xff] %v10733_v40  ;;  %15290 = vst [vmem:[#allocation85_spill] sm:$0xff] %v10735_v63  ;;  %v10747_v12 = vadd.f32 %v2265_v7, %v2256_v0  ;;  %v15297_v9 = vsub.f32 %v10152_v62, %v10542_v53  ;;  %v15298_v55 = vsub.f32 %v10168_v50, %v10542_v53  ;;  %v15343_v7 = vld [vmem:[#allocation79_spill] sm:$0xff] }
 0x4af   :  { %15291 = vst [vmem:[#allocation86_spill] sm:$0xff] %v10737_v44  ;;  %15292 = vst [vmem:[#allocation87_spill] sm:$0xff] %v10739_v36  ;;  %v15299_v8 = vsub.f32 %v10200_v35, %v10542_v53  ;;  %v15300_v21 = vsub.f32 %v10224_v59, %v10542_v53  ;;  %v15301_v38 = vsub.f32 %v10248_v10, %v10542_v53 }
 0x4b0   :  { %15293 = vst [vmem:[#allocation88_spill] sm:$0xff] %v10741_v1  ;;  %15294 = vst [vmem:[#allocation89_spill] sm:$0xff] %v10743_v61  ;;  %v2112_v28 = vmul.f32 %v8684_v11, %v15297_v9  ;;  %v2116_v5 = vmul.f32 %v8684_v11, %v15298_v55  ;;  %v15302_v62 = vsub.f32 %v10272_v31, %v10542_v53 }
 0x4b1   :  { %15295 = vst [vmem:[#allocation90_spill] sm:$0xff] %v10745_v34  ;;  %15296 = vst [vmem:[#allocation91_spill] sm:$0xff] %v10747_v12  ;;  %v2120_v0 = vmul.f32 %v8684_v11, %v15299_v8  ;;  %v2124_v2 = vmul.f32 %v8684_v11, %v15300_v21  ;;  %v2128_v4 = vmul.f32 %v8684_v11, %v15301_v38  ;;  %v15377_v12 = vld [vmem:[#allocation81_spill] sm:$0xff] }
 0x4b2   :  { %v2132_v9 = vmul.f32 %v8684_v11, %v15302_v62  ;;  %v15303_v50 = vsub.f32 %v10296_v17, %v10542_v53  ;;  %v15304_v35 = vsub.f32 %v10320_v47, %v10542_v53  ;;  %v15305_v59 = vsub.f32 %v10344_v33, %v10542_v53 }
 0x4b3   :  { %v15306_v10 = vsub.f32 %v10368_v30, %v10542_v53  ;;  %v15307_v31 = vsub.f32 %v10392_v56, %v10542_v53  ;;  %v15308_v17 = vsub.f32 %v10416_v16, %v10542_v53  ;;  %v15309_v47 = vsub.f32 %v10440_v3, %v10542_v53 }
 0x4b4   :  { %v2136_v55 = vmul.f32 %v8684_v11, %v15303_v50  ;;  %v2140_v8 = vmul.f32 %v8684_v11, %v15304_v35  ;;  %v2144_v21 = vmul.f32 %v8684_v11, %v15305_v59  ;;  %v15310_v33 = vsub.f32 %v10464_v24, %v10542_v53 }
 0x4b5   :  { %v2148_v38 = vmul.f32 %v8684_v11, %v15306_v10  ;;  %v2152_v62 = vmul.f32 %v8684_v11, %v15307_v31  ;;  %v2156_v50 = vmul.f32 %v8684_v11, %v15308_v17  ;;  %v2160_v35 = vmul.f32 %v8684_v11, %v15309_v47 }
 0x4b6   :  { %v2164_v59 = vmul.f32 %v8684_v11, %v15310_v33  ;;  %v15311_v30 = vsub.f32 %v10488_v23, %v10542_v53  ;;  %v15312_v56 = vsub.f32 %v15253_v27, %v10542_v53  ;;  %v2198_v18 = vmul.f32 %v10657_v43, %v2112_v28 }
 0x4b7   :  { %v2202_v16 = vmul.f32 %v10657_v43, %v2116_v5  ;;  %v2206_v17 = vmul.f32 %v10657_v43, %v2120_v0  ;;  %v2210_v3 = vmul.f32 %v10657_v43, %v2124_v2  ;;  %v2214_v47 = vmul.f32 %v10657_v43, %v2128_v4 }
 0x4b8   :  { %v2168_v10 = vmul.f32 %v8684_v11, %v15311_v30  ;;  %v2172_v31 = vmul.f32 %v8684_v11, %v15312_v56  ;;  %v2218_v24 = vmul.f32 %v10657_v43, %v2132_v9  ;;  %v2222_v33 = vmul.f32 %v10657_v43, %v2136_v55 }
 0x4b9   :  { %v2226_v23 = vmul.f32 %v10657_v43, %v2140_v8  ;;  %v2230_v30 = vmul.f32 %v10657_v43, %v2144_v21  ;;  %v2234_v53 = vmul.f32 %v10657_v43, %v2148_v38  ;;  %v2238_v27 = vmul.f32 %v10657_v43, %v2152_v62 }
 0x4ba   :  { %v2242_v11 = vmul.f32 %v10657_v43, %v2156_v50  ;;  %v2246_v28 = vmul.f32 %v10657_v43, %v2160_v35  ;;  %v2250_v2 = vmul.f32 %v10657_v43, %v2164_v59  ;;  %v2254_v4 = vmul.f32 %v10657_v43, %v2168_v10 }
 0x4bb   :  { %v2258_v5 = vmul.f32 %v10657_v43, %v2172_v31  ;;  %v10830_v0 = vadd.f32 %v10536_v58, %v2198_v18  ;;  %v10833_v9 = vadd.f32 %v10536_v58, %v2202_v16  ;;  %v10836_v55 = vadd.f32 %v10536_v58, %v2206_v17 }
 0x4bc   :  { %v10839_v8 = vadd.f32 %v10536_v58, %v2210_v3  ;;  %v10842_v21 = vadd.f32 %v10536_v58, %v2214_v47  ;;  %v10845_v38 = vadd.f32 %v10536_v58, %v2218_v24  ;;  %v10848_v43 = vadd.f32 %v10536_v58, %v2222_v33  ;;  %v15335_v3 = vld [vmem:[#allocation63_spill] sm:$0xff] }
 0x4bd   :  { %15313 = vst [vmem:[#allocation92_spill] sm:$0xff] %v10830_v0  ;;  %15314 = vst [vmem:[#allocation93_spill] sm:$0xff] %v10833_v9  ;;  %v10851_v18 = vadd.f32 %v10536_v58, %v2226_v23  ;;  %v10854_v62 = vadd.f32 %v10536_v58, %v2230_v30  ;;  %v10857_v50 = vadd.f32 %v10536_v58, %v2234_v53  ;;  %v2029_v53 = vmul.f32 0.0078125, %v10664_v15  ;;  %v15333_v23 = vld [vmem:[#allocation59_spill] sm:$0xff]  ;;  %v15334_v15 = vld [vmem:[#allocation61_spill] sm:$0xff] }
 0x4be   :  { %15315 = vst [vmem:[#allocation94_spill] sm:$0xff] %v10836_v55  ;;  %15316 = vst [vmem:[#allocation95_spill] sm:$0xff] %v10839_v8  ;;  %v10860_v35 = vadd.f32 %v10536_v58, %v2238_v27  ;;  %v10863_v59 = vadd.f32 %v10536_v58, %v2242_v11  ;;  %v10866_v10 = vadd.f32 %v10536_v58, %v2246_v28  ;;  %v15330_v28 = vld [vmem:[#allocation53_spill] sm:$0xff]  ;;  %v15346_v30 = vld [vmem:[#allocation47_spill] sm:$0xff] }
 0x4bf   :  { %15317 = vst [vmem:[#allocation96_spill] sm:$0xff] %v10842_v21  ;;  %15318 = vst [vmem:[#allocation97_spill] sm:$0xff] %v10845_v38  ;;  %v10869_v56 = vadd.f32 %v10536_v58, %v2250_v2  ;;  %v10872_v31 = vadd.f32 %v10536_v58, %v2254_v4  ;;  %v10875_v16 = vadd.f32 %v10536_v58, %v2258_v5  ;;  %v15329_v58 = vld [vmem:[#allocation51_spill] sm:$0xff]  ;;  %v15332_v5 = vld [vmem:[#allocation57_spill] sm:$0xff] }
 0x4c0   :  { %15319 = vst [vmem:[#allocation98_spill] sm:$0xff] %v10848_v43  ;;  %15320 = vst [vmem:[#allocation99_spill] sm:$0xff] %v10851_v18  ;;  %v2033_v27 = vmul.f32 %v10667_v42, %v10667_v42  ;;  %v15331_v2 = vld [vmem:[#allocation55_spill] sm:$0xff]  ;;  %v10931_v4 = vrot.slane %v10532_v29, %v15345_v22  ;;  %v2269_v41 = vrot.slane %v10532_v29, %v15346_v30  ;;  %v15349_v11 = vld [vmem:[#allocation52_spill] sm:$0xff] }
 0x4c1   :  { %15321 = vst [vmem:[#allocation100_spill] sm:$0xff] %v10854_v62  ;;  %15322 = vst [vmem:[#allocation101_spill] sm:$0xff] %v10857_v50  ;;  %v10939_v17 = vrot.slane %v10629_v51, %v15345_v22  ;;  %v15347_v47 = vld [vmem:[#allocation83_spill] sm:$0xff]  ;;  %v15357_v50 = vld [vmem:[#allocation60_spill] sm:$0xff] }
 0x4c2   :  { %15323 = vst [vmem:[#allocation102_spill] sm:$0xff] %v10860_v35  ;;  %15324 = vst [vmem:[#allocation103_spill] sm:$0xff] %v10863_v59  ;;  %v2037_v24 = vsub.f32 %v2029_v53, %v2033_v27  ;;  %v15340_v53 = vld [vmem:[#allocation73_spill] sm:$0xff]  ;;  %v2183_v27 = vrot.slane %v10629_v51, %v15346_v30  ;;  %v15348_v14 = vsub.f32 %v15254_v26, %v15347_v47  ;;  %v15353_v35 = vld [vmem:[#allocation56_spill] sm:$0xff] }
 0x4c3   :  { %15325 = vst [vmem:[#allocation104_spill] sm:$0xff] %v10866_v10  ;;  %15326 = vst [vmem:[#allocation105_spill] sm:$0xff] %v10869_v56  ;;  %v15351_v56 = vld [vmem:[#allocation54_spill] sm:$0xff]  ;;  %v15354_v29 = vsub.f32 %v15353_v35, %v15347_v47  ;;  %v15358_v26 = vsub.f32 %v15357_v50, %v15347_v47  ;;  %v15361_v18 = vld [vmem:[#allocation64_spill] sm:$0xff] }
 0x4c4   :  { %15327 = vst [vmem:[#allocation106_spill] sm:$0xff] %v10872_v31  ;;  %15328 = vst [vmem:[#allocation107_spill] sm:$0xff] %v10875_v16  ;;  %v2105_v33 = vadd.f32 0.8, %v2037_v24  ;;  %v2111_v24 = vmul.f32 %v8686_v54, %v15348_v14  ;;  %v15350_v16 = vsub.f32 %v15349_v11, %v15347_v47  ;;  %v15352_v10 = vsub.f32 %v15351_v56, %v15347_v47  ;;  %v15355_v30 = vld [vmem:[#allocation58_spill] sm:$0xff]  ;;  %v15365_v38 = vld [vmem:[#allocation68_spill] sm:$0xff] }
 0x4c5   :  { %v15356_v51 = vsub.f32 %v15355_v30, %v15347_v47  ;;  %v2131_v14 = vmul.f32 %v8686_v54, %v15358_v26  ;;  %v15359_v62 = vld [vmem:[#allocation62_spill] sm:$0xff]  ;;  %v15362_v56 = vsub.f32 %v15361_v18, %v15347_v47  ;;  %v15366_v30 = vsub.f32 %v15365_v38, %v15347_v47  ;;  %v15369_v8 = vld [vmem:[#allocation72_spill] sm:$0xff] }
 0x4c6   :  { %8687 = vrsqrt.f32 %v2105_v33  ;;  %v2115_v31 = vmul.f32 %v8686_v54, %v15350_v16  ;;  %v2119_v59 = vmul.f32 %v8686_v54, %v15352_v10  ;;  %v2123_v33 = vmul.f32 %v8686_v54, %v15354_v29  ;;  %v15363_v43 = vld [vmem:[#allocation66_spill] sm:$0xff]  ;;  %v15373_v9 = vld [vmem:[#allocation76_spill] sm:$0xff] }
 0x4c7   :  { %v2127_v22 = vmul.f32 %v8686_v54, %v15356_v51  ;;  %v15360_v11 = vsub.f32 %v15359_v62, %v15347_v47  ;;  %v2139_v10 = vmul.f32 %v8686_v54, %v15362_v56  ;;  %v15364_v35 = vsub.f32 %v15363_v43, %v15347_v47  ;;  %v15367_v21 = vld [vmem:[#allocation70_spill] sm:$0xff] }
 0x4c8   :  { %v2147_v51 = vmul.f32 %v8686_v54, %v15366_v30  ;;  %v15368_v50 = vsub.f32 %v15367_v21, %v15347_v47  ;;  %v15370_v62 = vsub.f32 %v15369_v8, %v15347_v47  ;;  %v15371_v55 = vld [vmem:[#allocation74_spill] sm:$0xff]  ;;  %v15374_v43 = vsub.f32 %v15373_v9, %v15347_v47 }
 0x4c9   :  { %v2135_v16 = vmul.f32 %v8686_v54, %v15360_v11  ;;  %v2143_v29 = vmul.f32 %v8686_v54, %v15364_v35  ;;  %v15372_v18 = vsub.f32 %v15371_v55, %v15347_v47  ;;  %v15375_v0 = vld [vmem:[#allocation78_spill] sm:$0xff]  ;;  %v15378_v21 = vsub.f32 %v15377_v12, %v15347_v47 }
 0x4ca   :  { %v2151_v26 = vmul.f32 %v8686_v54, %v15368_v50  ;;  %v2155_v11 = vmul.f32 %v8686_v54, %v15370_v62  ;;  %v2163_v35 = vmul.f32 %v8686_v54, %v15374_v43  ;;  %v15376_v38 = vsub.f32 %v15375_v0, %v15347_v47 }
 0x4cb   :  { %v2159_v56 = vmul.f32 %v8686_v54, %v15372_v18  ;;  %v2171_v50 = vmul.f32 %v8686_v54, %v15378_v21  ;;  %v2197_v34 = vmul.f32 %v2183_v27, %v2111_v24  ;;  %v2201_v61 = vmul.f32 %v2183_v27, %v2115_v31 }
 0x4cc   :  { %v2167_v30 = vmul.f32 %v8686_v54, %v15376_v38  ;;  %v2205_v8 = vmul.f32 %v2183_v27, %v2119_v59  ;;  %v2209_v62 = vmul.f32 %v2183_v27, %v2123_v33  ;;  %v2213_v1 = vmul.f32 %v2183_v27, %v2127_v22 }
 0x4cd   :  { %v2217_v36 = vmul.f32 %v2183_v27, %v2131_v14  ;;  %v2221_v55 = vmul.f32 %v2183_v27, %v2135_v16  ;;  %v2225_v18 = vmul.f32 %v2183_v27, %v2139_v10  ;;  %v2229_v44 = vmul.f32 %v2183_v27, %v2143_v29 }
 0x4ce   :  { %v2233_v63 = vmul.f32 %v2183_v27, %v2147_v51  ;;  %v2237_v9 = vmul.f32 %v2183_v27, %v2151_v26  ;;  %v2241_v43 = vmul.f32 %v2183_v27, %v2155_v11  ;;  %v2245_v40 = vmul.f32 %v2183_v27, %v2159_v56 }
 0x4cf   :  { %v2249_v60 = vmul.f32 %v2183_v27, %v2163_v35  ;;  %v2253_v0 = vmul.f32 %v2183_v27, %v2167_v30  ;;  %v2257_v38 = vmul.f32 %v2183_v27, %v2171_v50  ;;  %v10989_v52 = vadd.f32 %v2269_v41, %v2197_v34 }
 0x4d0   :  { %v10991_v12 = vadd.f32 %v2269_v41, %v2201_v61  ;;  %v10993_v54 = vadd.f32 %v2269_v41, %v2205_v8  ;;  %v10995_v59 = vadd.f32 %v2269_v41, %v2209_v62  ;;  %v8688_v22 = vpop.eup %8687  ;;  %v10997_v31 = vadd.f32 %v2269_v41, %v2213_v1 }
 0x4d1   :  { %v10999_v47 = vadd.f32 %v2269_v41, %v2217_v36  ;;  %v11001_v24 = vadd.f32 %v2269_v41, %v2221_v55  ;;  %v11003_v33 = vadd.f32 %v2269_v41, %v2225_v18  ;;  %v11005_v14 = vadd.f32 %v2269_v41, %v2229_v44 }
 0x4d2   :  { %v11007_v27 = vadd.f32 %v2269_v41, %v2233_v63  ;;  %v11009_v34 = vadd.f32 %v2269_v41, %v2237_v9  ;;  %v11011_v61 = vadd.f32 %v2269_v41, %v2241_v43  ;;  %v11013_v16 = vadd.f32 %v2269_v41, %v2245_v40 }
 0x4d3   :  { %v11015_v10 = vadd.f32 %v2269_v41, %v2249_v60  ;;  %v11017_v1 = vadd.f32 %v2269_v41, %v2253_v0  ;;  %v11019_v36 = vadd.f32 %v2269_v41, %v2257_v38  ;;  %v2347_v29 = vmax.f32 %v10989_v52, 0.0 }
 0x4d4   :  { %v2351_v51 = vmax.f32 %v10991_v12, 0.0  ;;  %v2355_v44 = vmax.f32 %v10993_v54, 0.0  ;;  %v2359_v63 = vmax.f32 %v10995_v59, 0.0  ;;  %v2363_v26 = vmax.f32 %v10997_v31, 0.0 }
 0x4d5   :  { %v2367_v11 = vmax.f32 %v10999_v47, 0.0  ;;  %v2371_v40 = vmax.f32 %v11001_v24, 0.0  ;;  %v2375_v60 = vmax.f32 %v11003_v33, 0.0  ;;  %v2379_v56 = vmax.f32 %v11005_v14, 0.0 }
 0x4d6   :  { %v2383_v41 = vmax.f32 %v11007_v27, 0.0  ;;  %v2387_v35 = vmax.f32 %v11009_v34, 0.0  ;;  %v15379_v55 = vsub.f32 %v15329_v58, %v10667_v42  ;;  %v15380_v9 = vsub.f32 %v15330_v28, %v10667_v42 }
 0x4d7   :  { %v15381_v0 = vsub.f32 %v15331_v2, %v10667_v42  ;;  %v15382_v21 = vsub.f32 %v15332_v5, %v10667_v42  ;;  %v15383_v8 = vsub.f32 %v15333_v23, %v10667_v42  ;;  %v15384_v58 = vsub.f32 %v15334_v15, %v10667_v42 }
 0x4d8   :  { %v2113_v18 = vmul.f32 %v8688_v22, %v15379_v55  ;;  %v2117_v43 = vmul.f32 %v8688_v22, %v15380_v9  ;;  %v15385_v28 = vsub.f32 %v15335_v3, %v10667_v42  ;;  %v15386_v2 = vsub.f32 %v15336_v49, %v10667_v42 }
 0x4d9   :  { %v2121_v38 = vmul.f32 %v8688_v22, %v15381_v0  ;;  %v2125_v50 = vmul.f32 %v8688_v22, %v15382_v21  ;;  %v2129_v62 = vmul.f32 %v8688_v22, %v15383_v8  ;;  %v2133_v55 = vmul.f32 %v8688_v22, %v15384_v58 }
 0x4da   :  { %v2137_v9 = vmul.f32 %v8688_v22, %v15385_v28  ;;  %v2141_v0 = vmul.f32 %v8688_v22, %v15386_v2  ;;  %v15387_v5 = vsub.f32 %v15337_v39, %v10667_v42  ;;  %v15388_v23 = vsub.f32 %v15338_v32, %v10667_v42 }
 0x4db   :  { %v15389_v15 = vsub.f32 %v15339_v37, %v10667_v42  ;;  %v15390_v3 = vsub.f32 %v15340_v53, %v10667_v42  ;;  %v15391_v49 = vsub.f32 %v15341_v46, %v10667_v42  ;;  %v15392_v39 = vsub.f32 %v15342_v20, %v10667_v42 }
 0x4dc   :  { %v2145_v21 = vmul.f32 %v8688_v22, %v15387_v5  ;;  %v2149_v8 = vmul.f32 %v8688_v22, %v15388_v23  ;;  %v15393_v32 = vsub.f32 %v15343_v7, %v10667_v42  ;;  %v15394_v37 = vsub.f32 %v15344_v13, %v10667_v42 }
 0x4dd   :  { %v2153_v58 = vmul.f32 %v8688_v22, %v15389_v15  ;;  %v2157_v28 = vmul.f32 %v8688_v22, %v15390_v3  ;;  %v2161_v2 = vmul.f32 %v8688_v22, %v15391_v49  ;;  %v2165_v5 = vmul.f32 %v8688_v22, %v15392_v39 }
 0x4de   :  { %v2169_v23 = vmul.f32 %v8688_v22, %v15393_v32  ;;  %v2173_v15 = vmul.f32 %v8688_v22, %v15394_v37  ;;  %v2199_v30 = vmul.f32 %v10939_v17, %v2113_v18  ;;  %v2203_v53 = vmul.f32 %v10939_v17, %v2117_v43 }
 0x4df   :  { %v2207_v3 = vmul.f32 %v10939_v17, %v2121_v38  ;;  %v2211_v46 = vmul.f32 %v10939_v17, %v2125_v50  ;;  %v2215_v49 = vmul.f32 %v10939_v17, %v2129_v62  ;;  %v2219_v20 = vmul.f32 %v10939_v17, %v2133_v55 }
 0x4e0   :  { %v2223_v39 = vmul.f32 %v10939_v17, %v2137_v9  ;;  %v2227_v7 = vmul.f32 %v10939_v17, %v2141_v0  ;;  %v2231_v32 = vmul.f32 %v10939_v17, %v2145_v21  ;;  %v2235_v42 = vmul.f32 %v10939_v17, %v2149_v8 }
 0x4e1   :  { %v2239_v13 = vmul.f32 %v10939_v17, %v2153_v58  ;;  %v2243_v22 = vmul.f32 %v10939_v17, %v2157_v28  ;;  %v2247_v18 = vmul.f32 %v10939_v17, %v2161_v2  ;;  %v2251_v50 = vmul.f32 %v10939_v17, %v2165_v5 }
 0x4e2   :  { %v2255_v62 = vmul.f32 %v10939_v17, %v2169_v23  ;;  %v2259_v43 = vmul.f32 %v10939_v17, %v2173_v15  ;;  %v11102_v38 = vadd.f32 %v10931_v4, %v2199_v30  ;;  %v11105_v55 = vadd.f32 %v10931_v4, %v2203_v53 }
 0x4e3   :  { %v11108_v9 = vadd.f32 %v10931_v4, %v2207_v3  ;;  %v11111_v0 = vadd.f32 %v10931_v4, %v2211_v46  ;;  %v11114_v21 = vadd.f32 %v10931_v4, %v2215_v49  ;;  %v11117_v8 = vadd.f32 %v10931_v4, %v2219_v20 }
 0x4e4   :  { %v11120_v17 = vadd.f32 %v10931_v4, %v2223_v39  ;;  %v11123_v30 = vadd.f32 %v10931_v4, %v2227_v7  ;;  %v11126_v58 = vadd.f32 %v10931_v4, %v2231_v32  ;;  %v11129_v28 = vadd.f32 %v10931_v4, %v2235_v42 }
 0x4e5   :  { %v11132_v2 = vadd.f32 %v10931_v4, %v2239_v13  ;;  %v11135_v5 = vadd.f32 %v10931_v4, %v2243_v22  ;;  %v11138_v23 = vadd.f32 %v10931_v4, %v2247_v18  ;;  %v11141_v37 = vadd.f32 %v10931_v4, %v2251_v50 }
 0x4e6   :  { %v11144_v15 = vadd.f32 %v10931_v4, %v2255_v62  ;;  %v11147_v53 = vadd.f32 %v10931_v4, %v2259_v43  ;;  %v2349_v3 = vmax.f32 %v11102_v38, 0.0  ;;  %v2353_v46 = vmax.f32 %v11105_v55, 0.0 }
 0x4e7   :  { %v2357_v49 = vmax.f32 %v11108_v9, 0.0  ;;  %v2361_v20 = vmax.f32 %v11111_v0, 0.0 }
 0x4e8   :  { %9301 = dma.done.wait [#allocation4], 32768 }
 0x4e9   :  { %9302 = vsyncadd [#allocation4], 4294934528  ;;  %v11169_v13 = vpack.c.bf16 %v2351_v51, %v2347_v29  ;;  %v2447_v18 = vld [vmem:[#allocation2 + $0x8] sm:$0xff]  ;;  %v2449_v50 = vld [vmem:[#allocation2 + $0x18] sm:$0xff]  ;;  %v15396_v39 = vmax.f32 %v10719_v19, 0.0  ;;  %v15397_v59 = vmax.f32 %v10721_v57, 0.0 }
 0x4ea   :  { %v2446_v22 = vld [vmem:[#allocation2] sm:$0xff]  ;;  %2744 = vmatprep.subr.bf16.mxu0 %v2447_v18  ;;  %2970 = vmatprep.subr.bf16.mxu1 %v2449_v50  ;;  %v2448_v43 = vld [vmem:[#allocation2 + $0x10] sm:$0xff]  ;;  %v2455_v62 = vld [vmem:[#allocation2 + $0x48] sm:$0xff]  ;;  %v15399_v47 = vmax.f32 %v10725_v6, 0.0 }
 0x4eb   :  { %2776 = vmatprep.mubr.bf16.mxu0 %v11169_v13  ;;  %3002 = vmatprep.mubr.bf16.mxu1 %v11169_v13  ;;  %v2457_v7 = vld [vmem:[#allocation2 + $0x58] sm:$0xff]  ;;  %v2454_v52 = vld [vmem:[#allocation2 + $0x40] sm:$0xff]  ;;  %v2456_v12 = vld [vmem:[#allocation2 + $0x50] sm:$0xff] }
 0x4ec   :  { %2745 = vmatpush1.bf16.msra.mxu0 %v2446_v22  ;;  %2971 = vmatpush1.bf16.msra.mxu1 %v2448_v43  ;;  %v2463_v29 = vld [vmem:[#allocation2 + $0x88] sm:$0xff]  ;;  %v2465_v51 = vld [vmem:[#allocation2 + $0x98] sm:$0xff]  ;;  %v2462_v4 = vld [vmem:[#allocation2 + $0x80] sm:$0xff] }
 0x4ed   :  { %2746 = vmatprep.subr.bf16.mxu0 %v2455_v62  ;;  %2972 = vmatprep.subr.bf16.mxu1 %v2457_v7  ;;  %v2464_v42 = vld [vmem:[#allocation2 + $0x90] sm:$0xff]  ;;  %v2471_v32 = vld [vmem:[#allocation2 + $0xc8] sm:$0xff]  ;;  %v2473_v18 = vld [vmem:[#allocation2 + $0xd8] sm:$0xff] }
 0x4ee   :  { %v2470_v22 = vld [vmem:[#allocation2 + $0xc0] sm:$0xff]  ;;  %v2472_v50 = vld [vmem:[#allocation2 + $0xd0] sm:$0xff]  ;;  %v2479_v62 = vld [vmem:[#allocation2 + $0x108] sm:$0xff] }
 0x4ef   :  { %v2481_v7 = vld [vmem:[#allocation2 + $0x118] sm:$0xff]  ;;  %v2478_v43 = vld [vmem:[#allocation2 + $0x100] sm:$0xff]  ;;  %v2584_v19 = vld [vmem:[#allocation2 + $0x450] sm:$0xff] }
 0x4f0   :  { %2747 = vmatpush1.bf16.msra.mxu0 %v2454_v52  ;;  %2973 = vmatpush1.bf16.msra.mxu1 %v2456_v12  ;;  %v2480_v52 = vld [vmem:[#allocation2 + $0x110] sm:$0xff]  ;;  %v2487_v12 = vld [vmem:[#allocation2 + $0x148] sm:$0xff]  ;;  %v2593_v54 = vld [vmem:[#allocation2 + $0x498] sm:$0xff] }
 0x4f1   :  { %2748 = vmatprep.subr.bf16.mxu0 %v2463_v29  ;;  %2974 = vmatprep.subr.bf16.mxu1 %v2465_v51  ;;  %v2489_v29 = vld [vmem:[#allocation2 + $0x158] sm:$0xff]  ;;  %v2598_v57 = vld [vmem:[#allocation2 + $0x4c0] sm:$0xff] }
 0x4f2   :  { %v2497_v51 = vld [vmem:[#allocation2 + $0x198] sm:$0xff]  ;;  %v2614_v6 = vld [vmem:[#allocation2 + $0x540] sm:$0xff] }
 0x4f3   :  { %v2609_v31 = vld [vmem:[#allocation2 + $0x518] sm:$0xff] }
 0x4f4   :  { %2749 = vmatpush1.bf16.msra.mxu0 %v2462_v4  ;;  %2975 = vmatpush1.bf16.msra.mxu1 %v2464_v42  ;;  %v2486_v4 = vld [vmem:[#allocation2 + $0x140] sm:$0xff]  ;;  %v2488_v42 = vld [vmem:[#allocation2 + $0x150] sm:$0xff]  ;;  %v2625_v24 = vld [vmem:[#allocation2 + $0x598] sm:$0xff] }
 0x4f5   :  { %2750 = vmatprep.subr.bf16.mxu0 %v2471_v32  ;;  %2976 = vmatprep.subr.bf16.mxu1 %v2473_v18  ;;  %v2495_v32 = vld [vmem:[#allocation2 + $0x188] sm:$0xff]  ;;  %v2494_v18 = vld [vmem:[#allocation2 + $0x180] sm:$0xff]  ;;  %v2641_v14 = vld [vmem:[#allocation2 + $0x618] sm:$0xff] }
 0x4f6   :  { %v2657_v34 = vld [vmem:[#allocation2 + $0x698] sm:$0xff] }
 0x4f7   :  { %v2453_v38 = vld [vmem:[#allocation2 + $0x38] sm:$0xff] }
 0x4f8   :  { %2751 = vmatpush1.bf16.msra.mxu0 %v2470_v22  ;;  %2977 = vmatpush1.bf16.msra.mxu1 %v2472_v50  ;;  %v2496_v22 = vld [vmem:[#allocation2 + $0x190] sm:$0xff]  ;;  %v2503_v50 = vld [vmem:[#allocation2 + $0x1c8] sm:$0xff]  ;;  %v2469_v9 = vld [vmem:[#allocation2 + $0xb8] sm:$0xff] }
 0x4f9   :  { %2752 = vmatprep.subr.bf16.mxu0 %v2479_v62  ;;  %2978 = vmatprep.subr.bf16.mxu1 %v2481_v7  ;;  %v2505_v62 = vld [vmem:[#allocation2 + $0x1d8] sm:$0xff]  ;;  %v2502_v7 = vld [vmem:[#allocation2 + $0x1c0] sm:$0xff] }
 0x4fc   :  { %2753 = vmatpush1.bf16.msra.mxu0 %v2478_v43  ;;  %2979 = vmatpush1.bf16.msra.mxu1 %v2480_v52  ;;  %v2504_v43 = vld [vmem:[#allocation2 + $0x1d0] sm:$0xff]  ;;  %v2511_v52 = vld [vmem:[#allocation2 + $0x208] sm:$0xff] }
 0x4fd   :  { %2754 = vmatprep.subr.bf16.mxu0 %v2487_v12  ;;  %2980 = vmatprep.subr.bf16.mxu1 %v2489_v29  ;;  %v2513_v12 = vld [vmem:[#allocation2 + $0x218] sm:$0xff]  ;;  %v2510_v29 = vld [vmem:[#allocation2 + $0x200] sm:$0xff] }
 0x500   :  { %2755 = vmatpush1.bf16.msra.mxu0 %v2486_v4  ;;  %2981 = vmatpush1.bf16.msra.mxu1 %v2488_v42  ;;  %v2512_v4 = vld [vmem:[#allocation2 + $0x210] sm:$0xff]  ;;  %v2519_v42 = vld [vmem:[#allocation2 + $0x248] sm:$0xff] }
 0x501   :  { %2756 = vmatprep.subr.bf16.mxu0 %v2495_v32  ;;  %2982 = vmatprep.subr.bf16.mxu1 %v2497_v51  ;;  %v2521_v32 = vld [vmem:[#allocation2 + $0x258] sm:$0xff]  ;;  %v2518_v51 = vld [vmem:[#allocation2 + $0x240] sm:$0xff] }
 0x504   :  { %2757 = vmatpush1.bf16.msra.mxu0 %v2494_v18  ;;  %2983 = vmatpush1.bf16.msra.mxu1 %v2496_v22  ;;  %v2520_v18 = vld [vmem:[#allocation2 + $0x250] sm:$0xff]  ;;  %v2527_v22 = vld [vmem:[#allocation2 + $0x288] sm:$0xff] }
 0x505   :  { %2758 = vmatprep.subr.bf16.mxu0 %v2503_v50  ;;  %2984 = vmatprep.subr.bf16.mxu1 %v2505_v62  ;;  %v2529_v50 = vld [vmem:[#allocation2 + $0x298] sm:$0xff]  ;;  %v2526_v62 = vld [vmem:[#allocation2 + $0x280] sm:$0xff] }
 0x508   :  { %2759 = vmatpush1.bf16.msra.mxu0 %v2502_v7  ;;  %2985 = vmatpush1.bf16.msra.mxu1 %v2504_v43  ;;  %v2528_v7 = vld [vmem:[#allocation2 + $0x290] sm:$0xff]  ;;  %v2535_v43 = vld [vmem:[#allocation2 + $0x2c8] sm:$0xff] }
 0x509   :  { %2760 = vmatprep.subr.bf16.mxu0 %v2511_v52  ;;  %2986 = vmatprep.subr.bf16.mxu1 %v2513_v12  ;;  %v2537_v52 = vld [vmem:[#allocation2 + $0x2d8] sm:$0xff]  ;;  %v2534_v12 = vld [vmem:[#allocation2 + $0x2c0] sm:$0xff] }
 0x50c   :  { %2761 = vmatpush1.bf16.msra.mxu0 %v2510_v29  ;;  %2987 = vmatpush1.bf16.msra.mxu1 %v2512_v4  ;;  %v2536_v29 = vld [vmem:[#allocation2 + $0x2d0] sm:$0xff]  ;;  %v2543_v4 = vld [vmem:[#allocation2 + $0x308] sm:$0xff] }
 0x50d   :  { %2762 = vmatprep.subr.bf16.mxu0 %v2519_v42  ;;  %2988 = vmatprep.subr.bf16.mxu1 %v2521_v32  ;;  %v2545_v42 = vld [vmem:[#allocation2 + $0x318] sm:$0xff]  ;;  %v2542_v32 = vld [vmem:[#allocation2 + $0x300] sm:$0xff] }
 0x510   :  { %2763 = vmatpush1.bf16.msra.mxu0 %v2518_v51  ;;  %2989 = vmatpush1.bf16.msra.mxu1 %v2520_v18  ;;  %v2544_v51 = vld [vmem:[#allocation2 + $0x310] sm:$0xff]  ;;  %v2551_v18 = vld [vmem:[#allocation2 + $0x348] sm:$0xff] }
 0x511   :  { %2764 = vmatprep.subr.bf16.mxu0 %v2527_v22  ;;  %2990 = vmatprep.subr.bf16.mxu1 %v2529_v50  ;;  %v2553_v22 = vld [vmem:[#allocation2 + $0x358] sm:$0xff]  ;;  %v2550_v50 = vld [vmem:[#allocation2 + $0x340] sm:$0xff] }
 0x514   :  { %2765 = vmatpush1.bf16.msra.mxu0 %v2526_v62  ;;  %2991 = vmatpush1.bf16.msra.mxu1 %v2528_v7  ;;  %v2552_v62 = vld [vmem:[#allocation2 + $0x350] sm:$0xff]  ;;  %v2559_v7 = vld [vmem:[#allocation2 + $0x388] sm:$0xff] }
 0x515   :  { %2766 = vmatprep.subr.bf16.mxu0 %v2535_v43  ;;  %2992 = vmatprep.subr.bf16.mxu1 %v2537_v52  ;;  %v2561_v43 = vld [vmem:[#allocation2 + $0x398] sm:$0xff]  ;;  %v2558_v52 = vld [vmem:[#allocation2 + $0x380] sm:$0xff] }
 0x518   :  { %2767 = vmatpush1.bf16.msra.mxu0 %v2534_v12  ;;  %2993 = vmatpush1.bf16.msra.mxu1 %v2536_v29  ;;  %v2560_v12 = vld [vmem:[#allocation2 + $0x390] sm:$0xff]  ;;  %v2567_v29 = vld [vmem:[#allocation2 + $0x3c8] sm:$0xff] }
 0x519   :  { %2768 = vmatprep.subr.bf16.mxu0 %v2543_v4  ;;  %2994 = vmatprep.subr.bf16.mxu1 %v2545_v42  ;;  %v2569_v4 = vld [vmem:[#allocation2 + $0x3d8] sm:$0xff]  ;;  %v2566_v42 = vld [vmem:[#allocation2 + $0x3c0] sm:$0xff] }
 0x51c   :  { %2769 = vmatpush1.bf16.msra.mxu0 %v2542_v32  ;;  %2995 = vmatpush1.bf16.msra.mxu1 %v2544_v51  ;;  %v2568_v32 = vld [vmem:[#allocation2 + $0x3d0] sm:$0xff]  ;;  %v2575_v51 = vld [vmem:[#allocation2 + $0x408] sm:$0xff] }
 0x51d   :  { %2770 = vmatprep.subr.bf16.mxu0 %v2551_v18  ;;  %2996 = vmatprep.subr.bf16.mxu1 %v2553_v22  ;;  %v2577_v18 = vld [vmem:[#allocation2 + $0x418] sm:$0xff]  ;;  %v15395_v22 = vmax.f32 %v10717_v25, 0.0  ;;  %v2582_v25 = vld [vmem:[#allocation2 + $0x440] sm:$0xff] }
 0x520   :  { %2771 = vmatpush1.bf16.msra.mxu0 %v2550_v50  ;;  %2997 = vmatpush1.bf16.msra.mxu1 %v2552_v62  ;;  %v11177_v50 = vpack.c.bf16 %v15396_v39, %v15395_v22  ;;  %v2574_v62 = vld [vmem:[#allocation2 + $0x400] sm:$0xff]  ;;  %v2591_v39 = vld [vmem:[#allocation2 + $0x488] sm:$0xff] }
 0x521   :  { %2772 = vmatprep.subr.bf16.mxu0 %v2559_v7  ;;  %2998 = vmatprep.subr.bf16.mxu1 %v2561_v43  ;;  %v2576_v7 = vld [vmem:[#allocation2 + $0x410] sm:$0xff]  ;;  %v2583_v43 = vld [vmem:[#allocation2 + $0x448] sm:$0xff]  ;;  %v2606_v22 = vld [vmem:[#allocation2 + $0x500] sm:$0xff] }
 0x524   :  { %2773 = vmatpush1.bf16.msra.mxu0 %v2558_v52  ;;  %2999 = vmatpush1.bf16.msra.mxu1 %v2560_v12  ;;  %v2585_v52 = vld [vmem:[#allocation2 + $0x458] sm:$0xff]  ;;  %v11183_v12 = vpack.c.bf16 %v2359_v63, %v2355_v44  ;;  %v15398_v44 = vmax.f32 %v10723_v48, 0.0  ;;  %v2600_v48 = vld [vmem:[#allocation2 + $0x4d0] sm:$0xff] }
 0x525   :  { %2774 = vmatprep.subr.bf16.mxu0 %v2567_v29  ;;  %3000 = vmatprep.subr.bf16.mxu1 %v2569_v4  ;;  %v2590_v29 = vld [vmem:[#allocation2 + $0x480] sm:$0xff]  ;;  %v2592_v4 = vld [vmem:[#allocation2 + $0x490] sm:$0xff] }
 0x526   :  { %v11193_v63 = vpack.c.bf16 %v15398_v44, %v15397_v59  ;;  %v2624_v59 = vld [vmem:[#allocation2 + $0x590] sm:$0xff]  ;;  %v2631_v44 = vld [vmem:[#allocation2 + $0x5c8] sm:$0xff] }
 0x528   :  { %2775 = vmatpush1.bf16.msra.mxu0 %v2566_v42  ;;  %3001 = vmatpush1.bf16.msra.mxu1 %v2568_v32  ;;  %v2599_v42 = vld [vmem:[#allocation2 + $0x4c8] sm:$0xff]  ;;  %v2601_v32 = vld [vmem:[#allocation2 + $0x4d8] sm:$0xff] }
 0x529   :  { %2857 = vmatprep.subr.bf16.mxu0 %v2575_v51  ;;  %3083 = vmatprep.subr.bf16.mxu1 %v2577_v18  ;;  %v11199_v51 = vpack.c.bf16 %v2367_v11, %v2363_v26  ;;  %v2607_v18 = vld [vmem:[#allocation2 + $0x508] sm:$0xff]  ;;  %v15400_v26 = vmax.f32 %v10727_v45, 0.0  ;;  %v2616_v45 = vld [vmem:[#allocation2 + $0x550] sm:$0xff] }
 0x52b   :  { %2777 = vmatmul.mubr.bf16.vlgmr.msra.gmra.mrb[64].mxu0 %v11177_v50  ;;  %3003 = vmatmul.mubr.bf16.vlgmr.msra.gmra.mrb[64].mxu1 %v11177_v50  ;;  %v11209_v11 = vpack.c.bf16 %v15400_v26, %v15399_v47  ;;  %v2640_v47 = vld [vmem:[#allocation2 + $0x610] sm:$0xff]  ;;  %v2647_v26 = vld [vmem:[#allocation2 + $0x648] sm:$0xff] }
 0x52c   :  { %2858 = vmatpush1.bf16.msra.mxu0 %v2574_v62  ;;  %3084 = vmatpush1.bf16.msra.mxu1 %v2576_v7  ;;  %v2608_v62 = vld [vmem:[#allocation2 + $0x510] sm:$0xff]  ;;  %v2615_v7 = vld [vmem:[#allocation2 + $0x548] sm:$0xff] }
 0x52d   :  { %2859 = vmatprep.subr.bf16.mxu0 %v2583_v43  ;;  %3085 = vmatprep.subr.bf16.mxu1 %v2585_v52  ;;  %v2617_v43 = vld [vmem:[#allocation2 + $0x558] sm:$0xff]  ;;  %v11215_v52 = vpack.c.bf16 %v2375_v60, %v2371_v40 }
 0x52e   :  { %2786 = vmatprep.mubr.bf16.mxu0 %v11183_v12  ;;  %3012 = vmatprep.mubr.bf16.mxu1 %v11183_v12  ;;  %v15403_v40 = vld [vmem:[#allocation50_spill] sm:$0xff] }
 0x52f   :  { %v15404_v60 = vmax.f32 %v15403_v40, 0.0  ;;  %v2656_v40 = vld [vmem:[#allocation2 + $0x690] sm:$0xff] }
 0x530   :  { %2860 = vmatpush1.bf16.msra.mxu0 %v2582_v25  ;;  %3086 = vmatpush1.bf16.msra.mxu1 %v2584_v19  ;;  %v2623_v25 = vld [vmem:[#allocation2 + $0x588] sm:$0xff] }
 0x531   :  { %2861 = vmatprep.subr.bf16.mxu0 %v2591_v39  ;;  %3087 = vmatprep.subr.bf16.mxu1 %v2593_v54  ;;  %v15401_v19 = vld [vmem:[#allocation80_spill] sm:$0xff]  ;;  %v2622_v54 = vld [vmem:[#allocation2 + $0x580] sm:$0xff] }
 0x532   :  { %v15402_v33 = vmax.f32 %v15401_v19, 0.0 }
 0x533   :  { %2787 = vmatmul.mubr.bf16.gmra.mrb[68].mxu0 %v11193_v63  ;;  %3013 = vmatmul.mubr.bf16.gmra.mrb[68].mxu1 %v11193_v63 }
 0x534   :  { %2862 = vmatpush1.bf16.msra.mxu0 %v2590_v29  ;;  %3088 = vmatpush1.bf16.msra.mxu1 %v2592_v4  ;;  %v11225_v39 = vpack.c.bf16 %v15404_v60, %v15402_v33  ;;  %v2633_v29 = vld [vmem:[#allocation2 + $0x5d8] sm:$0xff]  ;;  %v11231_v4 = vpack.c.bf16 %v2383_v41, %v2379_v56  ;;  %v2654_v33 = vld [vmem:[#allocation2 + $0x680] sm:$0xff]  ;;  %v2663_v60 = vld [vmem:[#allocation2 + $0x6c8] sm:$0xff] }
 0x535   :  { %2863 = vmatprep.subr.bf16.mxu0 %v2599_v42  ;;  %3089 = vmatprep.subr.bf16.mxu1 %v2601_v32  ;;  %v2630_v42 = vld [vmem:[#allocation2 + $0x5c0] sm:$0xff]  ;;  %v2632_v32 = vld [vmem:[#allocation2 + $0x5d0] sm:$0xff] }
 0x536   :  { %2796 = vmatprep.mubr.bf16.mxu0 %v11199_v51  ;;  %3022 = vmatprep.mubr.bf16.mxu1 %v11199_v51  ;;  %v15407_v56 = vld [vmem:[#allocation85_spill] sm:$0xff] }
 0x537   :  { %v15408_v41 = vmax.f32 %v15407_v56, 0.0 }
 0x538   :  { %2864 = vmatpush1.bf16.msra.mxu0 %v2598_v57  ;;  %3090 = vmatpush1.bf16.msra.mxu1 %v2600_v48  ;;  %v2639_v57 = vld [vmem:[#allocation2 + $0x608] sm:$0xff] }
 0x539   :  { %2865 = vmatprep.subr.bf16.mxu0 %v2607_v18  ;;  %3091 = vmatprep.subr.bf16.mxu1 %v2609_v31  ;;  %v15405_v48 = vld [vmem:[#allocation84_spill] sm:$0xff]  ;;  %v2638_v31 = vld [vmem:[#allocation2 + $0x600] sm:$0xff] }
 0x53a   :  { %v15406_v27 = vmax.f32 %v15405_v48, 0.0  ;;  %v15418_v48 = vld [vmem:[#allocation89_spill] sm:$0xff] }
 0x53b   :  { %2797 = vmatmul.mubr.bf16.gmra.mrb[72].mxu0 %v11209_v11  ;;  %3023 = vmatmul.mubr.bf16.gmra.mrb[72].mxu1 %v11209_v11 }
 0x53c   :  { %2866 = vmatpush1.bf16.msra.mxu0 %v2606_v22  ;;  %3092 = vmatpush1.bf16.msra.mxu1 %v2608_v62  ;;  %v11241_v18 = vpack.c.bf16 %v15408_v41, %v15406_v27  ;;  %v2649_v22 = vld [vmem:[#allocation2 + $0x658] sm:$0xff]  ;;  %v15409_v62 = vmax.f32 %v11011_v61, 0.0  ;;  %v15419_v27 = vmax.f32 %v15418_v48, 0.0  ;;  %v2670_v41 = vld [vmem:[#allocation2 + $0x700] sm:$0xff]  ;;  %v2459_v48 = vld [vmem:[#allocation2 + $0x68] sm:$0xff] }
 0x53d   :  { %2867 = vmatprep.subr.bf16.mxu0 %v2615_v7  ;;  %3093 = vmatprep.subr.bf16.mxu1 %v2617_v43  ;;  %v2646_v43 = vld [vmem:[#allocation2 + $0x640] sm:$0xff] }
 0x53e   :  { %2806 = vmatprep.mubr.bf16.mxu0 %v11215_v52  ;;  %3032 = vmatprep.mubr.bf16.mxu1 %v11215_v52  ;;  %v11247_v7 = vpack.c.bf16 %v15409_v62, %v2387_v35  ;;  %v15412_v35 = vld [vmem:[#allocation87_spill] sm:$0xff]  ;;  %v15421_v62 = vmax.f32 %v11019_v36, 0.0 }
 0x540   :  { %2868 = vmatpush1.bf16.msra.mxu0 %v2614_v6  ;;  %3094 = vmatpush1.bf16.msra.mxu1 %v2616_v45  ;;  %v2648_v6 = vld [vmem:[#allocation2 + $0x650] sm:$0xff]  ;;  %v2655_v45 = vld [vmem:[#allocation2 + $0x688] sm:$0xff] }
 0x541   :  { %2869 = vmatprep.subr.bf16.mxu0 %v2623_v25  ;;  %3095 = vmatprep.subr.bf16.mxu1 %v2625_v24  ;;  %v15410_v25 = vld [vmem:[#allocation86_spill] sm:$0xff]  ;;  %v15413_v24 = vmax.f32 %v15412_v35, 0.0 }
 0x542   :  { %v15411_v61 = vmax.f32 %v15410_v25, 0.0  ;;  %v15422_v25 = vld [vmem:[#allocation90_spill] sm:$0xff] }
 0x543   :  { %2807 = vmatmul.mubr.bf16.gmra.mrb[76].mxu0 %v11225_v39  ;;  %3033 = vmatmul.mubr.bf16.gmra.mrb[76].mxu1 %v11225_v39  ;;  %v15423_v36 = vmax.f32 %v15422_v25, 0.0  ;;  %v15434_v25 = vmax.f32 %v11114_v21, 0.0  ;;  %v2485_v21 = vld [vmem:[#allocation2 + $0x138] sm:$0xff] }
 0x544   :  { %2870 = vmatpush1.bf16.msra.mxu0 %v2622_v54  ;;  %3096 = vmatpush1.bf16.msra.mxu1 %v2624_v59  ;;  %v11257_v19 = vpack.c.bf16 %v15413_v24, %v15411_v61  ;;  %v2665_v54 = vld [vmem:[#allocation2 + $0x6d8] sm:$0xff]  ;;  %v15414_v59 = vmax.f32 %v11013_v16, 0.0  ;;  %v15424_v61 = vld [vmem:[#allocation91_spill] sm:$0xff] }
 0x545   :  { %2871 = vmatprep.subr.bf16.mxu0 %v2631_v44  ;;  %3097 = vmatprep.subr.bf16.mxu1 %v2633_v29  ;;  %v15415_v44 = vmax.f32 %v11015_v10, 0.0  ;;  %v2673_v16 = vld [vmem:[#allocation2 + $0x718] sm:$0xff]  ;;  %v15425_v35 = vmax.f32 %v15424_v61, 0.0 }
 0x546   :  { %2816 = vmatprep.mubr.bf16.mxu0 %v11231_v4  ;;  %3042 = vmatprep.mubr.bf16.mxu1 %v11231_v4 }
 0x547   :  { %v11263_v29 = vpack.c.bf16 %v15415_v44, %v15414_v59  ;;  %v11289_v24 = vpack.c.bf16 %v15425_v35, %v15423_v36  ;;  %v11295_v59 = vpack.c.bf16 %v2353_v46, %v2349_v3  ;;  %v2694_v44 = vld [vmem:[#allocation2 + $0x7c0] sm:$0xff]  ;;  %v15428_v3 = vld [vmem:[#allocation93_spill] sm:$0xff]  ;;  %v15435_v36 = vmax.f32 %v11117_v8, 0.0 }
 0x548   :  { %2872 = vmatpush1.bf16.msra.mxu0 %v2630_v42  ;;  %3098 = vmatpush1.bf16.msra.mxu1 %v2632_v32  ;;  %v2662_v42 = vld [vmem:[#allocation2 + $0x6c0] sm:$0xff]  ;;  %v2664_v32 = vld [vmem:[#allocation2 + $0x6d0] sm:$0xff]  ;;  %v15429_v46 = vmax.f32 %v15428_v3, 0.0  ;;  %v15440_v3 = vmax.f32 %v11120_v17, 0.0  ;;  %v2501_v17 = vld [vmem:[#allocation2 + $0x1b8] sm:$0xff] }
 0x549   :  { %2873 = vmatprep.subr.bf16.mxu0 %v2639_v57  ;;  %3099 = vmatprep.subr.bf16.mxu1 %v2641_v14  ;;  %v2671_v57 = vld [vmem:[#allocation2 + $0x708] sm:$0xff]  ;;  %v11327_v61 = vpack.c.bf16 %v15435_v36, %v15434_v25  ;;  %v2474_v35 = vld [vmem:[#allocation2 + $0xe0] sm:$0xff]  ;;  %v2508_v25 = vld [vmem:[#allocation2 + $0x1f0] sm:$0xff] }
 0x54a   :  { %v15416_v14 = vld [vmem:[#allocation88_spill] sm:$0xff] }
 0x54b   :  { %2817 = vmatmul.mubr.bf16.gmra.mrb[80].mxu0 %v11241_v18  ;;  %3043 = vmatmul.mubr.bf16.gmra.mrb[80].mxu1 %v11241_v18  ;;  %v15417_v10 = vmax.f32 %v15416_v14, 0.0  ;;  %v2450_v14 = vld [vmem:[#allocation2 + $0x20] sm:$0xff]  ;;  %v2515_v36 = vld [vmem:[#allocation2 + $0x228] sm:$0xff] }
 0x54c   :  { %2874 = vmatpush1.bf16.msra.mxu0 %v2638_v31  ;;  %3100 = vmatpush1.bf16.msra.mxu1 %v2640_v47  ;;  %v2672_v31 = vld [vmem:[#allocation2 + $0x710] sm:$0xff]  ;;  %v2679_v47 = vld [vmem:[#allocation2 + $0x748] sm:$0xff] }
 0x54d   :  { %2875 = vmatprep.subr.bf16.mxu0 %v2647_v26  ;;  %3101 = vmatprep.subr.bf16.mxu1 %v2649_v22  ;;  %v11273_v56 = vpack.c.bf16 %v15419_v27, %v15417_v10  ;;  %v2681_v26 = vld [vmem:[#allocation2 + $0x758] sm:$0xff]  ;;  %v15420_v22 = vmax.f32 %v11017_v1, 0.0  ;;  %v2452_v10 = vld [vmem:[#allocation2 + $0x30] sm:$0xff] }
 0x54e   :  { %2826 = vmatprep.mubr.bf16.mxu0 %v11247_v7  ;;  %3052 = vmatprep.mubr.bf16.mxu1 %v11247_v7  ;;  %v2689_v1 = vld [vmem:[#allocation2 + $0x798] sm:$0xff] }
 0x54f   :  { %v2461_v27 = vld [vmem:[#allocation2 + $0x78] sm:$0xff] }
 0x550   :  { %2876 = vmatpush1.bf16.msra.mxu0 %v2646_v43  ;;  %3102 = vmatpush1.bf16.msra.mxu1 %v2648_v6  ;;  %v11279_v43 = vpack.c.bf16 %v15421_v62, %v15420_v22  ;;  %v2678_v6 = vld [vmem:[#allocation2 + $0x740] sm:$0xff] }
 0x551   :  { %2877 = vmatprep.subr.bf16.mxu0 %v2655_v45  ;;  %3103 = vmatprep.subr.bf16.mxu1 %v2657_v34  ;;  %v2680_v45 = vld [vmem:[#allocation2 + $0x750] sm:$0xff]  ;;  %v2687_v34 = vld [vmem:[#allocation2 + $0x788] sm:$0xff]  ;;  %v15430_v22 = vld [vmem:[#allocation94_spill] sm:$0xff] }
 0x552   :  { %v15431_v0 = vmax.f32 %v15430_v22, 0.0  ;;  %v2498_v22 = vld [vmem:[#allocation2 + $0x1a0] sm:$0xff] }
 0x553   :  { %2827 = vmatmul.mubr.bf16.gmra.mrb[84].mxu0 %v11257_v19  ;;  %3053 = vmatmul.mubr.bf16.gmra.mrb[84].mxu1 %v11257_v19 }
 0x554   :  { %2878 = vmatpush1.bf16.msra.mxu0 %v2654_v33  ;;  %3104 = vmatpush1.bf16.msra.mxu1 %v2656_v40  ;;  %v2686_v33 = vld [vmem:[#allocation2 + $0x780] sm:$0xff]  ;;  %v2688_v40 = vld [vmem:[#allocation2 + $0x790] sm:$0xff] }
 0x555   :  { %2879 = vmatprep.subr.bf16.mxu0 %v2663_v60  ;;  %3105 = vmatprep.subr.bf16.mxu1 %v2665_v54  ;;  %v2695_v60 = vld [vmem:[#allocation2 + $0x7c8] sm:$0xff]  ;;  %v2697_v54 = vld [vmem:[#allocation2 + $0x7d8] sm:$0xff] }
 0x556   :  { %2836 = vmatprep.mubr.bf16.mxu0 %v11263_v29  ;;  %3062 = vmatprep.mubr.bf16.mxu1 %v11263_v29 }
 0x558   :  { %2880 = vmatpush1.bf16.msra.mxu0 %v2662_v42  ;;  %3106 = vmatpush1.bf16.msra.mxu1 %v2664_v32  ;;  %v2696_v42 = vld [vmem:[#allocation2 + $0x7d0] sm:$0xff]  ;;  %v2451_v32 = vld [vmem:[#allocation2 + $0x28] sm:$0xff] }
 0x559   :  { %2881 = vmatprep.subr.bf16.mxu0 %v2671_v57  ;;  %3107 = vmatprep.subr.bf16.mxu1 %v2673_v16  ;;  %v15426_v57 = vld [vmem:[#allocation92_spill] sm:$0xff] }
 0x55a   :  { %v15427_v55 = vmax.f32 %v15426_v57, 0.0  ;;  %v2491_v57 = vld [vmem:[#allocation2 + $0x168] sm:$0xff] }
 0x55b   :  { %2837 = vmatmul.mubr.bf16.gmra.mrb[88].mxu0 %v11273_v56  ;;  %3063 = vmatmul.mubr.bf16.gmra.mrb[88].mxu1 %v11273_v56 }
 0x55c   :  { %2882 = vmatpush1.bf16.msra.mxu0 %v2670_v41  ;;  %3108 = vmatpush1.bf16.msra.mxu1 %v2672_v31  ;;  %v11305_v16 = vpack.c.bf16 %v15429_v46, %v15427_v55  ;;  %v11311_v41 = vpack.c.bf16 %v2361_v20, %v2357_v49  ;;  %v2458_v31 = vld [vmem:[#allocation2 + $0x60] sm:$0xff]  ;;  %v2493_v55 = vld [vmem:[#allocation2 + $0x178] sm:$0xff]  ;;  %v15441_v46 = vmax.f32 %v11123_v30, 0.0 }
 0x55d   :  { %2883 = vmatprep.subr.bf16.mxu0 %v2679_v47  ;;  %3109 = vmatprep.subr.bf16.mxu1 %v2681_v26  ;;  %v2460_v47 = vld [vmem:[#allocation2 + $0x70] sm:$0xff]  ;;  %v2467_v26 = vld [vmem:[#allocation2 + $0xa8] sm:$0xff] }
 0x55e   :  { %2846 = vmatprep.mubr.bf16.mxu0 %v11279_v43  ;;  %3072 = vmatprep.mubr.bf16.mxu1 %v11279_v43  ;;  %v15432_v49 = vld [vmem:[#allocation95_spill] sm:$0xff] }
 0x55f   :  { %v15433_v20 = vmax.f32 %v15432_v49, 0.0  ;;  %v2507_v49 = vld [vmem:[#allocation2 + $0x1e8] sm:$0xff] }
 0x560   :  { %2884 = vmatpush1.bf16.msra.mxu0 %v2678_v6  ;;  %3110 = vmatpush1.bf16.msra.mxu1 %v2680_v45  ;;  %v2466_v6 = vld [vmem:[#allocation2 + $0xa0] sm:$0xff]  ;;  %v2468_v45 = vld [vmem:[#allocation2 + $0xb0] sm:$0xff] }
 0x561   :  { %2885 = vmatprep.subr.bf16.mxu0 %v2687_v34  ;;  %3111 = vmatprep.subr.bf16.mxu1 %v2689_v1  ;;  %v11321_v62 = vpack.c.bf16 %v15433_v20, %v15431_v0  ;;  %v2475_v34 = vld [vmem:[#allocation2 + $0xe8] sm:$0xff]  ;;  %v2477_v1 = vld [vmem:[#allocation2 + $0xf8] sm:$0xff]  ;;  %v2500_v0 = vld [vmem:[#allocation2 + $0x1b0] sm:$0xff] }
 0x562   :  { %v2509_v20 = vld [vmem:[#allocation2 + $0x1f8] sm:$0xff] }
 0x563   :  { %2847 = vmatmul.mubr.bf16.gmra.mrb[92].mxu0 %v11289_v24  ;;  %3073 = vmatmul.mubr.bf16.gmra.mrb[92].mxu1 %v11289_v24 }
 0x564   :  { %2886 = vmatpush1.bf16.msra.mxu0 %v2686_v33  ;;  %3112 = vmatpush1.bf16.msra.mxu1 %v2688_v40  ;;  %v2476_v33 = vld [vmem:[#allocation2 + $0xf0] sm:$0xff]  ;;  %v2483_v40 = vld [vmem:[#allocation2 + $0x128] sm:$0xff] }
 0x565   :  { %2887 = vmatprep.subr.bf16.mxu0 %v2695_v60  ;;  %3113 = vmatprep.subr.bf16.mxu1 %v2697_v54  ;;  %v15436_v60 = vld [vmem:[#allocation96_spill] sm:$0xff]  ;;  %v15438_v54 = vld [vmem:[#allocation97_spill] sm:$0xff] }
 0x566   :  { %2889 = vmatprep.mubr.bf16.mxu0 %v11295_v59  ;;  %3115 = vmatprep.mubr.bf16.mxu1 %v11295_v59  ;;  %v15437_v8 = vmax.f32 %v15436_v60, 0.0  ;;  %v2514_v60 = vld [vmem:[#allocation2 + $0x220] sm:$0xff] }
 0x568   :  { %2888 = vmatpush1.bf16.msra.mxu0 %v2694_v44  ;;  %3114 = vmatpush1.bf16.msra.mxu1 %v2696_v42  ;;  %v15439_v44 = vmax.f32 %v15438_v54, 0.0  ;;  %v2523_v54 = vld [vmem:[#allocation2 + $0x268] sm:$0xff] }
 0x569   :  { %3196 = vmatprep.subr.bf16.mxu0 %v2451_v32  ;;  %3422 = vmatprep.subr.bf16.mxu1 %v2453_v38  ;;  %v2482_v32 = vld [vmem:[#allocation2 + $0x120] sm:$0xff]  ;;  %v2484_v38 = vld [vmem:[#allocation2 + $0x130] sm:$0xff] }
 0x56a   :  { %v11337_v42 = vpack.c.bf16 %v15439_v44, %v15437_v8  ;;  %v2516_v8 = vld [vmem:[#allocation2 + $0x230] sm:$0xff]  ;;  %v2525_v44 = vld [vmem:[#allocation2 + $0x278] sm:$0xff] }
 0x56b   :  { %2890 = vmatmul.mubr.bf16.vlgmr.msra.gmra.mrb[64].mxu0 %v11305_v16  ;;  %3116 = vmatmul.mubr.bf16.vlgmr.msra.gmra.mrb[64].mxu1 %v11305_v16 }
 0x56c   :  { %3197 = vmatpush1.bf16.msra.mxu0 %v2450_v14  ;;  %3423 = vmatpush1.bf16.msra.mxu1 %v2452_v10  ;;  %v11343_v14 = vpack.c.bf16 %v15441_v46, %v15440_v3  ;;  %v2490_v10 = vld [vmem:[#allocation2 + $0x160] sm:$0xff]  ;;  %v2524_v3 = vld [vmem:[#allocation2 + $0x270] sm:$0xff]  ;;  %v2531_v46 = vld [vmem:[#allocation2 + $0x2a8] sm:$0xff] }
 0x56d   :  { %3198 = vmatprep.subr.bf16.mxu0 %v2459_v48  ;;  %3424 = vmatprep.subr.bf16.mxu1 %v2461_v27  ;;  %v2492_v48 = vld [vmem:[#allocation2 + $0x170] sm:$0xff]  ;;  %v2499_v27 = vld [vmem:[#allocation2 + $0x1a8] sm:$0xff] }
 0x56e   :  { %2899 = vmatprep.mubr.bf16.mxu0 %v11311_v41  ;;  %3125 = vmatprep.mubr.bf16.mxu1 %v11311_v41 }
 0x570   :  { %3199 = vmatpush1.bf16.msra.mxu0 %v2458_v31  ;;  %3425 = vmatpush1.bf16.msra.mxu1 %v2460_v47  ;;  %v15442_v31 = vld [vmem:[#allocation98_spill] sm:$0xff]  ;;  %v15444_v47 = vld [vmem:[#allocation99_spill] sm:$0xff] }
 0x571   :  { %3200 = vmatprep.subr.bf16.mxu0 %v2467_v26  ;;  %3426 = vmatprep.subr.bf16.mxu1 %v2469_v9  ;;  %v15443_v30 = vmax.f32 %v15442_v31, 0.0  ;;  %v15445_v26 = vmax.f32 %v15444_v47, 0.0  ;;  %v2530_v31 = vld [vmem:[#allocation2 + $0x2a0] sm:$0xff]  ;;  %v2539_v47 = vld [vmem:[#allocation2 + $0x2e8] sm:$0xff] }
 0x573   :  { %2900 = vmatmul.mubr.bf16.gmra.mrb[68].mxu0 %v11321_v62  ;;  %3126 = vmatmul.mubr.bf16.gmra.mrb[68].mxu1 %v11321_v62  ;;  %v11353_v9 = vpack.c.bf16 %v15445_v26, %v15443_v30  ;;  %v2532_v30 = vld [vmem:[#allocation2 + $0x2b0] sm:$0xff]  ;;  %v2541_v26 = vld [vmem:[#allocation2 + $0x2f8] sm:$0xff] }
 0x574   :  { %3201 = vmatpush1.bf16.msra.mxu0 %v2466_v6  ;;  %3427 = vmatpush1.bf16.msra.mxu1 %v2468_v45  ;;  %v15446_v6 = vmax.f32 %v11126_v58, 0.0  ;;  %v15447_v45 = vmax.f32 %v11129_v28, 0.0  ;;  %v2517_v58 = vld [vmem:[#allocation2 + $0x238] sm:$0xff] }
 0x575   :  { %3202 = vmatprep.subr.bf16.mxu0 %v2475_v34  ;;  %3428 = vmatprep.subr.bf16.mxu1 %v2477_v1  ;;  %v2506_v1 = vld [vmem:[#allocation2 + $0x1e0] sm:$0xff] }
 0x576   :  { %2909 = vmatprep.mubr.bf16.mxu0 %v11327_v61  ;;  %3135 = vmatprep.mubr.bf16.mxu1 %v11327_v61  ;;  %v11359_v34 = vpack.c.bf16 %v15447_v45, %v15446_v6  ;;  %v2540_v6 = vld [vmem:[#allocation2 + $0x2f0] sm:$0xff]  ;;  %v2547_v45 = vld [vmem:[#allocation2 + $0x328] sm:$0xff] }
 0x578   :  { %3203 = vmatpush1.bf16.msra.mxu0 %v2474_v35  ;;  %3429 = vmatpush1.bf16.msra.mxu1 %v2476_v33  ;;  %v15448_v35 = vld [vmem:[#allocation100_spill] sm:$0xff]  ;;  %v15450_v33 = vld [vmem:[#allocation101_spill] sm:$0xff] }
 0x579   :  { %3204 = vmatprep.subr.bf16.mxu0 %v2483_v40  ;;  %3430 = vmatprep.subr.bf16.mxu1 %v2485_v21  ;;  %v15449_v28 = vmax.f32 %v15448_v35, 0.0  ;;  %v15451_v40 = vmax.f32 %v15450_v33, 0.0  ;;  %v2546_v35 = vld [vmem:[#allocation2 + $0x320] sm:$0xff]  ;;  %v2555_v33 = vld [vmem:[#allocation2 + $0x368] sm:$0xff] }
 0x57b   :  { %2910 = vmatmul.mubr.bf16.gmra.mrb[72].mxu0 %v11337_v42  ;;  %3136 = vmatmul.mubr.bf16.gmra.mrb[72].mxu1 %v11337_v42  ;;  %v11369_v21 = vpack.c.bf16 %v15451_v40, %v15449_v28  ;;  %v2548_v28 = vld [vmem:[#allocation2 + $0x330] sm:$0xff]  ;;  %v2557_v40 = vld [vmem:[#allocation2 + $0x378] sm:$0xff] }
 0x57c   :  { %3205 = vmatpush1.bf16.msra.mxu0 %v2482_v32  ;;  %3431 = vmatpush1.bf16.msra.mxu1 %v2484_v38  ;;  %v15452_v32 = vmax.f32 %v11132_v2, 0.0  ;;  %v15453_v38 = vmax.f32 %v11135_v5, 0.0  ;;  %v2533_v2 = vld [vmem:[#allocation2 + $0x2b8] sm:$0xff] }
 0x57d   :  { %3206 = vmatprep.subr.bf16.mxu0 %v2491_v57  ;;  %3432 = vmatprep.subr.bf16.mxu1 %v2493_v55  ;;  %v2522_v55 = vld [vmem:[#allocation2 + $0x260] sm:$0xff] }
 0x57e   :  { %2919 = vmatprep.mubr.bf16.mxu0 %v11343_v14  ;;  %3145 = vmatprep.mubr.bf16.mxu1 %v11343_v14  ;;  %v11375_v57 = vpack.c.bf16 %v15453_v38, %v15452_v32  ;;  %v2556_v32 = vld [vmem:[#allocation2 + $0x370] sm:$0xff]  ;;  %v2563_v38 = vld [vmem:[#allocation2 + $0x3a8] sm:$0xff] }
 0x580   :  { %3207 = vmatpush1.bf16.msra.mxu0 %v2490_v10  ;;  %3433 = vmatpush1.bf16.msra.mxu1 %v2492_v48  ;;  %v15454_v10 = vld [vmem:[#allocation102_spill] sm:$0xff]  ;;  %v15456_v48 = vld [vmem:[#allocation103_spill] sm:$0xff] }
 0x581   :  { %3208 = vmatprep.subr.bf16.mxu0 %v2499_v27  ;;  %3434 = vmatprep.subr.bf16.mxu1 %v2501_v17  ;;  %v15455_v5 = vmax.f32 %v15454_v10, 0.0  ;;  %v15457_v27 = vmax.f32 %v15456_v48, 0.0  ;;  %v2562_v10 = vld [vmem:[#allocation2 + $0x3a0] sm:$0xff]  ;;  %v2571_v48 = vld [vmem:[#allocation2 + $0x3e8] sm:$0xff] }
 0x583   :  { %2920 = vmatmul.mubr.bf16.gmra.mrb[76].mxu0 %v11353_v9  ;;  %3146 = vmatmul.mubr.bf16.gmra.mrb[76].mxu1 %v11353_v9  ;;  %v11385_v17 = vpack.c.bf16 %v15457_v27, %v15455_v5  ;;  %v2564_v5 = vld [vmem:[#allocation2 + $0x3b0] sm:$0xff]  ;;  %v2573_v27 = vld [vmem:[#allocation2 + $0x3f8] sm:$0xff] }
 0x584   :  { %3209 = vmatpush1.bf16.msra.mxu0 %v2498_v22  ;;  %3435 = vmatpush1.bf16.msra.mxu1 %v2500_v0  ;;  %v15458_v22 = vmax.f32 %v11138_v23, 0.0  ;;  %v15459_v0 = vmax.f32 %v11141_v37, 0.0  ;;  %v2549_v23 = vld [vmem:[#allocation2 + $0x338] sm:$0xff] }
 0x585   :  { %3210 = vmatprep.subr.bf16.mxu0 %v2507_v49  ;;  %3436 = vmatprep.subr.bf16.mxu1 %v2509_v20  ;;  %v2538_v20 = vld [vmem:[#allocation2 + $0x2e0] sm:$0xff] }
 0x586   :  { %2929 = vmatprep.mubr.bf16.mxu0 %v11359_v34  ;;  %3155 = vmatprep.mubr.bf16.mxu1 %v11359_v34  ;;  %v11391_v49 = vpack.c.bf16 %v15459_v0, %v15458_v22  ;;  %v2578_v22 = vld [vmem:[#allocation2 + $0x420] sm:$0xff]  ;;  %v2580_v0 = vld [vmem:[#allocation2 + $0x430] sm:$0xff] }
 0x588   :  { %3211 = vmatpush1.bf16.msra.mxu0 %v2506_v1  ;;  %3437 = vmatpush1.bf16.msra.mxu1 %v2508_v25  ;;  %v15460_v1 = vld [vmem:[#allocation104_spill] sm:$0xff]  ;;  %v15462_v25 = vld [vmem:[#allocation105_spill] sm:$0xff] }
 0x589   :  { %3212 = vmatprep.subr.bf16.mxu0 %v2515_v36  ;;  %3438 = vmatprep.subr.bf16.mxu1 %v2517_v58  ;;  %v15461_v37 = vmax.f32 %v15460_v1, 0.0  ;;  %v15463_v36 = vmax.f32 %v15462_v25, 0.0  ;;  %v2597_v1 = vld [vmem:[#allocation2 + $0x4b8] sm:$0xff]  ;;  %v2596_v25 = vld [vmem:[#allocation2 + $0x4b0] sm:$0xff] }
 0x58b   :  { %2930 = vmatmul.mubr.bf16.gmra.mrb[80].mxu0 %v11369_v21  ;;  %3156 = vmatmul.mubr.bf16.gmra.mrb[80].mxu1 %v11369_v21  ;;  %v11401_v58 = vpack.c.bf16 %v15463_v36, %v15461_v37  ;;  %v2594_v37 = vld [vmem:[#allocation2 + $0x4a0] sm:$0xff]  ;;  %v2603_v36 = vld [vmem:[#allocation2 + $0x4e8] sm:$0xff] }
 0x58c   :  { %3213 = vmatpush1.bf16.msra.mxu0 %v2514_v60  ;;  %3439 = vmatpush1.bf16.msra.mxu1 %v2516_v8  ;;  %v15464_v60 = vmax.f32 %v11144_v15, 0.0  ;;  %v15465_v8 = vmax.f32 %v11147_v53, 0.0  ;;  %v2565_v15 = vld [vmem:[#allocation2 + $0x3b8] sm:$0xff] }
 0x58d   :  { %3214 = vmatprep.subr.bf16.mxu0 %v2523_v54  ;;  %3440 = vmatprep.subr.bf16.mxu1 %v2525_v44  ;;  %v2554_v44 = vld [vmem:[#allocation2 + $0x360] sm:$0xff] }
 0x58e   :  { %2939 = vmatprep.mubr.bf16.mxu0 %v11375_v57  ;;  %3165 = vmatprep.mubr.bf16.mxu1 %v11375_v57  ;;  %v11407_v54 = vpack.c.bf16 %v15465_v8, %v15464_v60  ;;  %v2612_v60 = vld [vmem:[#allocation2 + $0x530] sm:$0xff]  ;;  %v2619_v8 = vld [vmem:[#allocation2 + $0x568] sm:$0xff] }
 0x590   :  { %3215 = vmatpush1.bf16.msra.mxu0 %v2522_v55  ;;  %3441 = vmatpush1.bf16.msra.mxu1 %v2524_v3  ;;  %v15466_v55 = vld [vmem:[#allocation106_spill] sm:$0xff]  ;;  %v15468_v3 = vld [vmem:[#allocation107_spill] sm:$0xff] }
 0x591   :  { %3216 = vmatprep.subr.bf16.mxu0 %v2531_v46  ;;  %3442 = vmatprep.subr.bf16.mxu1 %v2533_v2  ;;  %v15467_v53 = vmax.f32 %v15466_v55, 0.0  ;;  %v15469_v46 = vmax.f32 %v15468_v3, 0.0  ;;  %v2628_v55 = vld [vmem:[#allocation2 + $0x5b0] sm:$0xff]  ;;  %v2634_v3 = vld [vmem:[#allocation2 + $0x5e0] sm:$0xff] }
 0x593   :  { %2940 = vmatmul.mubr.bf16.gmra.mrb[84].mxu0 %v11385_v17  ;;  %3166 = vmatmul.mubr.bf16.gmra.mrb[84].mxu1 %v11385_v17  ;;  %v11417_v2 = vpack.c.bf16 %v15469_v46, %v15467_v53  ;;  %v2635_v53 = vld [vmem:[#allocation2 + $0x5e8] sm:$0xff] }
 0x594   :  { %3217 = vmatpush1.bf16.msra.mxu0 %v2530_v31  ;;  %3443 = vmatpush1.bf16.msra.mxu1 %v2532_v30  ;;  %v2570_v31 = vld [vmem:[#allocation2 + $0x3e0] sm:$0xff]  ;;  %v2572_v30 = vld [vmem:[#allocation2 + $0x3f0] sm:$0xff]  ;;  %v2643_v46 = vld [vmem:[#allocation2 + $0x628] sm:$0xff] }
 0x595   :  { %3218 = vmatprep.subr.bf16.mxu0 %v2539_v47  ;;  %3444 = vmatprep.subr.bf16.mxu1 %v2541_v26  ;;  %v2579_v47 = vld [vmem:[#allocation2 + $0x428] sm:$0xff]  ;;  %v2581_v26 = vld [vmem:[#allocation2 + $0x438] sm:$0xff] }
 0x596   :  { %2949 = vmatprep.mubr.bf16.mxu0 %v11391_v49  ;;  %3175 = vmatprep.mubr.bf16.mxu1 %v11391_v49 }
 0x598   :  { %3219 = vmatpush1.bf16.msra.mxu0 %v2538_v20  ;;  %3445 = vmatpush1.bf16.msra.mxu1 %v2540_v6  ;;  %v2587_v20 = vld [vmem:[#allocation2 + $0x468] sm:$0xff]  ;;  %v2589_v6 = vld [vmem:[#allocation2 + $0x478] sm:$0xff] }
 0x599   :  { %3220 = vmatprep.subr.bf16.mxu0 %v2547_v45  ;;  %3446 = vmatprep.subr.bf16.mxu1 %v2549_v23  ;;  %v2586_v45 = vld [vmem:[#allocation2 + $0x460] sm:$0xff]  ;;  %v2595_v23 = vld [vmem:[#allocation2 + $0x4a8] sm:$0xff] }
 0x59b   :  { %2950 = vmatmul.mubr.bf16.gmra.mrb[88].mxu0 %v11401_v58  ;;  %3176 = vmatmul.mubr.bf16.gmra.mrb[88].mxu1 %v11401_v58 }
 0x59c   :  { %3221 = vmatpush1.bf16.msra.mxu0 %v2546_v35  ;;  %3447 = vmatpush1.bf16.msra.mxu1 %v2548_v28  ;;  %v2602_v35 = vld [vmem:[#allocation2 + $0x4e0] sm:$0xff]  ;;  %v2611_v28 = vld [vmem:[#allocation2 + $0x528] sm:$0xff] }
 0x59d   :  { %3222 = vmatprep.subr.bf16.mxu0 %v2555_v33  ;;  %3448 = vmatprep.subr.bf16.mxu1 %v2557_v40  ;;  %v2613_v33 = vld [vmem:[#allocation2 + $0x538] sm:$0xff]  ;;  %v2610_v40 = vld [vmem:[#allocation2 + $0x520] sm:$0xff] }
 0x59e   :  { %2959 = vmatprep.mubr.bf16.mxu0 %v11407_v54  ;;  %3185 = vmatprep.mubr.bf16.mxu1 %v11407_v54 }
 0x5a0   :  { %3223 = vmatpush1.bf16.msra.mxu0 %v2554_v44  ;;  %3449 = vmatpush1.bf16.msra.mxu1 %v2556_v32  ;;  %v2618_v44 = vld [vmem:[#allocation2 + $0x560] sm:$0xff]  ;;  %v2627_v32 = vld [vmem:[#allocation2 + $0x5a8] sm:$0xff] }
 0x5a1   :  { %3224 = vmatprep.subr.bf16.mxu0 %v2563_v38  ;;  %3450 = vmatprep.subr.bf16.mxu1 %v2565_v15  ;;  %v2629_v38 = vld [vmem:[#allocation2 + $0x5b8] sm:$0xff]  ;;  %v2626_v15 = vld [vmem:[#allocation2 + $0x5a0] sm:$0xff] }
 0x5a3   :  { %2960 = vmatmul.mubr.bf16.gmra.mrb[92].mxu0 %v11417_v2  ;;  %3186 = vmatmul.mubr.bf16.gmra.mrb[92].mxu1 %v11417_v2 }
 0x5a4   :  { %3225 = vmatpush1.bf16.msra.mxu0 %v2562_v10  ;;  %3451 = vmatpush1.bf16.msra.mxu1 %v2564_v5  ;;  %v2645_v10 = vld [vmem:[#allocation2 + $0x638] sm:$0xff]  ;;  %v2642_v5 = vld [vmem:[#allocation2 + $0x620] sm:$0xff] }
 0x5a5   :  { %3226 = vmatprep.subr.bf16.mxu0 %v2571_v48  ;;  %3452 = vmatprep.subr.bf16.mxu1 %v2573_v27  ;;  %v2644_v48 = vld [vmem:[#allocation2 + $0x630] sm:$0xff]  ;;  %v2651_v27 = vld [vmem:[#allocation2 + $0x668] sm:$0xff] }
 0x5a6   :  { %3228 = vmatprep.mubr.bf16.mxu0 %v11169_v13  ;;  %3454 = vmatprep.mubr.bf16.mxu1 %v11169_v13  ;;  %v2588_v13 = vld [vmem:[#allocation2 + $0x470] sm:$0xff] }
 0x5a8   :  { %3227 = vmatpush1.bf16.msra.mxu0 %v2570_v31  ;;  %3453 = vmatpush1.bf16.msra.mxu1 %v2572_v30  ;;  %v2650_v31 = vld [vmem:[#allocation2 + $0x660] sm:$0xff]  ;;  %v2659_v30 = vld [vmem:[#allocation2 + $0x6a8] sm:$0xff] }
 0x5a9   :  { %3309 = vmatprep.subr.bf16.mxu0 %v2579_v47  ;;  %3535 = vmatprep.subr.bf16.mxu1 %v2581_v26  ;;  %v2661_v47 = vld [vmem:[#allocation2 + $0x6b8] sm:$0xff]  ;;  %v2658_v26 = vld [vmem:[#allocation2 + $0x6a0] sm:$0xff] }
 0x5ab   :  { %3229 = vmatmul.mubr.bf16.vlgmr.msra.gmra.mrb[96].mxu0 %v11177_v50  ;;  %3455 = vmatmul.mubr.bf16.vlgmr.msra.gmra.mrb[96].mxu1 %v11177_v50  ;;  %v2605_v50 = vld [vmem:[#allocation2 + $0x4f8] sm:$0xff] }
 0x5ac   :  { %3310 = vmatpush1.bf16.msra.mxu0 %v2578_v22  ;;  %3536 = vmatpush1.bf16.msra.mxu1 %v2580_v0  ;;  %v2660_v22 = vld [vmem:[#allocation2 + $0x6b0] sm:$0xff]  ;;  %v2667_v0 = vld [vmem:[#allocation2 + $0x6e8] sm:$0xff] }
 0x5ad   :  { %3311 = vmatprep.subr.bf16.mxu0 %v2587_v20  ;;  %3537 = vmatprep.subr.bf16.mxu1 %v2589_v6  ;;  %v2666_v20 = vld [vmem:[#allocation2 + $0x6e0] sm:$0xff]  ;;  %v2675_v6 = vld [vmem:[#allocation2 + $0x728] sm:$0xff] }
 0x5ae   :  { %3238 = vmatprep.mubr.bf16.mxu0 %v11183_v12  ;;  %3464 = vmatprep.mubr.bf16.mxu1 %v11183_v12  ;;  %v2604_v12 = vld [vmem:[#allocation2 + $0x4f0] sm:$0xff] }
 0x5b0   :  { %3312 = vmatpush1.bf16.msra.mxu0 %v2586_v45  ;;  %3538 = vmatpush1.bf16.msra.mxu1 %v2588_v13  ;;  %v2677_v45 = vld [vmem:[#allocation2 + $0x738] sm:$0xff]  ;;  %v2674_v13 = vld [vmem:[#allocation2 + $0x720] sm:$0xff] }
 0x5b1   :  { %3313 = vmatprep.subr.bf16.mxu0 %v2595_v23  ;;  %3539 = vmatprep.subr.bf16.mxu1 %v2597_v1  ;;  %v2676_v23 = vld [vmem:[#allocation2 + $0x730] sm:$0xff]  ;;  %v2683_v1 = vld [vmem:[#allocation2 + $0x768] sm:$0xff] }
 0x5b3   :  { %3239 = vmatmul.mubr.bf16.gmra.mrb[100].mxu0 %v11193_v63  ;;  %3465 = vmatmul.mubr.bf16.gmra.mrb[100].mxu1 %v11193_v63  ;;  %v2621_v63 = vld [vmem:[#allocation2 + $0x578] sm:$0xff] }
 0x5b4   :  { %3314 = vmatpush1.bf16.msra.mxu0 %v2594_v37  ;;  %3540 = vmatpush1.bf16.msra.mxu1 %v2596_v25  ;;  %v2682_v37 = vld [vmem:[#allocation2 + $0x760] sm:$0xff]  ;;  %v2691_v25 = vld [vmem:[#allocation2 + $0x7a8] sm:$0xff] }
 0x5b5   :  { %3315 = vmatprep.subr.bf16.mxu0 %v2603_v36  ;;  %3541 = vmatprep.subr.bf16.mxu1 %v2605_v50  ;;  %v2693_v36 = vld [vmem:[#allocation2 + $0x7b8] sm:$0xff]  ;;  %v2690_v50 = vld [vmem:[#allocation2 + $0x7a0] sm:$0xff] }
 0x5b6   :  { %3248 = vmatprep.mubr.bf16.mxu0 %v11199_v51  ;;  %3474 = vmatprep.mubr.bf16.mxu1 %v11199_v51  ;;  %v2620_v51 = vld [vmem:[#allocation2 + $0x570] sm:$0xff] }
 0x5b8   :  { %3316 = vmatpush1.bf16.msra.mxu0 %v2602_v35  ;;  %3542 = vmatpush1.bf16.msra.mxu1 %v2604_v12  ;;  %v2692_v35 = vld [vmem:[#allocation2 + $0x7b0] sm:$0xff]  ;;  %v2699_v12 = vld [vmem:[#allocation2 + $0x7e8] sm:$0xff] }
 0x5b9   :  { %3317 = vmatprep.subr.bf16.mxu0 %v2611_v28  ;;  %3543 = vmatprep.subr.bf16.mxu1 %v2613_v33  ;;  %v2698_v28 = vld [vmem:[#allocation2 + $0x7e0] sm:$0xff] }
 0x5bb   :  { %3249 = vmatmul.mubr.bf16.gmra.mrb[104].mxu0 %v11209_v11  ;;  %3475 = vmatmul.mubr.bf16.gmra.mrb[104].mxu1 %v11209_v11  ;;  %v2637_v11 = vld [vmem:[#allocation2 + $0x5f8] sm:$0xff] }
 0x5bc   :  { %3318 = vmatpush1.bf16.msra.mxu0 %v2610_v40  ;;  %3544 = vmatpush1.bf16.msra.mxu1 %v2612_v60 }
 0x5bd   :  { %3319 = vmatprep.subr.bf16.mxu0 %v2619_v8  ;;  %3545 = vmatprep.subr.bf16.mxu1 %v2621_v63 }
 0x5be   :  { %3258 = vmatprep.mubr.bf16.mxu0 %v11215_v52  ;;  %3484 = vmatprep.mubr.bf16.mxu1 %v11215_v52  ;;  %v2636_v52 = vld [vmem:[#allocation2 + $0x5f0] sm:$0xff] }
 0x5c0   :  { %3320 = vmatpush1.bf16.msra.mxu0 %v2618_v44  ;;  %3546 = vmatpush1.bf16.msra.mxu1 %v2620_v51 }
 0x5c1   :  { %3321 = vmatprep.subr.bf16.mxu0 %v2627_v32  ;;  %3547 = vmatprep.subr.bf16.mxu1 %v2629_v38 }
 0x5c3   :  { %3259 = vmatmul.mubr.bf16.gmra.mrb[108].mxu0 %v11225_v39  ;;  %3485 = vmatmul.mubr.bf16.gmra.mrb[108].mxu1 %v11225_v39  ;;  %v2653_v39 = vld [vmem:[#allocation2 + $0x678] sm:$0xff] }
 0x5c4   :  { %3322 = vmatpush1.bf16.msra.mxu0 %v2626_v15  ;;  %3548 = vmatpush1.bf16.msra.mxu1 %v2628_v55 }
 0x5c5   :  { %3323 = vmatprep.subr.bf16.mxu0 %v2635_v53  ;;  %3549 = vmatprep.subr.bf16.mxu1 %v2637_v11 }
 0x5c6   :  { %3268 = vmatprep.mubr.bf16.mxu0 %v11231_v4  ;;  %3494 = vmatprep.mubr.bf16.mxu1 %v11231_v4  ;;  %v2652_v4 = vld [vmem:[#allocation2 + $0x670] sm:$0xff] }
 0x5c8   :  { %3324 = vmatpush1.bf16.msra.mxu0 %v2634_v3  ;;  %3550 = vmatpush1.bf16.msra.mxu1 %v2636_v52 }
 0x5c9   :  { %3325 = vmatprep.subr.bf16.mxu0 %v2643_v46  ;;  %3551 = vmatprep.subr.bf16.mxu1 %v2645_v10 }
 0x5cb   :  { %3269 = vmatmul.mubr.bf16.gmra.mrb[112].mxu0 %v11241_v18  ;;  %3495 = vmatmul.mubr.bf16.gmra.mrb[112].mxu1 %v11241_v18  ;;  %v2669_v18 = vld [vmem:[#allocation2 + $0x6f8] sm:$0xff] }
 0x5cc   :  { %3326 = vmatpush1.bf16.msra.mxu0 %v2642_v5  ;;  %3552 = vmatpush1.bf16.msra.mxu1 %v2644_v48 }
 0x5cd   :  { %3327 = vmatprep.subr.bf16.mxu0 %v2651_v27  ;;  %3553 = vmatprep.subr.bf16.mxu1 %v2653_v39 }
 0x5ce   :  { %3278 = vmatprep.mubr.bf16.mxu0 %v11247_v7  ;;  %3504 = vmatprep.mubr.bf16.mxu1 %v11247_v7  ;;  %v2668_v7 = vld [vmem:[#allocation2 + $0x6f0] sm:$0xff] }
 0x5d0   :  { %3328 = vmatpush1.bf16.msra.mxu0 %v2650_v31  ;;  %3554 = vmatpush1.bf16.msra.mxu1 %v2652_v4 }
 0x5d1   :  { %3329 = vmatprep.subr.bf16.mxu0 %v2659_v30  ;;  %3555 = vmatprep.subr.bf16.mxu1 %v2661_v47 }
 0x5d3   :  { %3279 = vmatmul.mubr.bf16.gmra.mrb[116].mxu0 %v11257_v19  ;;  %3505 = vmatmul.mubr.bf16.gmra.mrb[116].mxu1 %v11257_v19  ;;  %v2685_v19 = vld [vmem:[#allocation2 + $0x778] sm:$0xff] }
 0x5d4   :  { %3330 = vmatpush1.bf16.msra.mxu0 %v2658_v26  ;;  %3556 = vmatpush1.bf16.msra.mxu1 %v2660_v22 }
 0x5d5   :  { %3331 = vmatprep.subr.bf16.mxu0 %v2667_v0  ;;  %3557 = vmatprep.subr.bf16.mxu1 %v2669_v18 }
 0x5d6   :  { %3288 = vmatprep.mubr.bf16.mxu0 %v11263_v29  ;;  %3514 = vmatprep.mubr.bf16.mxu1 %v11263_v29  ;;  %v2684_v29 = vld [vmem:[#allocation2 + $0x770] sm:$0xff] }
 0x5d8   :  { %3332 = vmatpush1.bf16.msra.mxu0 %v2666_v20  ;;  %3558 = vmatpush1.bf16.msra.mxu1 %v2668_v7 }
 0x5d9   :  { %3333 = vmatprep.subr.bf16.mxu0 %v2675_v6  ;;  %3559 = vmatprep.subr.bf16.mxu1 %v2677_v45 }
 0x5db   :  { %3289 = vmatmul.mubr.bf16.gmra.mrb[120].mxu0 %v11273_v56  ;;  %3515 = vmatmul.mubr.bf16.gmra.mrb[120].mxu1 %v11273_v56  ;;  %v2701_v56 = vld [vmem:[#allocation2 + $0x7f8] sm:$0xff] }
 0x5dc   :  { %3334 = vmatpush1.bf16.msra.mxu0 %v2674_v13  ;;  %3560 = vmatpush1.bf16.msra.mxu1 %v2676_v23 }
 0x5dd   :  { %3335 = vmatprep.subr.bf16.mxu0 %v2683_v1  ;;  %3561 = vmatprep.subr.bf16.mxu1 %v2685_v19 }
 0x5de   :  { %3298 = vmatprep.mubr.bf16.mxu0 %v11279_v43  ;;  %3524 = vmatprep.mubr.bf16.mxu1 %v11279_v43  ;;  %v2700_v43 = vld [vmem:[#allocation2 + $0x7f0] sm:$0xff] }
 0x5e0   :  { %3336 = vmatpush1.bf16.msra.mxu0 %v2682_v37  ;;  %3562 = vmatpush1.bf16.msra.mxu1 %v2684_v29 }
 0x5e1   :  { %3337 = vmatprep.subr.bf16.mxu0 %v2691_v25  ;;  %3563 = vmatprep.subr.bf16.mxu1 %v2693_v36 }
 0x5e3   :  { %3299 = vmatmul.mubr.bf16.gmra.mrb[124].mxu0 %v11289_v24  ;;  %3525 = vmatmul.mubr.bf16.gmra.mrb[124].mxu1 %v11289_v24  ;;  %v2702_v24 = vld [vmem:[#allocation23] sm:$0xff] }
 0x5e4   :  { %3338 = vmatpush1.bf16.msra.mxu0 %v2690_v50  ;;  %3564 = vmatpush1.bf16.msra.mxu1 %v2692_v35 }
 0x5e5   :  { %3339 = vmatprep.subr.bf16.mxu0 %v2699_v12  ;;  %3565 = vmatprep.subr.bf16.mxu1 %v2701_v56 }
 0x5e6   :  { %3341 = vmatprep.mubr.bf16.mxu0 %v11295_v59  ;;  %3567 = vmatprep.mubr.bf16.mxu1 %v11295_v59  ;;  %v15470_v59 = vld [vmem:[#allocation46_spill] sm:$0xff] }
 0x5e8   :  { %3340 = vmatpush1.bf16.msra.mxu0 %v2698_v28  ;;  %3566 = vmatpush1.bf16.msra.mxu1 %v2700_v43 }
 0x5eb   :  { %3342 = vmatmul.mubr.bf16.vlgmr.msra.gmra.mrb[96].mxu0 %v11305_v16  ;;  %3568 = vmatmul.mubr.bf16.vlgmr.msra.gmra.mrb[96].mxu1 %v11305_v16  ;;  %v11486_v16 = vrot.slane %v2702_v24, %v15470_v59 }
 0x5ec   :  { %3351 = vmatprep.mubr.bf16.mxu0 %v11311_v41  ;;  %3577 = vmatprep.mubr.bf16.mxu1 %v11311_v41  ;;  %v15471_v41 = vld [vmem:[#allocation48_spill] sm:$0xff] }
 0x5f3   :  { %3352 = vmatmul.mubr.bf16.gmra.mrb[100].mxu0 %v11321_v62  ;;  %3578 = vmatmul.mubr.bf16.gmra.mrb[100].mxu1 %v11321_v62  ;;  %v11489_v62 = vrot.slane %v2702_v24, %v15471_v41 }
 0x5f4   :  { %3361 = vmatprep.mubr.bf16.mxu0 %v11327_v61  ;;  %3587 = vmatprep.mubr.bf16.mxu1 %v11327_v61  ;;  %v15472_v61 = vld [vmem:[#allocation47_spill] sm:$0xff] }
 0x5fb   :  { %3362 = vmatmul.mubr.bf16.gmra.mrb[104].mxu0 %v11337_v42  ;;  %3588 = vmatmul.mubr.bf16.gmra.mrb[104].mxu1 %v11337_v42  ;;  %v11492_v42 = vrot.slane %v2702_v24, %v15472_v61 }
 0x5fc   :  { %3371 = vmatprep.mubr.bf16.mxu0 %v11343_v14  ;;  %3597 = vmatprep.mubr.bf16.mxu1 %v11343_v14  ;;  %v15473_v14 = vld [vmem:[#allocation49_spill] sm:$0xff] }
 0x603   :  { %3372 = vmatmul.mubr.bf16.gmra.mrb[108].mxu0 %v11353_v9  ;;  %3598 = vmatmul.mubr.bf16.gmra.mrb[108].mxu1 %v11353_v9  ;;  %v11495_v9 = vrot.slane %v2702_v24, %v15473_v14 }
 0x604   :  { %3381 = vmatprep.mubr.bf16.mxu0 %v11359_v34  ;;  %3607 = vmatprep.mubr.bf16.mxu1 %v11359_v34 }
 0x60b   :  { %3382 = vmatmul.mubr.bf16.gmra.mrb[112].mxu0 %v11369_v21  ;;  %3608 = vmatmul.mubr.bf16.gmra.mrb[112].mxu1 %v11369_v21 }
 0x60c   :  { %3391 = vmatprep.mubr.bf16.mxu0 %v11375_v57  ;;  %3617 = vmatprep.mubr.bf16.mxu1 %v11375_v57 }
 0x613   :  { %3392 = vmatmul.mubr.bf16.gmra.mrb[116].mxu0 %v11385_v17  ;;  %3618 = vmatmul.mubr.bf16.gmra.mrb[116].mxu1 %v11385_v17 }
 0x614   :  { %3401 = vmatprep.mubr.bf16.mxu0 %v11391_v49  ;;  %3627 = vmatprep.mubr.bf16.mxu1 %v11391_v49 }
 0x61b   :  { %3402 = vmatmul.mubr.bf16.gmra.mrb[120].mxu0 %v11401_v58  ;;  %3628 = vmatmul.mubr.bf16.gmra.mrb[120].mxu1 %v11401_v58 }
 0x61c   :  { %3411 = vmatprep.mubr.bf16.mxu0 %v11407_v54  ;;  %3637 = vmatprep.mubr.bf16.mxu1 %v11407_v54 }
 0x623   :  { %3412 = vmatmul.mubr.bf16.gmra.mrb[124].mxu0 %v11417_v2  ;;  %3638 = vmatmul.mubr.bf16.gmra.mrb[124].mxu1 %v11417_v2 }
 0x63e   :  { %v2891_v34 = vpop.f32.mrb[64].mxu0  ;;  %v3117_v21 = vpop.f32.mrb[64].mxu1 }
 0x63f   :  { %v11498_v57 = vadd.f32 %v2891_v34, %v11486_v16  ;;  %v11501_v17 = vadd.f32 %v3117_v21, %v11489_v62  ;;  %v2893_v49 = vpop.f32.mrb[65].mxu0  ;;  %v3119_v58 = vpop.f32.mrb[65].mxu1 }
 0x640   :  { %v11504_v54 = vadd.f32 %v2893_v49, %v11492_v42  ;;  %v11507_v2 = vadd.f32 %v3119_v58, %v11495_v9  ;;  %v2895_v33 = vpop.f32.mrb[66].mxu0  ;;  %v3121_v40 = vpop.f32.mrb[66].mxu1 }
 0x641   :  { %v3816_v60 = vmul.f32 %v11498_v57, %v11498_v57  ;;  %v3818_v8 = vmul.f32 %v11501_v17, %v11501_v17  ;;  %v11514_v63 = vadd.f32 %v2895_v33, %v11486_v16  ;;  %v11517_v44 = vadd.f32 %v3121_v40, %v11489_v62  ;;  %v2897_v51 = vpop.f32.mrb[67].mxu0  ;;  %v3123_v32 = vpop.f32.mrb[67].mxu1 }
 0x642   :  { %15474 = vst [vmem:[#allocation51_spill] sm:$0xff] %v11504_v54  ;;  %15475 = vst [vmem:[#allocation53_spill] sm:$0xff] %v11507_v2  ;;  %v3817_v38 = vmul.f32 %v11504_v54, %v11504_v54  ;;  %v3819_v15 = vmul.f32 %v11507_v2, %v11507_v2  ;;  %v11524_v55 = vadd.f32 %v2897_v51, %v11492_v42 }
 0x643   :  { %v11527_v53 = vadd.f32 %v3123_v32, %v11495_v9  ;;  %v3648_v11 = vadd.f32 %v11514_v63, %v11498_v57  ;;  %v3824_v3 = vmul.f32 %v11514_v63, %v11514_v63  ;;  %v3690_v52 = vadd.f32 %v11517_v44, %v11501_v17 }
 0x644   :  { %15476 = vst [vmem:[#allocation55_spill] sm:$0xff] %v11524_v55  ;;  %v3826_v46 = vmul.f32 %v11517_v44, %v11517_v44  ;;  %v3669_v10 = vadd.f32 %v11524_v55, %v11504_v54  ;;  %v3825_v5 = vmul.f32 %v11524_v55, %v11524_v55 }
 0x645   :  { %15477 = vst [vmem:[#allocation57_spill] sm:$0xff] %v11527_v53  ;;  %v3711_v48 = vadd.f32 %v11527_v53, %v11507_v2  ;;  %v3827_v27 = vmul.f32 %v11527_v53, %v11527_v53  ;;  %v3944_v39 = vadd.f32 %v3824_v3, %v3816_v60 }
 0x646   :  { %v3986_v31 = vadd.f32 %v3826_v46, %v3818_v8  ;;  %v3965_v4 = vadd.f32 %v3825_v5, %v3817_v38  ;;  %v2901_v47 = vpop.f32.mrb[68].mxu0  ;;  %v3127_v26 = vpop.f32.mrb[68].mxu1 }
 0x647   :  { %v4007_v30 = vadd.f32 %v3827_v27, %v3819_v15  ;;  %v11546_v22 = vadd.f32 %v2901_v47, %v11486_v16  ;;  %v11549_v0 = vadd.f32 %v3127_v26, %v11489_v62  ;;  %v2903_v18 = vpop.f32.mrb[69].mxu0  ;;  %v3129_v20 = vpop.f32.mrb[69].mxu1 }
 0x648   :  { %v11552_v7 = vadd.f32 %v2903_v18, %v11492_v42  ;;  %v11555_v6 = vadd.f32 %v3129_v20, %v11495_v9  ;;  %v2905_v45 = vpop.f32.mrb[70].mxu0  ;;  %v3131_v13 = vpop.f32.mrb[70].mxu1 }
 0x649   :  { %v3649_v23 = vadd.f32 %v11546_v22, %v3648_v11  ;;  %v3832_v1 = vmul.f32 %v11546_v22, %v11546_v22  ;;  %v3691_v19 = vadd.f32 %v11549_v0, %v3690_v52  ;;  %v3834_v37 = vmul.f32 %v11549_v0, %v11549_v0  ;;  %v2907_v29 = vpop.f32.mrb[71].mxu0  ;;  %v3133_v25 = vpop.f32.mrb[71].mxu1 }
 0x64a   :  { %15478 = vst [vmem:[#allocation59_spill] sm:$0xff] %v11552_v7  ;;  %15479 = vst [vmem:[#allocation61_spill] sm:$0xff] %v11555_v6  ;;  %v3670_v36 = vadd.f32 %v11552_v7, %v3669_v10  ;;  %v3833_v50 = vmul.f32 %v11552_v7, %v11552_v7  ;;  %v3712_v35 = vadd.f32 %v11555_v6, %v3711_v48 }
 0x64b   :  { %v3835_v12 = vmul.f32 %v11555_v6, %v11555_v6  ;;  %v3945_v56 = vadd.f32 %v3944_v39, %v3832_v1  ;;  %v3987_v28 = vadd.f32 %v3986_v31, %v3834_v37  ;;  %v11570_v43 = vadd.f32 %v2905_v45, %v11486_v16 }
 0x64c   :  { %v11573_v24 = vadd.f32 %v3131_v13, %v11489_v62  ;;  %v3966_v34 = vadd.f32 %v3965_v4, %v3833_v50  ;;  %v11576_v49 = vadd.f32 %v2907_v29, %v11492_v42  ;;  %v11579_v58 = vadd.f32 %v3133_v25, %v11495_v9 }
 0x64d   :  { %v4008_v21 = vadd.f32 %v4007_v30, %v3835_v12  ;;  %v3650_v33 = vadd.f32 %v11570_v43, %v3649_v23  ;;  %v3840_v40 = vmul.f32 %v11570_v43, %v11570_v43 }
 0x64e   :  { %15480 = vst [vmem:[#allocation63_spill] sm:$0xff] %v11576_v49  ;;  %15481 = vst [vmem:[#allocation65_spill] sm:$0xff] %v11579_v58  ;;  %v3692_v60 = vadd.f32 %v11573_v24, %v3691_v19  ;;  %v3842_v8 = vmul.f32 %v11573_v24, %v11573_v24  ;;  %v3671_v51 = vadd.f32 %v11576_v49, %v3670_v36  ;;  %v2911_v11 = vpop.f32.mrb[72].mxu0  ;;  %v3137_v3 = vpop.f32.mrb[72].mxu1 }
 0x64f   :  { %v3841_v32 = vmul.f32 %v11576_v49, %v11576_v49  ;;  %v3713_v38 = vadd.f32 %v11579_v58, %v3712_v35  ;;  %v3843_v15 = vmul.f32 %v11579_v58, %v11579_v58  ;;  %v3946_v52 = vadd.f32 %v3945_v56, %v3840_v40  ;;  %v2913_v48 = vpop.f32.mrb[73].mxu0  ;;  %v3139_v27 = vpop.f32.mrb[73].mxu1  ;;  %v11862_v49 = vld [vmem:[#allocation26] sm:$0xff] }
 0x650   :  { %v3988_v46 = vadd.f32 %v3987_v28, %v3842_v8  ;;  %v11594_v10 = vadd.f32 %v2911_v11, %v11486_v16  ;;  %v11597_v5 = vadd.f32 %v3137_v3, %v11489_v62  ;;  %v11600_v4 = vadd.f32 %v2913_v48, %v11492_v42  ;;  %v2915_v47 = vpop.f32.mrb[74].mxu0  ;;  %v3141_v26 = vpop.f32.mrb[74].mxu1  ;;  %15506 = vst [vmem:[#allocation80_spill] sm:$0xff] %v11862_v49 }
 0x651   :  { %v3967_v39 = vadd.f32 %v3966_v34, %v3841_v32  ;;  %v4009_v31 = vadd.f32 %v4008_v21, %v3843_v15  ;;  %v11603_v30 = vadd.f32 %v3139_v27, %v11495_v9  ;;  %v2917_v23 = vpop.f32.mrb[75].mxu0  ;;  %v3143_v1 = vpop.f32.mrb[75].mxu1  ;;  %v11618_v35 = vadd.f32 %v2915_v47, %v11486_v16 }
 0x652   :  { %15482 = vst [vmem:[#allocation67_spill] sm:$0xff] %v11600_v4  ;;  %v3651_v18 = vadd.f32 %v11594_v10, %v3650_v33  ;;  %v3848_v20 = vmul.f32 %v11594_v10, %v11594_v10  ;;  %v3693_v45 = vadd.f32 %v11597_v5, %v3692_v60  ;;  %v3850_v13 = vmul.f32 %v11597_v5, %v11597_v5 }
 0x653   :  { %15483 = vst [vmem:[#allocation69_spill] sm:$0xff] %v11603_v30  ;;  %v3672_v19 = vadd.f32 %v11600_v4, %v3671_v51  ;;  %v3849_v37 = vmul.f32 %v11600_v4, %v11600_v4  ;;  %v3714_v29 = vadd.f32 %v11603_v30, %v3713_v38  ;;  %v3851_v25 = vmul.f32 %v11603_v30, %v11603_v30 }
 0x654   :  { %v3947_v36 = vadd.f32 %v3946_v52, %v3848_v20  ;;  %v3989_v50 = vadd.f32 %v3988_v46, %v3850_v13  ;;  %v11621_v12 = vadd.f32 %v3141_v26, %v11489_v62  ;;  %v11624_v34 = vadd.f32 %v2917_v23, %v11492_v42 }
 0x655   :  { %v3968_v56 = vadd.f32 %v3967_v39, %v3849_v37  ;;  %v4010_v28 = vadd.f32 %v4009_v31, %v3851_v25  ;;  %v11627_v21 = vadd.f32 %v3143_v1, %v11495_v9  ;;  %v3652_v33 = vadd.f32 %v11618_v35, %v3651_v18 }
 0x656   :  { %15484 = vst [vmem:[#allocation71_spill] sm:$0xff] %v11624_v34  ;;  %v3856_v40 = vmul.f32 %v11618_v35, %v11618_v35  ;;  %v3694_v60 = vadd.f32 %v11621_v12, %v3693_v45  ;;  %v3858_v8 = vmul.f32 %v11621_v12, %v11621_v12  ;;  %v3673_v51 = vadd.f32 %v11624_v34, %v3672_v19  ;;  %v2921_v11 = vpop.f32.mrb[76].mxu0  ;;  %v3147_v3 = vpop.f32.mrb[76].mxu1 }
 0x657   :  { %15485 = vst [vmem:[#allocation73_spill] sm:$0xff] %v11627_v21  ;;  %v3857_v32 = vmul.f32 %v11624_v34, %v11624_v34  ;;  %v3715_v38 = vadd.f32 %v11627_v21, %v3714_v29  ;;  %v3859_v15 = vmul.f32 %v11627_v21, %v11627_v21  ;;  %v11642_v48 = vadd.f32 %v2921_v11, %v11486_v16  ;;  %v2923_v39 = vpop.f32.mrb[77].mxu0  ;;  %v3149_v31 = vpop.f32.mrb[77].mxu1 }
 0x658   :  { %v3948_v52 = vadd.f32 %v3947_v36, %v3856_v40  ;;  %v3990_v46 = vadd.f32 %v3989_v50, %v3858_v8  ;;  %v11645_v27 = vadd.f32 %v3147_v3, %v11489_v62  ;;  %v11648_v18 = vadd.f32 %v2923_v39, %v11492_v42  ;;  %v2925_v45 = vpop.f32.mrb[78].mxu0  ;;  %v3151_v13 = vpop.f32.mrb[78].mxu1 }
 0x659   :  { %v3969_v47 = vadd.f32 %v3968_v56, %v3857_v32  ;;  %v4011_v26 = vadd.f32 %v4010_v28, %v3859_v15  ;;  %v11651_v20 = vadd.f32 %v3149_v31, %v11495_v9  ;;  %v3653_v23 = vadd.f32 %v11642_v48, %v3652_v33  ;;  %v2927_v29 = vpop.f32.mrb[79].mxu0  ;;  %v3153_v25 = vpop.f32.mrb[79].mxu1 }
 0x65a   :  { %15486 = vst [vmem:[#allocation75_spill] sm:$0xff] %v11648_v18  ;;  %v3864_v1 = vmul.f32 %v11642_v48, %v11642_v48  ;;  %v3695_v19 = vadd.f32 %v11645_v27, %v3694_v60  ;;  %v3866_v37 = vmul.f32 %v11645_v27, %v11645_v27  ;;  %v3674_v36 = vadd.f32 %v11648_v18, %v3673_v51 }
 0x65b   :  { %15487 = vst [vmem:[#allocation77_spill] sm:$0xff] %v11651_v20  ;;  %v3865_v50 = vmul.f32 %v11648_v18, %v11648_v18  ;;  %v3716_v56 = vadd.f32 %v11651_v20, %v3715_v38  ;;  %v3867_v28 = vmul.f32 %v11651_v20, %v11651_v20  ;;  %v11666_v8 = vadd.f32 %v2925_v45, %v11486_v16 }
 0x65c   :  { %v3949_v33 = vadd.f32 %v3948_v52, %v3864_v1  ;;  %v3991_v40 = vadd.f32 %v3990_v46, %v3866_v37  ;;  %v11669_v60 = vadd.f32 %v3151_v13, %v11489_v62  ;;  %v11672_v51 = vadd.f32 %v2927_v29, %v11492_v42 }
 0x65d   :  { %v3970_v32 = vadd.f32 %v3969_v47, %v3865_v50  ;;  %v4012_v15 = vadd.f32 %v4011_v26, %v3867_v28  ;;  %v11675_v11 = vadd.f32 %v3153_v25, %v11495_v9  ;;  %v3654_v38 = vadd.f32 %v11666_v8, %v3653_v23 }
 0x65e   :  { %15488 = vst [vmem:[#allocation79_spill] sm:$0xff] %v11672_v51  ;;  %v3872_v3 = vmul.f32 %v11666_v8, %v11666_v8  ;;  %v3696_v52 = vadd.f32 %v11669_v60, %v3695_v19  ;;  %v3874_v46 = vmul.f32 %v11669_v60, %v11669_v60  ;;  %v3675_v39 = vadd.f32 %v11672_v51, %v3674_v36  ;;  %v2931_v45 = vpop.f32.mrb[80].mxu0  ;;  %v3157_v13 = vpop.f32.mrb[80].mxu1 }
 0x65f   :  { %15489 = vst [vmem:[#allocation82_spill] sm:$0xff] %v11675_v11  ;;  %v3873_v31 = vmul.f32 %v11672_v51, %v11672_v51  ;;  %v3717_v47 = vadd.f32 %v11675_v11, %v3716_v56  ;;  %v3875_v26 = vmul.f32 %v11675_v11, %v11675_v11  ;;  %v11690_v37 = vadd.f32 %v2931_v45, %v11486_v16  ;;  %v2933_v29 = vpop.f32.mrb[81].mxu0  ;;  %v3159_v25 = vpop.f32.mrb[81].mxu1 }
 0x660   :  { %v3950_v23 = vadd.f32 %v3949_v33, %v3872_v3  ;;  %v3992_v1 = vadd.f32 %v3991_v40, %v3874_v46  ;;  %v11693_v19 = vadd.f32 %v3157_v13, %v11489_v62  ;;  %v11696_v28 = vadd.f32 %v2933_v29, %v11492_v42  ;;  %v2935_v14 = vpop.f32.mrb[82].mxu0  ;;  %v3161_v61 = vpop.f32.mrb[82].mxu1 }
 0x661   :  { %v3971_v36 = vadd.f32 %v3970_v32, %v3873_v31  ;;  %v4013_v50 = vadd.f32 %v4012_v15, %v3875_v26  ;;  %v11699_v56 = vadd.f32 %v3159_v25, %v11495_v9  ;;  %v3655_v33 = vadd.f32 %v11690_v37, %v3654_v38  ;;  %v2937_v32 = vpop.f32.mrb[83].mxu0  ;;  %v3163_v15 = vpop.f32.mrb[83].mxu1 }
 0x662   :  { %15490 = vst [vmem:[#allocation83_spill] sm:$0xff] %v11696_v28  ;;  %v3880_v40 = vmul.f32 %v11690_v37, %v11690_v37  ;;  %v3697_v3 = vadd.f32 %v11693_v19, %v3696_v52  ;;  %v3882_v46 = vmul.f32 %v11693_v19, %v11693_v19  ;;  %v3676_v31 = vadd.f32 %v11696_v28, %v3675_v39 }
 0x663   :  { %15491 = vst [vmem:[#allocation52_spill] sm:$0xff] %v11699_v56  ;;  %v3881_v26 = vmul.f32 %v11696_v28, %v11696_v28  ;;  %v3718_v45 = vadd.f32 %v11699_v56, %v3717_v47  ;;  %v3883_v38 = vmul.f32 %v11699_v56, %v11699_v56  ;;  %v11714_v25 = vadd.f32 %v2935_v14, %v11486_v16 }
 0x664   :  { %v3951_v13 = vadd.f32 %v3950_v23, %v3880_v40  ;;  %v3993_v29 = vadd.f32 %v3992_v1, %v3882_v46  ;;  %v11717_v52 = vadd.f32 %v3161_v61, %v11489_v62  ;;  %v11720_v39 = vadd.f32 %v2937_v32, %v11492_v42 }
 0x665   :  { %v3972_v11 = vadd.f32 %v3971_v36, %v3881_v26  ;;  %v4014_v20 = vadd.f32 %v4013_v50, %v3883_v38  ;;  %v11723_v21 = vadd.f32 %v3163_v15, %v11495_v9  ;;  %v3656_v47 = vadd.f32 %v11714_v25, %v3655_v33 }
 0x666   :  { %15492 = vst [vmem:[#allocation54_spill] sm:$0xff] %v11720_v39  ;;  %v3888_v23 = vmul.f32 %v11714_v25, %v11714_v25  ;;  %v3698_v1 = vadd.f32 %v11717_v52, %v3697_v3  ;;  %v3890_v14 = vmul.f32 %v11717_v52, %v11717_v52  ;;  %v3677_v61 = vadd.f32 %v11720_v39, %v3676_v31  ;;  %v2941_v46 = vpop.f32.mrb[84].mxu0  ;;  %v3167_v33 = vpop.f32.mrb[84].mxu1 }
 0x667   :  { %15493 = vst [vmem:[#allocation56_spill] sm:$0xff] %v11723_v21  ;;  %v3889_v36 = vmul.f32 %v11720_v39, %v11720_v39  ;;  %v3719_v50 = vadd.f32 %v11723_v21, %v3718_v45  ;;  %v3891_v40 = vmul.f32 %v11723_v21, %v11723_v21  ;;  %v11738_v26 = vadd.f32 %v2941_v46, %v11486_v16  ;;  %v2943_v38 = vpop.f32.mrb[85].mxu0  ;;  %v3169_v31 = vpop.f32.mrb[85].mxu1 }
 0x668   :  { %v3952_v32 = vadd.f32 %v3951_v13, %v3888_v23  ;;  %v3994_v15 = vadd.f32 %v3993_v29, %v3890_v14  ;;  %v11741_v3 = vadd.f32 %v3167_v33, %v11489_v62  ;;  %v11744_v58 = vadd.f32 %v2943_v38, %v11492_v42  ;;  %v2945_v21 = vpop.f32.mrb[86].mxu0  ;;  %v3171_v6 = vpop.f32.mrb[86].mxu1 }
 0x669   :  { %v3973_v56 = vadd.f32 %v3972_v11, %v3889_v36  ;;  %v4015_v30 = vadd.f32 %v4014_v20, %v3891_v40  ;;  %v11747_v45 = vadd.f32 %v3169_v31, %v11495_v9  ;;  %v3657_v13 = vadd.f32 %v11738_v26, %v3656_v47  ;;  %v2947_v11 = vpop.f32.mrb[87].mxu0  ;;  %v3173_v20 = vpop.f32.mrb[87].mxu1 }
 0x66a   :  { %15494 = vst [vmem:[#allocation58_spill] sm:$0xff] %v11744_v58  ;;  %v3896_v29 = vmul.f32 %v11738_v26, %v11738_v26  ;;  %v3699_v23 = vadd.f32 %v11741_v3, %v3698_v1  ;;  %v3898_v14 = vmul.f32 %v11741_v3, %v11741_v3  ;;  %v3678_v36 = vadd.f32 %v11744_v58, %v3677_v61 }
 0x66b   :  { %15495 = vst [vmem:[#allocation60_spill] sm:$0xff] %v11747_v45  ;;  %v3897_v40 = vmul.f32 %v11744_v58, %v11744_v58  ;;  %v3720_v46 = vadd.f32 %v11747_v45, %v3719_v50  ;;  %v3899_v47 = vmul.f32 %v11747_v45, %v11747_v45  ;;  %v11762_v31 = vadd.f32 %v2945_v21, %v11486_v16 }
 0x66c   :  { %v3953_v33 = vadd.f32 %v3952_v32, %v3896_v29  ;;  %v3995_v38 = vadd.f32 %v3994_v15, %v3898_v14  ;;  %v11765_v1 = vadd.f32 %v3171_v6, %v11489_v62  ;;  %v11768_v61 = vadd.f32 %v2947_v11, %v11492_v42 }
 0x66d   :  { %v3974_v53 = vadd.f32 %v3973_v56, %v3897_v40  ;;  %v4016_v2 = vadd.f32 %v4015_v30, %v3899_v47  ;;  %v11771_v58 = vadd.f32 %v3173_v20, %v11495_v9  ;;  %v3658_v50 = vadd.f32 %v11762_v31, %v3657_v13 }
 0x66e   :  { %15496 = vst [vmem:[#allocation62_spill] sm:$0xff] %v11768_v61  ;;  %v3904_v32 = vmul.f32 %v11762_v31, %v11762_v31  ;;  %v3700_v15 = vadd.f32 %v11765_v1, %v3699_v23  ;;  %v3906_v21 = vmul.f32 %v11765_v1, %v11765_v1  ;;  %v3679_v6 = vadd.f32 %v11768_v61, %v3678_v36  ;;  %v2951_v14 = vpop.f32.mrb[88].mxu0  ;;  %v3177_v13 = vpop.f32.mrb[88].mxu1 }
 0x66f   :  { %15497 = vst [vmem:[#allocation64_spill] sm:$0xff] %v11771_v58  ;;  %v3905_v30 = vmul.f32 %v11768_v61, %v11768_v61  ;;  %v3721_v56 = vadd.f32 %v11771_v58, %v3720_v46  ;;  %v3907_v29 = vmul.f32 %v11771_v58, %v11771_v58  ;;  %v11786_v40 = vadd.f32 %v2951_v14, %v11486_v16  ;;  %v2953_v47 = vpop.f32.mrb[89].mxu0  ;;  %v3179_v36 = vpop.f32.mrb[89].mxu1 }
 0x670   :  { %v3954_v11 = vadd.f32 %v3953_v33, %v3904_v32  ;;  %v3996_v20 = vadd.f32 %v3995_v38, %v3906_v21  ;;  %v11789_v23 = vadd.f32 %v3177_v13, %v11489_v62  ;;  %v11792_v61 = vadd.f32 %v2953_v47, %v11492_v42  ;;  %v2955_v58 = vpop.f32.mrb[90].mxu0  ;;  %v3181_v28 = vpop.f32.mrb[90].mxu1 }
 0x671   :  { %v3975_v45 = vadd.f32 %v3974_v53, %v3905_v30  ;;  %v4017_v39 = vadd.f32 %v4016_v2, %v3907_v29  ;;  %v11795_v46 = vadd.f32 %v3179_v36, %v11495_v9  ;;  %v3659_v33 = vadd.f32 %v11786_v40, %v3658_v50  ;;  %v2957_v53 = vpop.f32.mrb[91].mxu0  ;;  %v3183_v2 = vpop.f32.mrb[91].mxu1 }
 0x672   :  { %15498 = vst [vmem:[#allocation66_spill] sm:$0xff] %v11792_v61  ;;  %v3912_v38 = vmul.f32 %v11786_v40, %v11786_v40  ;;  %v3701_v32 = vadd.f32 %v11789_v23, %v3700_v15  ;;  %v3914_v21 = vmul.f32 %v11789_v23, %v11789_v23  ;;  %v3680_v30 = vadd.f32 %v11792_v61, %v3679_v6 }
 0x673   :  { %15499 = vst [vmem:[#allocation68_spill] sm:$0xff] %v11795_v46  ;;  %v3913_v29 = vmul.f32 %v11792_v61, %v11792_v61  ;;  %v3722_v14 = vadd.f32 %v11795_v46, %v3721_v56  ;;  %v3915_v50 = vmul.f32 %v11795_v46, %v11795_v46  ;;  %v11810_v36 = vadd.f32 %v2955_v58, %v11486_v16 }
 0x674   :  { %v3955_v13 = vadd.f32 %v3954_v11, %v3912_v38  ;;  %v3997_v47 = vadd.f32 %v3996_v20, %v3914_v21  ;;  %v11813_v15 = vadd.f32 %v3181_v28, %v11489_v62  ;;  %v11816_v6 = vadd.f32 %v2957_v53, %v11492_v42 }
 0x675   :  { %v3976_v51 = vadd.f32 %v3975_v45, %v3913_v29  ;;  %v4018_v18 = vadd.f32 %v4017_v39, %v3915_v50  ;;  %v11819_v61 = vadd.f32 %v3183_v2, %v11495_v9  ;;  %v3660_v56 = vadd.f32 %v11810_v36, %v3659_v33 }
 0x676   :  { %15500 = vst [vmem:[#allocation70_spill] sm:$0xff] %v11813_v15  ;;  %15501 = vst [vmem:[#allocation72_spill] sm:$0xff] %v11816_v6  ;;  %v3920_v11 = vmul.f32 %v11810_v36, %v11810_v36  ;;  %v3702_v20 = vadd.f32 %v11813_v15, %v3701_v32  ;;  %v3922_v58 = vmul.f32 %v11813_v15, %v11813_v15  ;;  %v2961_v21 = vpop.f32.mrb[92].mxu0  ;;  %v3187_v33 = vpop.f32.mrb[92].mxu1 }
 0x677   :  { %15502 = vst [vmem:[#allocation74_spill] sm:$0xff] %v11819_v61  ;;  %v3681_v28 = vadd.f32 %v11816_v6, %v3680_v30  ;;  %v3921_v39 = vmul.f32 %v11816_v6, %v11816_v6  ;;  %v3723_v45 = vadd.f32 %v11819_v61, %v3722_v14  ;;  %v3923_v38 = vmul.f32 %v11819_v61, %v11819_v61  ;;  %v2963_v50 = vpop.f32.mrb[93].mxu0  ;;  %v3189_v30 = vpop.f32.mrb[93].mxu1 }
 0x678   :  { %v3956_v53 = vadd.f32 %v3955_v13, %v3920_v11  ;;  %v3998_v2 = vadd.f32 %v3997_v47, %v3922_v58  ;;  %v11834_v29 = vadd.f32 %v2961_v21, %v11486_v16  ;;  %v11837_v32 = vadd.f32 %v3187_v33, %v11489_v62  ;;  %v2965_v61 = vpop.f32.mrb[94].mxu0  ;;  %v3191_v4 = vpop.f32.mrb[94].mxu1 }
 0x679   :  { %v3977_v46 = vadd.f32 %v3976_v51, %v3921_v39  ;;  %v4019_v34 = vadd.f32 %v4018_v18, %v3923_v38  ;;  %v11840_v6 = vadd.f32 %v2963_v50, %v11492_v42  ;;  %v11843_v14 = vadd.f32 %v3189_v30, %v11495_v9  ;;  %v11851_v51 = vld [vmem:[#allocation25] sm:$0xff]  ;;  %v2967_v18 = vpop.f32.mrb[95].mxu0  ;;  %v3193_v39 = vpop.f32.mrb[95].mxu1 }
 0x67a   :  { %15503 = vst [vmem:[#allocation76_spill] sm:$0xff] %v11837_v32  ;;  %v3661_v13 = vadd.f32 %v11834_v29, %v3660_v56  ;;  %v3928_v47 = vmul.f32 %v11834_v29, %v11834_v29  ;;  %v3703_v11 = vadd.f32 %v11837_v32, %v3702_v20  ;;  %v3930_v58 = vmul.f32 %v11837_v32, %v11837_v32 }
 0x67b   :  { %15504 = vst [vmem:[#allocation78_spill] sm:$0xff] %v11840_v6  ;;  %15505 = vst [vmem:[#allocation81_spill] sm:$0xff] %v11843_v14  ;;  %v3682_v38 = vadd.f32 %v11840_v6, %v3681_v28  ;;  %v3929_v21 = vmul.f32 %v11840_v6, %v11840_v6  ;;  %v3724_v33 = vadd.f32 %v11843_v14, %v3723_v45 }
 0x67c   :  { %v3931_v56 = vmul.f32 %v11843_v14, %v11843_v14  ;;  %v3957_v50 = vadd.f32 %v3956_v53, %v3928_v47  ;;  %v3999_v30 = vadd.f32 %v3998_v2, %v3930_v58  ;;  %v11860_v20 = vadd.f32 %v2965_v61, %v11486_v16 }
 0x67d   :  { %v11865_v7 = vadd.f32 %v3191_v4, %v11489_v62  ;;  %v3978_v55 = vadd.f32 %v3977_v46, %v3929_v21  ;;  %v11869_v6 = vrot.slane %v11851_v51, %v15470_v59  ;;  %v11872_v45 = vadd.f32 %v2967_v18, %v11492_v42 }
 0x67e   :  { %v4020_v28 = vadd.f32 %v4019_v34, %v3931_v56  ;;  %v3662_v53 = vadd.f32 %v11860_v20, %v3661_v13  ;;  %v3936_v16 = vmul.f32 %v11860_v20, %v11860_v20  ;;  %v11882_v4 = vrot.slane %v11862_v49, %v15470_v59 }
 0x67f   :  { %15507 = vst [vmem:[#allocation50_spill] sm:$0xff] %v11865_v7  ;;  %15508 = vst [vmem:[#allocation84_spill] sm:$0xff] %v11869_v6  ;;  %v3704_v61 = vadd.f32 %v11865_v7, %v3703_v11  ;;  %v3938_v62 = vmul.f32 %v11865_v7, %v11865_v7  ;;  %v3683_v34 = vadd.f32 %v11872_v45, %v3682_v38 }
 0x680   :  { %15509 = vst [vmem:[#allocation85_spill] sm:$0xff] %v11872_v45  ;;  %15510 = vst [vmem:[#allocation86_spill] sm:$0xff] %v11882_v4  ;;  %v3937_v42 = vmul.f32 %v11872_v45, %v11872_v45  ;;  %v11888_v46 = vadd.f32 %v3193_v39, %v11495_v9  ;;  %v3663_v2 = vrot.slane %v3662_v53, 4  ;;  %v3958_v13 = vadd.f32 %v3957_v50, %v3936_v16 }
 0x681   :  { %v3705_v47 = vrot.slane %v3704_v61, 4  ;;  %v4000_v58 = vadd.f32 %v3999_v30, %v3938_v62  ;;  %v3684_v11 = vrot.slane %v3683_v34, 4 }
 0x682   :  { %15511 = vst [vmem:[#allocation87_spill] sm:$0xff] %v11888_v46  ;;  %v3979_v18 = vadd.f32 %v3978_v55, %v3937_v42  ;;  %v3725_v21 = vadd.f32 %v11888_v46, %v3724_v33  ;;  %v3939_v56 = vmul.f32 %v11888_v46, %v11888_v46  ;;  %v3664_v59 = vadd.f32 %v3663_v2, %v3662_v53 }
 0x683   :  { %v3959_v14 = vrot.slane %v3958_v13, 4  ;;  %v3706_v38 = vadd.f32 %v3705_v47, %v3704_v61  ;;  %v4001_v4 = vrot.slane %v4000_v58, 4  ;;  %v3685_v6 = vadd.f32 %v3684_v11, %v3683_v34 }
 0x684   :  { %v3980_v45 = vrot.slane %v3979_v18, 4  ;;  %v3726_v49 = vrot.slane %v3725_v21, 4  ;;  %v4021_v9 = vadd.f32 %v4020_v28, %v3939_v56  ;;  %v3665_v39 = vrot.slane %v3664_v59, 2 }
 0x685   :  { %v3960_v54 = vadd.f32 %v3959_v14, %v3958_v13  ;;  %v3707_v50 = vrot.slane %v3706_v38, 2  ;;  %v4002_v16 = vadd.f32 %v4001_v4, %v4000_v58  ;;  %v3686_v30 = vrot.slane %v3685_v6, 2 }
 0x686   :  { %v3981_v62 = vadd.f32 %v3980_v45, %v3979_v18  ;;  %v3727_v55 = vadd.f32 %v3726_v49, %v3725_v21  ;;  %v4022_v42 = vrot.slane %v4021_v9, 4  ;;  %v3666_v33 = vadd.f32 %v3665_v39, %v3664_v59 }
 0x687   :  { %v3961_v7 = vrot.slane %v3960_v54, 2  ;;  %v3708_v32 = vadd.f32 %v3707_v50, %v3706_v38  ;;  %v4003_v46 = vrot.slane %v4002_v16, 2  ;;  %v3687_v53 = vadd.f32 %v3686_v30, %v3685_v6 }
 0x688   :  { %v3982_v2 = vrot.slane %v3981_v62, 2  ;;  %v3728_v61 = vrot.slane %v3727_v55, 2  ;;  %v4023_v47 = vadd.f32 %v4022_v42, %v4021_v9  ;;  %v3667_v34 = vrot.slane %v3666_v33, 1 }
 0x689   :  { %v3962_v11 = vadd.f32 %v3961_v7, %v3960_v54  ;;  %v3709_v15 = vrot.slane %v3708_v32, 1  ;;  %v4004_v28 = vadd.f32 %v4003_v46, %v4002_v16  ;;  %v3688_v56 = vrot.slane %v3687_v53, 1 }
 0x68a   :  { %v3983_v14 = vadd.f32 %v3982_v2, %v3981_v62  ;;  %v3729_v13 = vadd.f32 %v3728_v61, %v3727_v55  ;;  %v4024_v4 = vrot.slane %v4023_v47, 2  ;;  %v3668_v58 = vadd.f32 %v3667_v34, %v3666_v33  ;;  %v15532_v62 = vld [vmem:[#allocation45_spill] sm:$0xff] }
 0x68b   :  { %v3963_v45 = vrot.slane %v3962_v11, 1  ;;  %v3710_v49 = vadd.f32 %v3709_v15, %v3708_v32  ;;  %v4005_v18 = vrot.slane %v4004_v28, 1  ;;  %v11895_v59 = vrot.slane %v11851_v51, %v15471_v41 }
 0x68c   :  { %v3689_v6 = vadd.f32 %v3688_v56, %v3687_v53  ;;  %v3984_v21 = vrot.slane %v3983_v14, 1  ;;  %v3730_v38 = vrot.slane %v3729_v13, 1  ;;  %v11897_v39 = vmul.f32 0.0078125, %v3668_v58  ;;  %v15518_v56 = vld [vmem:[#allocation63_spill] sm:$0xff]  ;;  %v15530_v53 = vld [vmem:[#allocation80_spill] sm:$0xff] }
 0x68d   :  { %v3964_v9 = vadd.f32 %v3963_v45, %v3962_v11  ;;  %v4006_v54 = vadd.f32 %v4005_v18, %v4004_v28  ;;  %v11899_v7 = vadd.f32 %v4024_v4, %v4023_v47  ;;  %v11901_v46 = vmul.f32 0.0078125, %v3710_v49  ;;  %v15515_v4 = vld [vmem:[#allocation51_spill] sm:$0xff] }
 0x68e   :  { %v3985_v50 = vadd.f32 %v3984_v21, %v3983_v14  ;;  %v11903_v16 = vmul.f32 0.0078125, %v3689_v6  ;;  %v11905_v15 = vadd.f32 %v3730_v38, %v3729_v13  ;;  %v4128_v30 = vmul.f32 %v11897_v39, %v11897_v39  ;;  %v15512_v21 = vld [vmem:[#allocation70_spill] sm:$0xff]  ;;  %v15513_v38 = vld [vmem:[#allocation76_spill] sm:$0xff]  ;;  %v15516_v13 = vld [vmem:[#allocation55_spill] sm:$0xff] }
 0x68f   :  { %v4120_v32 = vmul.f32 0.0078125, %v3964_v9  ;;  %v4122_v18 = vmul.f32 0.0078125, %v4006_v54  ;;  %v4130_v6 = vmul.f32 %v11901_v46, %v11901_v46  ;;  %v15517_v14 = vld [vmem:[#allocation59_spill] sm:$0xff]  ;;  %v12023_v55 = vsub.s32 4, %v15532_v62 }
 0x690   :  { %v4121_v9 = vmul.f32 0.0078125, %v3985_v50  ;;  %v15519_v28 = vld [vmem:[#allocation67_spill] sm:$0xff]  ;;  %v12020_v47 = vmul.f32 0.0078125, %v11905_v15  ;;  %v15538_v15 = vsub.f32 %v11570_v43, %v11897_v39  ;;  %v15539_v2 = vsub.f32 %v11594_v10, %v11897_v39 }
 0x691   :  { %v4136_v61 = vsub.f32 %v4120_v32, %v4128_v30  ;;  %v4138_v54 = vsub.f32 %v4122_v18, %v4130_v6  ;;  %v4129_v32 = vmul.f32 %v11903_v16, %v11903_v16  ;;  %v15520_v50 = vld [vmem:[#allocation71_spill] sm:$0xff]  ;;  %v4026_v18 = vrot.slane %v11899_v7, 1  ;;  %15533 = vst [vmem:[#allocation88_spill] sm:$0xff] %v12023_v55  ;;  %v15551_v30 = vld [vmem:[#allocation84_spill] sm:$0xff] }
 0x692   :  { %v15535_v6 = vsub.f32 %v11498_v57, %v11897_v39  ;;  %v15540_v57 = vsub.f32 %v11618_v35, %v11897_v39  ;;  %v15543_v43 = vsub.f32 %v11690_v37, %v11897_v39  ;;  %v15544_v10 = vsub.f32 %v11714_v25, %v11897_v39 }
 0x693   :  { %v4272_v49 = vadd.f32 0.8, %v4136_v61  ;;  %v4274_v58 = vadd.f32 0.8, %v4138_v54  ;;  %v4137_v54 = vsub.f32 %v4121_v9, %v4129_v32  ;;  %v12010_v61 = vrot.slane %v15530_v53, %v15471_v41 }
 0x694   :  { %v12017_v32 = vadd.f32 %v4026_v18, %v11899_v7  ;;  %v15537_v7 = vsub.f32 %v11546_v22, %v11897_v39  ;;  %v15542_v22 = vsub.f32 %v11666_v8, %v11897_v39  ;;  %v15545_v35 = vsub.f32 %v11738_v26, %v11897_v39 }
 0x695   :  { %8689 = vrsqrt.f32 %v4272_v49  ;;  %v15514_v49 = vld [vmem:[#allocation50_spill] sm:$0xff]  ;;  %v12014_v45 = vadd.f32 0.8, %v4137_v54  ;;  %v15536_v54 = vsub.f32 %v11514_v63, %v11897_v39  ;;  %v15541_v63 = vsub.f32 %v11642_v48, %v11897_v39 }
 0x696   :  { %8691 = vrsqrt.f32 %v4274_v58  ;;  %v12026_v58 = vsub.s32 6, %v15532_v62  ;;  %v15546_v48 = vsub.f32 %v11762_v31, %v11897_v39  ;;  %v15547_v8 = vsub.f32 %v11786_v40, %v11897_v39 }
 0x697   :  { %v15548_v37 = vsub.f32 %v11810_v36, %v11897_v39  ;;  %v15549_v25 = vsub.f32 %v11834_v29, %v11897_v39  ;;  %v15550_v26 = vsub.f32 %v11860_v20, %v11897_v39  ;;  %8693 = vrsqrt.f32 %v12014_v45  ;;  %v15605_v45 = vld [vmem:[#allocation69_spill] sm:$0xff] }
 0x698   :  { %15534 = vst [vmem:[#allocation89_spill] sm:$0xff] %v12026_v58 }
 0x69f   :  { %v8690_v11 = vpop.eup %8689 }
 0x6a0   :  { %v4288_v41 = vmul.f32 %v8690_v11, %v15535_v6  ;;  %v4296_v9 = vmul.f32 %v8690_v11, %v15536_v54  ;;  %v4304_v18 = vmul.f32 %v8690_v11, %v15537_v7  ;;  %v4312_v33 = vmul.f32 %v8690_v11, %v15538_v15 }
 0x6a1   :  { %v4320_v42 = vmul.f32 %v8690_v11, %v15539_v2  ;;  %v4328_v6 = vmul.f32 %v8690_v11, %v15540_v57  ;;  %v4336_v54 = vmul.f32 %v8690_v11, %v15541_v63  ;;  %v4344_v7 = vmul.f32 %v8690_v11, %v15542_v22 }
 0x6a2   :  { %v4352_v15 = vmul.f32 %v8690_v11, %v15543_v43  ;;  %v4360_v2 = vmul.f32 %v8690_v11, %v15544_v10  ;;  %v4368_v57 = vmul.f32 %v8690_v11, %v15545_v35  ;;  %v4376_v63 = vmul.f32 %v8690_v11, %v15546_v48 }
 0x6a3   :  { %v4384_v22 = vmul.f32 %v8690_v11, %v15547_v8  ;;  %v4392_v43 = vmul.f32 %v8690_v11, %v15548_v37  ;;  %v4400_v10 = vmul.f32 %v8690_v11, %v15549_v25  ;;  %v4408_v35 = vmul.f32 %v8690_v11, %v15550_v26 }
 0x6a4   :  { %v4458_v34 = vmul.f32 %v15551_v30, %v4288_v41  ;;  %v4466_v31 = vmul.f32 %v15551_v30, %v4296_v9  ;;  %v4474_v48 = vmul.f32 %v15551_v30, %v4304_v18  ;;  %v4482_v40 = vmul.f32 %v15551_v30, %v4312_v33  ;;  %v8692_v18 = vpop.eup %8691 }
 0x6a5   :  { %v4490_v8 = vmul.f32 %v15551_v30, %v4320_v42  ;;  %v4498_v36 = vmul.f32 %v15551_v30, %v4328_v6  ;;  %v4506_v37 = vmul.f32 %v15551_v30, %v4336_v54  ;;  %v4514_v29 = vmul.f32 %v15551_v30, %v4344_v7  ;;  %v15552_v6 = vld [vmem:[#allocation86_spill] sm:$0xff] }
 0x6a6   :  { %v4522_v25 = vmul.f32 %v15551_v30, %v4352_v15  ;;  %v4530_v20 = vmul.f32 %v15551_v30, %v4360_v2  ;;  %v4538_v41 = vmul.f32 %v15551_v30, %v4368_v57  ;;  %v4546_v39 = vmul.f32 %v15551_v30, %v4376_v63 }
 0x6a7   :  { %v4554_v11 = vmul.f32 %v15551_v30, %v4384_v22  ;;  %v4562_v33 = vmul.f32 %v15551_v30, %v4392_v43  ;;  %v4570_v42 = vmul.f32 %v15551_v30, %v4400_v10  ;;  %v4578_v9 = vmul.f32 %v15551_v30, %v4408_v35 }
 0x6a8   :  { %v12093_v54 = vadd.f32 %v15552_v6, %v4458_v34  ;;  %v12096_v7 = vadd.f32 %v15552_v6, %v4466_v31  ;;  %v12099_v15 = vadd.f32 %v15552_v6, %v4474_v48  ;;  %v12102_v2 = vadd.f32 %v15552_v6, %v4482_v40 }
 0x6a9   :  { %v12105_v57 = vadd.f32 %v15552_v6, %v4490_v8  ;;  %v12108_v63 = vadd.f32 %v15552_v6, %v4498_v36  ;;  %v12111_v30 = vadd.f32 %v15552_v6, %v4506_v37  ;;  %v12114_v34 = vadd.f32 %v15552_v6, %v4514_v29  ;;  %v15606_v36 = vld [vmem:[#allocation73_spill] sm:$0xff] }
 0x6aa   :  { %15553 = vst [vmem:[#allocation90_spill] sm:$0xff] %v12093_v54  ;;  %15554 = vst [vmem:[#allocation91_spill] sm:$0xff] %v12096_v7  ;;  %v12117_v22 = vadd.f32 %v15552_v6, %v4522_v25  ;;  %v12120_v43 = vadd.f32 %v15552_v6, %v4530_v20  ;;  %v12123_v10 = vadd.f32 %v15552_v6, %v4538_v41 }
 0x6ab   :  { %15555 = vst [vmem:[#allocation92_spill] sm:$0xff] %v12099_v15  ;;  %15556 = vst [vmem:[#allocation93_spill] sm:$0xff] %v12102_v2  ;;  %v12126_v26 = vadd.f32 %v15552_v6, %v4546_v39  ;;  %v12129_v35 = vadd.f32 %v15552_v6, %v4554_v11  ;;  %v12132_v31 = vadd.f32 %v15552_v6, %v4562_v33 }
 0x6ac   :  { %15557 = vst [vmem:[#allocation94_spill] sm:$0xff] %v12105_v57  ;;  %15558 = vst [vmem:[#allocation95_spill] sm:$0xff] %v12108_v63  ;;  %v12135_v48 = vadd.f32 %v15552_v6, %v4570_v42  ;;  %v12138_v40 = vadd.f32 %v15552_v6, %v4578_v9  ;;  %v15569_v41 = vsub.f32 %v11501_v17, %v11901_v46 }
 0x6ad   :  { %15559 = vst [vmem:[#allocation96_spill] sm:$0xff] %v12111_v30  ;;  %15560 = vst [vmem:[#allocation97_spill] sm:$0xff] %v12114_v34  ;;  %v15570_v11 = vsub.f32 %v11517_v44, %v11901_v46  ;;  %v15571_v42 = vsub.f32 %v11549_v0, %v11901_v46  ;;  %v15572_v6 = vsub.f32 %v11573_v24, %v11901_v46 }
 0x6ae   :  { %15561 = vst [vmem:[#allocation98_spill] sm:$0xff] %v12117_v22  ;;  %15562 = vst [vmem:[#allocation99_spill] sm:$0xff] %v12120_v43  ;;  %v4290_v39 = vmul.f32 %v8692_v18, %v15569_v41  ;;  %v15573_v25 = vsub.f32 %v11597_v5, %v11901_v46  ;;  %v15574_v17 = vsub.f32 %v11621_v12, %v11901_v46 }
 0x6af   :  { %15563 = vst [vmem:[#allocation100_spill] sm:$0xff] %v12123_v10  ;;  %15564 = vst [vmem:[#allocation101_spill] sm:$0xff] %v12126_v26  ;;  %v4298_v33 = vmul.f32 %v8692_v18, %v15570_v11  ;;  %v4306_v9 = vmul.f32 %v8692_v18, %v15571_v42  ;;  %v4314_v29 = vmul.f32 %v8692_v18, %v15572_v6  ;;  %v8694_v26 = vpop.eup %8693 }
 0x6b0   :  { %15565 = vst [vmem:[#allocation102_spill] sm:$0xff] %v12129_v35  ;;  %15566 = vst [vmem:[#allocation103_spill] sm:$0xff] %v12132_v31  ;;  %v4322_v20 = vmul.f32 %v8692_v18, %v15573_v25  ;;  %v4330_v41 = vmul.f32 %v8692_v18, %v15574_v17  ;;  %v15575_v44 = vsub.f32 %v11645_v27, %v11901_v46 }
 0x6b1   :  { %15567 = vst [vmem:[#allocation104_spill] sm:$0xff] %v12135_v48  ;;  %15568 = vst [vmem:[#allocation105_spill] sm:$0xff] %v12138_v40  ;;  %v15576_v0 = vsub.f32 %v11669_v60, %v11901_v46  ;;  %v15577_v24 = vsub.f32 %v11693_v19, %v11901_v46  ;;  %v15578_v5 = vsub.f32 %v11717_v52, %v11901_v46 }
 0x6b2   :  { %v4338_v11 = vmul.f32 %v8692_v18, %v15575_v44  ;;  %v15579_v12 = vsub.f32 %v11741_v3, %v11901_v46  ;;  %v15580_v27 = vsub.f32 %v11765_v1, %v11901_v46  ;;  %v15581_v60 = vsub.f32 %v11789_v23, %v11901_v46 }
 0x6b3   :  { %v4346_v42 = vmul.f32 %v8692_v18, %v15576_v0  ;;  %v4354_v6 = vmul.f32 %v8692_v18, %v15577_v24  ;;  %v4362_v25 = vmul.f32 %v8692_v18, %v15578_v5  ;;  %v15582_v19 = vsub.f32 %v15512_v21, %v11901_v46 }
 0x6b4   :  { %v4370_v17 = vmul.f32 %v8692_v18, %v15579_v12  ;;  %v4378_v44 = vmul.f32 %v8692_v18, %v15580_v27  ;;  %v4386_v0 = vmul.f32 %v8692_v18, %v15581_v60  ;;  %v15583_v52 = vsub.f32 %v15513_v38, %v11901_v46 }
 0x6b5   :  { %v4394_v24 = vmul.f32 %v8692_v18, %v15582_v19  ;;  %v15584_v3 = vsub.f32 %v15514_v49, %v11901_v46  ;;  %v4460_v37 = vmul.f32 %v11895_v59, %v4290_v39  ;;  %v4468_v1 = vmul.f32 %v11895_v59, %v4298_v33 }
 0x6b6   :  { %v4402_v5 = vmul.f32 %v8692_v18, %v15583_v52  ;;  %v4476_v27 = vmul.f32 %v11895_v59, %v4306_v9  ;;  %v4484_v23 = vmul.f32 %v11895_v59, %v4314_v29  ;;  %v4492_v60 = vmul.f32 %v11895_v59, %v4322_v20 }
 0x6b7   :  { %v4410_v12 = vmul.f32 %v8692_v18, %v15584_v3  ;;  %v4500_v21 = vmul.f32 %v11895_v59, %v4330_v41  ;;  %v4508_v19 = vmul.f32 %v11895_v59, %v4338_v11  ;;  %v4516_v38 = vmul.f32 %v11895_v59, %v4346_v42 }
 0x6b8   :  { %v4524_v52 = vmul.f32 %v11895_v59, %v4354_v6  ;;  %v4532_v46 = vmul.f32 %v11895_v59, %v4362_v25  ;;  %v4540_v49 = vmul.f32 %v11895_v59, %v4370_v17  ;;  %v4548_v18 = vmul.f32 %v11895_v59, %v4378_v44 }
 0x6b9   :  { %v4556_v39 = vmul.f32 %v11895_v59, %v4386_v0  ;;  %v4564_v29 = vmul.f32 %v11895_v59, %v4394_v24  ;;  %v4572_v20 = vmul.f32 %v11895_v59, %v4402_v5  ;;  %v4580_v33 = vmul.f32 %v11895_v59, %v4410_v12 }
 0x6ba   :  { %v12221_v9 = vadd.f32 %v12010_v61, %v4460_v37  ;;  %v12224_v41 = vadd.f32 %v12010_v61, %v4468_v1  ;;  %v12227_v11 = vadd.f32 %v12010_v61, %v4476_v27  ;;  %v12230_v42 = vadd.f32 %v12010_v61, %v4484_v23 }
 0x6bb   :  { %v12233_v6 = vadd.f32 %v12010_v61, %v4492_v60  ;;  %v12236_v25 = vadd.f32 %v12010_v61, %v4500_v21  ;;  %v12239_v59 = vadd.f32 %v12010_v61, %v4508_v19  ;;  %v12242_v37 = vadd.f32 %v12010_v61, %v4516_v38  ;;  %v15604_v38 = vld [vmem:[#allocation65_spill] sm:$0xff]  ;;  %v15608_v19 = vld [vmem:[#allocation82_spill] sm:$0xff] }
 0x6bc   :  { %15585 = vst [vmem:[#allocation106_spill] sm:$0xff] %v12221_v9  ;;  %15586 = vst [vmem:[#allocation107_spill] sm:$0xff] %v12224_v41  ;;  %v12245_v17 = vadd.f32 %v12010_v61, %v4524_v52  ;;  %v12248_v44 = vadd.f32 %v12010_v61, %v4532_v46  ;;  %v12251_v0 = vadd.f32 %v12010_v61, %v4540_v49  ;;  %v4123_v46 = vmul.f32 0.0078125, %v12017_v32  ;;  %v15615_v21 = vld [vmem:[#allocation81_spill] sm:$0xff]  ;;  %v15616_v32 = vld [vmem:[#allocation87_spill] sm:$0xff] }
 0x6bd   :  { %15587 = vst [vmem:[#allocation70_spill] sm:$0xff] %v12227_v11  ;;  %15588 = vst [vmem:[#allocation76_spill] sm:$0xff] %v12230_v42  ;;  %v12254_v24 = vadd.f32 %v12010_v61, %v4548_v18  ;;  %v12257_v5 = vadd.f32 %v12010_v61, %v4556_v39  ;;  %v12260_v3 = vadd.f32 %v12010_v61, %v4564_v29  ;;  %v15602_v29 = vld [vmem:[#allocation57_spill] sm:$0xff]  ;;  %v15617_v41 = vld [vmem:[#allocation47_spill] sm:$0xff] }
 0x6be   :  { %15589 = vst [vmem:[#allocation50_spill] sm:$0xff] %v12233_v6  ;;  %15590 = vst [vmem:[#allocation51_spill] sm:$0xff] %v12236_v25  ;;  %v12263_v12 = vadd.f32 %v12010_v61, %v4572_v20  ;;  %v12266_v1 = vadd.f32 %v12010_v61, %v4580_v33  ;;  %v4131_v49 = vmul.f32 %v12020_v47, %v12020_v47  ;;  %v15601_v61 = vld [vmem:[#allocation53_spill] sm:$0xff]  ;;  %v3343_v52 = vpop.f32.mrb[96].mxu0  ;;  %v3569_v39 = vpop.f32.mrb[96].mxu1  ;;  %v12337_v25 = vsub.s32 5, %v15532_v62 }
 0x6bf   :  { %15591 = vst [vmem:[#allocation55_spill] sm:$0xff] %v12239_v59  ;;  %15592 = vst [vmem:[#allocation59_spill] sm:$0xff] %v12242_v37  ;;  %v15603_v20 = vld [vmem:[#allocation61_spill] sm:$0xff]  ;;  %v3345_v60 = vpop.f32.mrb[97].mxu0  ;;  %v3571_v23 = vpop.f32.mrb[97].mxu1  ;;  %v15614_v37 = vld [vmem:[#allocation74_spill] sm:$0xff]  ;;  %v12334_v59 = vrot.slane %v15530_v53, %v15617_v41  ;;  %v15634_v57 = vsub.f32 %v15515_v4, %v11903_v16  ;;  %v15640_v4 = vsub.f32 %v15519_v28, %v11903_v16 }
 0x6c0   :  { %15593 = vst [vmem:[#allocation63_spill] sm:$0xff] %v12245_v17  ;;  %15594 = vst [vmem:[#allocation67_spill] sm:$0xff] %v12248_v44  ;;  %v4139_v27 = vsub.f32 %v4123_v46, %v4131_v49  ;;  %v15607_v18 = vld [vmem:[#allocation77_spill] sm:$0xff]  ;;  %v3573_v33 = vpop.f32.mrb[98].mxu1  ;;  %v15612_v49 = vld [vmem:[#allocation64_spill] sm:$0xff] }
 0x6c1   :  { %15595 = vst [vmem:[#allocation71_spill] sm:$0xff] %v12251_v0  ;;  %15596 = vst [vmem:[#allocation80_spill] sm:$0xff] %v12254_v24  ;;  %v15610_v24 = vld [vmem:[#allocation56_spill] sm:$0xff]  ;;  %v12312_v17 = vpop.f32.mrb[99].mxu1  ;;  %v8705_v46 = vld [vmem:[#allocation23] sm:$0xff]  ;;  %v4289_v2 = vmul.f32 %v8694_v26, %v15634_v57  ;;  %v4321_v57 = vmul.f32 %v8694_v26, %v15640_v4 }
 0x6c2   :  { %15597 = vst [vmem:[#allocation45_spill] sm:$0xff] %v12257_v5  ;;  %15598 = vst [vmem:[#allocation84_spill] sm:$0xff] %v12260_v3  ;;  %v3347_v3 = vpop.f32.mrb[98].mxu0  ;;  %v15609_v5 = vld [vmem:[#allocation52_spill] sm:$0xff]  ;;  %v4275_v42 = vadd.f32 0.8, %v4139_v27  ;;  %v12323_v11 = vrot.slane %v8705_v46, %v12023_v55  ;;  %v12326_v8 = vrot.slane %v8705_v46, %v12026_v58 }
 0x6c3   :  { %15599 = vst [vmem:[#allocation86_spill] sm:$0xff] %v12263_v12  ;;  %15600 = vst [vmem:[#allocation108_spill] sm:$0xff] %v12266_v1  ;;  %v15611_v0 = vld [vmem:[#allocation60_spill] sm:$0xff]  ;;  %v3349_v44 = vpop.f32.mrb[99].mxu0  ;;  %v12330_v12 = vrot.slane %v11851_v51, %v15617_v41  ;;  %v12340_v27 = vsub.s32 7, %v15532_v62  ;;  %v15620_v6 = vld [vmem:[#allocation49_spill] sm:$0xff]  ;;  %v12360_v62 = vrot.slane %v8705_v46, %v12337_v25 }
 0x6c4   :  { %v15613_v1 = vld [vmem:[#allocation68_spill] sm:$0xff]  ;;  %15618 = vst [vmem:[#allocation53_spill] sm:$0xff] %v12337_v25  ;;  %v12344_v9 = vrot.slane %v11851_v51, %v15620_v6  ;;  %v12347_v40 = vadd.f32 %v3343_v52, %v12323_v11  ;;  %v12350_v48 = vadd.f32 %v3569_v39, %v12326_v8  ;;  %v12353_v31 = vadd.f32 %v3347_v3, %v12323_v11  ;;  %v15642_v25 = vld [vmem:[#allocation75_spill] sm:$0xff] }
 0x6c5   :  { %15619 = vst [vmem:[#allocation57_spill] sm:$0xff] %v12340_v27  ;;  %8695 = vrsqrt.f32 %v4275_v42  ;;  %v12357_v41 = vrot.slane %v15530_v53, %v15620_v6  ;;  %v12363_v51 = vrot.slane %v8705_v46, %v12340_v27  ;;  %v12390_v10 = vadd.f32 %v3345_v60, %v12360_v62  ;;  %v15644_v58 = vld [vmem:[#allocation79_spill] sm:$0xff] }
 0x6c6   :  { %15621 = vst [vmem:[#allocation61_spill] sm:$0xff] %v12347_v40  ;;  %15622 = vst [vmem:[#allocation65_spill] sm:$0xff] %v12350_v48  ;;  %v12365_v35 = vpop.f32.mrb[100].mxu0  ;;  %v12367_v52 = vpop.f32.mrb[100].mxu1  ;;  %v12371_v39 = vmul.f32 %v12347_v40, %v12347_v40  ;;  %v12375_v42 = vmul.f32 %v12350_v48, %v12350_v48  ;;  %v12379_v53 = vadd.f32 %v12353_v31, %v12347_v40  ;;  %v15646_v55 = vld [vmem:[#allocation83_spill] sm:$0xff] }
 0x6c7   :  { %15623 = vst [vmem:[#allocation69_spill] sm:$0xff] %v12353_v31  ;;  %v12383_v3 = vmul.f32 %v12353_v31, %v12353_v31  ;;  %v12385_v46 = vpop.f32.mrb[101].mxu0  ;;  %v12387_v6 = vpop.f32.mrb[101].mxu1  ;;  %15628 = vst [vmem:[#allocation56_spill] sm:$0xff] %v12390_v10  ;;  %v12393_v43 = vadd.f32 %v3571_v23, %v12363_v51  ;;  %v12396_v22 = vadd.f32 %v3573_v33, %v12326_v8 }
 0x6c8   :  { %15624 = vst [vmem:[#allocation73_spill] sm:$0xff] %v12375_v42  ;;  %15625 = vst [vmem:[#allocation77_spill] sm:$0xff] %v12379_v53  ;;  %v12399_v34 = vadd.f32 %v3349_v44, %v12360_v62  ;;  %v12401_v30 = vpop.f32.mrb[102].mxu0  ;;  %v12403_v63 = vpop.f32.mrb[102].mxu1  ;;  %v15635_v60 = vsub.f32 %v15516_v13, %v11903_v16  ;;  %v15636_v23 = vsub.f32 %v15517_v14, %v11903_v16  ;;  %v15656_v53 = vld [vmem:[#allocation72_spill] sm:$0xff]  ;;  %v15658_v42 = vld [vmem:[#allocation78_spill] sm:$0xff] }
 0x6c9   :  { %15626 = vst [vmem:[#allocation82_spill] sm:$0xff] %v12385_v46  ;;  %15627 = vst [vmem:[#allocation52_spill] sm:$0xff] %v12387_v6  ;;  %v15637_v44 = vsub.f32 %v15518_v56, %v11903_v16  ;;  %v12417_v54 = vpop.f32.mrb[103].mxu0  ;;  %v12419_v27 = vpop.f32.mrb[103].mxu1  ;;  %v15641_v13 = vsub.f32 %v15520_v50, %v11903_v16  ;;  %v15643_v14 = vsub.f32 %v15642_v25, %v11903_v16  ;;  %v15660_v6 = vld [vmem:[#allocation85_spill] sm:$0xff] }
 0x6ca   :  { %15629 = vst [vmem:[#allocation60_spill] sm:$0xff] %v12393_v43  ;;  %15630 = vst [vmem:[#allocation64_spill] sm:$0xff] %v12396_v22  ;;  %v4297_v15 = vmul.f32 %v8694_v26, %v15635_v60  ;;  %v4305_v33 = vmul.f32 %v8694_v26, %v15636_v23  ;;  %v15645_v56 = vsub.f32 %v15644_v58, %v11903_v16 }
 0x6cb   :  { %15631 = vst [vmem:[#allocation68_spill] sm:$0xff] %v12399_v34  ;;  %15632 = vst [vmem:[#allocation74_spill] sm:$0xff] %v12401_v30  ;;  %v4313_v7 = vmul.f32 %v8694_v26, %v15637_v44  ;;  %v4329_v60 = vmul.f32 %v8694_v26, %v15641_v13  ;;  %v4337_v23 = vmul.f32 %v8694_v26, %v15643_v14  ;;  %v15654_v30 = vld [vmem:[#allocation66_spill] sm:$0xff] }
 0x6cc   :  { %15633 = vst [vmem:[#allocation81_spill] sm:$0xff] %v12403_v63  ;;  %15638 = vst [vmem:[#allocation87_spill] sm:$0xff] %v12417_v54  ;;  %v4345_v44 = vmul.f32 %v8694_v26, %v15645_v56  ;;  %v15647_v31 = vsub.f32 %v15646_v55, %v11903_v16  ;;  %v15650_v54 = vld [vmem:[#allocation58_spill] sm:$0xff]  ;;  %v15655_v58 = vsub.f32 %v15654_v30, %v11903_v16 }
 0x6cd   :  { %15639 = vst [vmem:[#allocation109_spill] sm:$0xff] %v12419_v27  ;;  %v15648_v27 = vld [vmem:[#allocation54_spill] sm:$0xff]  ;;  %v15651_v50 = vsub.f32 %v15650_v54, %v11903_v16  ;;  %v15657_v55 = vsub.f32 %v15656_v53, %v11903_v16  ;;  %v15661_v54 = vsub.f32 %v15660_v6, %v11903_v16  ;;  %v4459_v46 = vmul.f32 %v12330_v12, %v4289_v2 }
 0x6ce   :  { %v4353_v40 = vmul.f32 %v8694_v26, %v15647_v31  ;;  %v15649_v28 = vsub.f32 %v15648_v27, %v11903_v16  ;;  %v15652_v63 = vld [vmem:[#allocation62_spill] sm:$0xff]  ;;  %v4385_v56 = vmul.f32 %v8694_v26, %v15655_v58  ;;  %v15659_v27 = vsub.f32 %v15658_v42, %v11903_v16 }
 0x6cf   :  { %v4369_v13 = vmul.f32 %v8694_v26, %v15651_v50  ;;  %v15653_v25 = vsub.f32 %v15652_v63, %v11903_v16  ;;  %v4393_v31 = vmul.f32 %v8694_v26, %v15657_v55  ;;  %v4409_v50 = vmul.f32 %v8694_v26, %v15661_v54  ;;  %v12467_v16 = vpop.f32.mrb[104].mxu1 }
 0x6d0   :  { %v4361_v4 = vmul.f32 %v8694_v26, %v15649_v28  ;;  %v4401_v28 = vmul.f32 %v8694_v26, %v15659_v27  ;;  %v4467_v63 = vmul.f32 %v12330_v12, %v4297_v15  ;;  %v4483_v30 = vmul.f32 %v12330_v12, %v4313_v7  ;;  %v12465_v27 = vpop.f32.mrb[104].mxu0 }
 0x6d1   :  { %v4377_v14 = vmul.f32 %v8694_v26, %v15653_v25  ;;  %v4475_v25 = vmul.f32 %v12330_v12, %v4305_v33  ;;  %v4491_v58 = vmul.f32 %v12330_v12, %v4321_v57  ;;  %v4499_v53 = vmul.f32 %v12330_v12, %v4329_v60  ;;  %v12473_v6 = vpop.f32.mrb[105].mxu0  ;;  %v12475_v33 = vpop.f32.mrb[105].mxu1 }
 0x6d2   :  { %v4507_v55 = vmul.f32 %v12330_v12, %v4337_v23  ;;  %v4515_v42 = vmul.f32 %v12330_v12, %v4345_v44  ;;  %v4523_v2 = vmul.f32 %v12330_v12, %v4353_v40  ;;  %v4531_v15 = vmul.f32 %v12330_v12, %v4361_v4  ;;  %15662 = vst [vmem:[#allocation75_spill] sm:$0xff] %v12475_v33  ;;  %v12477_v57 = vpop.eup %8695  ;;  %v12483_v54 = vpop.f32.mrb[106].mxu0 }
 0x6d3   :  { %v4539_v26 = vmul.f32 %v12330_v12, %v4369_v13  ;;  %v4547_v7 = vmul.f32 %v12330_v12, %v4377_v14  ;;  %v4555_v60 = vmul.f32 %v12330_v12, %v4385_v56  ;;  %v4563_v23 = vmul.f32 %v12330_v12, %v4393_v31  ;;  %15663 = vst [vmem:[#allocation79_spill] sm:$0xff] %v12483_v54  ;;  %v12485_v4 = vpop.f32.mrb[106].mxu1  ;;  %v12499_v31 = vpop.f32.mrb[107].mxu0 }
 0x6d4   :  { %v4571_v44 = vmul.f32 %v12330_v12, %v4401_v28  ;;  %v4579_v40 = vmul.f32 %v12330_v12, %v4409_v50  ;;  %15664 = vst [vmem:[#allocation83_spill] sm:$0xff] %v12485_v4  ;;  %v12488_v13 = vadd.f32 %v12334_v59, %v4459_v46  ;;  %v12491_v14 = vadd.f32 %v12334_v59, %v4467_v63  ;;  %v12501_v28 = vpop.f32.mrb[107].mxu1 }
 0x6d5   :  { %v12494_v33 = vadd.f32 %v12334_v59, %v4475_v25  ;;  %v12497_v56 = vadd.f32 %v12334_v59, %v4483_v30  ;;  %15669 = vst [vmem:[#allocation72_spill] sm:$0xff] %v12499_v31  ;;  %15670 = vst [vmem:[#allocation78_spill] sm:$0xff] %v12501_v28  ;;  %v12504_v12 = vadd.f32 %v12334_v59, %v4491_v58 }
 0x6d6   :  { %15665 = vst [vmem:[#allocation54_spill] sm:$0xff] %v12488_v13  ;;  %15666 = vst [vmem:[#allocation58_spill] sm:$0xff] %v12491_v14  ;;  %v12507_v50 = vadd.f32 %v12334_v59, %v4499_v53  ;;  %v12510_v46 = vadd.f32 %v12334_v59, %v4507_v55  ;;  %v12513_v63 = vadd.f32 %v12334_v59, %v4515_v42  ;;  %v12547_v54 = vpop.f32.mrb[108].mxu0 }
 0x6d7   :  { %15667 = vst [vmem:[#allocation62_spill] sm:$0xff] %v12494_v33  ;;  %15668 = vst [vmem:[#allocation66_spill] sm:$0xff] %v12497_v56  ;;  %v12516_v25 = vadd.f32 %v12334_v59, %v4523_v2  ;;  %v12519_v30 = vadd.f32 %v12334_v59, %v4531_v15  ;;  %v12522_v28 = vadd.f32 %v12334_v59, %v4539_v26  ;;  %v12555_v15 = vpop.f32.mrb[109].mxu0  ;;  %v15724_v33 = vld [vmem:[#allocation74_spill] sm:$0xff] }
 0x6d8   :  { %15671 = vst [vmem:[#allocation85_spill] sm:$0xff] %v12504_v12  ;;  %15672 = vst [vmem:[#allocation110_spill] sm:$0xff] %v12507_v50  ;;  %v12525_v58 = vadd.f32 %v12334_v59, %v4547_v7  ;;  %v12528_v53 = vadd.f32 %v12334_v59, %v4555_v60  ;;  %v12531_v55 = vadd.f32 %v12334_v59, %v4563_v23 }
 0x6d9   :  { %15673 = vst [vmem:[#allocation111_spill] sm:$0xff] %v12510_v46  ;;  %15674 = vst [vmem:[#allocation112_spill] sm:$0xff] %v12513_v63  ;;  %v12534_v42 = vadd.f32 %v12334_v59, %v4571_v44  ;;  %v12537_v2 = vadd.f32 %v12334_v59, %v4579_v40  ;;  %v12549_v59 = vpop.f32.mrb[108].mxu1  ;;  %v12563_v46 = vpop.f32.mrb[110].mxu0  ;;  %v15683_v31 = vsub.f32 %v15601_v61, %v12020_v47 }
 0x6da   :  { %15675 = vst [vmem:[#allocation113_spill] sm:$0xff] %v12516_v25  ;;  %15676 = vst [vmem:[#allocation114_spill] sm:$0xff] %v12519_v30  ;;  %v12557_v60 = vpop.f32.mrb[109].mxu1  ;;  %v15684_v26 = vsub.f32 %v15602_v29, %v12020_v47  ;;  %v15685_v44 = vsub.f32 %v15603_v20, %v12020_v47  ;;  %v15686_v63 = vsub.f32 %v15604_v38, %v12020_v47 }
 0x6db   :  { %15677 = vst [vmem:[#allocation115_spill] sm:$0xff] %v12522_v28  ;;  %15678 = vst [vmem:[#allocation116_spill] sm:$0xff] %v12525_v58  ;;  %v12565_v40 = vpop.f32.mrb[110].mxu1  ;;  %v4291_v7 = vmul.f32 %v12477_v57, %v15683_v31  ;;  %v15687_v31 = vsub.f32 %v15605_v45, %v12020_v47  ;;  %v15691_v45 = vsub.f32 %v15609_v5, %v12020_v47 }
 0x6dc   :  { %15679 = vst [vmem:[#allocation117_spill] sm:$0xff] %v12528_v53  ;;  %15680 = vst [vmem:[#allocation118_spill] sm:$0xff] %v12531_v55  ;;  %v4299_v23 = vmul.f32 %v12477_v57, %v15684_v26  ;;  %v4307_v4 = vmul.f32 %v12477_v57, %v15685_v44  ;;  %v12585_v61 = vpop.f32.mrb[111].mxu1  ;;  %v15688_v26 = vsub.f32 %v15606_v36, %v12020_v47 }
 0x6dd   :  { %15681 = vst [vmem:[#allocation119_spill] sm:$0xff] %v12534_v42  ;;  %15682 = vst [vmem:[#allocation120_spill] sm:$0xff] %v12537_v2  ;;  %v4315_v2 = vmul.f32 %v12477_v57, %v15686_v63  ;;  %v12583_v42 = vpop.f32.mrb[111].mxu0  ;;  %v4323_v29 = vmul.f32 %v12477_v57, %v15687_v31  ;;  %v15689_v44 = vsub.f32 %v15607_v18, %v12020_v47 }
 0x6de   :  { %v4331_v20 = vmul.f32 %v12477_v57, %v15688_v26  ;;  %v15690_v63 = vsub.f32 %v15608_v19, %v12020_v47  ;;  %v4355_v31 = vmul.f32 %v12477_v57, %v15691_v45  ;;  %v15692_v36 = vsub.f32 %v15610_v24, %v12020_v47  ;;  %v12643_v28 = vpop.f32.mrb[112].mxu0 }
 0x6df   :  { %v4339_v38 = vmul.f32 %v12477_v57, %v15689_v44  ;;  %v15693_v18 = vsub.f32 %v15611_v0, %v12020_v47  ;;  %v15694_v19 = vsub.f32 %v15612_v49, %v12020_v47  ;;  %v15695_v5 = vsub.f32 %v15613_v1, %v12020_v47 }
 0x6e0   :  { %v4347_v55 = vmul.f32 %v12477_v57, %v15690_v63  ;;  %v4363_v26 = vmul.f32 %v12477_v57, %v15692_v36  ;;  %v15696_v24 = vsub.f32 %v15614_v37, %v12020_v47  ;;  %v15697_v0 = vsub.f32 %v15615_v21, %v12020_v47 }
 0x6e1   :  { %v4371_v44 = vmul.f32 %v12477_v57, %v15693_v18  ;;  %v4379_v63 = vmul.f32 %v12477_v57, %v15694_v19  ;;  %v4387_v45 = vmul.f32 %v12477_v57, %v15695_v5  ;;  %v15698_v49 = vsub.f32 %v15616_v32, %v12020_v47  ;;  %v12645_v47 = vpop.f32.mrb[112].mxu1 }
 0x6e2   :  { %v4395_v36 = vmul.f32 %v12477_v57, %v15696_v24  ;;  %v4403_v18 = vmul.f32 %v12477_v57, %v15697_v0  ;;  %v4461_v53 = vmul.f32 %v12344_v9, %v4291_v7  ;;  %v4469_v1 = vmul.f32 %v12344_v9, %v4299_v23  ;;  %v12651_v7 = vpop.f32.mrb[113].mxu0  ;;  %v12653_v23 = vpop.f32.mrb[113].mxu1 }
 0x6e3   :  { %v4411_v19 = vmul.f32 %v12477_v57, %v15698_v49  ;;  %v4477_v5 = vmul.f32 %v12344_v9, %v4307_v4  ;;  %v4485_v37 = vmul.f32 %v12344_v9, %v4315_v2  ;;  %v4493_v24 = vmul.f32 %v12344_v9, %v4323_v29  ;;  %v12659_v49 = vpop.f32.mrb[114].mxu0 }
 0x6e4   :  { %v4501_v58 = vmul.f32 %v12344_v9, %v4331_v20  ;;  %v4509_v21 = vmul.f32 %v12344_v9, %v4339_v38  ;;  %v4517_v0 = vmul.f32 %v12344_v9, %v4347_v55  ;;  %v4525_v32 = vmul.f32 %v12344_v9, %v4355_v31  ;;  %v12661_v31 = vpop.f32.mrb[114].mxu1 }
 0x6e5   :  { %v4533_v57 = vmul.f32 %v12344_v9, %v4363_v26  ;;  %v4541_v4 = vmul.f32 %v12344_v9, %v4371_v44  ;;  %v4549_v2 = vmul.f32 %v12344_v9, %v4379_v63  ;;  %v4557_v29 = vmul.f32 %v12344_v9, %v4387_v45 }
 0x6e6   :  { %v4565_v55 = vmul.f32 %v12344_v9, %v4395_v36  ;;  %v4573_v20 = vmul.f32 %v12344_v9, %v4403_v18  ;;  %v4581_v38 = vmul.f32 %v12344_v9, %v4411_v19  ;;  %v12664_v26 = vadd.f32 %v12357_v41, %v4461_v53  ;;  %v12675_v36 = vpop.f32.mrb[115].mxu0  ;;  %v12677_v18 = vpop.f32.mrb[115].mxu1 }
 0x6e7   :  { %v12667_v44 = vadd.f32 %v12357_v41, %v4469_v1  ;;  %v12670_v63 = vadd.f32 %v12357_v41, %v4477_v5  ;;  %v12673_v45 = vadd.f32 %v12357_v41, %v4485_v37  ;;  %v12680_v9 = vadd.f32 %v12357_v41, %v4493_v24  ;;  %v12723_v12 = vpop.f32.mrb[116].mxu0 }
 0x6e8   :  { %15699 = vst [vmem:[#allocation121_spill] sm:$0xff] %v12664_v26  ;;  %v12683_v19 = vadd.f32 %v12357_v41, %v4501_v58  ;;  %v12686_v53 = vadd.f32 %v12357_v41, %v4509_v21  ;;  %v12689_v1 = vadd.f32 %v12357_v41, %v4517_v0  ;;  %v12692_v5 = vadd.f32 %v12357_v41, %v4525_v32 }
 0x6e9   :  { %15700 = vst [vmem:[#allocation122_spill] sm:$0xff] %v12667_v44  ;;  %15701 = vst [vmem:[#allocation123_spill] sm:$0xff] %v12670_v63  ;;  %v12695_v37 = vadd.f32 %v12357_v41, %v4533_v57  ;;  %v12698_v30 = vadd.f32 %v12357_v41, %v4541_v4  ;;  %v12701_v24 = vadd.f32 %v12357_v41, %v4549_v2  ;;  %v12731_v57 = vpop.f32.mrb[117].mxu0 }
 0x6ea   :  { %15702 = vst [vmem:[#allocation124_spill] sm:$0xff] %v12673_v45  ;;  %15703 = vst [vmem:[#allocation125_spill] sm:$0xff] %v12680_v9  ;;  %v12704_v58 = vadd.f32 %v12357_v41, %v4557_v29  ;;  %v12707_v21 = vadd.f32 %v12357_v41, %v4565_v55  ;;  %v12710_v0 = vadd.f32 %v12357_v41, %v4573_v20  ;;  %v15723_v45 = vld [vmem:[#allocation77_spill] sm:$0xff] }
 0x6eb   :  { %15704 = vst [vmem:[#allocation126_spill] sm:$0xff] %v12683_v19  ;;  %15705 = vst [vmem:[#allocation127_spill] sm:$0xff] %v12686_v53  ;;  %v12713_v32 = vadd.f32 %v12357_v41, %v4581_v38  ;;  %v12725_v41 = vpop.f32.mrb[116].mxu1  ;;  %v12739_v53 = vpop.f32.mrb[118].mxu0  ;;  %v3821_v25 = vmul.f32 %v12390_v10, %v12390_v10  ;;  %v3823_v2 = vmul.f32 %v12393_v43, %v12393_v43 }
 0x6ec   :  { %15706 = vst [vmem:[#allocation128_spill] sm:$0xff] %v12689_v1  ;;  %15707 = vst [vmem:[#allocation129_spill] sm:$0xff] %v12692_v5  ;;  %v12733_v29 = vpop.f32.mrb[117].mxu1  ;;  %v4028_v4 = vadd.f32 %v12383_v3, %v12371_v39  ;;  %v3774_v20 = vadd.f32 %v12396_v22, %v12350_v48  ;;  %v12751_v55 = vpop.f32.mrb[119].mxu0  ;;  %v3830_v1 = vmul.f32 %v12396_v22, %v12396_v22  ;;  %v15722_v5 = vld [vmem:[#allocation73_spill] sm:$0xff] }
 0x6ed   :  { %15708 = vst [vmem:[#allocation130_spill] sm:$0xff] %v12695_v37  ;;  %15709 = vst [vmem:[#allocation131_spill] sm:$0xff] %v12698_v30  ;;  %v12741_v38 = vpop.f32.mrb[118].mxu1  ;;  %v12767_v39 = vadd.f32 %v12365_v35, %v12323_v11  ;;  %v12771_v3 = vadd.f32 %v12367_v52, %v12326_v8  ;;  %v15720_v30 = vld [vmem:[#allocation52_spill] sm:$0xff]  ;;  %v12805_v14 = vadd.f32 %v15724_v33, %v12323_v11 }
 0x6ee   :  { %15710 = vst [vmem:[#allocation132_spill] sm:$0xff] %v12701_v24  ;;  %15711 = vst [vmem:[#allocation133_spill] sm:$0xff] %v12704_v58  ;;  %v12753_v50 = vpop.f32.mrb[119].mxu1  ;;  %v15718_v58 = vld [vmem:[#allocation82_spill] sm:$0xff]  ;;  %v12779_v37 = vadd.f32 %v15720_v30, %v12363_v51  ;;  %v4070_v19 = vadd.f32 %v3830_v1, %v15722_v5 }
 0x6ef   :  { %15712 = vst [vmem:[#allocation134_spill] sm:$0xff] %v12707_v21  ;;  %15713 = vst [vmem:[#allocation135_spill] sm:$0xff] %v12710_v0  ;;  %v3829_v0 = vmul.f32 %v12399_v34, %v12399_v34  ;;  %v12763_v21 = vadd.f32 %v12312_v17, %v12363_v51  ;;  %v12775_v24 = vadd.f32 %v15718_v58, %v12360_v62  ;;  %v12799_v26 = vpop.f32.mrb[120].mxu1 }
 0x6f0   :  { %15714 = vst [vmem:[#allocation136_spill] sm:$0xff] %v12713_v32  ;;  %v3753_v32 = vadd.f32 %v12399_v34, %v12390_v10  ;;  %15716 = vst [vmem:[#allocation138_spill] sm:$0xff] %v12767_v39  ;;  %v3733_v52 = vadd.f32 %v12767_v39, %v15723_v45  ;;  %v3836_v58 = vmul.f32 %v12767_v39, %v12767_v39 }
 0x6f1   :  { %15715 = vst [vmem:[#allocation137_spill] sm:$0xff] %v12763_v21  ;;  %15717 = vst [vmem:[#allocation139_spill] sm:$0xff] %v12771_v3  ;;  %v4049_v17 = vadd.f32 %v3829_v0, %v3821_v25  ;;  %v3795_v9 = vadd.f32 %v12763_v21, %v12393_v43  ;;  %v3831_v35 = vmul.f32 %v12763_v21, %v12763_v21  ;;  %v12797_v0 = vpop.f32.mrb[120].mxu0  ;;  %v15728_v21 = vld [vmem:[#allocation87_spill] sm:$0xff] }
 0x6f2   :  { %15719 = vst [vmem:[#allocation82_spill] sm:$0xff] %v12775_v24  ;;  %15721 = vst [vmem:[#allocation52_spill] sm:$0xff] %v12779_v37  ;;  %v3775_v63 = vadd.f32 %v12771_v3, %v3774_v20  ;;  %v3838_v30 = vmul.f32 %v12771_v3, %v12771_v3  ;;  %v3754_v25 = vadd.f32 %v12775_v24, %v3753_v32  ;;  %v12809_v32 = vpop.f32.mrb[121].mxu1 }
 0x6f3   :  { %v4091_v44 = vadd.f32 %v3831_v35, %v3823_v2  ;;  %v3837_v1 = vmul.f32 %v12775_v24, %v12775_v24  ;;  %v3796_v5 = vadd.f32 %v12779_v37, %v3795_v9  ;;  %v4029_v45 = vadd.f32 %v4028_v4, %v3836_v58  ;;  %15725 = vst [vmem:[#allocation73_spill] sm:$0xff] %v12805_v14  ;;  %v12807_v2 = vpop.f32.mrb[121].mxu0  ;;  %v15726_v9 = vld [vmem:[#allocation81_spill] sm:$0xff]  ;;  %v12825_v33 = vpop.f32.mrb[122].mxu1 }
 0x6f4   :  { %v4071_v56 = vadd.f32 %v4070_v19, %v3838_v30  ;;  %v3839_v20 = vmul.f32 %v12779_v37, %v12779_v37  ;;  %v12813_v13 = vadd.f32 %v15726_v9, %v12326_v8  ;;  %v12817_v4 = vadd.f32 %v15728_v21, %v12360_v62  ;;  %v15730_v19 = vld [vmem:[#allocation109_spill] sm:$0xff]  ;;  %v12823_v30 = vpop.f32.mrb[122].mxu0  ;;  %v12836_v9 = vpop.f32.mrb[123].mxu1 }
 0x6f5   :  { %v4050_v35 = vadd.f32 %v4049_v17, %v3837_v1  ;;  %v12821_v58 = vadd.f32 %v15730_v19, %v12363_v51  ;;  %v3734_v43 = vadd.f32 %v12805_v14, %v3733_v52  ;;  %v3844_v17 = vmul.f32 %v12805_v14, %v12805_v14  ;;  %v12834_v21 = vpop.f32.mrb[123].mxu0  ;;  %v15741_v14 = vld [vmem:[#allocation72_spill] sm:$0xff] }
 0x6f6   :  { %15727 = vst [vmem:[#allocation77_spill] sm:$0xff] %v12813_v13  ;;  %15729 = vst [vmem:[#allocation74_spill] sm:$0xff] %v12817_v4  ;;  %v4092_v37 = vadd.f32 %v4091_v44, %v3839_v20  ;;  %v12832_v1 = vadd.f32 %v12465_v27, %v12323_v11  ;;  %v3776_v19 = vadd.f32 %v12813_v13, %v3775_v63 }
 0x6f7   :  { %15731 = vst [vmem:[#allocation81_spill] sm:$0xff] %v12821_v58  ;;  %v3846_v24 = vmul.f32 %v12813_v13, %v12813_v13  ;;  %v3755_v44 = vadd.f32 %v12817_v4, %v3754_v25  ;;  %v3845_v52 = vmul.f32 %v12817_v4, %v12817_v4  ;;  %v4030_v20 = vadd.f32 %v4029_v45, %v3844_v17 }
 0x6f8   :  { %15732 = vst [vmem:[#allocation87_spill] sm:$0xff] %v12832_v1  ;;  %v3797_v34 = vadd.f32 %v12821_v58, %v3796_v5  ;;  %v3847_v27 = vmul.f32 %v12821_v58, %v12821_v58  ;;  %v3735_v10 = vadd.f32 %v12832_v1, %v3734_v43  ;;  %v3852_v63 = vmul.f32 %v12832_v1, %v12832_v1  ;;  %v15735_v5 = vld [vmem:[#allocation75_spill] sm:$0xff] }
 0x6f9   :  { %v4072_v3 = vadd.f32 %v4071_v56, %v3846_v24  ;;  %v4051_v22 = vadd.f32 %v4050_v35, %v3845_v52  ;;  %v12852_v13 = vadd.f32 %v12467_v16, %v12326_v8  ;;  %v12856_v45 = vadd.f32 %v12473_v6, %v12360_v62  ;;  %v15737_v43 = vld [vmem:[#allocation79_spill] sm:$0xff]  ;;  %v12873_v6 = vpop.f32.mrb[124].mxu0 }
 0x6fa   :  { %v4093_v25 = vadd.f32 %v4092_v37, %v3847_v27  ;;  %v12860_v17 = vadd.f32 %v15735_v5, %v12363_v51  ;;  %v12864_v56 = vadd.f32 %v15737_v43, %v12323_v11  ;;  %v4031_v24 = vadd.f32 %v4030_v20, %v3852_v63  ;;  %v15739_v37 = vld [vmem:[#allocation83_spill] sm:$0xff]  ;;  %v12875_v27 = vpop.f32.mrb[124].mxu1  ;;  %v12883_v63 = vpop.f32.mrb[125].mxu0 }
 0x6fb   :  { %15733 = vst [vmem:[#allocation109_spill] sm:$0xff] %v12852_v13  ;;  %15734 = vst [vmem:[#allocation140_spill] sm:$0xff] %v12856_v45  ;;  %v3777_v35 = vadd.f32 %v12852_v13, %v3776_v19  ;;  %v3854_v16 = vmul.f32 %v12852_v13, %v12852_v13  ;;  %v12871_v52 = vadd.f32 %v15739_v37, %v12326_v8  ;;  %v12885_v58 = vpop.f32.mrb[125].mxu1  ;;  %v12891_v48 = vpop.f32.mrb[126].mxu0 }
 0x6fc   :  { %15736 = vst [vmem:[#allocation75_spill] sm:$0xff] %v12860_v17  ;;  %15738 = vst [vmem:[#allocation79_spill] sm:$0xff] %v12864_v56  ;;  %v3756_v5 = vadd.f32 %v12856_v45, %v3755_v44  ;;  %v3853_v43 = vmul.f32 %v12856_v45, %v12856_v45  ;;  %v3798_v20 = vadd.f32 %v12860_v17, %v3797_v34  ;;  %v12893_v45 = vpop.f32.mrb[126].mxu1 }
 0x6fd   :  { %15740 = vst [vmem:[#allocation83_spill] sm:$0xff] %v12871_v52  ;;  %v3855_v19 = vmul.f32 %v12860_v17, %v12860_v17  ;;  %v4073_v37 = vadd.f32 %v4072_v3, %v3854_v16  ;;  %v3736_v4 = vadd.f32 %v12864_v56, %v3735_v10  ;;  %v3860_v13 = vmul.f32 %v12864_v56, %v12864_v56  ;;  %v12901_v3 = vpop.f32.mrb[127].mxu0  ;;  %v12903_v10 = vpop.f32.mrb[127].mxu1 }
 0x6fe   :  { %v3778_v44 = vadd.f32 %v12871_v52, %v3777_v35  ;;  %v4052_v34 = vadd.f32 %v4051_v22, %v3853_v43  ;;  %v3862_v17 = vmul.f32 %v12871_v52, %v12871_v52  ;;  %v12899_v39 = vadd.f32 %v15741_v14, %v12360_v62  ;;  %v15743_v35 = vld [vmem:[#allocation78_spill] sm:$0xff] }
 0x6ff   :  { %v4094_v1 = vadd.f32 %v4093_v25, %v3855_v19  ;;  %v4032_v16 = vadd.f32 %v4031_v24, %v3860_v13  ;;  %v12907_v56 = vadd.f32 %v15743_v35, %v12363_v51  ;;  %v12911_v22 = vadd.f32 %v12547_v54, %v12323_v11 }
 0x700   :  { %15742 = vst [vmem:[#allocation72_spill] sm:$0xff] %v12899_v39  ;;  %v12915_v25 = vadd.f32 %v12549_v59, %v12326_v8  ;;  %v4074_v43 = vadd.f32 %v4073_v37, %v3862_v17  ;;  %v3757_v14 = vadd.f32 %v12899_v39, %v3756_v5  ;;  %v3861_v19 = vmul.f32 %v12899_v39, %v12899_v39 }
 0x701   :  { %15744 = vst [vmem:[#allocation78_spill] sm:$0xff] %v12907_v56  ;;  %v12922_v13 = vadd.f32 %v12555_v15, %v12360_v62  ;;  %v3799_v24 = vadd.f32 %v12907_v56, %v3798_v20  ;;  %v3863_v54 = vmul.f32 %v12907_v56, %v12907_v56  ;;  %v3737_v35 = vadd.f32 %v12911_v22, %v3736_v4 }
 0x702   :  { %v3868_v59 = vmul.f32 %v12911_v22, %v12911_v22  ;;  %v4053_v17 = vadd.f32 %v4052_v34, %v3861_v19  ;;  %v3779_v5 = vadd.f32 %v12915_v25, %v3778_v44  ;;  %v3870_v37 = vmul.f32 %v12915_v25, %v12915_v25 }
 0x703   :  { %15745 = vst [vmem:[#allocation141_spill] sm:$0xff] %v12922_v13  ;;  %v3758_v39 = vadd.f32 %v12922_v13, %v3757_v14  ;;  %v4095_v15 = vadd.f32 %v4094_v1, %v3863_v54  ;;  %v3869_v20 = vmul.f32 %v12922_v13, %v12922_v13  ;;  %v12938_v56 = vadd.f32 %v12557_v60, %v12363_v51 }
 0x704   :  { %v4033_v52 = vadd.f32 %v4032_v16, %v3868_v59  ;;  %v4075_v4 = vadd.f32 %v4074_v43, %v3870_v37  ;;  %v12942_v34 = vadd.f32 %v12563_v46, %v12323_v11  ;;  %v12946_v44 = vadd.f32 %v12565_v40, %v12326_v8 }
 0x705   :  { %15746 = vst [vmem:[#allocation142_spill] sm:$0xff] %v12938_v56  ;;  %v12950_v1 = vadd.f32 %v12583_v42, %v12360_v62  ;;  %v4054_v16 = vadd.f32 %v4053_v17, %v3869_v20  ;;  %v3800_v14 = vadd.f32 %v12938_v56, %v3799_v24  ;;  %v3871_v60 = vmul.f32 %v12938_v56, %v12938_v56 }
 0x706   :  { %v12957_v43 = vadd.f32 %v12585_v61, %v12363_v51  ;;  %v3738_v46 = vadd.f32 %v12942_v34, %v3737_v35  ;;  %v3876_v40 = vmul.f32 %v12942_v34, %v12942_v34  ;;  %v3780_v19 = vadd.f32 %v12946_v44, %v3779_v5 }
 0x707   :  { %15747 = vst [vmem:[#allocation143_spill] sm:$0xff] %v12950_v1  ;;  %v3878_v42 = vmul.f32 %v12946_v44, %v12946_v44  ;;  %v4096_v54 = vadd.f32 %v4095_v15, %v3871_v60  ;;  %v3759_v24 = vadd.f32 %v12950_v1, %v3758_v39  ;;  %v3877_v59 = vmul.f32 %v12950_v1, %v12950_v1 }
 0x708   :  { %15748 = vst [vmem:[#allocation144_spill] sm:$0xff] %v12957_v43  ;;  %v3801_v17 = vadd.f32 %v12957_v43, %v3800_v14  ;;  %v4034_v61 = vadd.f32 %v4033_v52, %v3876_v40  ;;  %v3879_v35 = vmul.f32 %v12957_v43, %v12957_v43  ;;  %v12973_v20 = vadd.f32 %v12643_v28, %v12323_v11 }
 0x709   :  { %v4076_v37 = vadd.f32 %v4075_v4, %v3878_v42  ;;  %v4055_v5 = vadd.f32 %v4054_v16, %v3877_v59  ;;  %v12977_v15 = vadd.f32 %v12645_v47, %v12326_v8  ;;  %v12981_v39 = vadd.f32 %v12651_v7, %v12360_v62 }
 0x70a   :  { %v12985_v52 = vadd.f32 %v12653_v23, %v12363_v51  ;;  %v4097_v4 = vadd.f32 %v4096_v54, %v3879_v35  ;;  %v3739_v14 = vadd.f32 %v12973_v20, %v3738_v46  ;;  %v3884_v28 = vmul.f32 %v12973_v20, %v12973_v20 }
 0x70b   :  { %15749 = vst [vmem:[#allocation145_spill] sm:$0xff] %v12981_v39  ;;  %v12992_v16 = vadd.f32 %v12659_v49, %v12323_v11  ;;  %v3781_v47 = vadd.f32 %v12977_v15, %v3780_v19  ;;  %v3886_v7 = vmul.f32 %v12977_v15, %v12977_v15  ;;  %v3760_v60 = vadd.f32 %v12981_v39, %v3759_v24 }
 0x70c   :  { %15750 = vst [vmem:[#allocation146_spill] sm:$0xff] %v12985_v52  ;;  %v3885_v23 = vmul.f32 %v12981_v39, %v12981_v39  ;;  %v4035_v40 = vadd.f32 %v4034_v61, %v3884_v28  ;;  %v3802_v46 = vadd.f32 %v12985_v52, %v3801_v17  ;;  %v3887_v42 = vmul.f32 %v12985_v52, %v12985_v52 }
 0x70d   :  { %v3740_v54 = vadd.f32 %v12992_v16, %v3739_v14  ;;  %v4077_v49 = vadd.f32 %v4076_v37, %v3886_v7  ;;  %v3892_v19 = vmul.f32 %v12992_v16, %v12992_v16  ;;  %v13008_v35 = vadd.f32 %v12661_v31, %v12326_v8 }
 0x70e   :  { %v4056_v59 = vadd.f32 %v4055_v5, %v3885_v23  ;;  %v4098_v24 = vadd.f32 %v4097_v4, %v3887_v42  ;;  %v13012_v61 = vadd.f32 %v12675_v36, %v12360_v62  ;;  %v13016_v17 = vadd.f32 %v12677_v18, %v12363_v51 }
 0x70f   :  { %v13020_v37 = vadd.f32 %v12723_v12, %v12323_v11  ;;  %v4036_v5 = vadd.f32 %v4035_v40, %v3892_v19  ;;  %v3782_v14 = vadd.f32 %v13008_v35, %v3781_v47  ;;  %v3894_v31 = vmul.f32 %v13008_v35, %v13008_v35 }
 0x710   :  { %15751 = vst [vmem:[#allocation147_spill] sm:$0xff] %v13016_v17  ;;  %v13027_v4 = vadd.f32 %v12725_v41, %v12326_v8  ;;  %v3761_v36 = vadd.f32 %v13012_v61, %v3760_v60  ;;  %v3893_v18 = vmul.f32 %v13012_v61, %v13012_v61  ;;  %v3803_v28 = vadd.f32 %v13016_v17, %v3802_v46 }
 0x711   :  { %v3895_v12 = vmul.f32 %v13016_v17, %v13016_v17  ;;  %v4078_v7 = vadd.f32 %v4077_v49, %v3894_v31  ;;  %v3741_v47 = vadd.f32 %v13020_v37, %v3740_v54  ;;  %v3900_v23 = vmul.f32 %v13020_v37, %v13020_v37 }
 0x712   :  { %v3783_v40 = vadd.f32 %v13027_v4, %v3782_v14  ;;  %v4057_v41 = vadd.f32 %v4056_v59, %v3893_v18  ;;  %v3902_v60 = vmul.f32 %v13027_v4, %v13027_v4  ;;  %v13043_v19 = vadd.f32 %v12731_v57, %v12360_v62 }
 0x713   :  { %v4099_v42 = vadd.f32 %v4098_v24, %v3895_v12  ;;  %v4037_v46 = vadd.f32 %v4036_v5, %v3900_v23  ;;  %v13047_v49 = vadd.f32 %v12733_v29, %v12363_v51  ;;  %v13051_v54 = vadd.f32 %v12739_v53, %v12323_v11 }
 0x714   :  { %v13055_v59 = vadd.f32 %v12741_v38, %v12326_v8  ;;  %v4079_v24 = vadd.f32 %v4078_v7, %v3902_v60  ;;  %v3762_v14 = vadd.f32 %v13043_v19, %v3761_v36  ;;  %v3901_v57 = vmul.f32 %v13043_v19, %v13043_v19 }
 0x715   :  { %15752 = vst [vmem:[#allocation148_spill] sm:$0xff] %v13047_v49  ;;  %v13062_v5 = vadd.f32 %v12751_v55, %v12360_v62  ;;  %v3804_v29 = vadd.f32 %v13047_v49, %v3803_v28  ;;  %v3903_v53 = vmul.f32 %v13047_v49, %v13047_v49  ;;  %v3742_v31 = vadd.f32 %v13051_v54, %v3741_v47 }
 0x716   :  { %v3908_v38 = vmul.f32 %v13051_v54, %v13051_v54  ;;  %v4058_v18 = vadd.f32 %v4057_v41, %v3901_v57  ;;  %v3784_v36 = vadd.f32 %v13055_v59, %v3783_v40  ;;  %v3910_v12 = vmul.f32 %v13055_v59, %v13055_v59 }
 0x717   :  { %v3763_v7 = vadd.f32 %v13062_v5, %v3762_v14  ;;  %v4100_v55 = vadd.f32 %v4099_v42, %v3903_v53  ;;  %v3909_v28 = vmul.f32 %v13062_v5, %v13062_v5  ;;  %v13078_v60 = vadd.f32 %v12753_v50, %v12363_v51 }
 0x718   :  { %v4038_v23 = vadd.f32 %v4037_v46, %v3908_v38  ;;  %v4080_v47 = vadd.f32 %v4079_v24, %v3910_v12  ;;  %v13082_v41 = vadd.f32 %v12797_v0, %v12323_v11  ;;  %v13086_v40 = vadd.f32 %v12799_v26, %v12326_v8 }
 0x719   :  { %15753 = vst [vmem:[#allocation149_spill] sm:$0xff] %v13078_v60  ;;  %v13090_v42 = vadd.f32 %v12807_v2, %v12360_v62  ;;  %v4059_v46 = vadd.f32 %v4058_v18, %v3909_v28  ;;  %v3805_v14 = vadd.f32 %v13078_v60, %v3804_v29  ;;  %v3911_v50 = vmul.f32 %v13078_v60, %v13078_v60 }
 0x71a   :  { %v13097_v24 = vadd.f32 %v12809_v32, %v12363_v51  ;;  %v3743_v0 = vadd.f32 %v13082_v41, %v3742_v31  ;;  %v3916_v26 = vmul.f32 %v13082_v41, %v13082_v41  ;;  %v3785_v57 = vadd.f32 %v13086_v40, %v3784_v36 }
 0x71b   :  { %v3918_v2 = vmul.f32 %v13086_v40, %v13086_v40  ;;  %v4101_v53 = vadd.f32 %v4100_v55, %v3911_v50  ;;  %v3764_v29 = vadd.f32 %v13090_v42, %v3763_v7  ;;  %v3917_v38 = vmul.f32 %v13090_v42, %v13090_v42 }
 0x71c   :  { %15754 = vst [vmem:[#allocation150_spill] sm:$0xff] %v13097_v24  ;;  %v3806_v18 = vadd.f32 %v13097_v24, %v3805_v14  ;;  %v4039_v32 = vadd.f32 %v4038_v23, %v3916_v26  ;;  %v3919_v31 = vmul.f32 %v13097_v24, %v13097_v24  ;;  %v13113_v28 = vadd.f32 %v12823_v30, %v12323_v11 }
 0x71d   :  { %v4081_v12 = vadd.f32 %v4080_v47, %v3918_v2  ;;  %v4060_v36 = vadd.f32 %v4059_v46, %v3917_v38  ;;  %v13117_v55 = vadd.f32 %v12825_v33, %v12326_v8  ;;  %v13121_v7 = vadd.f32 %v12834_v21, %v12360_v62 }
 0x71e   :  { %v13125_v23 = vadd.f32 %v12836_v9, %v12363_v51  ;;  %v4102_v47 = vadd.f32 %v4101_v53, %v3919_v31  ;;  %v3744_v14 = vadd.f32 %v13113_v28, %v3743_v0  ;;  %v3924_v30 = vmul.f32 %v13113_v28, %v13113_v28 }
 0x71f   :  { %v13132_v46 = vadd.f32 %v12873_v6, %v12323_v11  ;;  %v3786_v33 = vadd.f32 %v13117_v55, %v3785_v57  ;;  %v3926_v21 = vmul.f32 %v13117_v55, %v13117_v55  ;;  %v3765_v50 = vadd.f32 %v13121_v7, %v3764_v29 }
 0x720   :  { %15755 = vst [vmem:[#allocation151_spill] sm:$0xff] %v13125_v23  ;;  %v3925_v9 = vmul.f32 %v13121_v7, %v13121_v7  ;;  %v4040_v26 = vadd.f32 %v4039_v32, %v3924_v30  ;;  %v3807_v0 = vadd.f32 %v13125_v23, %v3806_v18  ;;  %v3927_v2 = vmul.f32 %v13125_v23, %v13125_v23 }
 0x721   :  { %v3745_v53 = vadd.f32 %v13132_v46, %v3744_v14  ;;  %v4082_v6 = vadd.f32 %v4081_v12, %v3926_v21  ;;  %v3932_v57 = vmul.f32 %v13132_v46, %v13132_v46  ;;  %v13148_v31 = vadd.f32 %v12875_v27, %v12326_v8 }
 0x722   :  { %v4061_v38 = vadd.f32 %v4060_v36, %v3925_v9  ;;  %v4103_v29 = vadd.f32 %v4102_v47, %v3927_v2  ;;  %v13152_v32 = vadd.f32 %v12883_v63, %v12360_v62  ;;  %v13156_v18 = vadd.f32 %v12885_v58, %v12363_v51 }
 0x723   :  { %v13160_v12 = vadd.f32 %v12891_v48, %v12323_v11  ;;  %v4041_v36 = vadd.f32 %v4040_v26, %v3932_v57  ;;  %v3787_v14 = vadd.f32 %v13148_v31, %v3786_v33  ;;  %v3934_v27 = vmul.f32 %v13148_v31, %v13148_v31 }
 0x724   :  { %15756 = vst [vmem:[#allocation152_spill] sm:$0xff] %v13152_v32  ;;  %15757 = vst [vmem:[#allocation153_spill] sm:$0xff] %v13156_v18  ;;  %v13167_v47 = vadd.f32 %v12893_v45, %v12326_v8  ;;  %v3766_v63 = vadd.f32 %v13152_v32, %v3765_v50  ;;  %v3933_v58 = vmul.f32 %v13152_v32, %v13152_v32 }
 0x725   :  { %v3808_v30 = vadd.f32 %v13156_v18, %v3807_v0  ;;  %v3935_v48 = vmul.f32 %v13156_v18, %v13156_v18  ;;  %v4083_v11 = vadd.f32 %v4082_v6, %v3934_v27  ;;  %v3746_v33 = vadd.f32 %v13160_v12, %v3745_v53 }
 0x726   :  { %v3940_v21 = vmul.f32 %v13160_v12, %v13160_v12  ;;  %v3788_v9 = vadd.f32 %v13167_v47, %v3787_v14  ;;  %v4062_v8 = vadd.f32 %v4061_v38, %v3933_v58  ;;  %v3942_v50 = vmul.f32 %v13167_v47, %v13167_v47 }
 0x727   :  { %v4104_v45 = vadd.f32 %v4103_v29, %v3935_v48  ;;  %v3747_v26 = vrot.slane %v3746_v33, 4  ;;  %v13183_v0 = vadd.f32 %v12901_v3, %v12360_v62  ;;  %v13187_v53 = vadd.f32 %v12903_v10, %v12363_v51 }
 0x728   :  { %v4042_v2 = vadd.f32 %v4041_v36, %v3940_v21  ;;  %v3789_v57 = vrot.slane %v3788_v9, 4  ;;  %v4084_v6 = vadd.f32 %v4083_v11, %v3942_v50 }
 0x729   :  { %15758 = vst [vmem:[#allocation154_spill] sm:$0xff] %v13183_v0  ;;  %15759 = vst [vmem:[#allocation155_spill] sm:$0xff] %v13187_v53  ;;  %v3748_v27 = vadd.f32 %v3747_v26, %v3746_v33  ;;  %v3767_v38 = vadd.f32 %v13183_v0, %v3766_v63  ;;  %v3941_v58 = vmul.f32 %v13183_v0, %v13183_v0 }
 0x72a   :  { %v4043_v18 = vrot.slane %v4042_v2, 4  ;;  %v3790_v14 = vadd.f32 %v3789_v57, %v3788_v9  ;;  %v4085_v29 = vrot.slane %v4084_v6, 4  ;;  %v3809_v36 = vadd.f32 %v13187_v53, %v3808_v30 }
 0x72b   :  { %v3943_v62 = vmul.f32 %v13187_v53, %v13187_v53  ;;  %v3749_v3 = vrot.slane %v3748_v27, 2  ;;  %v3768_v21 = vrot.slane %v3767_v38, 4  ;;  %v4063_v10 = vadd.f32 %v4062_v8, %v3941_v58 }
 0x72c   :  { %v4044_v48 = vadd.f32 %v4043_v18, %v4042_v2  ;;  %v3791_v11 = vrot.slane %v3790_v14, 2  ;;  %v4086_v51 = vadd.f32 %v4085_v29, %v4084_v6  ;;  %v3810_v33 = vrot.slane %v3809_v36, 4 }
 0x72d   :  { %v4105_v50 = vadd.f32 %v4104_v45, %v3943_v62  ;;  %v3750_v9 = vadd.f32 %v3749_v3, %v3748_v27  ;;  %v3769_v57 = vadd.f32 %v3768_v21, %v3767_v38  ;;  %v4064_v24 = vrot.slane %v4063_v10, 4 }
 0x72e   :  { %v4045_v26 = vrot.slane %v4044_v48, 2  ;;  %v3792_v63 = vadd.f32 %v3791_v11, %v3790_v14  ;;  %v4087_v23 = vrot.slane %v4086_v51, 2  ;;  %v3811_v60 = vadd.f32 %v3810_v33, %v3809_v36  ;;  %v15773_v33 = vld [vmem:[#allocation88_spill] sm:$0xff] }
 0x72f   :  { %v4106_v49 = vrot.slane %v4105_v50, 4  ;;  %v3751_v30 = vrot.slane %v3750_v9, 1  ;;  %v3770_v53 = vrot.slane %v3769_v57, 2  ;;  %v4065_v18 = vadd.f32 %v4064_v24, %v4063_v10  ;;  %v15774_v10 = vld [vmem:[#allocation89_spill] sm:$0xff] }
 0x730   :  { %v4046_v17 = vadd.f32 %v4045_v26, %v4044_v48  ;;  %v3793_v52 = vrot.slane %v3792_v63, 1  ;;  %v4088_v43 = vadd.f32 %v4087_v23, %v4086_v51  ;;  %v3812_v2 = vrot.slane %v3811_v60, 2 }
 0x731   :  { %v4107_v56 = vadd.f32 %v4106_v49, %v4105_v50  ;;  %v3752_v6 = vadd.f32 %v3751_v30, %v3750_v9  ;;  %v3771_v45 = vadd.f32 %v3770_v53, %v3769_v57  ;;  %v4066_v58 = vrot.slane %v4065_v18, 2  ;;  %v15763_v50 = vld [vmem:[#allocation73_spill] sm:$0xff]  ;;  %v13267_v30 = vld [vmem:[#allocation26] sm:$0xff]  ;;  %v13277_v53 = vld [vmem:[#allocation25] sm:$0xff] }
 0x732   :  { %v4047_v8 = vrot.slane %v4046_v17, 1  ;;  %v3794_v29 = vadd.f32 %v3793_v52, %v3792_v63  ;;  %v4089_v27 = vrot.slane %v4088_v43, 1  ;;  %v3813_v14 = vadd.f32 %v3812_v2, %v3811_v60  ;;  %v15760_v52 = vld [vmem:[#allocation61_spill] sm:$0xff]  ;;  %v15767_v2 = vld [vmem:[#allocation64_spill] sm:$0xff]  ;;  %v15771_v63 = vld [vmem:[#allocation83_spill] sm:$0xff] }
 0x733   :  { %v4108_v38 = vrot.slane %v4107_v56, 2  ;;  %v13195_v3 = vmul.f32 0.0078125, %v3752_v6  ;;  %v3772_v48 = vrot.slane %v3771_v45, 1  ;;  %v4067_v21 = vadd.f32 %v4066_v58, %v4065_v18  ;;  %v15761_v60 = vld [vmem:[#allocation69_spill] sm:$0xff]  ;;  %v15768_v58 = vld [vmem:[#allocation139_spill] sm:$0xff]  ;;  %15772 = vst [vmem:[#allocation61_spill] sm:$0xff] %v13267_v30 }
 0x734   :  { %v4048_v62 = vadd.f32 %v4047_v8, %v4046_v17  ;;  %v13197_v36 = vmul.f32 0.0078125, %v3794_v29  ;;  %v4090_v11 = vadd.f32 %v4089_v27, %v4088_v43  ;;  %v3814_v23 = vrot.slane %v3813_v14, 1  ;;  %v15762_v17 = vld [vmem:[#allocation138_spill] sm:$0xff]  ;;  %v15764_v43 = vld [vmem:[#allocation87_spill] sm:$0xff]  ;;  %v15766_v6 = vld [vmem:[#allocation65_spill] sm:$0xff]  ;;  %15775 = vst [vmem:[#allocation69_spill] sm:$0xff] %v13277_v53 }
 0x735   :  { %v4109_v24 = vadd.f32 %v4108_v38, %v4107_v56  ;;  %v4132_v49 = vmul.f32 %v13195_v3, %v13195_v3  ;;  %v15765_v56 = vld [vmem:[#allocation79_spill] sm:$0xff]  ;;  %v15769_v38 = vld [vmem:[#allocation77_spill] sm:$0xff]  ;;  %v3773_v18 = vadd.f32 %v3772_v48, %v3771_v45  ;;  %v13275_v29 = vrot.slane %v13267_v30, %v15774_v10 }
 0x736   :  { %v4124_v51 = vmul.f32 0.0078125, %v4048_v62  ;;  %v4134_v8 = vmul.f32 %v13197_v36, %v13197_v36  ;;  %v15770_v62 = vld [vmem:[#allocation109_spill] sm:$0xff]  ;;  %v3815_v9 = vadd.f32 %v3814_v23, %v3813_v14  ;;  %v13285_v14 = vrot.slane %v13277_v53, %v15774_v10 }
 0x737   :  { %v13281_v45 = vmul.f32 0.0078125, %v3773_v18  ;;  %v15788_v0 = vsub.f32 %v15762_v17, %v13195_v3  ;;  %v15793_v17 = vsub.f32 %v12942_v34, %v13195_v3  ;;  %v15798_v34 = vsub.f32 %v13082_v41, %v13195_v3 }
 0x738   :  { %v4140_v57 = vsub.f32 %v4124_v51, %v4132_v49  ;;  %v4126_v49 = vmul.f32 0.0078125, %v4090_v11  ;;  %v13289_v23 = vmul.f32 0.0078125, %v3815_v9 }
 0x73a   :  { %v4276_v51 = vadd.f32 0.8, %v4140_v57  ;;  %v4142_v11 = vsub.f32 %v4126_v49, %v4134_v8  ;;  %v4068_v57 = vrot.slane %v4067_v21, 1  ;;  %v13271_v8 = vrot.slane %v13267_v30, %v15773_v33  ;;  %15777 = vst [vmem:[#allocation73_spill] sm:$0xff] %v13289_v23 }
 0x73b   :  { %v4110_v49 = vrot.slane %v4109_v24, 1  ;;  %v13295_v30 = vmul.f32 %v13281_v45, %v13281_v45  ;;  %v15787_v23 = vsub.f32 %v15761_v60, %v13195_v3  ;;  %v15792_v60 = vsub.f32 %v12911_v22, %v13195_v3 }
 0x73c   :  { %8697 = vrsqrt.f32 %v4276_v51  ;;  %v4278_v26 = vadd.f32 0.8, %v4142_v11  ;;  %v4437_v51 = vrot.slane %v13277_v53, %v15773_v33  ;;  %v4069_v11 = vadd.f32 %v4068_v57, %v4067_v21 }
 0x73d   :  { %v13287_v48 = vadd.f32 %v4110_v49, %v4109_v24  ;;  %15779 = vst [vmem:[#allocation79_spill] sm:$0xff] %v13295_v30  ;;  %v15786_v49 = vsub.f32 %v15760_v52, %v13195_v3  ;;  %v15789_v21 = vsub.f32 %v15763_v50, %v13195_v3  ;;  %v15791_v52 = vsub.f32 %v15765_v56, %v13195_v3 }
 0x73e   :  { %8699 = vrsqrt.f32 %v4278_v26  ;;  %v13291_v27 = vmul.f32 0.0078125, %v4069_v11  ;;  %v15790_v26 = vsub.f32 %v15764_v43, %v13195_v3  ;;  %v15794_v50 = vsub.f32 %v12973_v20, %v13195_v3 }
 0x73f   :  { %15776 = vst [vmem:[#allocation138_spill] sm:$0xff] %v13287_v48  ;;  %v15795_v43 = vsub.f32 %v12992_v16, %v13195_v3  ;;  %v15796_v56 = vsub.f32 %v13020_v37, %v13195_v3  ;;  %v15797_v22 = vsub.f32 %v13051_v54, %v13195_v3  ;;  %v15799_v20 = vsub.f32 %v13113_v28, %v13195_v3 }
 0x740   :  { %15778 = vst [vmem:[#allocation87_spill] sm:$0xff] %v13291_v27  ;;  %v15800_v16 = vsub.f32 %v13132_v46, %v13195_v3  ;;  %v15801_v37 = vsub.f32 %v13160_v12, %v13195_v3 }
 0x746   :  { %v8698_v48 = vpop.eup %8697 }
 0x747   :  { %v4292_v11 = vmul.f32 %v8698_v48, %v15786_v49  ;;  %v4300_v53 = vmul.f32 %v8698_v48, %v15787_v23  ;;  %v4308_v9 = vmul.f32 %v8698_v48, %v15788_v0  ;;  %v4316_v13 = vmul.f32 %v8698_v48, %v15789_v21 }
 0x748   :  { %v4324_v10 = vmul.f32 %v8698_v48, %v15790_v26  ;;  %v4332_v49 = vmul.f32 %v8698_v48, %v15791_v52  ;;  %v4340_v23 = vmul.f32 %v8698_v48, %v15792_v60  ;;  %v4348_v0 = vmul.f32 %v8698_v48, %v15793_v17  ;;  %v8700_v18 = vpop.eup %8699 }
 0x749   :  { %v4356_v21 = vmul.f32 %v8698_v48, %v15794_v50  ;;  %v4364_v26 = vmul.f32 %v8698_v48, %v15795_v43  ;;  %v4372_v52 = vmul.f32 %v8698_v48, %v15796_v56  ;;  %v4380_v60 = vmul.f32 %v8698_v48, %v15797_v22 }
 0x74a   :  { %v4388_v17 = vmul.f32 %v8698_v48, %v15798_v34  ;;  %v4396_v50 = vmul.f32 %v8698_v48, %v15799_v20  ;;  %v4404_v43 = vmul.f32 %v8698_v48, %v15800_v16  ;;  %v4412_v56 = vmul.f32 %v8698_v48, %v15801_v37 }
 0x74b   :  { %v4462_v39 = vmul.f32 %v4437_v51, %v4292_v11  ;;  %v4470_v1 = vmul.f32 %v4437_v51, %v4300_v53  ;;  %v4478_v54 = vmul.f32 %v4437_v51, %v4308_v9  ;;  %v4486_v22 = vmul.f32 %v4437_v51, %v4316_v13 }
 0x74c   :  { %v4494_v24 = vmul.f32 %v4437_v51, %v4324_v10  ;;  %v4502_v57 = vmul.f32 %v4437_v51, %v4332_v49  ;;  %v4510_v41 = vmul.f32 %v4437_v51, %v4340_v23  ;;  %v4518_v34 = vmul.f32 %v4437_v51, %v4348_v0  ;;  %v15868_v0 = vld [vmem:[#allocation53_spill] sm:$0xff] }
 0x74d   :  { %v4526_v33 = vmul.f32 %v4437_v51, %v4356_v21  ;;  %v4534_v28 = vmul.f32 %v4437_v51, %v4364_v26  ;;  %v4542_v20 = vmul.f32 %v4437_v51, %v4372_v52  ;;  %v4550_v30 = vmul.f32 %v4437_v51, %v4380_v60  ;;  %v15858_v60 = vld [vmem:[#allocation142_spill] sm:$0xff]  ;;  %v15861_v21 = vld [vmem:[#allocation147_spill] sm:$0xff] }
 0x74e   :  { %v4558_v27 = vmul.f32 %v4437_v51, %v4388_v17  ;;  %v4566_v46 = vmul.f32 %v4437_v51, %v4396_v50  ;;  %v4574_v16 = vmul.f32 %v4437_v51, %v4404_v43  ;;  %v4582_v32 = vmul.f32 %v4437_v51, %v4412_v56  ;;  %v15862_v50 = vld [vmem:[#allocation148_spill] sm:$0xff]  ;;  %v15864_v17 = vld [vmem:[#allocation150_spill] sm:$0xff]  ;;  %v15865_v52 = vld [vmem:[#allocation151_spill] sm:$0xff] }
 0x74f   :  { %v13366_v12 = vadd.f32 %v13271_v8, %v4462_v39  ;;  %v13369_v3 = vadd.f32 %v13271_v8, %v4470_v1  ;;  %v13372_v13 = vadd.f32 %v13271_v8, %v4478_v54  ;;  %v13375_v53 = vadd.f32 %v13271_v8, %v4486_v22  ;;  %v15867_v26 = vld [vmem:[#allocation155_spill] sm:$0xff] }
 0x750   :  { %v13378_v10 = vadd.f32 %v13271_v8, %v4494_v24  ;;  %v13381_v48 = vadd.f32 %v13271_v8, %v4502_v57  ;;  %v13384_v51 = vadd.f32 %v13271_v8, %v4510_v41  ;;  %v13387_v39 = vadd.f32 %v13271_v8, %v4518_v34 }
 0x751   :  { %v13390_v1 = vadd.f32 %v13271_v8, %v4526_v33  ;;  %v13393_v9 = vadd.f32 %v13271_v8, %v4534_v28  ;;  %v13396_v11 = vadd.f32 %v13271_v8, %v4542_v20  ;;  %v13399_v24 = vadd.f32 %v13271_v8, %v4550_v30  ;;  %v15866_v30 = vld [vmem:[#allocation153_spill] sm:$0xff] }
 0x752   :  { %15802 = vst [vmem:[#allocation65_spill] sm:$0xff] %v13381_v48  ;;  %15803 = vst [vmem:[#allocation64_spill] sm:$0xff] %v13384_v51  ;;  %v13402_v57 = vadd.f32 %v13271_v8, %v4558_v27  ;;  %v13405_v49 = vadd.f32 %v13271_v8, %v4566_v46  ;;  %v13408_v23 = vadd.f32 %v13271_v8, %v4574_v16  ;;  %v15859_v27 = vld [vmem:[#allocation144_spill] sm:$0xff] }
 0x753   :  { %15804 = vst [vmem:[#allocation139_spill] sm:$0xff] %v13387_v39  ;;  %15805 = vst [vmem:[#allocation77_spill] sm:$0xff] %v13390_v1  ;;  %v13411_v33 = vadd.f32 %v13271_v8, %v4582_v32  ;;  %v15813_v41 = vsub.f32 %v15766_v6, %v13197_v36  ;;  %v15814_v28 = vsub.f32 %v15767_v2, %v13197_v36 }
 0x754   :  { %15806 = vst [vmem:[#allocation109_spill] sm:$0xff] %v13393_v9  ;;  %15807 = vst [vmem:[#allocation83_spill] sm:$0xff] %v13396_v11  ;;  %v15815_v46 = vsub.f32 %v15768_v58, %v13197_v36  ;;  %v15816_v37 = vsub.f32 %v15769_v38, %v13197_v36  ;;  %v15817_v54 = vsub.f32 %v15770_v62, %v13197_v36 }
 0x755   :  { %15808 = vst [vmem:[#allocation156_spill] sm:$0xff] %v13399_v24  ;;  %15809 = vst [vmem:[#allocation157_spill] sm:$0xff] %v13402_v57  ;;  %v4294_v34 = vmul.f32 %v8700_v18, %v15813_v41  ;;  %v4302_v20 = vmul.f32 %v8700_v18, %v15814_v28  ;;  %v15818_v6 = vsub.f32 %v15771_v63, %v13197_v36 }
 0x756   :  { %15810 = vst [vmem:[#allocation158_spill] sm:$0xff] %v13405_v49  ;;  %15811 = vst [vmem:[#allocation159_spill] sm:$0xff] %v13408_v23  ;;  %v4310_v16 = vmul.f32 %v8700_v18, %v15815_v46  ;;  %v4318_v56 = vmul.f32 %v8700_v18, %v15816_v37  ;;  %v4326_v22 = vmul.f32 %v8700_v18, %v15817_v54 }
 0x757   :  { %15812 = vst [vmem:[#allocation160_spill] sm:$0xff] %v13411_v33  ;;  %v4334_v41 = vmul.f32 %v8700_v18, %v15818_v6  ;;  %v15819_v2 = vsub.f32 %v12915_v25, %v13197_v36  ;;  %v15820_v58 = vsub.f32 %v12946_v44, %v13197_v36  ;;  %v15821_v38 = vsub.f32 %v12977_v15, %v13197_v36  ;;  %v15888_v33 = vld [vmem:[#allocation145_spill] sm:$0xff] }
 0x758   :  { %v15822_v62 = vsub.f32 %v13008_v35, %v13197_v36  ;;  %v15823_v63 = vsub.f32 %v13027_v4, %v13197_v36  ;;  %v15824_v25 = vsub.f32 %v13055_v59, %v13197_v36  ;;  %v15825_v44 = vsub.f32 %v13086_v40, %v13197_v36 }
 0x759   :  { %v4342_v28 = vmul.f32 %v8700_v18, %v15819_v2  ;;  %v4350_v46 = vmul.f32 %v8700_v18, %v15820_v58  ;;  %v4358_v37 = vmul.f32 %v8700_v18, %v15821_v38  ;;  %v15826_v15 = vsub.f32 %v13117_v55, %v13197_v36 }
 0x75a   :  { %v4366_v54 = vmul.f32 %v8700_v18, %v15822_v62  ;;  %v4374_v6 = vmul.f32 %v8700_v18, %v15823_v63  ;;  %v4382_v2 = vmul.f32 %v8700_v18, %v15824_v25  ;;  %v4390_v58 = vmul.f32 %v8700_v18, %v15825_v44 }
 0x75b   :  { %v4398_v38 = vmul.f32 %v8700_v18, %v15826_v15  ;;  %v15827_v35 = vsub.f32 %v13148_v31, %v13197_v36  ;;  %v15828_v4 = vsub.f32 %v13167_v47, %v13197_v36  ;;  %v4464_v43 = vmul.f32 %v13285_v14, %v4294_v34 }
 0x75c   :  { %v4472_v59 = vmul.f32 %v13285_v14, %v4302_v20  ;;  %v4480_v25 = vmul.f32 %v13285_v14, %v4310_v16  ;;  %v4488_v40 = vmul.f32 %v13285_v14, %v4318_v56  ;;  %v4496_v44 = vmul.f32 %v13285_v14, %v4326_v22 }
 0x75d   :  { %v4406_v62 = vmul.f32 %v8700_v18, %v15827_v35  ;;  %v4414_v63 = vmul.f32 %v8700_v18, %v15828_v4  ;;  %v4504_v55 = vmul.f32 %v13285_v14, %v4334_v41  ;;  %v4512_v15 = vmul.f32 %v13285_v14, %v4342_v28 }
 0x75e   :  { %v4520_v31 = vmul.f32 %v13285_v14, %v4350_v46  ;;  %v4528_v35 = vmul.f32 %v13285_v14, %v4358_v37  ;;  %v4536_v47 = vmul.f32 %v13285_v14, %v4366_v54  ;;  %v4544_v36 = vmul.f32 %v13285_v14, %v4374_v6 }
 0x75f   :  { %v4552_v18 = vmul.f32 %v13285_v14, %v4382_v2  ;;  %v4560_v34 = vmul.f32 %v13285_v14, %v4390_v58  ;;  %v4568_v56 = vmul.f32 %v13285_v14, %v4398_v38  ;;  %v4576_v22 = vmul.f32 %v13285_v14, %v4406_v62 }
 0x760   :  { %v4584_v20 = vmul.f32 %v13285_v14, %v4414_v63  ;;  %v13494_v16 = vadd.f32 %v13275_v29, %v4464_v43  ;;  %v13497_v41 = vadd.f32 %v13275_v29, %v4472_v59  ;;  %v13500_v28 = vadd.f32 %v13275_v29, %v4480_v25  ;;  %v15872_v25 = vld [vmem:[#allocation56_spill] sm:$0xff] }
 0x761   :  { %v13503_v46 = vadd.f32 %v13275_v29, %v4488_v40  ;;  %v13506_v37 = vadd.f32 %v13275_v29, %v4496_v44  ;;  %v13509_v54 = vadd.f32 %v13275_v29, %v4504_v55  ;;  %v13512_v14 = vadd.f32 %v13275_v29, %v4512_v15  ;;  %v15851_v40 = vld [vmem:[#allocation73_spill] sm:$0xff] }
 0x762   :  { %15829 = vst [vmem:[#allocation161_spill] sm:$0xff] %v13494_v16  ;;  %15830 = vst [vmem:[#allocation162_spill] sm:$0xff] %v13497_v41  ;;  %v13515_v43 = vadd.f32 %v13275_v29, %v4520_v31  ;;  %v13518_v6 = vadd.f32 %v13275_v29, %v4528_v35  ;;  %v13521_v2 = vadd.f32 %v13275_v29, %v4536_v47  ;;  %v15846_v31 = vld [vmem:[#allocation154_spill] sm:$0xff]  ;;  %v15847_v47 = vld [vmem:[#allocation87_spill] sm:$0xff] }
 0x763   :  { %15831 = vst [vmem:[#allocation163_spill] sm:$0xff] %v13500_v28  ;;  %15832 = vst [vmem:[#allocation164_spill] sm:$0xff] %v13503_v46  ;;  %v13524_v58 = vadd.f32 %v13275_v29, %v4544_v36  ;;  %v13527_v38 = vadd.f32 %v13275_v29, %v4552_v18  ;;  %v13530_v62 = vadd.f32 %v13275_v29, %v4560_v34  ;;  %v15880_v46 = vld [vmem:[#allocation140_spill] sm:$0xff]  ;;  %v15884_v41 = vld [vmem:[#allocation141_spill] sm:$0xff] }
 0x764   :  { %15833 = vst [vmem:[#allocation165_spill] sm:$0xff] %v13506_v37  ;;  %15834 = vst [vmem:[#allocation166_spill] sm:$0xff] %v13509_v54  ;;  %v13533_v4 = vadd.f32 %v13275_v29, %v4568_v56  ;;  %v13536_v63 = vadd.f32 %v13275_v29, %v4576_v22  ;;  %v13539_v59 = vadd.f32 %v13275_v29, %v4584_v20  ;;  %v15845_v22 = vld [vmem:[#allocation152_spill] sm:$0xff]  ;;  %v15878_v37 = vld [vmem:[#allocation74_spill] sm:$0xff] }
 0x765   :  { %15835 = vst [vmem:[#allocation167_spill] sm:$0xff] %v13512_v14  ;;  %15836 = vst [vmem:[#allocation168_spill] sm:$0xff] %v13515_v43  ;;  %v4221_v35 = vsub.f32 %v13012_v61, %v13281_v45  ;;  %v4229_v36 = vsub.f32 %v13043_v19, %v13281_v45  ;;  %v4237_v29 = vsub.f32 %v13062_v5, %v13281_v45  ;;  %v15848_v61 = vld [vmem:[#allocation79_spill] sm:$0xff]  ;;  %v15850_v19 = vld [vmem:[#allocation138_spill] sm:$0xff] }
 0x766   :  { %15837 = vst [vmem:[#allocation169_spill] sm:$0xff] %v13518_v6  ;;  %15838 = vst [vmem:[#allocation170_spill] sm:$0xff] %v13521_v2  ;;  %v4245_v34 = vsub.f32 %v13090_v42, %v13281_v45  ;;  %v4253_v56 = vsub.f32 %v13121_v7, %v13281_v45  ;;  %v4261_v20 = vsub.f32 %v15845_v22, %v13281_v45  ;;  %v4127_v44 = vmul.f32 0.0078125, %v15850_v19  ;;  %v15852_v42 = vld [vmem:[#allocation60_spill] sm:$0xff]  ;;  %v15853_v7 = vld [vmem:[#allocation137_spill] sm:$0xff] }
 0x767   :  { %15839 = vst [vmem:[#allocation171_spill] sm:$0xff] %v13524_v58  ;;  %15840 = vst [vmem:[#allocation172_spill] sm:$0xff] %v13527_v38  ;;  %v4269_v18 = vsub.f32 %v15846_v31, %v13281_v45  ;;  %v15849_v15 = vsub.f32 %v15847_v47, %v15848_v61  ;;  %v4135_v5 = vmul.f32 %v15851_v40, %v15851_v40  ;;  %v15854_v22 = vld [vmem:[#allocation52_spill] sm:$0xff]  ;;  %v15855_v31 = vld [vmem:[#allocation81_spill] sm:$0xff] }
 0x768   :  { %15841 = vst [vmem:[#allocation173_spill] sm:$0xff] %v13530_v62  ;;  %15842 = vst [vmem:[#allocation174_spill] sm:$0xff] %v13533_v4  ;;  %v15857_v19 = vld [vmem:[#allocation78_spill] sm:$0xff]  ;;  %v15869_v4 = vld [vmem:[#allocation61_spill] sm:$0xff] }
 0x769   :  { %15843 = vst [vmem:[#allocation175_spill] sm:$0xff] %v13536_v63  ;;  %15844 = vst [vmem:[#allocation176_spill] sm:$0xff] %v13539_v59  ;;  %v4277_v55 = vadd.f32 0.8, %v15849_v15  ;;  %v15856_v15 = vld [vmem:[#allocation75_spill] sm:$0xff]  ;;  %v4143_v61 = vsub.f32 %v4127_v44, %v4135_v5  ;;  %v15863_v44 = vld [vmem:[#allocation149_spill] sm:$0xff]  ;;  %v4611_v62 = vrot.slane %v15869_v4, %v15868_v0  ;;  %v15873_v59 = vsub.f32 %v15872_v25, %v13281_v45 }
 0x76a   :  { %v15870_v38 = vld [vmem:[#allocation57_spill] sm:$0xff]  ;;  %v15874_v2 = vld [vmem:[#allocation68_spill] sm:$0xff]  ;;  %v15876_v14 = vld [vmem:[#allocation82_spill] sm:$0xff] }
 0x76b   :  { %8701 = vrsqrt.f32 %v4277_v55  ;;  %v15860_v55 = vld [vmem:[#allocation146_spill] sm:$0xff]  ;;  %v4279_v63 = vadd.f32 0.8, %v4143_v61  ;;  %v13613_v5 = vrot.slane %v15869_v4, %v15870_v38  ;;  %v15871_v47 = vld [vmem:[#allocation69_spill] sm:$0xff]  ;;  %v15875_v6 = vsub.f32 %v15874_v2, %v13281_v45  ;;  %v15882_v28 = vld [vmem:[#allocation72_spill] sm:$0xff] }
 0x76c   :  { %v4441_v58 = vrot.slane %v15871_v47, %v15868_v0  ;;  %v13619_v8 = vrot.slane %v15871_v47, %v15870_v38  ;;  %v15877_v4 = vsub.f32 %v15876_v14, %v13281_v45  ;;  %v15879_v0 = vsub.f32 %v15878_v37, %v13281_v45  ;;  %v15886_v16 = vld [vmem:[#allocation143_spill] sm:$0xff] }
 0x76d   :  { %8703 = vrsqrt.f32 %v4279_v63  ;;  %v15881_v38 = vsub.f32 %v15880_v46, %v13281_v45  ;;  %v15883_v25 = vsub.f32 %v15882_v28, %v13281_v45  ;;  %v15885_v2 = vsub.f32 %v15884_v41, %v13281_v45 }
 0x76e   :  { %v15887_v14 = vsub.f32 %v15886_v16, %v13281_v45  ;;  %v15889_v37 = vsub.f32 %v15888_v33, %v13281_v45 }
 0x775   :  { %v8702_v32 = vpop.eup %8701 }
 0x776   :  { %v4293_v61 = vmul.f32 %v8702_v32, %v15873_v59  ;;  %v4301_v43 = vmul.f32 %v8702_v32, %v15875_v6  ;;  %v4309_v54 = vmul.f32 %v8702_v32, %v15877_v4  ;;  %v4317_v63 = vmul.f32 %v8702_v32, %v15879_v0 }
 0x777   :  { %v4325_v47 = vmul.f32 %v8702_v32, %v15881_v38  ;;  %v4333_v59 = vmul.f32 %v8702_v32, %v15883_v25  ;;  %v4341_v6 = vmul.f32 %v8702_v32, %v15885_v2  ;;  %v4349_v4 = vmul.f32 %v8702_v32, %v15887_v14 }
 0x778   :  { %v4357_v0 = vmul.f32 %v8702_v32, %v15889_v37  ;;  %v4365_v23 = vmul.f32 %v8702_v32, %v4221_v35  ;;  %v4373_v49 = vmul.f32 %v8702_v32, %v4229_v36  ;;  %v4381_v46 = vmul.f32 %v8702_v32, %v4237_v29 }
 0x779   :  { %v4389_v38 = vmul.f32 %v8702_v32, %v4245_v34  ;;  %v4397_v57 = vmul.f32 %v8702_v32, %v4253_v56  ;;  %v4405_v24 = vmul.f32 %v8702_v32, %v4261_v20  ;;  %v4413_v28 = vmul.f32 %v8702_v32, %v4269_v18 }
 0x77a   :  { %v4463_v25 = vmul.f32 %v4441_v58, %v4293_v61  ;;  %v4471_v11 = vmul.f32 %v4441_v58, %v4301_v43  ;;  %v4479_v9 = vmul.f32 %v4441_v58, %v4309_v54  ;;  %v4487_v41 = vmul.f32 %v4441_v58, %v4317_v63  ;;  %v8704_v43 = vpop.eup %8703 }
 0x77b   :  { %v4495_v2 = vmul.f32 %v4441_v58, %v4325_v47  ;;  %v4503_v1 = vmul.f32 %v4441_v58, %v4333_v59  ;;  %v4511_v39 = vmul.f32 %v4441_v58, %v4341_v6  ;;  %v4519_v16 = vmul.f32 %v4441_v58, %v4349_v4 }
 0x77c   :  { %v4527_v14 = vmul.f32 %v4441_v58, %v4357_v0  ;;  %v4535_v51 = vmul.f32 %v4441_v58, %v4365_v23  ;;  %v4543_v48 = vmul.f32 %v4441_v58, %v4373_v49  ;;  %v4551_v45 = vmul.f32 %v4441_v58, %v4381_v46 }
 0x77d   :  { %v4559_v33 = vmul.f32 %v4441_v58, %v4389_v38  ;;  %v4567_v35 = vmul.f32 %v4441_v58, %v4397_v57  ;;  %v4575_v36 = vmul.f32 %v4441_v58, %v4405_v24  ;;  %v4583_v29 = vmul.f32 %v4441_v58, %v4413_v28 }
 0x77e   :  { %v13648_v34 = vadd.f32 %v4611_v62, %v4463_v25  ;;  %v13650_v56 = vadd.f32 %v4611_v62, %v4471_v11  ;;  %v13652_v32 = vadd.f32 %v4611_v62, %v4479_v9  ;;  %v13654_v54 = vadd.f32 %v4611_v62, %v4487_v41 }
 0x77f   :  { %v13656_v18 = vadd.f32 %v4611_v62, %v4495_v2  ;;  %v13658_v20 = vadd.f32 %v4611_v62, %v4503_v1  ;;  %v13660_v23 = vadd.f32 %v4611_v62, %v4511_v39  ;;  %v13662_v49 = vadd.f32 %v4611_v62, %v4519_v16 }
 0x780   :  { %v13664_v57 = vadd.f32 %v4611_v62, %v4527_v14  ;;  %v13666_v24 = vadd.f32 %v4611_v62, %v4535_v51  ;;  %v13668_v58 = vadd.f32 %v4611_v62, %v4543_v48  ;;  %v13670_v11 = vadd.f32 %v4611_v62, %v4551_v45 }
 0x781   :  { %v13672_v9 = vadd.f32 %v4611_v62, %v4559_v33  ;;  %v13674_v61 = vadd.f32 %v4611_v62, %v4567_v35  ;;  %v13676_v63 = vadd.f32 %v4611_v62, %v4575_v36  ;;  %v13678_v1 = vadd.f32 %v4611_v62, %v4583_v29 }
 0x782   :  { %v15890_v16 = vsub.f32 %v15852_v42, %v15851_v40  ;;  %v15891_v45 = vsub.f32 %v15853_v7, %v15851_v40  ;;  %v15892_v35 = vsub.f32 %v15854_v22, %v15851_v40  ;;  %v15893_v29 = vsub.f32 %v15855_v31, %v15851_v40 }
 0x783   :  { %v15894_v41 = vsub.f32 %v15856_v15, %v15851_v40  ;;  %v15895_v42 = vsub.f32 %v15857_v19, %v15851_v40  ;;  %v15896_v7 = vsub.f32 %v15858_v60, %v15851_v40  ;;  %v15897_v22 = vsub.f32 %v15859_v27, %v15851_v40 }
 0x784   :  { %v4295_v14 = vmul.f32 %v8704_v43, %v15890_v16  ;;  %v4303_v33 = vmul.f32 %v8704_v43, %v15891_v45  ;;  %v4311_v36 = vmul.f32 %v8704_v43, %v15892_v35  ;;  %v4319_v25 = vmul.f32 %v8704_v43, %v15893_v29 }
 0x785   :  { %v4327_v2 = vmul.f32 %v8704_v43, %v15894_v41  ;;  %v4335_v16 = vmul.f32 %v8704_v43, %v15895_v42  ;;  %v4343_v45 = vmul.f32 %v8704_v43, %v15896_v7  ;;  %v4351_v35 = vmul.f32 %v8704_v43, %v15897_v22 }
 0x786   :  { %v15898_v31 = vsub.f32 %v15860_v55, %v15851_v40  ;;  %v15899_v15 = vsub.f32 %v15861_v21, %v15851_v40  ;;  %v15900_v19 = vsub.f32 %v15862_v50, %v15851_v40  ;;  %v15901_v60 = vsub.f32 %v15863_v44, %v15851_v40 }
 0x787   :  { %v15902_v27 = vsub.f32 %v15864_v17, %v15851_v40  ;;  %v15903_v55 = vsub.f32 %v15865_v52, %v15851_v40  ;;  %v15904_v21 = vsub.f32 %v15866_v30, %v15851_v40  ;;  %v15905_v50 = vsub.f32 %v15867_v26, %v15851_v40 }
 0x788   :  { %v4359_v29 = vmul.f32 %v8704_v43, %v15898_v31  ;;  %v4367_v41 = vmul.f32 %v8704_v43, %v15899_v15  ;;  %v4375_v42 = vmul.f32 %v8704_v43, %v15900_v19  ;;  %v4383_v7 = vmul.f32 %v8704_v43, %v15901_v60 }
 0x789   :  { %v4391_v22 = vmul.f32 %v8704_v43, %v15902_v27  ;;  %v4399_v31 = vmul.f32 %v8704_v43, %v15903_v55  ;;  %v4407_v15 = vmul.f32 %v8704_v43, %v15904_v21  ;;  %v4415_v19 = vmul.f32 %v8704_v43, %v15905_v50 }
 0x78a   :  { %v4465_v28 = vmul.f32 %v13619_v8, %v4295_v14  ;;  %v4473_v44 = vmul.f32 %v13619_v8, %v4303_v33  ;;  %v4481_v60 = vmul.f32 %v13619_v8, %v4311_v36  ;;  %v4489_v17 = vmul.f32 %v13619_v8, %v4319_v25 }
 0x78b   :  { %v4497_v27 = vmul.f32 %v13619_v8, %v4327_v2  ;;  %v4505_v52 = vmul.f32 %v13619_v8, %v4335_v16  ;;  %v4513_v55 = vmul.f32 %v13619_v8, %v4343_v45  ;;  %v4521_v30 = vmul.f32 %v13619_v8, %v4351_v35 }
 0x78c   :  { %v4529_v21 = vmul.f32 %v13619_v8, %v4359_v29  ;;  %v4537_v26 = vmul.f32 %v13619_v8, %v4367_v41  ;;  %v4545_v40 = vmul.f32 %v13619_v8, %v4375_v42  ;;  %v4553_v43 = vmul.f32 %v13619_v8, %v4383_v7 }
 0x78d   :  { %v4561_v14 = vmul.f32 %v13619_v8, %v4391_v22  ;;  %v4569_v25 = vmul.f32 %v13619_v8, %v4399_v31  ;;  %v4577_v2 = vmul.f32 %v13619_v8, %v4407_v15  ;;  %v4585_v33 = vmul.f32 %v13619_v8, %v4415_v19 }
 0x78e   :  { %v13761_v36 = vadd.f32 %v13613_v5, %v4465_v28  ;;  %v13764_v16 = vadd.f32 %v13613_v5, %v4473_v44  ;;  %v13767_v45 = vadd.f32 %v13613_v5, %v4481_v60  ;;  %v13770_v35 = vadd.f32 %v13613_v5, %v4489_v17 }
 0x78f   :  { %v13773_v29 = vadd.f32 %v13613_v5, %v4497_v27  ;;  %v13776_v41 = vadd.f32 %v13613_v5, %v4505_v52  ;;  %v13779_v8 = vadd.f32 %v13613_v5, %v4513_v55  ;;  %v13782_v28 = vadd.f32 %v13613_v5, %v4521_v30 }
 0x790   :  { %v13785_v42 = vadd.f32 %v13613_v5, %v4529_v21  ;;  %v13788_v7 = vadd.f32 %v13613_v5, %v4537_v26  ;;  %v13791_v22 = vadd.f32 %v13613_v5, %v4545_v40  ;;  %v13794_v31 = vadd.f32 %v13613_v5, %v4553_v43 }
 0x791   :  { %v13797_v15 = vadd.f32 %v13613_v5, %v4561_v14  ;;  %v13800_v50 = vadd.f32 %v13613_v5, %v4569_v25  ;;  %v13803_v19 = vadd.f32 %v13613_v5, %v4577_v2  ;;  %v13806_v44 = vadd.f32 %v13613_v5, %v4585_v33 }
 0x792   :  { %9303 = dma.done.wait [#allocation4 + $0x1], 57344 }
 0x793   :  { %9304 = vsyncadd [#allocation4 + $0x1], 4294909952  ;;  %v15906_v21 = vld [vmem:[#allocation54_spill] sm:$0xff]  ;;  %v4953_v14 = vld [vmem:[#allocation3 + $0x8] sm:$0xff]  ;;  %s9341_s16 = smov [#allocation29]  }
 0x794   :  { %v15907_v26 = vmax.f32 %v15906_v21, 0.0  ;;  %v15908_v55 = vld [vmem:[#allocation58_spill] sm:$0xff]  ;;  %5437 = vmatprep.subr.bf16.mxu0 %v4953_v14  ;;  %v4954_v33 = vld [vmem:[#allocation3 + $0x10] sm:$0xff]  ;;  %v15912_v38 = vld [vmem:[#allocation91_spill] sm:$0xff]  ;;  %s7410_s20 = sshll.u32 %s9341_s16, 4  ;;  %s7411_s20 = int_to_ptr.vmem [resolvable:$true] %s7410_s20 }
 0x795   :  { %v15909_v40 = vmax.f32 %v15908_v55, 0.0  ;;  %v4955_v25 = vld [vmem:[#allocation3 + $0x18] sm:$0xff]  ;;  %v4952_v43 = vld [vmem:[#allocation3] sm:$0xff]  ;;  %v4962_v30 = vld [vmem:[#allocation3 + $0x50] sm:$0xff]  ;;  %v15913_v46 = vmax.f32 %v15912_v38, 0.0  ;;  %s9263_s25 = scalar_lea.vmem %s7411_s20, 14336  ;;  %p9268_p9 = scmp.lt.s32.totalorder %s7411_s20, %s7411_s20 }
 0x796   :  { %5889 = vmatprep.subr.bf16.mxu1 %v4955_v25  ;;  %v4960_v2 = vld [vmem:[#allocation3 + $0x40] sm:$0xff]  ;;  %5438 = vmatpush1.bf16.msra.mxu0 %v4952_v43  ;;  %v4959_v21 = vld [vmem:[#allocation3 + $0x38] sm:$0xff]  ;;  %v4961_v55 = vld [vmem:[#allocation3 + $0x48] sm:$0xff]  ;;  %p9264_p8 = scmp.ne.s32.totalorder %s7411_s20, %s9263_s25  ;;  %p9269_p10 = scmp.lt.s32.totalorder %s9263_s25, %s9263_s25 }
 0x797   :  { %v13828_v52 = vpack.c.bf16 %v15909_v40, %v15907_v26  ;;  %5890 = vmatpush1.bf16.msra.mxu1 %v4954_v33  ;;  %5439 = vmatprep.subr.bf16.mxu0 %v4960_v2  ;;  %v4967_v26 = vld [vmem:[#allocation3 + $0x78] sm:$0xff]  ;;  %v4969_v40 = vld [vmem:[#allocation3 + $0x88] sm:$0xff]  ;;  %v4966_v5 = vld [vmem:[#allocation3 + $0x70] sm:$0xff] }
 0x798   :  { %5891 = vmatprep.subr.bf16.mxu1 %v4962_v30  ;;  %v4968_v27 = vld [vmem:[#allocation3 + $0x80] sm:$0xff]  ;;  %v4974_v17 = vld [vmem:[#allocation3 + $0xb0] sm:$0xff]  ;;  %v4973_v43 = vld [vmem:[#allocation3 + $0xa8] sm:$0xff]  ;;  %p9270_p11 = por %p9269_p10, %p9268_p9 }
 0x799   :  { %5469 = vmatprep.mubr.bf16.mxu0 %v13828_v52  ;;  %5921 = vmatprep.mubr.bf16.mxu1 %v13828_v52  ;;  %v4976_v14 = vld [vmem:[#allocation3 + $0xc0] sm:$0xff]  ;;  %v4975_v25 = vld [vmem:[#allocation3 + $0xb8] sm:$0xff]  ;;  %v4981_v2 = vld [vmem:[#allocation3 + $0xe8] sm:$0xff] }
 0x79a   :  { %5440 = vmatpush1.bf16.msra.mxu0 %v4959_v21  ;;  %v4983_v30 = vld [vmem:[#allocation3 + $0xf8] sm:$0xff]  ;;  %v4980_v33 = vld [vmem:[#allocation3 + $0xe0] sm:$0xff]  ;;  %v4982_v21 = vld [vmem:[#allocation3 + $0xf0] sm:$0xff]  ;;  %p9271_p12 = pnand %p9270_p11, %p9264_p8 }
 0x79b   :  { %5892 = vmatpush1.bf16.msra.mxu1 %v4961_v55  ;;  %5441 = vmatprep.subr.bf16.mxu0 %v4967_v26  ;;  %v4988_v55 = vld [vmem:[#allocation3 + $0x120] sm:$0xff]  ;;  %v4990_v26 = vld [vmem:[#allocation3 + $0x130] sm:$0xff]  ;;  %v5073_v38 = vld [vmem:[#allocation3 + $0x3c8] sm:$0xff] }
 0x79c   :  { %5893 = vmatprep.subr.bf16.mxu1 %v4969_v40  ;;  %v4997_v40 = vld [vmem:[#allocation3 + $0x168] sm:$0xff] }
 0x79e   :  { %5442 = vmatpush1.bf16.msra.mxu0 %v4966_v5  ;;  %v4987_v5 = vld [vmem:[#allocation3 + $0x118] sm:$0xff] }
 0x79f   :  { %5894 = vmatpush1.bf16.msra.mxu1 %v4968_v27  ;;  %5443 = vmatprep.subr.bf16.mxu0 %v4974_v17  ;;  %v4989_v27 = vld [vmem:[#allocation3 + $0x128] sm:$0xff]  ;;  %v4995_v17 = vld [vmem:[#allocation3 + $0x158] sm:$0xff] }
 0x7a0   :  { %5895 = vmatprep.subr.bf16.mxu1 %v4976_v14  ;;  %v4994_v14 = vld [vmem:[#allocation3 + $0x150] sm:$0xff] }
 0x7a2   :  { %5444 = vmatpush1.bf16.msra.mxu0 %v4973_v43  ;;  %v4996_v43 = vld [vmem:[#allocation3 + $0x160] sm:$0xff] }
 0x7a3   :  { %5896 = vmatpush1.bf16.msra.mxu1 %v4975_v25  ;;  %5445 = vmatprep.subr.bf16.mxu0 %v4981_v2  ;;  %v5002_v25 = vld [vmem:[#allocation3 + $0x190] sm:$0xff]  ;;  %v5004_v2 = vld [vmem:[#allocation3 + $0x1a0] sm:$0xff] }
 0x7a4   :  { %5897 = vmatprep.subr.bf16.mxu1 %v4983_v30  ;;  %v5001_v30 = vld [vmem:[#allocation3 + $0x188] sm:$0xff] }
 0x7a6   :  { %5446 = vmatpush1.bf16.msra.mxu0 %v4980_v33  ;;  %v5003_v33 = vld [vmem:[#allocation3 + $0x198] sm:$0xff] }
 0x7a7   :  { %5898 = vmatpush1.bf16.msra.mxu1 %v4982_v21  ;;  %5447 = vmatprep.subr.bf16.mxu0 %v4988_v55  ;;  %v5009_v21 = vld [vmem:[#allocation3 + $0x1c8] sm:$0xff]  ;;  %v5011_v55 = vld [vmem:[#allocation3 + $0x1d8] sm:$0xff] }
 0x7a8   :  { %5899 = vmatprep.subr.bf16.mxu1 %v4990_v26  ;;  %v5008_v26 = vld [vmem:[#allocation3 + $0x1c0] sm:$0xff] }
 0x7aa   :  { %5448 = vmatpush1.bf16.msra.mxu0 %v4987_v5  ;;  %v5010_v5 = vld [vmem:[#allocation3 + $0x1d0] sm:$0xff] }
 0x7ab   :  { %5900 = vmatpush1.bf16.msra.mxu1 %v4989_v27  ;;  %5449 = vmatprep.subr.bf16.mxu0 %v4995_v17  ;;  %v5016_v27 = vld [vmem:[#allocation3 + $0x200] sm:$0xff]  ;;  %v5018_v17 = vld [vmem:[#allocation3 + $0x210] sm:$0xff] }
 0x7ac   :  { %5901 = vmatprep.subr.bf16.mxu1 %v4997_v40  ;;  %v5015_v40 = vld [vmem:[#allocation3 + $0x1f8] sm:$0xff] }
 0x7ae   :  { %5450 = vmatpush1.bf16.msra.mxu0 %v4994_v14  ;;  %v5017_v14 = vld [vmem:[#allocation3 + $0x208] sm:$0xff] }
 0x7af   :  { %5902 = vmatpush1.bf16.msra.mxu1 %v4996_v43  ;;  %5451 = vmatprep.subr.bf16.mxu0 %v5002_v25  ;;  %v5023_v43 = vld [vmem:[#allocation3 + $0x238] sm:$0xff]  ;;  %v5025_v25 = vld [vmem:[#allocation3 + $0x248] sm:$0xff] }
 0x7b0   :  { %5903 = vmatprep.subr.bf16.mxu1 %v5004_v2  ;;  %v5022_v2 = vld [vmem:[#allocation3 + $0x230] sm:$0xff] }
 0x7b2   :  { %5452 = vmatpush1.bf16.msra.mxu0 %v5001_v30  ;;  %v5024_v30 = vld [vmem:[#allocation3 + $0x240] sm:$0xff] }
 0x7b3   :  { %5904 = vmatpush1.bf16.msra.mxu1 %v5003_v33  ;;  %5453 = vmatprep.subr.bf16.mxu0 %v5009_v21  ;;  %v5030_v33 = vld [vmem:[#allocation3 + $0x270] sm:$0xff]  ;;  %v5032_v21 = vld [vmem:[#allocation3 + $0x280] sm:$0xff] }
 0x7b4   :  { %5905 = vmatprep.subr.bf16.mxu1 %v5011_v55  ;;  %v5029_v55 = vld [vmem:[#allocation3 + $0x268] sm:$0xff] }
 0x7b6   :  { %5454 = vmatpush1.bf16.msra.mxu0 %v5008_v26  ;;  %v5031_v26 = vld [vmem:[#allocation3 + $0x278] sm:$0xff] }
 0x7b7   :  { %5906 = vmatpush1.bf16.msra.mxu1 %v5010_v5  ;;  %5455 = vmatprep.subr.bf16.mxu0 %v5016_v27  ;;  %v5037_v5 = vld [vmem:[#allocation3 + $0x2a8] sm:$0xff]  ;;  %v5039_v27 = vld [vmem:[#allocation3 + $0x2b8] sm:$0xff] }
 0x7b8   :  { %5907 = vmatprep.subr.bf16.mxu1 %v5018_v17  ;;  %v5036_v17 = vld [vmem:[#allocation3 + $0x2a0] sm:$0xff] }
 0x7ba   :  { %5456 = vmatpush1.bf16.msra.mxu0 %v5015_v40  ;;  %v5038_v40 = vld [vmem:[#allocation3 + $0x2b0] sm:$0xff] }
 0x7bb   :  { %5908 = vmatpush1.bf16.msra.mxu1 %v5017_v14  ;;  %5457 = vmatprep.subr.bf16.mxu0 %v5023_v43  ;;  %v5044_v14 = vld [vmem:[#allocation3 + $0x2e0] sm:$0xff]  ;;  %v5046_v43 = vld [vmem:[#allocation3 + $0x2f0] sm:$0xff] }
 0x7bc   :  { %5909 = vmatprep.subr.bf16.mxu1 %v5025_v25  ;;  %v5043_v25 = vld [vmem:[#allocation3 + $0x2d8] sm:$0xff] }
 0x7be   :  { %5458 = vmatpush1.bf16.msra.mxu0 %v5022_v2  ;;  %v5045_v2 = vld [vmem:[#allocation3 + $0x2e8] sm:$0xff] }
 0x7bf   :  { %5910 = vmatpush1.bf16.msra.mxu1 %v5024_v30  ;;  %5459 = vmatprep.subr.bf16.mxu0 %v5030_v33  ;;  %v5051_v30 = vld [vmem:[#allocation3 + $0x318] sm:$0xff]  ;;  %v5053_v33 = vld [vmem:[#allocation3 + $0x328] sm:$0xff] }
 0x7c0   :  { %5911 = vmatprep.subr.bf16.mxu1 %v5032_v21  ;;  %v5050_v21 = vld [vmem:[#allocation3 + $0x310] sm:$0xff] }
 0x7c2   :  { %5460 = vmatpush1.bf16.msra.mxu0 %v5029_v55  ;;  %v5052_v55 = vld [vmem:[#allocation3 + $0x320] sm:$0xff] }
 0x7c3   :  { %5912 = vmatpush1.bf16.msra.mxu1 %v5031_v26  ;;  %5461 = vmatprep.subr.bf16.mxu0 %v5037_v5  ;;  %v5058_v26 = vld [vmem:[#allocation3 + $0x350] sm:$0xff]  ;;  %v5060_v5 = vld [vmem:[#allocation3 + $0x360] sm:$0xff] }
 0x7c4   :  { %5913 = vmatprep.subr.bf16.mxu1 %v5039_v27  ;;  %v5057_v27 = vld [vmem:[#allocation3 + $0x348] sm:$0xff] }
 0x7c6   :  { %5462 = vmatpush1.bf16.msra.mxu0 %v5036_v17  ;;  %v5059_v17 = vld [vmem:[#allocation3 + $0x358] sm:$0xff] }
 0x7c7   :  { %5914 = vmatpush1.bf16.msra.mxu1 %v5038_v40  ;;  %5463 = vmatprep.subr.bf16.mxu0 %v5044_v14  ;;  %v5065_v40 = vld [vmem:[#allocation3 + $0x388] sm:$0xff]  ;;  %v5067_v14 = vld [vmem:[#allocation3 + $0x398] sm:$0xff] }
 0x7c8   :  { %5915 = vmatprep.subr.bf16.mxu1 %v5046_v43  ;;  %v15910_v43 = vld [vmem:[#allocation90_spill] sm:$0xff] }
 0x7c9   :  { %v15911_v60 = vmax.f32 %v15910_v43, 0.0 }
 0x7ca   :  { %5464 = vmatpush1.bf16.msra.mxu0 %v5043_v25 }
 0x7cb   :  { %5916 = vmatpush1.bf16.msra.mxu1 %v5045_v2  ;;  %5465 = vmatprep.subr.bf16.mxu0 %v5051_v30  ;;  %v13836_v25 = vpack.c.bf16 %v15913_v46, %v15911_v60  ;;  %v5064_v2 = vld [vmem:[#allocation3 + $0x380] sm:$0xff]  ;;  %v5066_v30 = vld [vmem:[#allocation3 + $0x390] sm:$0xff]  ;;  %v5071_v46 = vld [vmem:[#allocation3 + $0x3b8] sm:$0xff] }
 0x7cc   :  { %5917 = vmatprep.subr.bf16.mxu1 %v5053_v33  ;;  %v5072_v33 = vld [vmem:[#allocation3 + $0x3c0] sm:$0xff]  ;;  %v5079_v60 = vld [vmem:[#allocation3 + $0x3f8] sm:$0xff] }
 0x7ce   :  { %5466 = vmatpush1.bf16.msra.mxu0 %v5050_v21  ;;  %v5074_v21 = vld [vmem:[#allocation3 + $0x3d0] sm:$0xff] }
 0x7cf   :  { %5918 = vmatpush1.bf16.msra.mxu1 %v5052_v55  ;;  %5467 = vmatprep.subr.bf16.mxu0 %v5058_v26  ;;  %v15914_v55 = vld [vmem:[#allocation62_spill] sm:$0xff] }
 0x7d0   :  { %5919 = vmatprep.subr.bf16.mxu1 %v5060_v5  ;;  %v15915_v26 = vmax.f32 %v15914_v55, 0.0  ;;  %v15916_v5 = vld [vmem:[#allocation66_spill] sm:$0xff]  ;;  %v15922_v55 = vld [vmem:[#allocation85_spill] sm:$0xff] }
 0x7d1   :  { %v15917_v62 = vmax.f32 %v15916_v5, 0.0  ;;  %v15924_v5 = vld [vmem:[#allocation110_spill] sm:$0xff] }
 0x7d2   :  { %5468 = vmatpush1.bf16.msra.mxu0 %v5057_v27  ;;  %v5081_v27 = vld [vmem:[#allocation3 + $0x408] sm:$0xff]  ;;  %v15925_v37 = vmax.f32 %v15924_v5, 0.0 }
 0x7d3   :  { %5920 = vmatpush1.bf16.msra.mxu1 %v5059_v17  ;;  %5550 = vmatprep.subr.bf16.mxu0 %v5065_v40  ;;  %v13842_v0 = vpack.c.bf16 %v15917_v62, %v15915_v26  ;;  %v15918_v17 = vld [vmem:[#allocation92_spill] sm:$0xff]  ;;  %v15920_v62 = vld [vmem:[#allocation93_spill] sm:$0xff]  ;;  %v15923_v26 = vmax.f32 %v15922_v55, 0.0  ;;  %v15930_v55 = vld [vmem:[#allocation111_spill] sm:$0xff] }
 0x7d4   :  { %6002 = vmatprep.subr.bf16.mxu1 %v5067_v14  ;;  %v15919_v40 = vmax.f32 %v15918_v17, 0.0  ;;  %v15921_v14 = vmax.f32 %v15920_v62, 0.0  ;;  %v15926_v17 = vld [vmem:[#allocation94_spill] sm:$0xff]  ;;  %v15932_v5 = vld [vmem:[#allocation112_spill] sm:$0xff] }
 0x7d5   :  { %5470 = vmatmul.mubr.bf16.vlgmr.msra.gmra.mrb[128].mxu0 %v13836_v25  ;;  %v13858_v4 = vpack.c.bf16 %v15925_v37, %v15923_v26  ;;  %v15928_v37 = vld [vmem:[#allocation95_spill] sm:$0xff]  ;;  %v15931_v26 = vmax.f32 %v15930_v55, 0.0  ;;  %v15933_v6 = vmax.f32 %v15932_v5, 0.0  ;;  %v15938_v55 = vld [vmem:[#allocation113_spill] sm:$0xff]  ;;  %v15940_v5 = vld [vmem:[#allocation114_spill] sm:$0xff] }
 0x7d6   :  { %5922 = vmatmul.mubr.bf16.vlgmr.msra.gmra.mrb[128].mxu1 %v13836_v25  ;;  %5551 = vmatpush1.bf16.msra.mxu0 %v5064_v2  ;;  %v13852_v43 = vpack.c.bf16 %v15921_v14, %v15919_v40  ;;  %v5078_v2 = vld [vmem:[#allocation3 + $0x3f0] sm:$0xff]  ;;  %v15927_v40 = vmax.f32 %v15926_v17, 0.0  ;;  %v15929_v62 = vmax.f32 %v15928_v37, 0.0  ;;  %v15941_v51 = vmax.f32 %v15940_v5, 0.0 }
 0x7d7   :  { %6003 = vmatpush1.bf16.msra.mxu1 %v5066_v30  ;;  %5552 = vmatprep.subr.bf16.mxu0 %v5072_v33  ;;  %v5080_v30 = vld [vmem:[#allocation3 + $0x400] sm:$0xff]  ;;  %v5086_v33 = vld [vmem:[#allocation3 + $0x430] sm:$0xff]  ;;  %v13874_v48 = vpack.c.bf16 %v15933_v6, %v15931_v26  ;;  %v15939_v26 = vmax.f32 %v15938_v55, 0.0 }
 0x7d8   :  { %6004 = vmatprep.subr.bf16.mxu1 %v5074_v21  ;;  %5479 = vmatprep.mubr.bf16.mxu0 %v13842_v0  ;;  %v5088_v21 = vld [vmem:[#allocation3 + $0x440] sm:$0xff]  ;;  %v13868_v14 = vpack.c.bf16 %v15929_v62, %v15927_v40  ;;  %v15934_v17 = vld [vmem:[#allocation96_spill] sm:$0xff]  ;;  %v15936_v6 = vld [vmem:[#allocation97_spill] sm:$0xff] }
 0x7d9   :  { %5931 = vmatprep.mubr.bf16.mxu1 %v13842_v0  ;;  %v15935_v40 = vmax.f32 %v15934_v17, 0.0  ;;  %v15937_v37 = vmax.f32 %v15936_v6, 0.0  ;;  %v13890_v59 = vpack.c.bf16 %v15941_v51, %v15939_v26  ;;  %v15942_v17 = vld [vmem:[#allocation98_spill] sm:$0xff]  ;;  %v15944_v51 = vld [vmem:[#allocation99_spill] sm:$0xff]  ;;  %v15949_v5 = vld [vmem:[#allocation116_spill] sm:$0xff] }
 0x7da   :  { %5553 = vmatpush1.bf16.msra.mxu0 %v5071_v46  ;;  %v5085_v46 = vld [vmem:[#allocation3 + $0x428] sm:$0xff]  ;;  %v15945_v6 = vmax.f32 %v15944_v51, 0.0  ;;  %v15950_v47 = vmax.f32 %v15949_v5, 0.0  ;;  %v15959_v5 = vld [vmem:[#allocation118_spill] sm:$0xff] }
 0x7db   :  { %6005 = vmatpush1.bf16.msra.mxu1 %v5073_v38  ;;  %5554 = vmatprep.subr.bf16.mxu0 %v5079_v60  ;;  %v5087_v38 = vld [vmem:[#allocation3 + $0x438] sm:$0xff]  ;;  %v5093_v60 = vld [vmem:[#allocation3 + $0x468] sm:$0xff]  ;;  %v13884_v62 = vpack.c.bf16 %v15937_v37, %v15935_v40  ;;  %v15943_v40 = vmax.f32 %v15942_v17, 0.0 }
 0x7dc   :  { %6006 = vmatprep.subr.bf16.mxu1 %v5081_v27  ;;  %v5095_v27 = vld [vmem:[#allocation3 + $0x478] sm:$0xff]  ;;  %v15947_v55 = vld [vmem:[#allocation115_spill] sm:$0xff]  ;;  %v15952_v17 = vld [vmem:[#allocation100_spill] sm:$0xff] }
 0x7dd   :  { %5480 = vmatmul.mubr.bf16.gmra.mrb[132].mxu0 %v13852_v43  ;;  %v13900_v37 = vpack.c.bf16 %v15945_v6, %v15943_v40  ;;  %v15948_v26 = vmax.f32 %v15947_v55, 0.0  ;;  %v15953_v40 = vmax.f32 %v15952_v17, 0.0  ;;  %v15957_v55 = vld [vmem:[#allocation117_spill] sm:$0xff]  ;;  %v15962_v17 = vld [vmem:[#allocation102_spill] sm:$0xff] }
 0x7de   :  { %5932 = vmatmul.mubr.bf16.gmra.mrb[132].mxu1 %v13852_v43  ;;  %5555 = vmatpush1.bf16.msra.mxu0 %v5078_v2  ;;  %v5092_v2 = vld [vmem:[#allocation3 + $0x460] sm:$0xff] }
 0x7df   :  { %6007 = vmatpush1.bf16.msra.mxu1 %v5080_v30  ;;  %5556 = vmatprep.subr.bf16.mxu0 %v5086_v33  ;;  %v5094_v30 = vld [vmem:[#allocation3 + $0x470] sm:$0xff]  ;;  %v5100_v33 = vld [vmem:[#allocation3 + $0x4a0] sm:$0xff]  ;;  %15946 = vst [vmem:[#allocation152_spill] sm:$0xff] %v13900_v37  ;;  %v13906_v39 = vpack.c.bf16 %v15950_v47, %v15948_v26  ;;  %v15958_v26 = vmax.f32 %v15957_v55, 0.0 }
 0x7e0   :  { %6008 = vmatprep.subr.bf16.mxu1 %v5088_v21  ;;  %5489 = vmatprep.mubr.bf16.mxu0 %v13858_v4  ;;  %v5102_v21 = vld [vmem:[#allocation3 + $0x4b0] sm:$0xff]  ;;  %v15967_v55 = vld [vmem:[#allocation119_spill] sm:$0xff] }
 0x7e1   :  { %5941 = vmatprep.mubr.bf16.mxu1 %v13858_v4  ;;  %15951 = vst [vmem:[#allocation154_spill] sm:$0xff] %v13906_v39  ;;  %v15954_v47 = vld [vmem:[#allocation101_spill] sm:$0xff] }
 0x7e2   :  { %5557 = vmatpush1.bf16.msra.mxu0 %v5085_v46  ;;  %v5099_v46 = vld [vmem:[#allocation3 + $0x498] sm:$0xff]  ;;  %v15955_v51 = vmax.f32 %v15954_v47, 0.0 }
 0x7e3   :  { %6009 = vmatpush1.bf16.msra.mxu1 %v5087_v38  ;;  %5558 = vmatprep.subr.bf16.mxu0 %v5093_v60  ;;  %v5101_v38 = vld [vmem:[#allocation3 + $0x4a8] sm:$0xff]  ;;  %v5107_v60 = vld [vmem:[#allocation3 + $0x4d8] sm:$0xff] }
 0x7e4   :  { %6010 = vmatprep.subr.bf16.mxu1 %v5095_v27  ;;  %v5109_v27 = vld [vmem:[#allocation3 + $0x4e8] sm:$0xff]  ;;  %v13916_v6 = vpack.c.bf16 %v15955_v51, %v15953_v40  ;;  %v15963_v40 = vmax.f32 %v15962_v17, 0.0 }
 0x7e5   :  { %5490 = vmatmul.mubr.bf16.gmra.mrb[136].mxu0 %v13868_v14  ;;  %v15972_v17 = vld [vmem:[#allocation104_spill] sm:$0xff] }
 0x7e6   :  { %5942 = vmatmul.mubr.bf16.gmra.mrb[136].mxu1 %v13868_v14  ;;  %5559 = vmatpush1.bf16.msra.mxu0 %v5092_v2  ;;  %v5106_v2 = vld [vmem:[#allocation3 + $0x4d0] sm:$0xff]  ;;  %15956 = vst [vmem:[#allocation87_spill] sm:$0xff] %v13916_v6 }
 0x7e7   :  { %6011 = vmatpush1.bf16.msra.mxu1 %v5094_v30  ;;  %5560 = vmatprep.subr.bf16.mxu0 %v5100_v33  ;;  %v5108_v30 = vld [vmem:[#allocation3 + $0x4e0] sm:$0xff]  ;;  %v5114_v33 = vld [vmem:[#allocation3 + $0x510] sm:$0xff] }
 0x7e8   :  { %6012 = vmatprep.subr.bf16.mxu1 %v5102_v21  ;;  %5499 = vmatprep.mubr.bf16.mxu0 %v13874_v48  ;;  %v5116_v21 = vld [vmem:[#allocation3 + $0x520] sm:$0xff] }
 0x7e9   :  { %5951 = vmatprep.mubr.bf16.mxu1 %v13874_v48 }
 0x7ea   :  { %5561 = vmatpush1.bf16.msra.mxu0 %v5099_v46  ;;  %v5113_v46 = vld [vmem:[#allocation3 + $0x508] sm:$0xff] }
 0x7eb   :  { %6013 = vmatpush1.bf16.msra.mxu1 %v5101_v38  ;;  %5562 = vmatprep.subr.bf16.mxu0 %v5107_v60  ;;  %v5115_v38 = vld [vmem:[#allocation3 + $0x518] sm:$0xff]  ;;  %v5121_v60 = vld [vmem:[#allocation3 + $0x548] sm:$0xff] }
 0x7ec   :  { %6014 = vmatprep.subr.bf16.mxu1 %v5109_v27  ;;  %v5123_v27 = vld [vmem:[#allocation3 + $0x558] sm:$0xff] }
 0x7ed   :  { %5500 = vmatmul.mubr.bf16.gmra.mrb[140].mxu0 %v13884_v62 }
 0x7ee   :  { %5952 = vmatmul.mubr.bf16.gmra.mrb[140].mxu1 %v13884_v62  ;;  %5563 = vmatpush1.bf16.msra.mxu0 %v5106_v2  ;;  %v5120_v2 = vld [vmem:[#allocation3 + $0x540] sm:$0xff] }
 0x7ef   :  { %6015 = vmatpush1.bf16.msra.mxu1 %v5108_v30  ;;  %5564 = vmatprep.subr.bf16.mxu0 %v5114_v33  ;;  %v5122_v30 = vld [vmem:[#allocation3 + $0x550] sm:$0xff]  ;;  %v5128_v33 = vld [vmem:[#allocation3 + $0x580] sm:$0xff] }
 0x7f0   :  { %6016 = vmatprep.subr.bf16.mxu1 %v5116_v21  ;;  %5509 = vmatprep.mubr.bf16.mxu0 %v13890_v59  ;;  %v5130_v21 = vld [vmem:[#allocation3 + $0x590] sm:$0xff] }
 0x7f1   :  { %5961 = vmatprep.mubr.bf16.mxu1 %v13890_v59 }
 0x7f2   :  { %5565 = vmatpush1.bf16.msra.mxu0 %v5113_v46  ;;  %v5127_v46 = vld [vmem:[#allocation3 + $0x578] sm:$0xff] }
 0x7f3   :  { %6017 = vmatpush1.bf16.msra.mxu1 %v5115_v38  ;;  %5566 = vmatprep.subr.bf16.mxu0 %v5121_v60  ;;  %v5129_v38 = vld [vmem:[#allocation3 + $0x588] sm:$0xff]  ;;  %v5135_v60 = vld [vmem:[#allocation3 + $0x5b8] sm:$0xff] }
 0x7f4   :  { %6018 = vmatprep.subr.bf16.mxu1 %v5123_v27  ;;  %v5137_v27 = vld [vmem:[#allocation3 + $0x5c8] sm:$0xff] }
 0x7f5   :  { %5510 = vmatmul.mubr.bf16.gmra.mrb[144].mxu0 %v13900_v37 }
 0x7f6   :  { %5962 = vmatmul.mubr.bf16.gmra.mrb[144].mxu1 %v13900_v37  ;;  %5567 = vmatpush1.bf16.msra.mxu0 %v5120_v2  ;;  %v5134_v2 = vld [vmem:[#allocation3 + $0x5b0] sm:$0xff] }
 0x7f7   :  { %6019 = vmatpush1.bf16.msra.mxu1 %v5122_v30  ;;  %5568 = vmatprep.subr.bf16.mxu0 %v5128_v33  ;;  %v5136_v30 = vld [vmem:[#allocation3 + $0x5c0] sm:$0xff]  ;;  %v5142_v33 = vld [vmem:[#allocation3 + $0x5f0] sm:$0xff] }
 0x7f8   :  { %6020 = vmatprep.subr.bf16.mxu1 %v5130_v21  ;;  %5519 = vmatprep.mubr.bf16.mxu0 %v13906_v39  ;;  %v5144_v21 = vld [vmem:[#allocation3 + $0x600] sm:$0xff] }
 0x7f9   :  { %5971 = vmatprep.mubr.bf16.mxu1 %v13906_v39  ;;  %v15960_v39 = vmax.f32 %v15959_v5, 0.0  ;;  %v15969_v5 = vld [vmem:[#allocation120_spill] sm:$0xff] }
 0x7fa   :  { %5569 = vmatpush1.bf16.msra.mxu0 %v5127_v46  ;;  %v5141_v46 = vld [vmem:[#allocation3 + $0x5e8] sm:$0xff] }
 0x7fb   :  { %6021 = vmatpush1.bf16.msra.mxu1 %v5129_v38  ;;  %5570 = vmatprep.subr.bf16.mxu0 %v5135_v60  ;;  %v13922_v37 = vpack.c.bf16 %v15960_v39, %v15958_v26  ;;  %v5143_v38 = vld [vmem:[#allocation3 + $0x5f8] sm:$0xff]  ;;  %v5149_v60 = vld [vmem:[#allocation3 + $0x628] sm:$0xff]  ;;  %v15968_v26 = vmax.f32 %v15967_v55, 0.0 }
 0x7fc   :  { %6022 = vmatprep.subr.bf16.mxu1 %v5137_v27  ;;  %v5151_v27 = vld [vmem:[#allocation3 + $0x638] sm:$0xff]  ;;  %v15964_v39 = vld [vmem:[#allocation103_spill] sm:$0xff] }
 0x7fd   :  { %15961 = vst [vmem:[#allocation79_spill] sm:$0xff] %v13922_v37  ;;  %5520 = vmatmul.mubr.bf16.gmra.mrb[148].mxu0 %v13916_v6  ;;  %v15965_v47 = vmax.f32 %v15964_v39, 0.0  ;;  %v15977_v55 = vld [vmem:[#allocation121_spill] sm:$0xff] }
 0x7fe   :  { %5972 = vmatmul.mubr.bf16.gmra.mrb[148].mxu1 %v13916_v6  ;;  %5571 = vmatpush1.bf16.msra.mxu0 %v5134_v2  ;;  %v5148_v2 = vld [vmem:[#allocation3 + $0x620] sm:$0xff] }
 0x7ff   :  { %6023 = vmatpush1.bf16.msra.mxu1 %v5136_v30  ;;  %5572 = vmatprep.subr.bf16.mxu0 %v5142_v33  ;;  %v13932_v51 = vpack.c.bf16 %v15965_v47, %v15963_v40  ;;  %v5150_v30 = vld [vmem:[#allocation3 + $0x630] sm:$0xff]  ;;  %v5156_v33 = vld [vmem:[#allocation3 + $0x660] sm:$0xff]  ;;  %v15973_v40 = vmax.f32 %v15972_v17, 0.0 }
 0x800   :  { %6024 = vmatprep.subr.bf16.mxu1 %v5144_v21  ;;  %5529 = vmatprep.mubr.bf16.mxu0 %v13922_v37  ;;  %v5158_v21 = vld [vmem:[#allocation3 + $0x670] sm:$0xff]  ;;  %v15982_v17 = vld [vmem:[#allocation106_spill] sm:$0xff] }
 0x801   :  { %5981 = vmatprep.mubr.bf16.mxu1 %v13922_v37  ;;  %15966 = vst [vmem:[#allocation138_spill] sm:$0xff] %v13932_v51  ;;  %v15970_v37 = vmax.f32 %v15969_v5, 0.0  ;;  %v15979_v5 = vld [vmem:[#allocation122_spill] sm:$0xff] }
 0x802   :  { %5573 = vmatpush1.bf16.msra.mxu0 %v5141_v46  ;;  %v5155_v46 = vld [vmem:[#allocation3 + $0x658] sm:$0xff] }
 0x803   :  { %6025 = vmatpush1.bf16.msra.mxu1 %v5143_v38  ;;  %5574 = vmatprep.subr.bf16.mxu0 %v5149_v60  ;;  %v13938_v6 = vpack.c.bf16 %v15970_v37, %v15968_v26  ;;  %v5157_v38 = vld [vmem:[#allocation3 + $0x668] sm:$0xff]  ;;  %v5163_v60 = vld [vmem:[#allocation3 + $0x698] sm:$0xff]  ;;  %v15978_v26 = vmax.f32 %v15977_v55, 0.0 }
 0x804   :  { %6026 = vmatprep.subr.bf16.mxu1 %v5151_v27  ;;  %v5165_v27 = vld [vmem:[#allocation3 + $0x6a8] sm:$0xff]  ;;  %v15974_v37 = vld [vmem:[#allocation105_spill] sm:$0xff] }
 0x805   :  { %15971 = vst [vmem:[#allocation73_spill] sm:$0xff] %v13938_v6  ;;  %5530 = vmatmul.mubr.bf16.gmra.mrb[152].mxu0 %v13932_v51  ;;  %v15975_v39 = vmax.f32 %v15974_v37, 0.0  ;;  %v15987_v55 = vld [vmem:[#allocation123_spill] sm:$0xff] }
 0x806   :  { %5982 = vmatmul.mubr.bf16.gmra.mrb[152].mxu1 %v13932_v51  ;;  %5575 = vmatpush1.bf16.msra.mxu0 %v5148_v2  ;;  %v5162_v2 = vld [vmem:[#allocation3 + $0x690] sm:$0xff] }
 0x807   :  { %6027 = vmatpush1.bf16.msra.mxu1 %v5150_v30  ;;  %5576 = vmatprep.subr.bf16.mxu0 %v5156_v33  ;;  %v13948_v47 = vpack.c.bf16 %v15975_v39, %v15973_v40  ;;  %v5164_v30 = vld [vmem:[#allocation3 + $0x6a0] sm:$0xff]  ;;  %v5170_v33 = vld [vmem:[#allocation3 + $0x6d0] sm:$0xff]  ;;  %v15983_v40 = vmax.f32 %v15982_v17, 0.0 }
 0x808   :  { %6028 = vmatprep.subr.bf16.mxu1 %v5158_v21  ;;  %5539 = vmatprep.mubr.bf16.mxu0 %v13938_v6  ;;  %v5172_v21 = vld [vmem:[#allocation3 + $0x6e0] sm:$0xff] }
 0x809   :  { %5991 = vmatprep.mubr.bf16.mxu1 %v13938_v6  ;;  %15976 = vst [vmem:[#allocation60_spill] sm:$0xff] %v13948_v47  ;;  %v15980_v6 = vmax.f32 %v15979_v5, 0.0  ;;  %v15989_v5 = vld [vmem:[#allocation124_spill] sm:$0xff]  ;;  %v15992_v17 = vld [vmem:[#allocation70_spill] sm:$0xff] }
 0x80a   :  { %5577 = vmatpush1.bf16.msra.mxu0 %v5155_v46  ;;  %v5169_v46 = vld [vmem:[#allocation3 + $0x6c8] sm:$0xff] }
 0x80b   :  { %6029 = vmatpush1.bf16.msra.mxu1 %v5157_v38  ;;  %5578 = vmatprep.subr.bf16.mxu0 %v5163_v60  ;;  %v13954_v51 = vpack.c.bf16 %v15980_v6, %v15978_v26  ;;  %v5171_v38 = vld [vmem:[#allocation3 + $0x6d8] sm:$0xff]  ;;  %v5177_v60 = vld [vmem:[#allocation3 + $0x708] sm:$0xff]  ;;  %v15988_v26 = vmax.f32 %v15987_v55, 0.0 }
 0x80c   :  { %6030 = vmatprep.subr.bf16.mxu1 %v5165_v27  ;;  %v5179_v27 = vld [vmem:[#allocation3 + $0x718] sm:$0xff]  ;;  %v15984_v6 = vld [vmem:[#allocation107_spill] sm:$0xff] }
 0x80d   :  { %15981 = vst [vmem:[#allocation137_spill] sm:$0xff] %v13954_v51  ;;  %5540 = vmatmul.mubr.bf16.gmra.mrb[156].mxu0 %v13948_v47  ;;  %v15985_v37 = vmax.f32 %v15984_v6, 0.0  ;;  %v15997_v55 = vld [vmem:[#allocation125_spill] sm:$0xff] }
 0x80e   :  { %5992 = vmatmul.mubr.bf16.gmra.mrb[156].mxu1 %v13948_v47  ;;  %5579 = vmatpush1.bf16.msra.mxu0 %v5162_v2  ;;  %v5176_v2 = vld [vmem:[#allocation3 + $0x700] sm:$0xff] }
 0x80f   :  { %6031 = vmatpush1.bf16.msra.mxu1 %v5164_v30  ;;  %5580 = vmatprep.subr.bf16.mxu0 %v5170_v33  ;;  %v13964_v39 = vpack.c.bf16 %v15985_v37, %v15983_v40  ;;  %v5178_v30 = vld [vmem:[#allocation3 + $0x710] sm:$0xff]  ;;  %v5184_v33 = vld [vmem:[#allocation3 + $0x740] sm:$0xff]  ;;  %v15993_v40 = vmax.f32 %v15992_v17, 0.0 }
 0x810   :  { %6032 = vmatprep.subr.bf16.mxu1 %v5172_v21  ;;  %5582 = vmatprep.mubr.bf16.mxu0 %v13954_v51  ;;  %v5186_v21 = vld [vmem:[#allocation3 + $0x750] sm:$0xff]  ;;  %v16002_v17 = vld [vmem:[#allocation50_spill] sm:$0xff] }
 0x811   :  { %6034 = vmatprep.mubr.bf16.mxu1 %v13954_v51  ;;  %15986 = vst [vmem:[#allocation52_spill] sm:$0xff] %v13964_v39  ;;  %v15990_v51 = vmax.f32 %v15989_v5, 0.0  ;;  %v15999_v5 = vld [vmem:[#allocation126_spill] sm:$0xff] }
 0x812   :  { %5581 = vmatpush1.bf16.msra.mxu0 %v5169_v46  ;;  %v5183_v46 = vld [vmem:[#allocation3 + $0x738] sm:$0xff] }
 0x813   :  { %6033 = vmatpush1.bf16.msra.mxu1 %v5171_v38  ;;  %5663 = vmatprep.subr.bf16.mxu0 %v5177_v60  ;;  %v13970_v47 = vpack.c.bf16 %v15990_v51, %v15988_v26  ;;  %v5185_v38 = vld [vmem:[#allocation3 + $0x748] sm:$0xff]  ;;  %v5191_v60 = vld [vmem:[#allocation3 + $0x778] sm:$0xff]  ;;  %v15998_v26 = vmax.f32 %v15997_v55, 0.0 }
 0x814   :  { %6115 = vmatprep.subr.bf16.mxu1 %v5179_v27  ;;  %v5193_v27 = vld [vmem:[#allocation3 + $0x788] sm:$0xff] }
 0x815   :  { %15991 = vst [vmem:[#allocation81_spill] sm:$0xff] %v13970_v47  ;;  %5583 = vmatmul.mubr.bf16.vlgmr.msra.gmra.mrb[128].mxu0 %v13964_v39  ;;  %v15994_v51 = vld [vmem:[#allocation76_spill] sm:$0xff]  ;;  %v16007_v55 = vld [vmem:[#allocation127_spill] sm:$0xff] }
 0x816   :  { %6035 = vmatmul.mubr.bf16.vlgmr.msra.gmra.mrb[128].mxu1 %v13964_v39  ;;  %5664 = vmatpush1.bf16.msra.mxu0 %v5176_v2  ;;  %v15995_v6 = vmax.f32 %v15994_v51, 0.0  ;;  %v5190_v2 = vld [vmem:[#allocation3 + $0x770] sm:$0xff] }
 0x817   :  { %6116 = vmatpush1.bf16.msra.mxu1 %v5178_v30  ;;  %5665 = vmatprep.subr.bf16.mxu0 %v5184_v33  ;;  %v5192_v30 = vld [vmem:[#allocation3 + $0x780] sm:$0xff]  ;;  %v5198_v33 = vld [vmem:[#allocation3 + $0x7b0] sm:$0xff] }
 0x818   :  { %6117 = vmatprep.subr.bf16.mxu1 %v5186_v21  ;;  %5592 = vmatprep.mubr.bf16.mxu0 %v13970_v47  ;;  %v13980_v37 = vpack.c.bf16 %v15995_v6, %v15993_v40  ;;  %v5200_v21 = vld [vmem:[#allocation3 + $0x7c0] sm:$0xff]  ;;  %v16003_v40 = vmax.f32 %v16002_v17, 0.0 }
 0x819   :  { %6044 = vmatprep.mubr.bf16.mxu1 %v13970_v47  ;;  %v16000_v47 = vmax.f32 %v15999_v5, 0.0  ;;  %v16009_v5 = vld [vmem:[#allocation128_spill] sm:$0xff]  ;;  %v16012_v17 = vld [vmem:[#allocation55_spill] sm:$0xff] }
 0x81a   :  { %15996 = vst [vmem:[#allocation75_spill] sm:$0xff] %v13980_v37  ;;  %5666 = vmatpush1.bf16.msra.mxu0 %v5183_v46  ;;  %v5197_v46 = vld [vmem:[#allocation3 + $0x7a8] sm:$0xff] }
 0x81b   :  { %6118 = vmatpush1.bf16.msra.mxu1 %v5185_v38  ;;  %5667 = vmatprep.subr.bf16.mxu0 %v5191_v60  ;;  %v13986_v39 = vpack.c.bf16 %v16000_v47, %v15998_v26  ;;  %v5199_v38 = vld [vmem:[#allocation3 + $0x7b8] sm:$0xff]  ;;  %v5205_v60 = vld [vmem:[#allocation3 + $0x7e8] sm:$0xff]  ;;  %v16008_v26 = vmax.f32 %v16007_v55, 0.0 }
 0x81c   :  { %6119 = vmatprep.subr.bf16.mxu1 %v5193_v27  ;;  %v5207_v27 = vld [vmem:[#allocation3 + $0x7f8] sm:$0xff]  ;;  %v16004_v47 = vld [vmem:[#allocation51_spill] sm:$0xff] }
 0x81d   :  { %16001 = vst [vmem:[#allocation78_spill] sm:$0xff] %v13986_v39  ;;  %5593 = vmatmul.mubr.bf16.gmra.mrb[132].mxu0 %v13980_v37  ;;  %v16005_v51 = vmax.f32 %v16004_v47, 0.0  ;;  %v16017_v55 = vld [vmem:[#allocation129_spill] sm:$0xff] }
 0x81e   :  { %6045 = vmatmul.mubr.bf16.gmra.mrb[132].mxu1 %v13980_v37  ;;  %5668 = vmatpush1.bf16.msra.mxu0 %v5190_v2  ;;  %v5204_v2 = vld [vmem:[#allocation3 + $0x7e0] sm:$0xff] }
 0x81f   :  { %6120 = vmatpush1.bf16.msra.mxu1 %v5192_v30  ;;  %5669 = vmatprep.subr.bf16.mxu0 %v5198_v33  ;;  %v13996_v6 = vpack.c.bf16 %v16005_v51, %v16003_v40  ;;  %v5206_v30 = vld [vmem:[#allocation3 + $0x7f0] sm:$0xff]  ;;  %v5212_v33 = vld [vmem:[#allocation3 + $0x820] sm:$0xff]  ;;  %v16013_v40 = vmax.f32 %v16012_v17, 0.0 }
 0x820   :  { %6121 = vmatprep.subr.bf16.mxu1 %v5200_v21  ;;  %5602 = vmatprep.mubr.bf16.mxu0 %v13986_v39  ;;  %v5214_v21 = vld [vmem:[#allocation3 + $0x830] sm:$0xff]  ;;  %v16022_v17 = vld [vmem:[#allocation63_spill] sm:$0xff] }
 0x821   :  { %6054 = vmatprep.mubr.bf16.mxu1 %v13986_v39  ;;  %16006 = vst [vmem:[#allocation142_spill] sm:$0xff] %v13996_v6  ;;  %v16010_v39 = vmax.f32 %v16009_v5, 0.0  ;;  %v16019_v5 = vld [vmem:[#allocation130_spill] sm:$0xff] }
 0x822   :  { %5670 = vmatpush1.bf16.msra.mxu0 %v5197_v46  ;;  %v5211_v46 = vld [vmem:[#allocation3 + $0x818] sm:$0xff] }
 0x823   :  { %6122 = vmatpush1.bf16.msra.mxu1 %v5199_v38  ;;  %5671 = vmatprep.subr.bf16.mxu0 %v5205_v60  ;;  %v14002_v37 = vpack.c.bf16 %v16010_v39, %v16008_v26  ;;  %v5213_v38 = vld [vmem:[#allocation3 + $0x828] sm:$0xff]  ;;  %v5219_v60 = vld [vmem:[#allocation3 + $0x858] sm:$0xff]  ;;  %v16018_v26 = vmax.f32 %v16017_v55, 0.0 }
 0x824   :  { %6123 = vmatprep.subr.bf16.mxu1 %v5207_v27  ;;  %v5221_v27 = vld [vmem:[#allocation3 + $0x868] sm:$0xff] }
 0x825   :  { %16011 = vst [vmem:[#allocation144_spill] sm:$0xff] %v14002_v37  ;;  %5603 = vmatmul.mubr.bf16.gmra.mrb[136].mxu0 %v13996_v6  ;;  %v16014_v39 = vld [vmem:[#allocation59_spill] sm:$0xff] }
 0x826   :  { %6055 = vmatmul.mubr.bf16.gmra.mrb[136].mxu1 %v13996_v6  ;;  %5672 = vmatpush1.bf16.msra.mxu0 %v5204_v2  ;;  %v16015_v47 = vmax.f32 %v16014_v39, 0.0  ;;  %v5218_v2 = vld [vmem:[#allocation3 + $0x850] sm:$0xff]  ;;  %v16027_v55 = vld [vmem:[#allocation131_spill] sm:$0xff] }
 0x827   :  { %6124 = vmatpush1.bf16.msra.mxu1 %v5206_v30  ;;  %5673 = vmatprep.subr.bf16.mxu0 %v5212_v33  ;;  %v5220_v30 = vld [vmem:[#allocation3 + $0x860] sm:$0xff]  ;;  %v5226_v33 = vld [vmem:[#allocation3 + $0x890] sm:$0xff] }
 0x828   :  { %6125 = vmatprep.subr.bf16.mxu1 %v5214_v21  ;;  %5612 = vmatprep.mubr.bf16.mxu0 %v14002_v37  ;;  %v14012_v51 = vpack.c.bf16 %v16015_v47, %v16013_v40  ;;  %v5228_v21 = vld [vmem:[#allocation3 + $0x8a0] sm:$0xff]  ;;  %v16023_v40 = vmax.f32 %v16022_v17, 0.0 }
 0x829   :  { %6064 = vmatprep.mubr.bf16.mxu1 %v14002_v37  ;;  %v16020_v37 = vmax.f32 %v16019_v5, 0.0  ;;  %v16029_v5 = vld [vmem:[#allocation132_spill] sm:$0xff]  ;;  %v16032_v17 = vld [vmem:[#allocation71_spill] sm:$0xff] }
 0x82a   :  { %16016 = vst [vmem:[#allocation146_spill] sm:$0xff] %v14012_v51  ;;  %5674 = vmatpush1.bf16.msra.mxu0 %v5211_v46  ;;  %v5225_v46 = vld [vmem:[#allocation3 + $0x888] sm:$0xff] }
 0x82b   :  { %6126 = vmatpush1.bf16.msra.mxu1 %v5213_v38  ;;  %5675 = vmatprep.subr.bf16.mxu0 %v5219_v60  ;;  %v14018_v6 = vpack.c.bf16 %v16020_v37, %v16018_v26  ;;  %v5227_v38 = vld [vmem:[#allocation3 + $0x898] sm:$0xff]  ;;  %v5233_v60 = vld [vmem:[#allocation3 + $0x8c8] sm:$0xff]  ;;  %v16028_v26 = vmax.f32 %v16027_v55, 0.0 }
 0x82c   :  { %6127 = vmatprep.subr.bf16.mxu1 %v5221_v27  ;;  %v5235_v27 = vld [vmem:[#allocation3 + $0x8d8] sm:$0xff]  ;;  %v16024_v37 = vld [vmem:[#allocation67_spill] sm:$0xff] }
 0x82d   :  { %16021 = vst [vmem:[#allocation147_spill] sm:$0xff] %v14018_v6  ;;  %5613 = vmatmul.mubr.bf16.gmra.mrb[140].mxu0 %v14012_v51  ;;  %v16025_v39 = vmax.f32 %v16024_v37, 0.0  ;;  %v16037_v55 = vld [vmem:[#allocation133_spill] sm:$0xff] }
 0x82e   :  { %6065 = vmatmul.mubr.bf16.gmra.mrb[140].mxu1 %v14012_v51  ;;  %5676 = vmatpush1.bf16.msra.mxu0 %v5218_v2  ;;  %v5232_v2 = vld [vmem:[#allocation3 + $0x8c0] sm:$0xff] }
 0x82f   :  { %6128 = vmatpush1.bf16.msra.mxu1 %v5220_v30  ;;  %5677 = vmatprep.subr.bf16.mxu0 %v5226_v33  ;;  %v14028_v47 = vpack.c.bf16 %v16025_v39, %v16023_v40  ;;  %v5234_v30 = vld [vmem:[#allocation3 + $0x8d0] sm:$0xff]  ;;  %v5240_v33 = vld [vmem:[#allocation3 + $0x900] sm:$0xff]  ;;  %v16033_v40 = vmax.f32 %v16032_v17, 0.0 }
 0x830   :  { %6129 = vmatprep.subr.bf16.mxu1 %v5228_v21  ;;  %5622 = vmatprep.mubr.bf16.mxu0 %v14018_v6  ;;  %v5242_v21 = vld [vmem:[#allocation3 + $0x910] sm:$0xff] }
 0x831   :  { %6074 = vmatprep.mubr.bf16.mxu1 %v14018_v6  ;;  %16026 = vst [vmem:[#allocation148_spill] sm:$0xff] %v14028_v47  ;;  %v16030_v6 = vmax.f32 %v16029_v5, 0.0  ;;  %v16039_v5 = vld [vmem:[#allocation134_spill] sm:$0xff]  ;;  %v16042_v17 = vld [vmem:[#allocation45_spill] sm:$0xff] }
 0x832   :  { %5678 = vmatpush1.bf16.msra.mxu0 %v5225_v46  ;;  %v5239_v46 = vld [vmem:[#allocation3 + $0x8f8] sm:$0xff] }
 0x833   :  { %6130 = vmatpush1.bf16.msra.mxu1 %v5227_v38  ;;  %5679 = vmatprep.subr.bf16.mxu0 %v5233_v60  ;;  %v14034_v51 = vpack.c.bf16 %v16030_v6, %v16028_v26  ;;  %v5241_v38 = vld [vmem:[#allocation3 + $0x908] sm:$0xff]  ;;  %v5247_v60 = vld [vmem:[#allocation3 + $0x938] sm:$0xff]  ;;  %v16038_v26 = vmax.f32 %v16037_v55, 0.0 }
 0x834   :  { %6131 = vmatprep.subr.bf16.mxu1 %v5235_v27  ;;  %v5249_v27 = vld [vmem:[#allocation3 + $0x948] sm:$0xff] }
 0x835   :  { %16031 = vst [vmem:[#allocation149_spill] sm:$0xff] %v14034_v51  ;;  %5623 = vmatmul.mubr.bf16.gmra.mrb[144].mxu0 %v14028_v47  ;;  %v16034_v6 = vld [vmem:[#allocation80_spill] sm:$0xff]  ;;  %v16046_v55 = vld [vmem:[#allocation135_spill] sm:$0xff] }
 0x836   :  { %6075 = vmatmul.mubr.bf16.gmra.mrb[144].mxu1 %v14028_v47  ;;  %5680 = vmatpush1.bf16.msra.mxu0 %v5232_v2  ;;  %v16035_v37 = vmax.f32 %v16034_v6, 0.0  ;;  %v5246_v2 = vld [vmem:[#allocation3 + $0x930] sm:$0xff] }
 0x837   :  { %6132 = vmatpush1.bf16.msra.mxu1 %v5234_v30  ;;  %5681 = vmatprep.subr.bf16.mxu0 %v5240_v33  ;;  %v5248_v30 = vld [vmem:[#allocation3 + $0x940] sm:$0xff]  ;;  %v5254_v33 = vld [vmem:[#allocation3 + $0x970] sm:$0xff] }
 0x838   :  { %6133 = vmatprep.subr.bf16.mxu1 %v5242_v21  ;;  %5632 = vmatprep.mubr.bf16.mxu0 %v14034_v51  ;;  %v14044_v39 = vpack.c.bf16 %v16035_v37, %v16033_v40  ;;  %v5256_v21 = vld [vmem:[#allocation3 + $0x980] sm:$0xff]  ;;  %v16043_v40 = vmax.f32 %v16042_v17, 0.0 }
 0x839   :  { %6084 = vmatprep.mubr.bf16.mxu1 %v14034_v51  ;;  %v16040_v51 = vmax.f32 %v16039_v5, 0.0  ;;  %v16048_v5 = vld [vmem:[#allocation136_spill] sm:$0xff]  ;;  %v16050_v17 = vld [vmem:[#allocation86_spill] sm:$0xff] }
 0x83a   :  { %16036 = vst [vmem:[#allocation150_spill] sm:$0xff] %v14044_v39  ;;  %5682 = vmatpush1.bf16.msra.mxu0 %v5239_v46  ;;  %v5253_v46 = vld [vmem:[#allocation3 + $0x968] sm:$0xff] }
 0x83b   :  { %6134 = vmatpush1.bf16.msra.mxu1 %v5241_v38  ;;  %5683 = vmatprep.subr.bf16.mxu0 %v5247_v60  ;;  %v14050_v47 = vpack.c.bf16 %v16040_v51, %v16038_v26  ;;  %v5255_v38 = vld [vmem:[#allocation3 + $0x978] sm:$0xff]  ;;  %v5261_v60 = vld [vmem:[#allocation3 + $0x9a8] sm:$0xff]  ;;  %v16047_v26 = vmax.f32 %v16046_v55, 0.0  ;;  %v16054_v55 = vmax.f32 %v13648_v34, 0.0 }
 0x83c   :  { %6135 = vmatprep.subr.bf16.mxu1 %v5249_v27  ;;  %v5263_v27 = vld [vmem:[#allocation3 + $0x9b8] sm:$0xff]  ;;  %v16044_v51 = vld [vmem:[#allocation84_spill] sm:$0xff] }
 0x83d   :  { %16041 = vst [vmem:[#allocation151_spill] sm:$0xff] %v14050_v47  ;;  %5633 = vmatmul.mubr.bf16.gmra.mrb[148].mxu0 %v14044_v39  ;;  %v16045_v6 = vmax.f32 %v16044_v51, 0.0  ;;  %v5291_v34 = vld [vmem:[#allocation3 + $0xa98] sm:$0xff] }
 0x83e   :  { %6085 = vmatmul.mubr.bf16.gmra.mrb[148].mxu1 %v14044_v39  ;;  %5684 = vmatpush1.bf16.msra.mxu0 %v5246_v2  ;;  %v5260_v2 = vld [vmem:[#allocation3 + $0x9a0] sm:$0xff] }
 0x83f   :  { %6136 = vmatpush1.bf16.msra.mxu1 %v5248_v30  ;;  %5685 = vmatprep.subr.bf16.mxu0 %v5254_v33  ;;  %v14060_v37 = vpack.c.bf16 %v16045_v6, %v16043_v40  ;;  %v5262_v30 = vld [vmem:[#allocation3 + $0x9b0] sm:$0xff]  ;;  %v5268_v33 = vld [vmem:[#allocation3 + $0x9e0] sm:$0xff]  ;;  %v16051_v40 = vmax.f32 %v16050_v17, 0.0 }
 0x840   :  { %6137 = vmatprep.subr.bf16.mxu1 %v5256_v21  ;;  %5642 = vmatprep.mubr.bf16.mxu0 %v14050_v47  ;;  %v5270_v21 = vld [vmem:[#allocation3 + $0x9f0] sm:$0xff] }
 0x841   :  { %6094 = vmatprep.mubr.bf16.mxu1 %v14050_v47  ;;  %v16049_v47 = vmax.f32 %v16048_v5, 0.0 }
 0x842   :  { %5686 = vmatpush1.bf16.msra.mxu0 %v5253_v46  ;;  %v5267_v46 = vld [vmem:[#allocation3 + $0x9d8] sm:$0xff] }
 0x843   :  { %6138 = vmatpush1.bf16.msra.mxu1 %v5255_v38  ;;  %5687 = vmatprep.subr.bf16.mxu0 %v5261_v60  ;;  %v14066_v39 = vpack.c.bf16 %v16049_v47, %v16047_v26  ;;  %v5269_v38 = vld [vmem:[#allocation3 + $0x9e8] sm:$0xff]  ;;  %v5275_v60 = vld [vmem:[#allocation3 + $0xa18] sm:$0xff]  ;;  %v16055_v26 = vmax.f32 %v13650_v56, 0.0  ;;  %v16056_v56 = vmax.f32 %v13366_v12, 0.0 }
 0x844   :  { %6139 = vmatprep.subr.bf16.mxu1 %v5263_v27  ;;  %v5277_v27 = vld [vmem:[#allocation3 + $0xa28] sm:$0xff]  ;;  %v5295_v12 = vld [vmem:[#allocation3 + $0xab8] sm:$0xff] }
 0x845   :  { %5643 = vmatmul.mubr.bf16.gmra.mrb[152].mxu0 %v14060_v37  ;;  %v16052_v47 = vld [vmem:[#allocation108_spill] sm:$0xff]  ;;  %v14082_v5 = vpack.c.bf16 %v16055_v26, %v16054_v55  ;;  %v5303_v55 = vld [vmem:[#allocation3 + $0xaf8] sm:$0xff]  ;;  %v16061_v26 = vmax.f32 %v13375_v53, 0.0 }
 0x846   :  { %6095 = vmatmul.mubr.bf16.gmra.mrb[152].mxu1 %v14060_v37  ;;  %5688 = vmatpush1.bf16.msra.mxu0 %v5260_v2  ;;  %v16053_v51 = vmax.f32 %v16052_v47, 0.0  ;;  %v5274_v2 = vld [vmem:[#allocation3 + $0xa10] sm:$0xff]  ;;  %v5311_v53 = vld [vmem:[#allocation3 + $0xb38] sm:$0xff] }
 0x847   :  { %6140 = vmatpush1.bf16.msra.mxu1 %v5262_v30  ;;  %5689 = vmatprep.subr.bf16.mxu0 %v5268_v33  ;;  %v5276_v30 = vld [vmem:[#allocation3 + $0xa20] sm:$0xff]  ;;  %v5282_v33 = vld [vmem:[#allocation3 + $0xa50] sm:$0xff] }
 0x848   :  { %6141 = vmatprep.subr.bf16.mxu1 %v5270_v21  ;;  %5652 = vmatprep.mubr.bf16.mxu0 %v14066_v39  ;;  %v14076_v6 = vpack.c.bf16 %v16053_v51, %v16051_v40  ;;  %v5284_v21 = vld [vmem:[#allocation3 + $0xa60] sm:$0xff]  ;;  %v5290_v47 = vld [vmem:[#allocation3 + $0xa90] sm:$0xff] }
 0x849   :  { %6104 = vmatprep.mubr.bf16.mxu1 %v14066_v39  ;;  %v5288_v40 = vld [vmem:[#allocation3 + $0xa80] sm:$0xff] }
 0x84a   :  { %5690 = vmatpush1.bf16.msra.mxu0 %v5267_v46  ;;  %v5281_v46 = vld [vmem:[#allocation3 + $0xa48] sm:$0xff]  ;;  %v5296_v51 = vld [vmem:[#allocation3 + $0xac0] sm:$0xff] }
 0x84b   :  { %6142 = vmatpush1.bf16.msra.mxu1 %v5269_v38  ;;  %5691 = vmatprep.subr.bf16.mxu0 %v5275_v60  ;;  %v5283_v38 = vld [vmem:[#allocation3 + $0xa58] sm:$0xff]  ;;  %v5289_v60 = vld [vmem:[#allocation3 + $0xa88] sm:$0xff] }
 0x84c   :  { %6143 = vmatprep.subr.bf16.mxu1 %v5277_v27  ;;  %v16057_v27 = vmax.f32 %v13369_v3, 0.0  ;;  %v5297_v3 = vld [vmem:[#allocation3 + $0xac8] sm:$0xff] }
 0x84d   :  { %5653 = vmatmul.mubr.bf16.gmra.mrb[156].mxu0 %v14076_v6 }
 0x84e   :  { %6105 = vmatmul.mubr.bf16.gmra.mrb[156].mxu1 %v14076_v6  ;;  %5692 = vmatpush1.bf16.msra.mxu0 %v5274_v2  ;;  %v14092_v17 = vpack.c.bf16 %v16057_v27, %v16056_v56  ;;  %v5298_v2 = vld [vmem:[#allocation3 + $0xad0] sm:$0xff]  ;;  %v5312_v56 = vld [vmem:[#allocation3 + $0xb40] sm:$0xff]  ;;  %v16062_v27 = vmax.f32 %v13656_v18, 0.0  ;;  %v5319_v18 = vld [vmem:[#allocation3 + $0xb78] sm:$0xff] }
 0x84f   :  { %6144 = vmatpush1.bf16.msra.mxu1 %v5276_v30  ;;  %5693 = vmatprep.subr.bf16.mxu0 %v5282_v33  ;;  %v16058_v30 = vmax.f32 %v13652_v32, 0.0  ;;  %v16059_v33 = vmax.f32 %v13654_v54, 0.0  ;;  %v5305_v32 = vld [vmem:[#allocation3 + $0xb08] sm:$0xff]  ;;  %v16060_v54 = vmax.f32 %v13372_v13, 0.0 }
 0x850   :  { %6145 = vmatprep.subr.bf16.mxu1 %v5284_v21  ;;  %5695 = vmatprep.mubr.bf16.mxu0 %v14082_v5  ;;  %v5309_v13 = vld [vmem:[#allocation3 + $0xb28] sm:$0xff] }
 0x851   :  { %6147 = vmatprep.mubr.bf16.mxu1 %v14082_v5  ;;  %v14098_v21 = vpack.c.bf16 %v16059_v33, %v16058_v30 }
 0x852   :  { %5694 = vmatpush1.bf16.msra.mxu0 %v5281_v46  ;;  %v14108_v46 = vpack.c.bf16 %v16061_v26, %v16060_v54  ;;  %v16067_v54 = vmax.f32 %v13660_v23, 0.0  ;;  %v16068_v26 = vmax.f32 %v13662_v49, 0.0  ;;  %v5333_v23 = vld [vmem:[#allocation3 + $0xbe8] sm:$0xff] }
 0x853   :  { %6146 = vmatpush1.bf16.msra.mxu1 %v5283_v38  ;;  %5776 = vmatprep.subr.bf16.mxu0 %v5289_v60  ;;  %v5302_v38 = vld [vmem:[#allocation3 + $0xaf0] sm:$0xff]  ;;  %v5304_v60 = vld [vmem:[#allocation3 + $0xb00] sm:$0xff] }
 0x854   :  { %6228 = vmatprep.subr.bf16.mxu1 %v5291_v34  ;;  %v5310_v34 = vld [vmem:[#allocation3 + $0xb30] sm:$0xff] }
 0x855   :  { %5696 = vmatmul.mubr.bf16.vlgmr.msra.gmra.mrb[128].mxu0 %v14092_v17 }
 0x856   :  { %6148 = vmatmul.mubr.bf16.vlgmr.msra.gmra.mrb[128].mxu1 %v14092_v17  ;;  %5777 = vmatpush1.bf16.msra.mxu0 %v5288_v40  ;;  %v16063_v40 = vmax.f32 %v13658_v20, 0.0  ;;  %v16064_v20 = vmax.f32 %v13378_v10, 0.0  ;;  %v5323_v10 = vld [vmem:[#allocation3 + $0xb98] sm:$0xff] }
 0x857   :  { %6229 = vmatpush1.bf16.msra.mxu1 %v5290_v47  ;;  %5778 = vmatprep.subr.bf16.mxu0 %v5296_v51  ;;  %v5317_v51 = vld [vmem:[#allocation3 + $0xb68] sm:$0xff] }
 0x858   :  { %6230 = vmatprep.subr.bf16.mxu1 %v5298_v2  ;;  %5705 = vmatprep.mubr.bf16.mxu0 %v14098_v21  ;;  %v14114_v47 = vpack.c.bf16 %v16063_v40, %v16062_v27  ;;  %v16065_v2 = vld [vmem:[#allocation65_spill] sm:$0xff]  ;;  %v16071_v27 = vld [vmem:[#allocation139_spill] sm:$0xff] }
 0x859   :  { %6157 = vmatprep.mubr.bf16.mxu1 %v14098_v21  ;;  %v16066_v30 = vmax.f32 %v16065_v2, 0.0  ;;  %v16072_v40 = vmax.f32 %v16071_v27, 0.0  ;;  %v16073_v2 = vmax.f32 %v13664_v57, 0.0  ;;  %v5347_v57 = vld [vmem:[#allocation3 + $0xc58] sm:$0xff]  ;;  %v16079_v27 = vmax.f32 %v13668_v58, 0.0  ;;  %v5361_v58 = vld [vmem:[#allocation3 + $0xcc8] sm:$0xff] }
 0x85a   :  { %5779 = vmatpush1.bf16.msra.mxu0 %v5295_v12  ;;  %v5316_v12 = vld [vmem:[#allocation3 + $0xb60] sm:$0xff] }
 0x85b   :  { %6231 = vmatpush1.bf16.msra.mxu1 %v5297_v3  ;;  %5780 = vmatprep.subr.bf16.mxu0 %v5303_v55  ;;  %v14124_v33 = vpack.c.bf16 %v16066_v30, %v16064_v20  ;;  %v5318_v3 = vld [vmem:[#allocation3 + $0xb70] sm:$0xff]  ;;  %v5324_v55 = vld [vmem:[#allocation3 + $0xba0] sm:$0xff]  ;;  %v16074_v30 = vmax.f32 %v13666_v24, 0.0 }
 0x85c   :  { %6232 = vmatprep.subr.bf16.mxu1 %v5305_v32  ;;  %v5326_v32 = vld [vmem:[#allocation3 + $0xbb0] sm:$0xff]  ;;  %v5340_v20 = vld [vmem:[#allocation3 + $0xc20] sm:$0xff] }
 0x85d   :  { %5706 = vmatmul.mubr.bf16.gmra.mrb[132].mxu0 %v14108_v46 }
 0x85e   :  { %6158 = vmatmul.mubr.bf16.gmra.mrb[132].mxu1 %v14108_v46  ;;  %5781 = vmatpush1.bf16.msra.mxu0 %v5302_v38  ;;  %v14130_v38 = vpack.c.bf16 %v16068_v26, %v16067_v54  ;;  %v16075_v54 = vld [vmem:[#allocation77_spill] sm:$0xff] }
 0x85f   :  { %6233 = vmatpush1.bf16.msra.mxu1 %v5304_v60  ;;  %5782 = vmatprep.subr.bf16.mxu0 %v5310_v34  ;;  %v5325_v60 = vld [vmem:[#allocation3 + $0xba8] sm:$0xff]  ;;  %v5331_v34 = vld [vmem:[#allocation3 + $0xbd8] sm:$0xff]  ;;  %v16076_v24 = vmax.f32 %v16075_v54, 0.0  ;;  %v5366_v54 = vld [vmem:[#allocation3 + $0xcf0] sm:$0xff] }
 0x860   :  { %6234 = vmatprep.subr.bf16.mxu1 %v5312_v56  ;;  %5715 = vmatprep.mubr.bf16.mxu0 %v14114_v47  ;;  %v16069_v56 = vld [vmem:[#allocation64_spill] sm:$0xff]  ;;  %v16077_v26 = vld [vmem:[#allocation109_spill] sm:$0xff] }
 0x861   :  { %6167 = vmatprep.mubr.bf16.mxu1 %v14114_v47  ;;  %v16070_v49 = vmax.f32 %v16069_v56, 0.0  ;;  %v5352_v56 = vld [vmem:[#allocation3 + $0xc80] sm:$0xff] }
 0x862   :  { %5783 = vmatpush1.bf16.msra.mxu0 %v5309_v13 }
 0x863   :  { %6235 = vmatpush1.bf16.msra.mxu1 %v5311_v53  ;;  %5784 = vmatprep.subr.bf16.mxu0 %v5317_v51  ;;  %v14140_v13 = vpack.c.bf16 %v16072_v40, %v16070_v49  ;;  %v5330_v53 = vld [vmem:[#allocation3 + $0xbd0] sm:$0xff]  ;;  %v5332_v51 = vld [vmem:[#allocation3 + $0xbe0] sm:$0xff]  ;;  %v16080_v40 = vmax.f32 %v13670_v11, 0.0 }
 0x864   :  { %6236 = vmatprep.subr.bf16.mxu1 %v5319_v18  ;;  %v5338_v18 = vld [vmem:[#allocation3 + $0xc10] sm:$0xff] }
 0x865   :  { %5716 = vmatmul.mubr.bf16.gmra.mrb[136].mxu0 %v14124_v33  ;;  %v5354_v49 = vld [vmem:[#allocation3 + $0xc90] sm:$0xff] }
 0x866   :  { %6168 = vmatmul.mubr.bf16.gmra.mrb[136].mxu1 %v14124_v33  ;;  %5785 = vmatpush1.bf16.msra.mxu0 %v5316_v12  ;;  %v14146_v12 = vpack.c.bf16 %v16074_v30, %v16073_v2  ;;  %v16081_v2 = vld [vmem:[#allocation83_spill] sm:$0xff]  ;;  %v16083_v30 = vld [vmem:[#allocation156_spill] sm:$0xff] }
 0x867   :  { %6237 = vmatpush1.bf16.msra.mxu1 %v5318_v3  ;;  %5786 = vmatprep.subr.bf16.mxu0 %v5324_v55  ;;  %v5337_v3 = vld [vmem:[#allocation3 + $0xc08] sm:$0xff]  ;;  %v5339_v55 = vld [vmem:[#allocation3 + $0xc18] sm:$0xff]  ;;  %v16082_v11 = vmax.f32 %v16081_v2, 0.0  ;;  %v5380_v2 = vld [vmem:[#allocation3 + $0xd60] sm:$0xff] }
 0x868   :  { %6238 = vmatprep.subr.bf16.mxu1 %v5326_v32  ;;  %5725 = vmatprep.mubr.bf16.mxu0 %v14130_v38  ;;  %v5345_v32 = vld [vmem:[#allocation3 + $0xc48] sm:$0xff] }
 0x869   :  { %6177 = vmatprep.mubr.bf16.mxu1 %v14130_v38 }
 0x86a   :  { %5787 = vmatpush1.bf16.msra.mxu0 %v5323_v10  ;;  %v16078_v10 = vmax.f32 %v16077_v26, 0.0  ;;  %v16085_v26 = vmax.f32 %v13672_v9, 0.0  ;;  %v5375_v9 = vld [vmem:[#allocation3 + $0xd38] sm:$0xff] }
 0x86b   :  { %6239 = vmatpush1.bf16.msra.mxu1 %v5325_v60  ;;  %5788 = vmatprep.subr.bf16.mxu0 %v5331_v34  ;;  %v5344_v34 = vld [vmem:[#allocation3 + $0xc40] sm:$0xff] }
 0x86c   :  { %6240 = vmatprep.subr.bf16.mxu1 %v5333_v23  ;;  %v14156_v60 = vpack.c.bf16 %v16078_v10, %v16076_v24  ;;  %v5346_v23 = vld [vmem:[#allocation3 + $0xc50] sm:$0xff]  ;;  %v5368_v24 = vld [vmem:[#allocation3 + $0xd00] sm:$0xff]  ;;  %v16086_v10 = vmax.f32 %v13674_v61, 0.0 }
 0x86d   :  { %5726 = vmatmul.mubr.bf16.gmra.mrb[140].mxu0 %v14140_v13 }
 0x86e   :  { %6178 = vmatmul.mubr.bf16.gmra.mrb[140].mxu1 %v14140_v13  ;;  %5789 = vmatpush1.bf16.msra.mxu0 %v5330_v53  ;;  %v14162_v53 = vpack.c.bf16 %v16080_v40, %v16079_v27  ;;  %v16087_v27 = vld [vmem:[#allocation157_spill] sm:$0xff]  ;;  %v16089_v40 = vld [vmem:[#allocation158_spill] sm:$0xff] }
 0x86f   :  { %6241 = vmatpush1.bf16.msra.mxu1 %v5332_v51  ;;  %5790 = vmatprep.subr.bf16.mxu0 %v5338_v18  ;;  %v5351_v51 = vld [vmem:[#allocation3 + $0xc78] sm:$0xff]  ;;  %v5353_v18 = vld [vmem:[#allocation3 + $0xc88] sm:$0xff]  ;;  %v16088_v61 = vmax.f32 %v16087_v27, 0.0  ;;  %v5394_v27 = vld [vmem:[#allocation3 + $0xdd0] sm:$0xff] }
 0x870   :  { %6242 = vmatprep.subr.bf16.mxu1 %v5340_v20  ;;  %5735 = vmatprep.mubr.bf16.mxu0 %v14146_v12  ;;  %v5359_v20 = vld [vmem:[#allocation3 + $0xcb8] sm:$0xff] }
 0x871   :  { %6187 = vmatprep.mubr.bf16.mxu1 %v14146_v12 }
 0x872   :  { %5791 = vmatpush1.bf16.msra.mxu0 %v5337_v3  ;;  %v16084_v3 = vmax.f32 %v16083_v30, 0.0  ;;  %v16091_v30 = vmax.f32 %v13676_v63, 0.0  ;;  %v5389_v63 = vld [vmem:[#allocation3 + $0xda8] sm:$0xff] }
 0x873   :  { %6243 = vmatpush1.bf16.msra.mxu1 %v5339_v55  ;;  %5792 = vmatprep.subr.bf16.mxu0 %v5345_v32  ;;  %v5358_v32 = vld [vmem:[#allocation3 + $0xcb0] sm:$0xff] }
 0x874   :  { %6244 = vmatprep.subr.bf16.mxu1 %v5347_v57  ;;  %v14172_v55 = vpack.c.bf16 %v16084_v3, %v16082_v11  ;;  %v5360_v57 = vld [vmem:[#allocation3 + $0xcc0] sm:$0xff]  ;;  %v5382_v11 = vld [vmem:[#allocation3 + $0xd70] sm:$0xff]  ;;  %v16092_v3 = vmax.f32 %v13678_v1, 0.0 }
 0x875   :  { %5736 = vmatmul.mubr.bf16.gmra.mrb[144].mxu0 %v14156_v60 }
 0x876   :  { %6188 = vmatmul.mubr.bf16.gmra.mrb[144].mxu1 %v14156_v60  ;;  %5793 = vmatpush1.bf16.msra.mxu0 %v5344_v34  ;;  %v14178_v34 = vpack.c.bf16 %v16086_v10, %v16085_v26  ;;  %v16093_v26 = vld [vmem:[#allocation159_spill] sm:$0xff]  ;;  %v16095_v10 = vld [vmem:[#allocation160_spill] sm:$0xff] }
 0x877   :  { %6245 = vmatpush1.bf16.msra.mxu1 %v5346_v23  ;;  %5794 = vmatprep.subr.bf16.mxu0 %v5352_v56  ;;  %v5365_v23 = vld [vmem:[#allocation3 + $0xce8] sm:$0xff]  ;;  %v5367_v56 = vld [vmem:[#allocation3 + $0xcf8] sm:$0xff]  ;;  %v16094_v1 = vmax.f32 %v16093_v26, 0.0  ;;  %v16103_v26 = vmax.f32 %v13767_v45, 0.0 }
 0x878   :  { %6246 = vmatprep.subr.bf16.mxu1 %v5354_v49  ;;  %5745 = vmatprep.mubr.bf16.mxu0 %v14162_v53  ;;  %v5373_v49 = vld [vmem:[#allocation3 + $0xd28] sm:$0xff]  ;;  %v4971_v45 = vld [vmem:[#allocation3 + $0x98] sm:$0xff] }
 0x879   :  { %6197 = vmatprep.mubr.bf16.mxu1 %v14162_v53 }
 0x87a   :  { %5795 = vmatpush1.bf16.msra.mxu0 %v5351_v51  ;;  %v16090_v51 = vmax.f32 %v16089_v40, 0.0  ;;  %v16097_v40 = vmax.f32 %v13761_v36, 0.0  ;;  %v5014_v36 = vld [vmem:[#allocation3 + $0x1f0] sm:$0xff] }
 0x87b   :  { %6247 = vmatpush1.bf16.msra.mxu1 %v5353_v18  ;;  %5796 = vmatprep.subr.bf16.mxu0 %v5359_v20  ;;  %v5372_v20 = vld [vmem:[#allocation3 + $0xd20] sm:$0xff] }
 0x87c   :  { %6248 = vmatprep.subr.bf16.mxu1 %v5361_v58  ;;  %v14188_v18 = vpack.c.bf16 %v16090_v51, %v16088_v61  ;;  %v5374_v58 = vld [vmem:[#allocation3 + $0xd30] sm:$0xff]  ;;  %v5396_v61 = vld [vmem:[#allocation3 + $0xde0] sm:$0xff]  ;;  %v16098_v51 = vmax.f32 %v13764_v16, 0.0 }
 0x87d   :  { %5746 = vmatmul.mubr.bf16.gmra.mrb[148].mxu0 %v14172_v55 }
 0x87e   :  { %6198 = vmatmul.mubr.bf16.gmra.mrb[148].mxu1 %v14172_v55  ;;  %5797 = vmatpush1.bf16.msra.mxu0 %v5358_v32  ;;  %v14194_v32 = vpack.c.bf16 %v16092_v3, %v16091_v30  ;;  %v16099_v30 = vld [vmem:[#allocation161_spill] sm:$0xff]  ;;  %v16101_v3 = vld [vmem:[#allocation162_spill] sm:$0xff] }
 0x87f   :  { %6249 = vmatpush1.bf16.msra.mxu1 %v5360_v57  ;;  %5798 = vmatprep.subr.bf16.mxu0 %v5366_v54  ;;  %v5379_v57 = vld [vmem:[#allocation3 + $0xd58] sm:$0xff]  ;;  %v5381_v54 = vld [vmem:[#allocation3 + $0xd68] sm:$0xff]  ;;  %v16100_v16 = vmax.f32 %v16099_v30, 0.0 }
 0x880   :  { %6250 = vmatprep.subr.bf16.mxu1 %v5368_v24  ;;  %5755 = vmatprep.mubr.bf16.mxu0 %v14178_v34  ;;  %v5387_v24 = vld [vmem:[#allocation3 + $0xd98] sm:$0xff] }
 0x881   :  { %6207 = vmatprep.mubr.bf16.mxu1 %v14178_v34 }
 0x882   :  { %5799 = vmatpush1.bf16.msra.mxu0 %v5365_v23  ;;  %v16096_v23 = vmax.f32 %v16095_v10, 0.0 }
 0x883   :  { %6251 = vmatpush1.bf16.msra.mxu1 %v5367_v56  ;;  %5800 = vmatprep.subr.bf16.mxu0 %v5373_v49  ;;  %v5386_v49 = vld [vmem:[#allocation3 + $0xd90] sm:$0xff] }
 0x884   :  { %6252 = vmatprep.subr.bf16.mxu1 %v5375_v9  ;;  %v14204_v56 = vpack.c.bf16 %v16096_v23, %v16094_v1  ;;  %v5388_v9 = vld [vmem:[#allocation3 + $0xda0] sm:$0xff]  ;;  %v16104_v1 = vmax.f32 %v13770_v35, 0.0 }
 0x885   :  { %5756 = vmatmul.mubr.bf16.gmra.mrb[152].mxu0 %v14188_v18  ;;  %v4964_v23 = vld [vmem:[#allocation3 + $0x60] sm:$0xff] }
 0x886   :  { %6208 = vmatmul.mubr.bf16.gmra.mrb[152].mxu1 %v14188_v18  ;;  %5801 = vmatpush1.bf16.msra.mxu0 %v5372_v20  ;;  %v14210_v20 = vpack.c.bf16 %v16098_v51, %v16097_v40  ;;  %v14226_v10 = vpack.c.bf16 %v16104_v1, %v16103_v26  ;;  %v5028_v35 = vld [vmem:[#allocation3 + $0x260] sm:$0xff]  ;;  %v16107_v51 = vld [vmem:[#allocation164_spill] sm:$0xff] }
 0x887   :  { %6253 = vmatpush1.bf16.msra.mxu1 %v5374_v58  ;;  %5802 = vmatprep.subr.bf16.mxu0 %v5380_v2  ;;  %v5393_v58 = vld [vmem:[#allocation3 + $0xdc8] sm:$0xff]  ;;  %v5395_v2 = vld [vmem:[#allocation3 + $0xdd8] sm:$0xff] }
 0x888   :  { %6254 = vmatprep.subr.bf16.mxu1 %v5382_v11  ;;  %5765 = vmatprep.mubr.bf16.mxu0 %v14194_v32  ;;  %v4957_v11 = vld [vmem:[#allocation3 + $0x28] sm:$0xff]  ;;  %v16113_v1 = vld [vmem:[#allocation166_spill] sm:$0xff] }
 0x889   :  { %6217 = vmatprep.mubr.bf16.mxu1 %v14194_v32 }
 0x88a   :  { %5803 = vmatpush1.bf16.msra.mxu0 %v5379_v57  ;;  %v16102_v57 = vmax.f32 %v16101_v3, 0.0  ;;  %v4978_v3 = vld [vmem:[#allocation3 + $0xd0] sm:$0xff] }
 0x88b   :  { %6255 = vmatpush1.bf16.msra.mxu1 %v5381_v54  ;;  %5804 = vmatprep.subr.bf16.mxu0 %v5387_v24  ;;  %v4956_v24 = vld [vmem:[#allocation3 + $0x20] sm:$0xff] }
 0x88c   :  { %6256 = vmatprep.subr.bf16.mxu1 %v5389_v63  ;;  %v14220_v54 = vpack.c.bf16 %v16102_v57, %v16100_v16  ;;  %v4958_v63 = vld [vmem:[#allocation3 + $0x30] sm:$0xff]  ;;  %v4972_v57 = vld [vmem:[#allocation3 + $0xa0] sm:$0xff] }
 0x88d   :  { %5766 = vmatmul.mubr.bf16.gmra.mrb[156].mxu0 %v14204_v56  ;;  %v4970_v16 = vld [vmem:[#allocation3 + $0x90] sm:$0xff] }
 0x88e   :  { %6218 = vmatmul.mubr.bf16.gmra.mrb[156].mxu1 %v14204_v56  ;;  %5805 = vmatpush1.bf16.msra.mxu0 %v5386_v49  ;;  %v5021_v49 = vld [vmem:[#allocation3 + $0x228] sm:$0xff] }
 0x88f   :  { %6257 = vmatpush1.bf16.msra.mxu1 %v5388_v9  ;;  %5806 = vmatprep.subr.bf16.mxu0 %v5394_v27  ;;  %v4963_v9 = vld [vmem:[#allocation3 + $0x58] sm:$0xff]  ;;  %v4965_v27 = vld [vmem:[#allocation3 + $0x68] sm:$0xff] }
 0x890   :  { %6258 = vmatprep.subr.bf16.mxu1 %v5396_v61  ;;  %5808 = vmatprep.mubr.bf16.mxu0 %v14210_v20  ;;  %v16105_v61 = vld [vmem:[#allocation163_spill] sm:$0xff] }
 0x891   :  { %6260 = vmatprep.mubr.bf16.mxu1 %v14210_v20  ;;  %v16106_v40 = vmax.f32 %v16105_v61, 0.0  ;;  %v4984_v61 = vld [vmem:[#allocation3 + $0x100] sm:$0xff] }
 0x892   :  { %5807 = vmatpush1.bf16.msra.mxu0 %v5393_v58  ;;  %v16108_v58 = vmax.f32 %v16107_v51, 0.0  ;;  %v5042_v51 = vld [vmem:[#allocation3 + $0x2d0] sm:$0xff] }
 0x893   :  { %6259 = vmatpush1.bf16.msra.mxu1 %v5395_v2  ;;  %6341 = vmatprep.subr.bf16.mxu0 %v4957_v11  ;;  %v16109_v11 = vmax.f32 %v13773_v29, 0.0  ;;  %v4985_v29 = vld [vmem:[#allocation3 + $0x108] sm:$0xff] }
 0x894   :  { %7609 = vmatprep.subr.bf16.mxu1 %v5014_v36  ;;  %v14236_v2 = vpack.c.bf16 %v16108_v58, %v16106_v40  ;;  %v16110_v36 = vmax.f32 %v13776_v41, 0.0  ;;  %v16111_v41 = vld [vmem:[#allocation165_spill] sm:$0xff]  ;;  %v4992_v40 = vld [vmem:[#allocation3 + $0x140] sm:$0xff] }
 0x895   :  { %5809 = vmatmul.mubr.bf16.vlgmr.msra.gmra.mrb[128].mxu0 %v14220_v54  ;;  %v16112_v26 = vmax.f32 %v16111_v41, 0.0  ;;  %v4986_v58 = vld [vmem:[#allocation3 + $0x110] sm:$0xff] }
 0x896   :  { %6261 = vmatmul.mubr.bf16.vlgmr.msra.gmra.mrb[128].mxu1 %v14220_v54  ;;  %6342 = vmatpush1.bf16.msra.mxu0 %v4956_v24  ;;  %v14242_v30 = vpack.c.bf16 %v16110_v36, %v16109_v11  ;;  %v5035_v24 = vld [vmem:[#allocation3 + $0x298] sm:$0xff]  ;;  %v16117_v36 = vld [vmem:[#allocation167_spill] sm:$0xff] }
 0x897   :  { %7610 = vmatpush3.bf16.msra.mxu1 %v4958_v63  ;;  %6343 = vmatprep.subr.bf16.mxu0 %v4964_v23  ;;  %v4977_v63 = vld [vmem:[#allocation3 + $0xc8] sm:$0xff]  ;;  %v16114_v23 = vmax.f32 %v16113_v1, 0.0  ;;  %v4991_v11 = vld [vmem:[#allocation3 + $0x138] sm:$0xff]  ;;  %v5006_v1 = vld [vmem:[#allocation3 + $0x1b0] sm:$0xff] }
 0x898   :  { %5818 = vmatprep.mubr.bf16.mxu0 %v14226_v10  ;;  %6270 = vmatprep.mubr.bf16.mxu1 %v14226_v10 }
 0x899   :  { %7611 = vmatprep.subr.bf16.mxu1 %v5021_v49  ;;  %v14252_v49 = vpack.c.bf16 %v16114_v23, %v16112_v26  ;;  %v4998_v26 = vld [vmem:[#allocation3 + $0x170] sm:$0xff]  ;;  %v4993_v23 = vld [vmem:[#allocation3 + $0x148] sm:$0xff] }
 0x89a   :  { %6344 = vmatpush1.bf16.msra.mxu0 %v4963_v9  ;;  %v4979_v9 = vld [vmem:[#allocation3 + $0xd8] sm:$0xff] }
 0x89b   :  { %7612 = vmatpush3.bf16.msra.mxu1 %v4965_v27  ;;  %6345 = vmatprep.subr.bf16.mxu0 %v4971_v45  ;;  %v16115_v27 = vmax.f32 %v13779_v8, 0.0  ;;  %v16116_v45 = vmax.f32 %v13782_v28, 0.0  ;;  %v5049_v8 = vld [vmem:[#allocation3 + $0x308] sm:$0xff]  ;;  %v4999_v28 = vld [vmem:[#allocation3 + $0x178] sm:$0xff] }
 0x89c   :  { %7613 = vmatprep.subr.bf16.mxu1 %v5028_v35 }
 0x89d   :  { %5819 = vmatmul.mubr.bf16.gmra.mrb[132].mxu0 %v14236_v2  ;;  %v14258_v35 = vpack.c.bf16 %v16116_v45, %v16115_v27  ;;  %v5005_v27 = vld [vmem:[#allocation3 + $0x1a8] sm:$0xff] }
 0x89e   :  { %6271 = vmatmul.mubr.bf16.gmra.mrb[132].mxu1 %v14236_v2  ;;  %6346 = vmatpush1.bf16.msra.mxu0 %v4970_v16  ;;  %v16118_v16 = vmax.f32 %v16117_v36, 0.0  ;;  %v5012_v36 = vld [vmem:[#allocation3 + $0x1e0] sm:$0xff] }
 0x89f   :  { %5828 = vmatprep.mubr.bf16.mxu0 %v14242_v30  ;;  %6347 = vmatprep.subr.bf16.mxu0 %v4978_v3  ;;  %v16119_v3 = vld [vmem:[#allocation168_spill] sm:$0xff] }
 0x8a0   :  { %6280 = vmatprep.mubr.bf16.mxu1 %v14242_v30  ;;  %7614 = vmatpush3.bf16.msra.mxu1 %v4972_v57  ;;  %v16120_v57 = vmax.f32 %v16119_v3, 0.0  ;;  %v5063_v3 = vld [vmem:[#allocation3 + $0x378] sm:$0xff] }
 0x8a1   :  { %7615 = vmatprep.subr.bf16.mxu1 %v5035_v24 }
 0x8a2   :  { %6348 = vmatpush1.bf16.msra.mxu0 %v4977_v63  ;;  %v14268_v24 = vpack.c.bf16 %v16120_v57, %v16118_v16  ;;  %v16121_v63 = vmax.f32 %v13785_v42, 0.0  ;;  %v5013_v42 = vld [vmem:[#allocation3 + $0x1e8] sm:$0xff]  ;;  %v5020_v16 = vld [vmem:[#allocation3 + $0x220] sm:$0xff]  ;;  %v5007_v57 = vld [vmem:[#allocation3 + $0x1b8] sm:$0xff] }
 0x8a3   :  { %6349 = vmatprep.subr.bf16.mxu0 %v4985_v29  ;;  %v16122_v29 = vmax.f32 %v13788_v7, 0.0  ;;  %v16123_v7 = vld [vmem:[#allocation169_spill] sm:$0xff] }
 0x8a4   :  { %7616 = vmatpush3.bf16.msra.mxu1 %v4979_v9  ;;  %v5056_v9 = vld [vmem:[#allocation3 + $0x340] sm:$0xff]  ;;  %v16124_v45 = vmax.f32 %v16123_v7, 0.0 }
 0x8a5   :  { %5829 = vmatmul.mubr.bf16.gmra.mrb[136].mxu0 %v14252_v49  ;;  %7617 = vmatprep.subr.bf16.mxu1 %v5042_v51  ;;  %v14274_v41 = vpack.c.bf16 %v16122_v29, %v16121_v63  ;;  %v5019_v63 = vld [vmem:[#allocation3 + $0x218] sm:$0xff]  ;;  %v16129_v29 = vld [vmem:[#allocation171_spill] sm:$0xff] }
 0x8a6   :  { %6281 = vmatmul.mubr.bf16.gmra.mrb[136].mxu1 %v14252_v49  ;;  %6350 = vmatpush1.bf16.msra.mxu0 %v4984_v61  ;;  %v16125_v61 = vld [vmem:[#allocation170_spill] sm:$0xff] }
 0x8a7   :  { %5838 = vmatprep.mubr.bf16.mxu0 %v14258_v35  ;;  %6351 = vmatprep.subr.bf16.mxu0 %v4992_v40  ;;  %v16126_v40 = vmax.f32 %v16125_v61, 0.0  ;;  %v5034_v61 = vld [vmem:[#allocation3 + $0x290] sm:$0xff] }
 0x8a8   :  { %6290 = vmatprep.mubr.bf16.mxu1 %v14258_v35  ;;  %7618 = vmatpush3.bf16.msra.mxu1 %v4986_v58  ;;  %v5000_v58 = vld [vmem:[#allocation3 + $0x180] sm:$0xff] }
 0x8a9   :  { %7619 = vmatprep.subr.bf16.mxu1 %v5049_v8  ;;  %v14284_v51 = vpack.c.bf16 %v16126_v40, %v16124_v45  ;;  %v16128_v8 = vmax.f32 %v13794_v31, 0.0  ;;  %v5027_v31 = vld [vmem:[#allocation3 + $0x258] sm:$0xff]  ;;  %v5026_v45 = vld [vmem:[#allocation3 + $0x250] sm:$0xff]  ;;  %v5033_v40 = vld [vmem:[#allocation3 + $0x288] sm:$0xff] }
 0x8aa   :  { %6352 = vmatpush1.bf16.msra.mxu0 %v4991_v11  ;;  %v16127_v11 = vmax.f32 %v13791_v22, 0.0  ;;  %v5126_v22 = vld [vmem:[#allocation3 + $0x570] sm:$0xff] }
 0x8ab   :  { %6353 = vmatprep.subr.bf16.mxu0 %v4999_v28 }
 0x8ac   :  { %7620 = vmatpush3.bf16.msra.mxu1 %v4993_v23  ;;  %v14290_v28 = vpack.c.bf16 %v16128_v8, %v16127_v11  ;;  %v16137_v11 = vld [vmem:[#allocation174_spill] sm:$0xff] }
 0x8ad   :  { %5839 = vmatmul.mubr.bf16.gmra.mrb[140].mxu0 %v14268_v24  ;;  %7621 = vmatprep.subr.bf16.mxu1 %v5056_v9  ;;  %v16138_v8 = vmax.f32 %v16137_v11, 0.0  ;;  %v5075_v11 = vld [vmem:[#allocation3 + $0x3d8] sm:$0xff] }
 0x8ae   :  { %6291 = vmatmul.mubr.bf16.gmra.mrb[140].mxu1 %v14268_v24  ;;  %6354 = vmatpush1.bf16.msra.mxu0 %v4998_v26  ;;  %v16130_v26 = vmax.f32 %v16129_v29, 0.0  ;;  %v5055_v29 = vld [vmem:[#allocation3 + $0x338] sm:$0xff] }
 0x8af   :  { %5848 = vmatprep.mubr.bf16.mxu0 %v14274_v41  ;;  %6355 = vmatprep.subr.bf16.mxu0 %v5006_v1  ;;  %v16131_v1 = vld [vmem:[#allocation172_spill] sm:$0xff] }
 0x8b0   :  { %6300 = vmatprep.mubr.bf16.mxu1 %v14274_v41  ;;  %7622 = vmatpush3.bf16.msra.mxu1 %v5000_v58  ;;  %v16132_v23 = vmax.f32 %v16131_v1, 0.0  ;;  %v16135_v58 = vld [vmem:[#allocation173_spill] sm:$0xff] }
 0x8b1   :  { %7623 = vmatprep.subr.bf16.mxu1 %v5063_v3  ;;  %v16140_v3 = vmax.f32 %v13806_v44, 0.0  ;;  %v16143_v44 = vld [vmem:[#allocation176_spill] sm:$0xff] }
 0x8b2   :  { %6356 = vmatpush1.bf16.msra.mxu0 %v5005_v27  ;;  %v14300_v9 = vpack.c.bf16 %v16132_v23, %v16130_v26  ;;  %v16133_v27 = vmax.f32 %v13797_v15, 0.0  ;;  %v5041_v15 = vld [vmem:[#allocation3 + $0x2c8] sm:$0xff]  ;;  %v16144_v1 = vmax.f32 %v16143_v44, 0.0  ;;  %v5098_v44 = vld [vmem:[#allocation3 + $0x490] sm:$0xff] }
 0x8b3   :  { %6357 = vmatprep.subr.bf16.mxu0 %v5013_v42  ;;  %v16134_v42 = vmax.f32 %v13800_v50, 0.0  ;;  %v16136_v50 = vmax.f32 %v16135_v58, 0.0  ;;  %v5076_v58 = vld [vmem:[#allocation3 + $0x3e0] sm:$0xff] }
 0x8b4   :  { %7624 = vmatpush3.bf16.msra.mxu1 %v5007_v57 }
 0x8b5   :  { %5849 = vmatmul.mubr.bf16.gmra.mrb[144].mxu0 %v14284_v51  ;;  %v14306_v7 = vpack.c.bf16 %v16134_v42, %v16133_v27  ;;  %7673 = vmatprep.subr.bf16.mxu1 %v5126_v22  ;;  %v5048_v22 = vld [vmem:[#allocation3 + $0x300] sm:$0xff]  ;;  %v5054_v27 = vld [vmem:[#allocation3 + $0x330] sm:$0xff] }
 0x8b6   :  { %6301 = vmatmul.mubr.bf16.gmra.mrb[144].mxu1 %v14284_v51  ;;  %6358 = vmatpush1.bf16.msra.mxu0 %v5012_v36  ;;  %v14316_v36 = vpack.c.bf16 %v16138_v8, %v16136_v50  ;;  %v5062_v42 = vld [vmem:[#allocation3 + $0x370] sm:$0xff]  ;;  %v5133_v50 = vld [vmem:[#allocation3 + $0x5a8] sm:$0xff] }
 0x8b7   :  { %5858 = vmatprep.mubr.bf16.mxu0 %v14290_v28  ;;  %6359 = vmatprep.subr.bf16.mxu0 %v5020_v16  ;;  %v16139_v16 = vmax.f32 %v13803_v19, 0.0  ;;  %v16141_v19 = vld [vmem:[#allocation175_spill] sm:$0xff] }
 0x8b8   :  { %6310 = vmatprep.mubr.bf16.mxu1 %v14290_v28  ;;  %v16142_v26 = vmax.f32 %v16141_v19, 0.0  ;;  %v5077_v8 = vld [vmem:[#allocation3 + $0x3e8] sm:$0xff]  ;;  %v5096_v19 = vld [vmem:[#allocation3 + $0x480] sm:$0xff] }
 0x8b9   :  { %v14322_v57 = vpack.c.bf16 %v16140_v3, %v16139_v16  ;;  %v5140_v16 = vld [vmem:[#allocation3 + $0x5e0] sm:$0xff]  ;;  %v5082_v3 = vld [vmem:[#allocation3 + $0x410] sm:$0xff] }
 0x8ba   :  { %6360 = vmatpush1.bf16.msra.mxu0 %v5019_v63  ;;  %v5040_v63 = vld [vmem:[#allocation3 + $0x2c0] sm:$0xff]  ;;  %v14332_v23 = vpack.c.bf16 %v16144_v1, %v16142_v26  ;;  %v5161_v1 = vld [vmem:[#allocation3 + $0x688] sm:$0xff] }
 0x8bb   :  { %6361 = vmatprep.subr.bf16.mxu0 %v5027_v31  ;;  %v5047_v31 = vld [vmem:[#allocation3 + $0x2f8] sm:$0xff]  ;;  %v5104_v26 = vld [vmem:[#allocation3 + $0x4c0] sm:$0xff] }
 0x8bd   :  { %5859 = vmatmul.mubr.bf16.gmra.mrb[148].mxu0 %v14300_v9 }
 0x8be   :  { %6311 = vmatmul.mubr.bf16.gmra.mrb[148].mxu1 %v14300_v9  ;;  %6362 = vmatpush1.bf16.msra.mxu0 %v5026_v45  ;;  %v5061_v45 = vld [vmem:[#allocation3 + $0x368] sm:$0xff] }
 0x8bf   :  { %5868 = vmatprep.mubr.bf16.mxu0 %v14306_v7  ;;  %6363 = vmatprep.subr.bf16.mxu0 %v5034_v61  ;;  %v5069_v61 = vld [vmem:[#allocation3 + $0x3a8] sm:$0xff] }
 0x8c0   :  { %6320 = vmatprep.mubr.bf16.mxu1 %v14306_v7 }
 0x8c2   :  { %6364 = vmatpush1.bf16.msra.mxu0 %v5033_v40  ;;  %v5068_v40 = vld [vmem:[#allocation3 + $0x3a0] sm:$0xff] }
 0x8c3   :  { %6365 = vmatprep.subr.bf16.mxu0 %v5041_v15  ;;  %v5070_v15 = vld [vmem:[#allocation3 + $0x3b0] sm:$0xff] }
 0x8c5   :  { %5869 = vmatmul.mubr.bf16.gmra.mrb[152].mxu0 %v14316_v36 }
 0x8c6   :  { %6321 = vmatmul.mubr.bf16.gmra.mrb[152].mxu1 %v14316_v36  ;;  %6366 = vmatpush1.bf16.msra.mxu0 %v5040_v63  ;;  %v5090_v63 = vld [vmem:[#allocation3 + $0x450] sm:$0xff] }
 0x8c7   :  { %5878 = vmatprep.mubr.bf16.mxu0 %v14322_v57  ;;  %6367 = vmatprep.subr.bf16.mxu0 %v5048_v22  ;;  %v5147_v22 = vld [vmem:[#allocation3 + $0x618] sm:$0xff] }
 0x8c8   :  { %6330 = vmatprep.mubr.bf16.mxu1 %v14322_v57 }
 0x8ca   :  { %6368 = vmatpush1.bf16.msra.mxu0 %v5047_v31  ;;  %v5097_v31 = vld [vmem:[#allocation3 + $0x488] sm:$0xff] }
 0x8cb   :  { %6369 = vmatprep.subr.bf16.mxu0 %v5055_v29  ;;  %v5091_v29 = vld [vmem:[#allocation3 + $0x458] sm:$0xff] }
 0x8cd   :  { %5879 = vmatmul.mubr.bf16.gmra.mrb[156].mxu0 %v14332_v23 }
 0x8ce   :  { %6331 = vmatmul.mubr.bf16.gmra.mrb[156].mxu1 %v14332_v23  ;;  %6370 = vmatpush1.bf16.msra.mxu0 %v5054_v27  ;;  %v5111_v27 = vld [vmem:[#allocation3 + $0x4f8] sm:$0xff] }
 0x8cf   :  { %6373 = vmatprep.mubr.bf16.mxu0 %v13828_v52  ;;  %6371 = vmatprep.subr.bf16.mxu0 %v5062_v42  ;;  %v5110_v42 = vld [vmem:[#allocation3 + $0x4f0] sm:$0xff] }
 0x8d0   :  { %6825 = vmatprep.mubr.bf16.mxu1 %v13828_v52  ;;  %v5083_v52 = vld [vmem:[#allocation3 + $0x418] sm:$0xff] }
 0x8d2   :  { %6372 = vmatpush1.bf16.msra.mxu0 %v5061_v45  ;;  %v5118_v45 = vld [vmem:[#allocation3 + $0x530] sm:$0xff] }
 0x8d3   :  { %6454 = vmatprep.subr.bf16.mxu0 %v5069_v61  ;;  %v5168_v61 = vld [vmem:[#allocation3 + $0x6c0] sm:$0xff] }
 0x8d5   :  { %6374 = vmatmul.mubr.bf16.vlgmr.msra.gmra.mrb[160].mxu0 %v13836_v25 }
 0x8d6   :  { %6826 = vmatmul.mubr.bf16.vlgmr.msra.gmra.mrb[160].mxu1 %v13836_v25  ;;  %6455 = vmatpush1.bf16.msra.mxu0 %v5068_v40  ;;  %v5084_v25 = vld [vmem:[#allocation3 + $0x420] sm:$0xff]  ;;  %v5125_v40 = vld [vmem:[#allocation3 + $0x568] sm:$0xff] }
 0x8d7   :  { %7674 = vmatpush3.bf16.msra.mxu1 %v5070_v15  ;;  %6456 = vmatprep.subr.bf16.mxu0 %v5076_v58  ;;  %v5112_v15 = vld [vmem:[#allocation3 + $0x500] sm:$0xff] }
 0x8d8   :  { %6383 = vmatprep.mubr.bf16.mxu0 %v13842_v0  ;;  %6833 = vmatprep.mubr.bf16.mxu1 %v13842_v0  ;;  %v5089_v0 = vld [vmem:[#allocation3 + $0x448] sm:$0xff]  ;;  %v5124_v58 = vld [vmem:[#allocation3 + $0x560] sm:$0xff] }
 0x8d9   :  { %7675 = vmatprep.subr.bf16.mxu1 %v5133_v50  ;;  %v5132_v50 = vld [vmem:[#allocation3 + $0x5a0] sm:$0xff] }
 0x8da   :  { %6457 = vmatpush1.bf16.msra.mxu0 %v5075_v11  ;;  %v16145_v11 = vld [vmem:[#allocation152_spill] sm:$0xff] }
 0x8db   :  { %7676 = vmatpush3.bf16.msra.mxu1 %v5077_v8  ;;  %6458 = vmatprep.subr.bf16.mxu0 %v5083_v52  ;;  %v16146_v8 = vld [vmem:[#allocation154_spill] sm:$0xff] }
 0x8dc   :  { %7677 = vmatprep.subr.bf16.mxu1 %v5140_v16  ;;  %v5119_v52 = vld [vmem:[#allocation3 + $0x538] sm:$0xff]  ;;  %v5238_v16 = vld [vmem:[#allocation3 + $0x8f0] sm:$0xff] }
 0x8dd   :  { %6384 = vmatmul.mubr.bf16.gmra.mrb[164].mxu0 %v13852_v43 }
 0x8de   :  { %6834 = vmatmul.mubr.bf16.gmra.mrb[164].mxu1 %v13852_v43  ;;  %6459 = vmatpush1.bf16.msra.mxu0 %v5082_v3  ;;  %v5154_v43 = vld [vmem:[#allocation3 + $0x650] sm:$0xff]  ;;  %v5139_v3 = vld [vmem:[#allocation3 + $0x5d8] sm:$0xff] }
 0x8df   :  { %6393 = vmatprep.mubr.bf16.mxu0 %v13858_v4  ;;  %6460 = vmatprep.subr.bf16.mxu0 %v5090_v63  ;;  %v5138_v63 = vld [vmem:[#allocation3 + $0x5d0] sm:$0xff] }
 0x8e0   :  { %6841 = vmatprep.mubr.bf16.mxu1 %v13858_v4  ;;  %7678 = vmatpush3.bf16.msra.mxu1 %v5084_v25  ;;  %v5103_v4 = vld [vmem:[#allocation3 + $0x4b8] sm:$0xff]  ;;  %v5146_v25 = vld [vmem:[#allocation3 + $0x610] sm:$0xff] }
 0x8e1   :  { %7679 = vmatprep.subr.bf16.mxu1 %v5147_v22  ;;  %v16147_v22 = vld [vmem:[#allocation87_spill] sm:$0xff] }
 0x8e2   :  { %6461 = vmatpush1.bf16.msra.mxu0 %v5089_v0  ;;  %v16148_v0 = vld [vmem:[#allocation79_spill] sm:$0xff] }
 0x8e3   :  { %6462 = vmatprep.subr.bf16.mxu0 %v5097_v31  ;;  %v5145_v31 = vld [vmem:[#allocation3 + $0x608] sm:$0xff] }
 0x8e4   :  { %7680 = vmatpush3.bf16.msra.mxu1 %v5091_v29  ;;  %v5153_v29 = vld [vmem:[#allocation3 + $0x648] sm:$0xff] }
 0x8e5   :  { %6394 = vmatmul.mubr.bf16.gmra.mrb[168].mxu0 %v13868_v14  ;;  %7681 = vmatprep.subr.bf16.mxu1 %v5154_v43  ;;  %v16149_v43 = vld [vmem:[#allocation138_spill] sm:$0xff] }
 0x8e6   :  { %6842 = vmatmul.mubr.bf16.gmra.mrb[168].mxu1 %v13868_v14  ;;  %6463 = vmatpush1.bf16.msra.mxu0 %v5096_v19  ;;  %v5105_v14 = vld [vmem:[#allocation3 + $0x4c8] sm:$0xff]  ;;  %v5152_v19 = vld [vmem:[#allocation3 + $0x640] sm:$0xff] }
 0x8e7   :  { %6403 = vmatprep.mubr.bf16.mxu0 %v13874_v48  ;;  %6464 = vmatprep.subr.bf16.mxu0 %v5104_v26  ;;  %v5160_v26 = vld [vmem:[#allocation3 + $0x680] sm:$0xff] }
 0x8e8   :  { %6849 = vmatprep.mubr.bf16.mxu1 %v13874_v48  ;;  %7682 = vmatpush3.bf16.msra.mxu1 %v5098_v44  ;;  %v5117_v48 = vld [vmem:[#allocation3 + $0x528] sm:$0xff]  ;;  %v16150_v44 = vld [vmem:[#allocation73_spill] sm:$0xff] }
 0x8e9   :  { %7683 = vmatprep.subr.bf16.mxu1 %v5161_v1  ;;  %v5167_v1 = vld [vmem:[#allocation3 + $0x6b8] sm:$0xff] }
 0x8ea   :  { %6465 = vmatpush1.bf16.msra.mxu0 %v5103_v4  ;;  %v5159_v4 = vld [vmem:[#allocation3 + $0x678] sm:$0xff] }
 0x8eb   :  { %6466 = vmatprep.subr.bf16.mxu0 %v5111_v27  ;;  %v5166_v27 = vld [vmem:[#allocation3 + $0x6b0] sm:$0xff] }
 0x8ec   :  { %7684 = vmatpush3.bf16.msra.mxu1 %v5105_v14  ;;  %v16152_v14 = vld [vmem:[#allocation137_spill] sm:$0xff] }
 0x8ed   :  { %6404 = vmatmul.mubr.bf16.gmra.mrb[172].mxu0 %v13884_v62  ;;  %7685 = vmatprep.subr.bf16.mxu1 %v5168_v61  ;;  %v5173_v61 = vld [vmem:[#allocation3 + $0x6e8] sm:$0xff] }
 0x8ee   :  { %6850 = vmatmul.mubr.bf16.gmra.mrb[172].mxu1 %v13884_v62  ;;  %6467 = vmatpush1.bf16.msra.mxu0 %v5110_v42  ;;  %v5175_v62 = vld [vmem:[#allocation3 + $0x6f8] sm:$0xff]  ;;  %v5174_v42 = vld [vmem:[#allocation3 + $0x6f0] sm:$0xff] }
 0x8ef   :  { %6413 = vmatprep.mubr.bf16.mxu0 %v13890_v59  ;;  %6468 = vmatprep.subr.bf16.mxu0 %v5118_v45  ;;  %v16151_v45 = vld [vmem:[#allocation60_spill] sm:$0xff] }
 0x8f0   :  { %6857 = vmatprep.mubr.bf16.mxu1 %v13890_v59  ;;  %7686 = vmatpush3.bf16.msra.mxu1 %v5112_v15  ;;  %v5131_v59 = vld [vmem:[#allocation3 + $0x598] sm:$0xff]  ;;  %v5182_v15 = vld [vmem:[#allocation3 + $0x730] sm:$0xff] }
 0x8f1   :  { %7687 = vmatprep.subr.bf16.mxu1 %v5175_v62  ;;  %v5187_v62 = vld [vmem:[#allocation3 + $0x758] sm:$0xff] }
 0x8f2   :  { %6469 = vmatpush1.bf16.msra.mxu0 %v5117_v48  ;;  %v5181_v48 = vld [vmem:[#allocation3 + $0x728] sm:$0xff] }
 0x8f3   :  { %6470 = vmatprep.subr.bf16.mxu0 %v5125_v40  ;;  %v5180_v40 = vld [vmem:[#allocation3 + $0x720] sm:$0xff] }
 0x8f4   :  { %7688 = vmatpush3.bf16.msra.mxu1 %v5119_v52  ;;  %v5189_v52 = vld [vmem:[#allocation3 + $0x768] sm:$0xff] }
 0x8f5   :  { %6414 = vmatmul.mubr.bf16.gmra.mrb[176].mxu0 %v16145_v11  ;;  %7737 = vmatprep.subr.bf16.mxu1 %v5238_v16  ;;  %v5252_v16 = vld [vmem:[#allocation3 + $0x960] sm:$0xff] }
 0x8f6   :  { %6858 = vmatmul.mubr.bf16.gmra.mrb[176].mxu1 %v16145_v11  ;;  %6471 = vmatpush1.bf16.msra.mxu0 %v5124_v58  ;;  %v5188_v58 = vld [vmem:[#allocation3 + $0x760] sm:$0xff]  ;;  %v5245_v11 = vld [vmem:[#allocation3 + $0x928] sm:$0xff] }
 0x8f7   :  { %6423 = vmatprep.mubr.bf16.mxu0 %v16146_v8  ;;  %6472 = vmatprep.subr.bf16.mxu0 %v5132_v50  ;;  %v16153_v50 = vld [vmem:[#allocation52_spill] sm:$0xff] }
 0x8f8   :  { %6865 = vmatprep.mubr.bf16.mxu1 %v16146_v8  ;;  %v16154_v8 = vld [vmem:[#allocation81_spill] sm:$0xff] }
 0x8fa   :  { %6473 = vmatpush1.bf16.msra.mxu0 %v5131_v59  ;;  %v5195_v59 = vld [vmem:[#allocation3 + $0x798] sm:$0xff] }
 0x8fb   :  { %6474 = vmatprep.subr.bf16.mxu0 %v5139_v3  ;;  %v5194_v3 = vld [vmem:[#allocation3 + $0x790] sm:$0xff] }
 0x8fd   :  { %6424 = vmatmul.mubr.bf16.gmra.mrb[180].mxu0 %v16147_v22 }
 0x8fe   :  { %6866 = vmatmul.mubr.bf16.gmra.mrb[180].mxu1 %v16147_v22  ;;  %6475 = vmatpush1.bf16.msra.mxu0 %v5138_v63  ;;  %v5202_v63 = vld [vmem:[#allocation3 + $0x7d0] sm:$0xff]  ;;  %v5196_v22 = vld [vmem:[#allocation3 + $0x7a0] sm:$0xff] }
 0x8ff   :  { %6433 = vmatprep.mubr.bf16.mxu0 %v16148_v0  ;;  %6476 = vmatprep.subr.bf16.mxu0 %v5146_v25  ;;  %v16155_v25 = vld [vmem:[#allocation75_spill] sm:$0xff] }
 0x900   :  { %6873 = vmatprep.mubr.bf16.mxu1 %v16148_v0  ;;  %v16156_v0 = vld [vmem:[#allocation78_spill] sm:$0xff] }
 0x902   :  { %6477 = vmatpush1.bf16.msra.mxu0 %v5145_v31  ;;  %v5259_v31 = vld [vmem:[#allocation3 + $0x998] sm:$0xff] }
 0x903   :  { %6478 = vmatprep.subr.bf16.mxu0 %v5153_v29  ;;  %v5201_v29 = vld [vmem:[#allocation3 + $0x7c8] sm:$0xff] }
 0x905   :  { %6434 = vmatmul.mubr.bf16.gmra.mrb[184].mxu0 %v16149_v43 }
 0x906   :  { %6874 = vmatmul.mubr.bf16.gmra.mrb[184].mxu1 %v16149_v43  ;;  %6479 = vmatpush1.bf16.msra.mxu0 %v5152_v19  ;;  %v5209_v19 = vld [vmem:[#allocation3 + $0x808] sm:$0xff]  ;;  %v5208_v43 = vld [vmem:[#allocation3 + $0x800] sm:$0xff] }
 0x907   :  { %6443 = vmatprep.mubr.bf16.mxu0 %v16150_v44  ;;  %6480 = vmatprep.subr.bf16.mxu0 %v5160_v26  ;;  %v5203_v26 = vld [vmem:[#allocation3 + $0x7d8] sm:$0xff] }
 0x908   :  { %6881 = vmatprep.mubr.bf16.mxu1 %v16150_v44  ;;  %v5216_v44 = vld [vmem:[#allocation3 + $0x840] sm:$0xff] }
 0x90a   :  { %6481 = vmatpush1.bf16.msra.mxu0 %v5159_v4  ;;  %v16157_v4 = vld [vmem:[#allocation142_spill] sm:$0xff] }
 0x90b   :  { %6482 = vmatprep.subr.bf16.mxu0 %v5167_v1  ;;  %v5266_v1 = vld [vmem:[#allocation3 + $0x9d0] sm:$0xff] }
 0x90d   :  { %6444 = vmatmul.mubr.bf16.gmra.mrb[188].mxu0 %v16151_v45 }
 0x90e   :  { %6882 = vmatmul.mubr.bf16.gmra.mrb[188].mxu1 %v16151_v45  ;;  %6483 = vmatpush1.bf16.msra.mxu0 %v5166_v27  ;;  %v16158_v27 = vld [vmem:[#allocation144_spill] sm:$0xff]  ;;  %v5215_v45 = vld [vmem:[#allocation3 + $0x838] sm:$0xff] }
 0x90f   :  { %6486 = vmatprep.mubr.bf16.mxu0 %v16152_v14  ;;  %6484 = vmatprep.subr.bf16.mxu0 %v5174_v42  ;;  %v5210_v42 = vld [vmem:[#allocation3 + $0x810] sm:$0xff] }
 0x910   :  { %6922 = vmatprep.mubr.bf16.mxu1 %v16152_v14  ;;  %v5273_v14 = vld [vmem:[#allocation3 + $0xa08] sm:$0xff] }
 0x912   :  { %6485 = vmatpush1.bf16.msra.mxu0 %v5173_v61  ;;  %v5223_v61 = vld [vmem:[#allocation3 + $0x878] sm:$0xff] }
 0x913   :  { %6567 = vmatprep.subr.bf16.mxu0 %v5181_v48  ;;  %v5222_v48 = vld [vmem:[#allocation3 + $0x870] sm:$0xff] }
 0x915   :  { %6487 = vmatmul.mubr.bf16.vlgmr.msra.gmra.mrb[160].mxu0 %v16153_v50 }
 0x916   :  { %6923 = vmatmul.mubr.bf16.vlgmr.msra.gmra.mrb[192].mxu1 %v16153_v50  ;;  %6568 = vmatpush1.bf16.msra.mxu0 %v5180_v40  ;;  %v5230_v40 = vld [vmem:[#allocation3 + $0x8b0] sm:$0xff]  ;;  %v16160_v50 = vld [vmem:[#allocation147_spill] sm:$0xff] }
 0x917   :  { %7738 = vmatpush3.bf16.msra.mxu1 %v5182_v15  ;;  %6569 = vmatprep.subr.bf16.mxu0 %v5188_v58  ;;  %v16159_v15 = vld [vmem:[#allocation146_spill] sm:$0xff]  ;;  %v5217_v58 = vld [vmem:[#allocation3 + $0x848] sm:$0xff] }
 0x918   :  { %6496 = vmatprep.mubr.bf16.mxu0 %v16154_v8  ;;  %6930 = vmatprep.mubr.bf16.mxu1 %v16154_v8  ;;  %v5237_v8 = vld [vmem:[#allocation3 + $0x8e8] sm:$0xff] }
 0x919   :  { %7739 = vmatprep.subr.bf16.mxu1 %v5245_v11  ;;  %v5280_v11 = vld [vmem:[#allocation3 + $0xa40] sm:$0xff] }
 0x91a   :  { %6570 = vmatpush1.bf16.msra.mxu0 %v5187_v62  ;;  %v5229_v62 = vld [vmem:[#allocation3 + $0x8a8] sm:$0xff] }
 0x91b   :  { %7740 = vmatpush3.bf16.msra.mxu1 %v5189_v52  ;;  %6571 = vmatprep.subr.bf16.mxu0 %v5195_v59  ;;  %v5224_v52 = vld [vmem:[#allocation3 + $0x880] sm:$0xff] }
 0x91c   :  { %7741 = vmatprep.subr.bf16.mxu1 %v5252_v16  ;;  %v5236_v59 = vld [vmem:[#allocation3 + $0x8e0] sm:$0xff] }
 0x91d   :  { %6497 = vmatmul.mubr.bf16.gmra.mrb[164].mxu0 %v16155_v25  ;;  %v5244_v16 = vld [vmem:[#allocation3 + $0x920] sm:$0xff] }
 0x91e   :  { %6931 = vmatmul.mubr.bf16.gmra.mrb[196].mxu1 %v16155_v25  ;;  %6572 = vmatpush1.bf16.msra.mxu0 %v5194_v3  ;;  %v16161_v3 = vld [vmem:[#allocation148_spill] sm:$0xff]  ;;  %v16162_v25 = vld [vmem:[#allocation149_spill] sm:$0xff] }
 0x91f   :  { %6506 = vmatprep.mubr.bf16.mxu0 %v16156_v0  ;;  %6573 = vmatprep.subr.bf16.mxu0 %v5202_v63  ;;  %v5287_v63 = vld [vmem:[#allocation3 + $0xa78] sm:$0xff] }
 0x920   :  { %6938 = vmatprep.mubr.bf16.mxu1 %v16156_v0  ;;  %7742 = vmatpush3.bf16.msra.mxu1 %v5196_v22  ;;  %v5231_v22 = vld [vmem:[#allocation3 + $0x8b8] sm:$0xff] }
 0x921   :  { %7743 = vmatprep.subr.bf16.mxu1 %v5259_v31  ;;  %v5243_v0 = vld [vmem:[#allocation3 + $0x918] sm:$0xff]  ;;  %v5350_v31 = vld [vmem:[#allocation3 + $0xc70] sm:$0xff] }
 0x922   :  { %6574 = vmatpush1.bf16.msra.mxu0 %v5201_v29  ;;  %v5251_v29 = vld [vmem:[#allocation3 + $0x958] sm:$0xff] }
 0x923   :  { %6575 = vmatprep.subr.bf16.mxu0 %v5209_v19  ;;  %v5250_v19 = vld [vmem:[#allocation3 + $0x950] sm:$0xff] }
 0x924   :  { %7744 = vmatpush3.bf16.msra.mxu1 %v5203_v26  ;;  %v5258_v26 = vld [vmem:[#allocation3 + $0x990] sm:$0xff] }
 0x925   :  { %6507 = vmatmul.mubr.bf16.gmra.mrb[168].mxu0 %v16157_v4  ;;  %7745 = vmatprep.subr.bf16.mxu1 %v5266_v1  ;;  %v5265_v1 = vld [vmem:[#allocation3 + $0x9c8] sm:$0xff] }
 0x926   :  { %6939 = vmatmul.mubr.bf16.gmra.mrb[200].mxu1 %v16157_v4  ;;  %6576 = vmatpush1.bf16.msra.mxu0 %v5208_v43  ;;  %v16163_v43 = vld [vmem:[#allocation150_spill] sm:$0xff]  ;;  %v5257_v4 = vld [vmem:[#allocation3 + $0x988] sm:$0xff] }
 0x927   :  { %6516 = vmatprep.mubr.bf16.mxu0 %v16158_v27  ;;  %6577 = vmatprep.subr.bf16.mxu0 %v5216_v44  ;;  %v16164_v44 = vld [vmem:[#allocation151_spill] sm:$0xff] }
 0x928   :  { %6946 = vmatprep.mubr.bf16.mxu1 %v16158_v27  ;;  %7746 = vmatpush3.bf16.msra.mxu1 %v5210_v42  ;;  %v5264_v27 = vld [vmem:[#allocation3 + $0x9c0] sm:$0xff] }
 0x929   :  { %7747 = vmatprep.subr.bf16.mxu1 %v5273_v14  ;;  %v5272_v42 = vld [vmem:[#allocation3 + $0xa00] sm:$0xff]  ;;  %v5279_v14 = vld [vmem:[#allocation3 + $0xa38] sm:$0xff] }
 0x92a   :  { %6578 = vmatpush1.bf16.msra.mxu0 %v5215_v45  ;;  %v5271_v45 = vld [vmem:[#allocation3 + $0x9f8] sm:$0xff] }
 0x92b   :  { %6579 = vmatprep.subr.bf16.mxu0 %v5223_v61  ;;  %v5278_v61 = vld [vmem:[#allocation3 + $0xa30] sm:$0xff] }
 0x92c   :  { %7748 = vmatpush3.bf16.msra.mxu1 %v5217_v58  ;;  %v5300_v58 = vld [vmem:[#allocation3 + $0xae0] sm:$0xff] }
 0x92d   :  { %6517 = vmatmul.mubr.bf16.gmra.mrb[172].mxu0 %v16159_v15  ;;  %7749 = vmatprep.subr.bf16.mxu1 %v5280_v11  ;;  %v5301_v11 = vld [vmem:[#allocation3 + $0xae8] sm:$0xff] }
 0x92e   :  { %6947 = vmatmul.mubr.bf16.gmra.mrb[204].mxu1 %v16159_v15  ;;  %6580 = vmatpush1.bf16.msra.mxu0 %v5222_v48  ;;  %v5286_v48 = vld [vmem:[#allocation3 + $0xa70] sm:$0xff] }
 0x92f   :  { %6526 = vmatprep.mubr.bf16.mxu0 %v16160_v50  ;;  %6581 = vmatprep.subr.bf16.mxu0 %v5230_v40  ;;  %v5293_v40 = vld [vmem:[#allocation3 + $0xaa8] sm:$0xff]  ;;  %v5294_v15 = vld [vmem:[#allocation3 + $0xab0] sm:$0xff] }
 0x930   :  { %6954 = vmatprep.mubr.bf16.mxu1 %v16160_v50  ;;  %7750 = vmatpush3.bf16.msra.mxu1 %v5224_v52  ;;  %v5357_v50 = vld [vmem:[#allocation3 + $0xca8] sm:$0xff]  ;;  %v5314_v52 = vld [vmem:[#allocation3 + $0xb50] sm:$0xff] }
 0x931   :  { %7751 = vmatprep.subr.bf16.mxu1 %v5287_v63  ;;  %v14410_v63 = vld [vmem:[#allocation28] sm:$0xff] }
 0x932   :  { %6582 = vmatpush1.bf16.msra.mxu0 %v5229_v62  ;;  %v5364_v62 = vld [vmem:[#allocation3 + $0xce0] sm:$0xff] }
 0x933   :  { %6583 = vmatprep.subr.bf16.mxu0 %v5237_v8  ;;  %v5306_v8 = vld [vmem:[#allocation3 + $0xb10] sm:$0xff] }
 0x934   :  { %7752 = vmatpush3.bf16.msra.mxu1 %v5231_v22  ;;  %v5328_v22 = vld [vmem:[#allocation3 + $0xbc0] sm:$0xff] }
 0x935   :  { %6527 = vmatmul.mubr.bf16.gmra.mrb[176].mxu0 %v16161_v3  ;;  %7801 = vmatprep.subr.bf16.mxu1 %v5350_v31 }
 0x936   :  { %6955 = vmatmul.mubr.bf16.gmra.mrb[208].mxu1 %v16161_v3  ;;  %6584 = vmatpush1.bf16.msra.mxu0 %v5236_v59  ;;  %v5371_v59 = vld [vmem:[#allocation3 + $0xd18] sm:$0xff] }
 0x937   :  { %6536 = vmatprep.mubr.bf16.mxu0 %v16162_v25  ;;  %6585 = vmatprep.subr.bf16.mxu0 %v5244_v16  ;;  %v5321_v16 = vld [vmem:[#allocation3 + $0xb88] sm:$0xff]  ;;  %v5315_v3 = vld [vmem:[#allocation3 + $0xb58] sm:$0xff] }
 0x938   :  { %6962 = vmatprep.mubr.bf16.mxu1 %v16162_v25  ;;  %v5320_v25 = vld [vmem:[#allocation3 + $0xb80] sm:$0xff] }
 0x93a   :  { %6586 = vmatpush1.bf16.msra.mxu0 %v5243_v0 }
 0x93b   :  { %6587 = vmatprep.subr.bf16.mxu0 %v5251_v29  ;;  %v5378_v29 = vld [vmem:[#allocation3 + $0xd50] sm:$0xff] }
 0x93d   :  { %6537 = vmatmul.mubr.bf16.gmra.mrb[180].mxu0 %v16163_v43 }
 0x93e   :  { %6963 = vmatmul.mubr.bf16.gmra.mrb[212].mxu1 %v16163_v43  ;;  %6588 = vmatpush1.bf16.msra.mxu0 %v5250_v19  ;;  %v16167_v19 = vld [vmem:[#allocation47_spill] sm:$0xff]  ;;  %v16168_v43 = vld [vmem:[#allocation49_spill] sm:$0xff] }
 0x93f   :  { %6546 = vmatprep.mubr.bf16.mxu0 %v16164_v44  ;;  %6589 = vmatprep.subr.bf16.mxu0 %v5258_v26  ;;  %v14424_v26 = vrot.slane %v14410_v63, %v16167_v19 }
 0x940   :  { %6970 = vmatprep.mubr.bf16.mxu1 %v16164_v44  ;;  %v14428_v44 = vrot.slane %v14410_v63, %v16168_v43 }
 0x942   :  { %6590 = vmatpush1.bf16.msra.mxu0 %v5257_v4  ;;  %v5327_v4 = vld [vmem:[#allocation3 + $0xbb8] sm:$0xff] }
 0x943   :  { %6591 = vmatprep.subr.bf16.mxu0 %v5265_v1  ;;  %v5385_v1 = vld [vmem:[#allocation3 + $0xd88] sm:$0xff] }
 0x945   :  { %6547 = vmatmul.mubr.bf16.gmra.mrb[184].mxu0 %v14060_v37 }
 0x946   :  { %6971 = vmatmul.mubr.bf16.gmra.mrb[216].mxu1 %v14060_v37  ;;  %6592 = vmatpush1.bf16.msra.mxu0 %v5264_v27  ;;  %v5285_v37 = vld [vmem:[#allocation3 + $0xa68] sm:$0xff] }
 0x947   :  { %6556 = vmatprep.mubr.bf16.mxu0 %v14066_v39  ;;  %6593 = vmatprep.subr.bf16.mxu0 %v5272_v42 }
 0x948   :  { %6978 = vmatprep.mubr.bf16.mxu1 %v14066_v39  ;;  %v5292_v39 = vld [vmem:[#allocation3 + $0xaa0] sm:$0xff] }
 0x94a   :  { %6594 = vmatpush1.bf16.msra.mxu0 %v5271_v45  ;;  %v5335_v45 = vld [vmem:[#allocation3 + $0xbf8] sm:$0xff] }
 0x94b   :  { %6595 = vmatprep.subr.bf16.mxu0 %v5279_v14 }
 0x94d   :  { %6557 = vmatmul.mubr.bf16.gmra.mrb[188].mxu0 %v14076_v6 }
 0x94e   :  { %6979 = vmatmul.mubr.bf16.gmra.mrb[220].mxu1 %v14076_v6  ;;  %6596 = vmatpush1.bf16.msra.mxu0 %v5278_v61  ;;  %v5299_v6 = vld [vmem:[#allocation3 + $0xad8] sm:$0xff] }
 0x94f   :  { %6599 = vmatprep.mubr.bf16.mxu0 %v14082_v5  ;;  %6597 = vmatprep.subr.bf16.mxu0 %v5286_v48 }
 0x950   :  { %7019 = vmatprep.mubr.bf16.mxu1 %v14082_v5  ;;  %v5307_v5 = vld [vmem:[#allocation3 + $0xb18] sm:$0xff] }
 0x952   :  { %6598 = vmatpush1.bf16.msra.mxu0 %v5285_v37 }
 0x953   :  { %6680 = vmatprep.subr.bf16.mxu0 %v5293_v40 }
 0x955   :  { %6600 = vmatmul.mubr.bf16.vlgmr.msra.gmra.mrb[160].mxu0 %v14092_v17 }
 0x956   :  { %7020 = vmatmul.mubr.bf16.vlgmr.msra.gmra.mrb[224].mxu1 %v14092_v17  ;;  %6681 = vmatpush1.bf16.msra.mxu0 %v5292_v39  ;;  %v5308_v17 = vld [vmem:[#allocation3 + $0xb20] sm:$0xff] }
 0x957   :  { %7802 = vmatpush3.bf16.msra.mxu1 %v5294_v15  ;;  %6682 = vmatprep.subr.bf16.mxu0 %v5300_v58 }
 0x958   :  { %6609 = vmatprep.mubr.bf16.mxu0 %v14098_v21  ;;  %7027 = vmatprep.mubr.bf16.mxu1 %v14098_v21  ;;  %v5313_v21 = vld [vmem:[#allocation3 + $0xb48] sm:$0xff] }
 0x959   :  { %7803 = vmatprep.subr.bf16.mxu1 %v5357_v50 }
 0x95a   :  { %6683 = vmatpush1.bf16.msra.mxu0 %v5299_v6 }
 0x95b   :  { %7804 = vmatpush3.bf16.msra.mxu1 %v5301_v11  ;;  %6684 = vmatprep.subr.bf16.mxu0 %v5307_v5  ;;  %v5334_v11 = vld [vmem:[#allocation3 + $0xbf0] sm:$0xff] }
 0x95c   :  { %7805 = vmatprep.subr.bf16.mxu1 %v5364_v62  ;;  %v5342_v62 = vld [vmem:[#allocation3 + $0xc30] sm:$0xff] }
 0x95d   :  { %6610 = vmatmul.mubr.bf16.gmra.mrb[164].mxu0 %v14108_v46 }
 0x95e   :  { %7028 = vmatmul.mubr.bf16.gmra.mrb[228].mxu1 %v14108_v46  ;;  %6685 = vmatpush1.bf16.msra.mxu0 %v5306_v8  ;;  %v16165_v46 = vld [vmem:[#allocation46_spill] sm:$0xff] }
 0x95f   :  { %6619 = vmatprep.mubr.bf16.mxu0 %v14114_v47  ;;  %6686 = vmatprep.subr.bf16.mxu0 %v5314_v52  ;;  %v14416_v0 = vrot.slane %v14410_v63, %v16165_v46  ;;  %v5329_v52 = vld [vmem:[#allocation3 + $0xbc8] sm:$0xff] }
 0x960   :  { %7035 = vmatprep.mubr.bf16.mxu1 %v14114_v47  ;;  %7806 = vmatpush3.bf16.msra.mxu1 %v5308_v17  ;;  %v16166_v47 = vld [vmem:[#allocation48_spill] sm:$0xff] }
 0x961   :  { %7807 = vmatprep.subr.bf16.mxu1 %v5371_v59  ;;  %v14420_v31 = vrot.slane %v14410_v63, %v16166_v47  ;;  %v5392_v59 = vld [vmem:[#allocation3 + $0xdc0] sm:$0xff] }
 0x962   :  { %6687 = vmatpush1.bf16.msra.mxu0 %v5313_v21  ;;  %v5341_v21 = vld [vmem:[#allocation3 + $0xc28] sm:$0xff] }
 0x963   :  { %6688 = vmatprep.subr.bf16.mxu0 %v5321_v16 }
 0x964   :  { %7808 = vmatpush3.bf16.msra.mxu1 %v5315_v3 }
 0x965   :  { %6620 = vmatmul.mubr.bf16.gmra.mrb[168].mxu0 %v14124_v33  ;;  %7809 = vmatprep.subr.bf16.mxu1 %v5378_v29  ;;  %v5336_v29 = vld [vmem:[#allocation3 + $0xc00] sm:$0xff] }
 0x966   :  { %7036 = vmatmul.mubr.bf16.gmra.mrb[232].mxu1 %v14124_v33  ;;  %6689 = vmatpush1.bf16.msra.mxu0 %v5320_v25  ;;  %v5322_v33 = vld [vmem:[#allocation3 + $0xb90] sm:$0xff]  ;;  %v5349_v25 = vld [vmem:[#allocation3 + $0xc68] sm:$0xff] }
 0x967   :  { %6629 = vmatprep.mubr.bf16.mxu0 %v14130_v38  ;;  %6690 = vmatprep.subr.bf16.mxu0 %v5328_v22 }
 0x968   :  { %7043 = vmatprep.mubr.bf16.mxu1 %v14130_v38  ;;  %v5810_v27 = vpop.f32.mrb[128].mxu0  ;;  %7810 = vmatpush3.bf16.msra.mxu1 %v5322_v33 }
 0x969   :  { %v6262_v42 = vpop.f32.mrb[128].mxu1  ;;  %v7993_v14 = vadd.f32 %v5810_v27, %v14416_v0  ;;  %v5812_v48 = vpop.f32.mrb[129].mxu0  ;;  %7811 = vmatprep.subr.bf16.mxu1 %v5385_v1 }
 0x96a   :  { %v8025_v61 = vadd.f32 %v6262_v42, %v14420_v31  ;;  %v6264_v37 = vpop.f32.mrb[129].mxu1  ;;  %v7994_v40 = vadd.f32 %v5812_v48, %v14424_v26  ;;  %v5814_v15 = vpop.f32.mrb[130].mxu0  ;;  %6691 = vmatpush1.bf16.msra.mxu0 %v5327_v4  ;;  %v5348_v42 = vld [vmem:[#allocation3 + $0xc60] sm:$0xff] }
 0x96b   :  { %v8026_v39 = vadd.f32 %v6264_v37, %v14428_v44  ;;  %v6266_v58 = vpop.f32.mrb[130].mxu1  ;;  %8708 = vtanh.f32 %v7993_v14  ;;  %v7995_v38 = vadd.f32 %v5814_v15, %v14416_v0  ;;  %v5816_v50 = vpop.f32.mrb[131].mxu0  ;;  %6692 = vmatprep.subr.bf16.mxu0 %v5335_v45  ;;  %v5356_v14 = vld [vmem:[#allocation3 + $0xca0] sm:$0xff]  ;;  %v5399_v37 = vld [vmem:[#allocation3 + $0xdf8] sm:$0xff] }
 0x96c   :  { %v6268_v6 = vpop.f32.mrb[131].mxu1  ;;  %8710 = vtanh.f32 %v8025_v61  ;;  %v8027_v5 = vadd.f32 %v6266_v58, %v14420_v31  ;;  %v7996_v8 = vadd.f32 %v5816_v50, %v14424_v26  ;;  %7812 = vmatpush3.bf16.msra.mxu1 %v5329_v52  ;;  %v5343_v15 = vld [vmem:[#allocation3 + $0xc38] sm:$0xff] }
 0x96d   :  { %8712 = vtanh.f32 %v7994_v40  ;;  %6630 = vmatmul.mubr.bf16.gmra.mrb[172].mxu0 %v14140_v13  ;;  %v8028_v17 = vadd.f32 %v6268_v6, %v14428_v44  ;;  %7813 = vmatprep.subr.bf16.mxu1 %v5392_v59 }
 0x96e   :  { %7044 = vmatmul.mubr.bf16.gmra.mrb[236].mxu1 %v14140_v13  ;;  %8714 = vtanh.f32 %v8026_v39  ;;  %6693 = vmatpush1.bf16.msra.mxu0 %v5334_v11  ;;  %v5363_v11 = vld [vmem:[#allocation3 + $0xcd8] sm:$0xff] }
 0x96f   :  { %6639 = vmatprep.mubr.bf16.mxu0 %v14146_v12  ;;  %8716 = vtanh.f32 %v7995_v38  ;;  %6694 = vmatprep.subr.bf16.mxu0 %v5342_v62  ;;  %v5355_v38 = vld [vmem:[#allocation3 + $0xc98] sm:$0xff] }
 0x970   :  { %7051 = vmatprep.mubr.bf16.mxu1 %v14146_v12  ;;  %8718 = vtanh.f32 %v8027_v5  ;;  %v5820_v16 = vpop.f32.mrb[132].mxu0  ;;  %7814 = vmatpush3.bf16.msra.mxu1 %v5336_v29 }
 0x971   :  { %v6272_v3 = vpop.f32.mrb[132].mxu1  ;;  %8720 = vtanh.f32 %v7996_v8  ;;  %v7997_v13 = vadd.f32 %v5820_v16, %v14416_v0  ;;  %v5822_v46 = vpop.f32.mrb[133].mxu0  ;;  %7815 = vmatprep.subr.bf16.mxu1 %v5399_v37 }
 0x972   :  { %v8029_v22 = vadd.f32 %v6272_v3, %v14420_v31  ;;  %v6274_v47 = vpop.f32.mrb[133].mxu1  ;;  %8722 = vtanh.f32 %v8028_v17  ;;  %v7998_v19 = vadd.f32 %v5822_v46, %v14424_v26  ;;  %v5824_v12 = vpop.f32.mrb[134].mxu0  ;;  %6695 = vmatpush1.bf16.msra.mxu0 %v5341_v21 }
 0x973   :  { %v8030_v43 = vadd.f32 %v6274_v47, %v14428_v44  ;;  %v6276_v33 = vpop.f32.mrb[134].mxu1  ;;  %8724 = vtanh.f32 %v7997_v13  ;;  %v7999_v4 = vadd.f32 %v5824_v12, %v14416_v0  ;;  %v5826_v1 = vpop.f32.mrb[135].mxu0  ;;  %6696 = vmatprep.subr.bf16.mxu0 %v5349_v25  ;;  %v5362_v47 = vld [vmem:[#allocation3 + $0xcd0] sm:$0xff] }
 0x974   :  { %v6278_v27 = vpop.f32.mrb[135].mxu1  ;;  %8726 = vtanh.f32 %v8029_v22  ;;  %v8031_v45 = vadd.f32 %v6276_v33, %v14420_v31  ;;  %v8000_v48 = vadd.f32 %v5826_v1, %v14424_v26  ;;  %7816 = vmatpush3.bf16.msra.mxu1 %v5343_v15 }
 0x975   :  { %v8709_v61 = vpop.eup %8708  ;;  %8728 = vtanh.f32 %v7998_v19  ;;  %6640 = vmatmul.mubr.bf16.gmra.mrb[176].mxu0 %v14156_v60  ;;  %v8032_v39 = vadd.f32 %v6278_v27, %v14428_v44 }
 0x976   :  { %7052 = vmatmul.mubr.bf16.gmra.mrb[240].mxu1 %v14156_v60  ;;  %v8711_v40 = vpop.eup %8710  ;;  %7293 = vst [vmem:[#allocation29] sm:$0xff] %v8709_v61  ;;  %8730 = vtanh.f32 %v8030_v43  ;;  %6697 = vmatpush1.bf16.msra.mxu0 %v5348_v42  ;;  %v5370_v43 = vld [vmem:[#allocation3 + $0xd10] sm:$0xff]  ;;  %v5369_v42 = vld [vmem:[#allocation3 + $0xd08] sm:$0xff] }
 0x977   :  { %6649 = vmatprep.mubr.bf16.mxu0 %v14162_v53  ;;  %v8713_v58 = vpop.eup %8712  ;;  %7295 = vst [vmem:[#allocation29 + $0x10] sm:$0xff] %v8711_v40  ;;  %8732 = vtanh.f32 %v7999_v4  ;;  %6698 = vmatprep.subr.bf16.mxu0 %v5356_v14  ;;  %v5377_v61 = vld [vmem:[#allocation3 + $0xd48] sm:$0xff] }
 0x978   :  { %7059 = vmatprep.mubr.bf16.mxu1 %v14162_v53  ;;  %v8715_v50 = vpop.eup %8714  ;;  %7294 = vst [vmem:[#allocation29 + $0x8] sm:$0xff] %v8713_v58  ;;  %8734 = vtanh.f32 %v8031_v45  ;;  %v5830_v60 = vpop.f32.mrb[136].mxu0 }
 0x979   :  { %v6282_v6 = vpop.f32.mrb[136].mxu1  ;;  %v8717_v5 = vpop.eup %8716  ;;  %7296 = vst [vmem:[#allocation29 + $0x18] sm:$0xff] %v8715_v50  ;;  %8736 = vtanh.f32 %v8000_v48  ;;  %v8001_v62 = vadd.f32 %v5830_v60, %v14416_v0 }
 0x97a   :  { %v8033_v8 = vadd.f32 %v6282_v6, %v14420_v31  ;;  %v5832_v52 = vpop.f32.mrb[137].mxu0  ;;  %v6284_v17 = vpop.f32.mrb[137].mxu1  ;;  %7300 = vst [vmem:[#allocation29 + $0x38] sm:$0xff] %v8717_v5  ;;  %8738 = vtanh.f32 %v8032_v39  ;;  %6699 = vmatpush1.bf16.msra.mxu0 %v5355_v38 }
 0x97b   :  { %v8719_v59 = vpop.eup %8718  ;;  %v8002_v53 = vadd.f32 %v5832_v52, %v14424_v26  ;;  %v8034_v21 = vadd.f32 %v6284_v17, %v14428_v44  ;;  %v5834_v16 = vpop.f32.mrb[138].mxu0  ;;  %8740 = vtanh.f32 %v8001_v62  ;;  %6700 = vmatprep.subr.bf16.mxu0 %v5363_v11 }
 0x97c   :  { %v6286_v3 = vpop.f32.mrb[138].mxu1  ;;  %v8721_v25 = vpop.eup %8720  ;;  %7302 = vst [vmem:[#allocation29 + $0x48] sm:$0xff] %v8719_v59  ;;  %v8003_v13 = vadd.f32 %v5834_v16, %v14416_v0  ;;  %8742 = vtanh.f32 %v8033_v8  ;;  %v5376_v8 = vld [vmem:[#allocation3 + $0xd40] sm:$0xff] }
 0x97d   :  { %v5836_v22 = vpop.f32.mrb[139].mxu0  ;;  %v6288_v46 = vpop.f32.mrb[139].mxu1  ;;  %7301 = vst [vmem:[#allocation29 + $0x40] sm:$0xff] %v8721_v25  ;;  %v8035_v19 = vadd.f32 %v6286_v3, %v14420_v31  ;;  %8744 = vtanh.f32 %v8002_v53  ;;  %6650 = vmatmul.mubr.bf16.gmra.mrb[180].mxu0 %v14172_v55  ;;  %v5384_v59 = vld [vmem:[#allocation3 + $0xd80] sm:$0xff] }
 0x97e   :  { %v8723_v29 = vpop.eup %8722  ;;  %v8004_v33 = vadd.f32 %v5836_v22, %v14424_v26  ;;  %7060 = vmatmul.mubr.bf16.gmra.mrb[244].mxu1 %v14172_v55  ;;  %8746 = vtanh.f32 %v8034_v21  ;;  %v8036_v1 = vadd.f32 %v6288_v46, %v14428_v44  ;;  %6701 = vmatpush1.bf16.msra.mxu0 %v5362_v47  ;;  %v5391_v47 = vld [vmem:[#allocation3 + $0xdb8] sm:$0xff] }
 0x97f   :  { %v8725_v12 = vpop.eup %8724  ;;  %7303 = vst [vmem:[#allocation29 + $0x50] sm:$0xff] %v8723_v29  ;;  %6659 = vmatprep.mubr.bf16.mxu0 %v14178_v34  ;;  %8748 = vtanh.f32 %v8003_v13  ;;  %6702 = vmatprep.subr.bf16.mxu0 %v5370_v43  ;;  %v5383_v13 = vld [vmem:[#allocation3 + $0xd78] sm:$0xff] }
 0x980   :  { %v8727_v4 = vpop.eup %8726  ;;  %7307 = vst [vmem:[#allocation29 + $0x70] sm:$0xff] %v8725_v12  ;;  %7067 = vmatprep.mubr.bf16.mxu1 %v14178_v34  ;;  %8750 = vtanh.f32 %v8035_v19  ;;  %v5840_v14 = vpop.f32.mrb[140].mxu0 }
 0x981   :  { %v8729_v27 = vpop.eup %8728  ;;  %7309 = vst [vmem:[#allocation29 + $0x80] sm:$0xff] %v8727_v4  ;;  %v6292_v55 = vpop.f32.mrb[140].mxu1  ;;  %8752 = vtanh.f32 %v8004_v33  ;;  %v8005_v37 = vadd.f32 %v5840_v14, %v14416_v0 }
 0x982   :  { %v8731_v45 = vpop.eup %8730  ;;  %7308 = vst [vmem:[#allocation29 + $0x78] sm:$0xff] %v8729_v27  ;;  %v8037_v40 = vadd.f32 %v6292_v55, %v14420_v31  ;;  %v5842_v39 = vpop.f32.mrb[141].mxu0  ;;  %8754 = vtanh.f32 %v8036_v1  ;;  %6703 = vmatpush1.bf16.msra.mxu0 %v5369_v42 }
 0x983   :  { %v8733_v48 = vpop.eup %8732  ;;  %7310 = vst [vmem:[#allocation29 + $0x88] sm:$0xff] %v8731_v45  ;;  %v6294_v15 = vpop.f32.mrb[141].mxu1  ;;  %v8006_v34 = vadd.f32 %v5842_v39, %v14424_v26  ;;  %8756 = vtanh.f32 %v8005_v37  ;;  %6704 = vmatprep.subr.bf16.mxu0 %v5377_v61  ;;  %v5398_v39 = vld [vmem:[#allocation3 + $0xdf0] sm:$0xff] }
 0x984   :  { %v8735_v58 = vpop.eup %8734  ;;  %7314 = vst [vmem:[#allocation29 + $0xa8] sm:$0xff] %v8733_v48  ;;  %v8038_v38 = vadd.f32 %v6294_v15, %v14428_v44  ;;  %v5844_v50 = vpop.f32.mrb[142].mxu0  ;;  %8758 = vtanh.f32 %v8037_v40  ;;  %v5390_v48 = vld [vmem:[#allocation3 + $0xdb0] sm:$0xff] }
 0x985   :  { %v6296_v60 = vpop.f32.mrb[142].mxu1  ;;  %v8737_v6 = vpop.eup %8736  ;;  %7316 = vst [vmem:[#allocation29 + $0xb8] sm:$0xff] %v8735_v58  ;;  %v8007_v11 = vadd.f32 %v5844_v50, %v14416_v0  ;;  %8760 = vtanh.f32 %v8006_v34  ;;  %6660 = vmatmul.mubr.bf16.gmra.mrb[184].mxu0 %v14188_v18 }
 0x986   :  { %v5846_v5 = vpop.f32.mrb[143].mxu0  ;;  %v6298_v62 = vpop.f32.mrb[143].mxu1  ;;  %7315 = vst [vmem:[#allocation29 + $0xb0] sm:$0xff] %v8737_v6  ;;  %v8039_v17 = vadd.f32 %v6296_v60, %v14420_v31  ;;  %7068 = vmatmul.mubr.bf16.gmra.mrb[248].mxu1 %v14188_v18  ;;  %8762 = vtanh.f32 %v8038_v38  ;;  %6705 = vmatpush1.bf16.msra.mxu0 %v5376_v8  ;;  %v5397_v60 = vld [vmem:[#allocation3 + $0xde8] sm:$0xff] }
 0x987   :  { %v8739_v52 = vpop.eup %8738  ;;  %v8008_v21 = vadd.f32 %v5846_v5, %v14424_v26  ;;  %v8040_v3 = vadd.f32 %v6298_v62, %v14428_v44  ;;  %6669 = vmatprep.mubr.bf16.mxu0 %v14194_v32  ;;  %8764 = vtanh.f32 %v8007_v11  ;;  %6706 = vmatprep.subr.bf16.mxu0 %v5384_v59 }
 0x988   :  { %v8741_v53 = vpop.eup %8740  ;;  %7317 = vst [vmem:[#allocation29 + $0xc0] sm:$0xff] %v8739_v52  ;;  %7075 = vmatprep.mubr.bf16.mxu1 %v14194_v32  ;;  %8766 = vtanh.f32 %v8039_v17  ;;  %v5850_v46 = vpop.f32.mrb[144].mxu0 }
 0x989   :  { %v8743_v16 = vpop.eup %8742  ;;  %7321 = vst [vmem:[#allocation29 + $0xe0] sm:$0xff] %v8741_v53  ;;  %v6302_v18 = vpop.f32.mrb[144].mxu1  ;;  %8768 = vtanh.f32 %v8008_v21  ;;  %v8009_v19 = vadd.f32 %v5850_v46, %v14416_v0 }
 0x98a   :  { %v8745_v25 = vpop.eup %8744  ;;  %7323 = vst [vmem:[#allocation29 + $0xf0] sm:$0xff] %v8743_v16  ;;  %v8041_v43 = vadd.f32 %v6302_v18, %v14420_v31  ;;  %v5852_v12 = vpop.f32.mrb[145].mxu0  ;;  %8770 = vtanh.f32 %v8040_v3  ;;  %6707 = vmatpush1.bf16.msra.mxu0 %v5383_v13 }
 0x98b   :  { %v8747_v22 = vpop.eup %8746  ;;  %7322 = vst [vmem:[#allocation29 + $0xe8] sm:$0xff] %v8745_v25  ;;  %v6304_v33 = vpop.f32.mrb[145].mxu1  ;;  %v8010_v32 = vadd.f32 %v5852_v12, %v14424_v26  ;;  %8772 = vtanh.f32 %v8009_v19  ;;  %6708 = vmatprep.subr.bf16.mxu0 %v5391_v47 }
 0x98c   :  { %v8749_v29 = vpop.eup %8748  ;;  %7324 = vst [vmem:[#allocation29 + $0xf8] sm:$0xff] %v8747_v22  ;;  %v8042_v1 = vadd.f32 %v6304_v33, %v14428_v44  ;;  %v5854_v27 = vpop.f32.mrb[146].mxu0  ;;  %8774 = vtanh.f32 %v8041_v43 }
 0x98d   :  { %v8751_v4 = vpop.eup %8750  ;;  %7328 = vst [vmem:[#allocation29 + $0x118] sm:$0xff] %v8749_v29  ;;  %v6306_v42 = vpop.f32.mrb[146].mxu1  ;;  %v8011_v14 = vadd.f32 %v5854_v27, %v14416_v0  ;;  %8776 = vtanh.f32 %v8010_v32  ;;  %6670 = vmatmul.mubr.bf16.gmra.mrb[188].mxu0 %v14204_v56 }
 0x98e   :  { %v8753_v45 = vpop.eup %8752  ;;  %7330 = vst [vmem:[#allocation29 + $0x128] sm:$0xff] %v8751_v4  ;;  %v5856_v55 = vpop.f32.mrb[147].mxu0  ;;  %v8043_v40 = vadd.f32 %v6306_v42, %v14420_v31  ;;  %7076 = vmatmul.mubr.bf16.gmra.mrb[252].mxu1 %v14204_v56  ;;  %8778 = vtanh.f32 %v8042_v1  ;;  %6709 = vmatpush1.bf16.msra.mxu0 %v5390_v48 }
 0x98f   :  { %v6308_v61 = vpop.f32.mrb[147].mxu1  ;;  %v8755_v37 = vpop.eup %8754  ;;  %7329 = vst [vmem:[#allocation29 + $0x120] sm:$0xff] %v8753_v45  ;;  %v8012_v58 = vadd.f32 %v5856_v55, %v14424_v26  ;;  %6712 = vmatprep.mubr.bf16.mxu0 %v14210_v20  ;;  %8780 = vtanh.f32 %v8011_v14  ;;  %6710 = vmatprep.subr.bf16.mxu0 %v5398_v39 }
 0x990   :  { %v8757_v15 = vpop.eup %8756  ;;  %7331 = vst [vmem:[#allocation29 + $0x130] sm:$0xff] %v8755_v37  ;;  %v8044_v38 = vadd.f32 %v6308_v61, %v14428_v44  ;;  %7116 = vmatprep.mubr.bf16.mxu1 %v14210_v20  ;;  %8782 = vtanh.f32 %v8043_v40  ;;  %v5860_v11 = vpop.f32.mrb[148].mxu0 }
 0x991   :  { %v8759_v34 = vpop.eup %8758  ;;  %7335 = vst [vmem:[#allocation29 + $0x150] sm:$0xff] %v8757_v15  ;;  %v6312_v56 = vpop.f32.mrb[148].mxu1  ;;  %8784 = vtanh.f32 %v8012_v58  ;;  %v8013_v62 = vadd.f32 %v5860_v11, %v14416_v0 }
 0x992   :  { %v8761_v50 = vpop.eup %8760  ;;  %7337 = vst [vmem:[#allocation29 + $0x160] sm:$0xff] %v8759_v34  ;;  %v8045_v8 = vadd.f32 %v6312_v56, %v14420_v31  ;;  %v5862_v52 = vpop.f32.mrb[149].mxu0  ;;  %8786 = vtanh.f32 %v8044_v38  ;;  %6711 = vmatpush1.bf16.msra.mxu0 %v5397_v60 }
 0x993   :  { %v8763_v6 = vpop.eup %8762  ;;  %7336 = vst [vmem:[#allocation29 + $0x158] sm:$0xff] %v8761_v50  ;;  %v6314_v17 = vpop.f32.mrb[149].mxu1  ;;  %v8014_v53 = vadd.f32 %v5862_v52, %v14424_v26  ;;  %8788 = vtanh.f32 %v8013_v62 }
 0x994   :  { %v8765_v5 = vpop.eup %8764  ;;  %7338 = vst [vmem:[#allocation29 + $0x168] sm:$0xff] %v8763_v6  ;;  %v8046_v20 = vadd.f32 %v6314_v17, %v14428_v44  ;;  %v5864_v21 = vpop.f32.mrb[150].mxu0  ;;  %8790 = vtanh.f32 %v8045_v8 }
 0x995   :  { %v8767_v59 = vpop.eup %8766  ;;  %7342 = vst [vmem:[#allocation29 + $0x188] sm:$0xff] %v8765_v5  ;;  %v6316_v16 = vpop.f32.mrb[150].mxu1  ;;  %v8015_v25 = vadd.f32 %v5864_v21, %v14416_v0  ;;  %8792 = vtanh.f32 %v8014_v53  ;;  %6713 = vmatmul.mubr.bf16.vlgmr.msra.gmra.mrb[160].mxu0 %v14220_v54 }
 0x996   :  { %v8769_v3 = vpop.eup %8768  ;;  %7344 = vst [vmem:[#allocation29 + $0x198] sm:$0xff] %v8767_v59  ;;  %v5866_v13 = vpop.f32.mrb[151].mxu0  ;;  %v8047_v18 = vadd.f32 %v6316_v16, %v14420_v31  ;;  %7117 = vmatmul.mubr.bf16.vlgmr.msra.gmra.mrb[0].mxu1 %v14220_v54  ;;  %8794 = vtanh.f32 %v8046_v20  ;;  %6722 = vmatprep.mubr.bf16.mxu0 %v14226_v10 }
 0x997   :  { %v6318_v22 = vpop.f32.mrb[151].mxu1  ;;  %v8771_v46 = vpop.eup %8770  ;;  %7343 = vst [vmem:[#allocation29 + $0x190] sm:$0xff] %v8769_v3  ;;  %v8016_v29 = vadd.f32 %v5866_v13, %v14424_v26  ;;  %7124 = vmatprep.mubr.bf16.mxu1 %v14226_v10  ;;  %8796 = vtanh.f32 %v8015_v25 }
 0x998   :  { %v8773_v47 = vpop.eup %8772  ;;  %7345 = vst [vmem:[#allocation29 + $0x1a0] sm:$0xff] %v8771_v46  ;;  %v8048_v43 = vadd.f32 %v6318_v22, %v14428_v44  ;;  %8798 = vtanh.f32 %v8047_v18  ;;  %v5870_v4 = vpop.f32.mrb[152].mxu0 }
 0x999   :  { %v8775_v19 = vpop.eup %8774  ;;  %7349 = vst [vmem:[#allocation29 + $0x1c0] sm:$0xff] %v8773_v47  ;;  %v6322_v32 = vpop.f32.mrb[152].mxu1  ;;  %8800 = vtanh.f32 %v8016_v29  ;;  %v8017_v54 = vadd.f32 %v5870_v4, %v14416_v0 }
 0x99a   :  { %v8777_v12 = vpop.eup %8776  ;;  %7351 = vst [vmem:[#allocation29 + $0x1d0] sm:$0xff] %v8775_v19  ;;  %v8049_v27 = vadd.f32 %v6322_v32, %v14420_v31  ;;  %v5872_v42 = vpop.f32.mrb[153].mxu0  ;;  %8802 = vtanh.f32 %v8048_v43 }
 0x99b   :  { %v8779_v33 = vpop.eup %8778  ;;  %7350 = vst [vmem:[#allocation29 + $0x1c8] sm:$0xff] %v8777_v12  ;;  %v6324_v45 = vpop.f32.mrb[153].mxu1  ;;  %v8018_v10 = vadd.f32 %v5872_v42, %v14424_v26  ;;  %8804 = vtanh.f32 %v8017_v54 }
 0x99c   :  { %v8781_v1 = vpop.eup %8780  ;;  %7352 = vst [vmem:[#allocation29 + $0x1d8] sm:$0xff] %v8779_v33  ;;  %v8050_v55 = vadd.f32 %v6324_v45, %v14428_v44  ;;  %v5874_v61 = vpop.f32.mrb[154].mxu0  ;;  %8806 = vtanh.f32 %v8049_v27 }
 0x99d   :  { %v8783_v14 = vpop.eup %8782  ;;  %7356 = vst [vmem:[#allocation29 + $0x1f8] sm:$0xff] %v8781_v1  ;;  %v6326_v48 = vpop.f32.mrb[154].mxu1  ;;  %v8019_v40 = vadd.f32 %v5874_v61, %v14416_v0  ;;  %8808 = vtanh.f32 %v8018_v10  ;;  %6723 = vmatmul.mubr.bf16.gmra.mrb[164].mxu0 %v14236_v2 }
 0x99e   :  { %v8785_v37 = vpop.eup %8784  ;;  %7358 = vst [vmem:[#allocation29 + $0x208] sm:$0xff] %v8783_v14  ;;  %v5876_v39 = vpop.f32.mrb[155].mxu0  ;;  %v8051_v34 = vadd.f32 %v6326_v48, %v14420_v31  ;;  %7125 = vmatmul.mubr.bf16.gmra.mrb[4].mxu1 %v14236_v2  ;;  %8810 = vtanh.f32 %v8050_v55  ;;  %6732 = vmatprep.mubr.bf16.mxu0 %v14242_v30 }
 0x99f   :  { %v6328_v15 = vpop.f32.mrb[155].mxu1  ;;  %v8787_v58 = vpop.eup %8786  ;;  %7357 = vst [vmem:[#allocation29 + $0x200] sm:$0xff] %v8785_v37  ;;  %v8020_v50 = vadd.f32 %v5876_v39, %v14424_v26  ;;  %7132 = vmatprep.mubr.bf16.mxu1 %v14242_v30  ;;  %8812 = vtanh.f32 %v8019_v40 }
 0x9a0   :  { %v8789_v38 = vpop.eup %8788  ;;  %7359 = vst [vmem:[#allocation29 + $0x210] sm:$0xff] %v8787_v58  ;;  %v8052_v6 = vadd.f32 %v6328_v15, %v14428_v44  ;;  %8814 = vtanh.f32 %v8051_v34  ;;  %v5880_v5 = vpop.f32.mrb[156].mxu0 }
 0x9a1   :  { %v8791_v60 = vpop.eup %8790  ;;  %7363 = vst [vmem:[#allocation29 + $0x230] sm:$0xff] %v8789_v38  ;;  %v6332_v62 = vpop.f32.mrb[156].mxu1  ;;  %8816 = vtanh.f32 %v8020_v50  ;;  %v8021_v2 = vadd.f32 %v5880_v5, %v14416_v0 }
 0x9a2   :  { %v8793_v11 = vpop.eup %8792  ;;  %7365 = vst [vmem:[#allocation29 + $0x240] sm:$0xff] %v8791_v60  ;;  %v8053_v52 = vadd.f32 %v6332_v62, %v14420_v31  ;;  %v5882_v17 = vpop.f32.mrb[157].mxu0  ;;  %8818 = vtanh.f32 %v8052_v6 }
 0x9a3   :  { %v8795_v56 = vpop.eup %8794  ;;  %7364 = vst [vmem:[#allocation29 + $0x238] sm:$0xff] %v8793_v11  ;;  %v6334_v59 = vpop.f32.mrb[157].mxu1  ;;  %v8022_v30 = vadd.f32 %v5882_v17, %v14424_v26  ;;  %8820 = vtanh.f32 %v8021_v2 }
 0x9a4   :  { %v8797_v8 = vpop.eup %8796  ;;  %7366 = vst [vmem:[#allocation29 + $0x248] sm:$0xff] %v8795_v56  ;;  %v8054_v20 = vadd.f32 %v6334_v59, %v14428_v44  ;;  %v5884_v21 = vpop.f32.mrb[158].mxu0  ;;  %8822 = vtanh.f32 %v8053_v52 }
 0x9a5   :  { %v8799_v53 = vpop.eup %8798  ;;  %7370 = vst [vmem:[#allocation29 + $0x268] sm:$0xff] %v8797_v8  ;;  %v6336_v16 = vpop.f32.mrb[158].mxu1  ;;  %v8023_v25 = vadd.f32 %v5884_v21, %v14416_v0  ;;  %8824 = vtanh.f32 %v8022_v30  ;;  %6733 = vmatmul.mubr.bf16.gmra.mrb[168].mxu0 %v14252_v49 }
 0x9a6   :  { %v8801_v3 = vpop.eup %8800  ;;  %7372 = vst [vmem:[#allocation29 + $0x278] sm:$0xff] %v8799_v53  ;;  %v5886_v13 = vpop.f32.mrb[159].mxu0  ;;  %v8055_v18 = vadd.f32 %v6336_v16, %v14420_v31  ;;  %7133 = vmatmul.mubr.bf16.gmra.mrb[8].mxu1 %v14252_v49  ;;  %8826 = vtanh.f32 %v8054_v20  ;;  %6742 = vmatprep.mubr.bf16.mxu0 %v14258_v35 }
 0x9a7   :  { %v6338_v22 = vpop.f32.mrb[159].mxu1  ;;  %v8803_v46 = vpop.eup %8802  ;;  %7371 = vst [vmem:[#allocation29 + $0x270] sm:$0xff] %v8801_v3  ;;  %v8024_v29 = vadd.f32 %v5886_v13, %v14424_v26  ;;  %7140 = vmatprep.mubr.bf16.mxu1 %v14258_v35  ;;  %8828 = vtanh.f32 %v8023_v25 }
 0x9a8   :  { %v8805_v47 = vpop.eup %8804  ;;  %7373 = vst [vmem:[#allocation29 + $0x280] sm:$0xff] %v8803_v46  ;;  %v8056_v0 = vadd.f32 %v6338_v22, %v14428_v44  ;;  %8830 = vtanh.f32 %v8055_v18 }
 0x9a9   :  { %v8807_v19 = vpop.eup %8806  ;;  %7377 = vst [vmem:[#allocation29 + $0x2a0] sm:$0xff] %v8805_v47  ;;  %v7625_v26 = vpop.f32.mrb[160].mxu1  ;;  %8832 = vtanh.f32 %v8024_v29 }
 0x9aa   :  { %v8809_v43 = vpop.eup %8808  ;;  %7379 = vst [vmem:[#allocation29 + $0x2b0] sm:$0xff] %v8807_v19  ;;  %v7626_v49 = vpop.f32.mrb[161].mxu1  ;;  %8834 = vtanh.f32 %v8056_v0  ;;  %v16169_v0 = vld [vmem:[#allocation89_spill] sm:$0xff] }
 0x9ab   :  { %v8811_v31 = vpop.eup %8810  ;;  %7378 = vst [vmem:[#allocation29 + $0x2a8] sm:$0xff] %v8809_v43  ;;  %v14528_v4 = vadd.f32 %v7626_v49, %v7625_v26  ;;  %v7628_v44 = vpop.f32.mrb[162].mxu1  ;;  %v14580_v43 = vrot.slane %v14410_v63, %v16169_v0 }
 0x9ac   :  { %v8813_v12 = vpop.eup %8812  ;;  %7380 = vst [vmem:[#allocation29 + $0x2b8] sm:$0xff] %v8811_v31  ;;  %v7629_v35 = vpop.f32.mrb[163].mxu1 }
 0x9ad   :  { %v8815_v33 = vpop.eup %8814  ;;  %7384 = vst [vmem:[#allocation29 + $0x2d8] sm:$0xff] %v8813_v12  ;;  %v14530_v54 = vadd.f32 %v7629_v35, %v7628_v44  ;;  %6743 = vmatmul.mubr.bf16.gmra.mrb[172].mxu0 %v14268_v24  ;;  %v6828_v12 = vadd.f32 %v14528_v4, %v14580_v43 }
 0x9ae   :  { %v8817_v32 = vpop.eup %8816  ;;  %7386 = vst [vmem:[#allocation29 + $0x2e8] sm:$0xff] %v8815_v33  ;;  %7141 = vmatmul.mubr.bf16.gmra.mrb[12].mxu1 %v14268_v24  ;;  %6752 = vmatprep.mubr.bf16.mxu0 %v14274_v41 }
 0x9af   :  { %v8819_v1 = vpop.eup %8818  ;;  %7385 = vst [vmem:[#allocation29 + $0x2e0] sm:$0xff] %v8817_v32  ;;  %7148 = vmatprep.mubr.bf16.mxu1 %v14274_v41  ;;  %v6831_v32 = vadd.f32 %v14530_v54, %v14580_v43 }
 0x9b0   :  { %v8821_v27 = vpop.eup %8820  ;;  %7387 = vst [vmem:[#allocation29 + $0x2f0] sm:$0xff] %v8819_v1 }
 0x9b1   :  { %v8823_v42 = vpop.eup %8822  ;;  %7391 = vst [vmem:[#allocation29 + $0x310] sm:$0xff] %v8821_v27  ;;  %v7631_v10 = vpop.f32.mrb[164].mxu1 }
 0x9b2   :  { %v8825_v45 = vpop.eup %8824  ;;  %7393 = vst [vmem:[#allocation29 + $0x320] sm:$0xff] %v8823_v42  ;;  %v7632_v61 = vpop.f32.mrb[165].mxu1 }
 0x9b3   :  { %v8827_v14 = vpop.eup %8826  ;;  %7392 = vst [vmem:[#allocation29 + $0x318] sm:$0xff] %v8825_v45  ;;  %v14536_v37 = vadd.f32 %v7632_v61, %v7631_v10  ;;  %v7634_v40 = vpop.f32.mrb[166].mxu1 }
 0x9b4   :  { %v8829_v55 = vpop.eup %8828  ;;  %7394 = vst [vmem:[#allocation29 + $0x328] sm:$0xff] %v8827_v14  ;;  %v7635_v39 = vpop.f32.mrb[167].mxu1 }
 0x9b5   :  { %v8831_v48 = vpop.eup %8830  ;;  %7398 = vst [vmem:[#allocation29 + $0x348] sm:$0xff] %v8829_v55  ;;  %v14538_v58 = vadd.f32 %v7635_v39, %v7634_v40  ;;  %6753 = vmatmul.mubr.bf16.gmra.mrb[176].mxu0 %v14284_v51  ;;  %v6836_v63 = vadd.f32 %v14536_v37, %v14580_v43 }
 0x9b6   :  { %v8833_v24 = vpop.eup %8832  ;;  %7400 = vst [vmem:[#allocation29 + $0x358] sm:$0xff] %v8831_v48  ;;  %7149 = vmatmul.mubr.bf16.gmra.mrb[16].mxu1 %v14284_v51  ;;  %6762 = vmatprep.mubr.bf16.mxu0 %v14290_v28 }
 0x9b7   :  { %v8835_v15 = vpop.eup %8834  ;;  %7399 = vst [vmem:[#allocation29 + $0x350] sm:$0xff] %v8833_v24  ;;  %7156 = vmatprep.mubr.bf16.mxu1 %v14290_v28  ;;  %v6839_v4 = vadd.f32 %v14538_v58, %v14580_v43 }
 0x9b8   :  { %7401 = vst [vmem:[#allocation29 + $0x360] sm:$0xff] %v8835_v15 }
 0x9b9   :  { %v7637_v41 = vpop.f32.mrb[168].mxu1 }
 0x9ba   :  { %v7638_v34 = vpop.f32.mrb[169].mxu1 }
 0x9bb   :  { %v14544_v38 = vadd.f32 %v7638_v34, %v7637_v41  ;;  %v7640_v50 = vpop.f32.mrb[170].mxu1 }
 0x9bc   :  { %v7641_v60 = vpop.f32.mrb[171].mxu1 }
 0x9bd   :  { %v14546_v6 = vadd.f32 %v7641_v60, %v7640_v50  ;;  %6763 = vmatmul.mubr.bf16.gmra.mrb[180].mxu0 %v14300_v9  ;;  %v6844_v39 = vadd.f32 %v14544_v38, %v14580_v43 }
 0x9be   :  { %7157 = vmatmul.mubr.bf16.gmra.mrb[20].mxu1 %v14300_v9  ;;  %6772 = vmatprep.mubr.bf16.mxu0 %v14306_v7 }
 0x9bf   :  { %7164 = vmatprep.mubr.bf16.mxu1 %v14306_v7  ;;  %v6847_v37 = vadd.f32 %v14546_v6, %v14580_v43 }
 0x9c1   :  { %v7643_v51 = vpop.f32.mrb[172].mxu1 }
 0x9c2   :  { %v7644_v11 = vpop.f32.mrb[173].mxu1 }
 0x9c3   :  { %v14552_v56 = vadd.f32 %v7644_v11, %v7643_v51  ;;  %v7646_v28 = vpop.f32.mrb[174].mxu1 }
 0x9c4   :  { %v7647_v5 = vpop.f32.mrb[175].mxu1 }
 0x9c5   :  { %v14554_v62 = vadd.f32 %v7647_v5, %v7646_v28  ;;  %6773 = vmatmul.mubr.bf16.gmra.mrb[184].mxu0 %v14316_v36  ;;  %v6852_v28 = vadd.f32 %v14552_v56, %v14580_v43 }
 0x9c6   :  { %7165 = vmatmul.mubr.bf16.gmra.mrb[24].mxu1 %v14316_v36  ;;  %6782 = vmatprep.mubr.bf16.mxu0 %v14322_v57 }
 0x9c7   :  { %7172 = vmatprep.mubr.bf16.mxu1 %v14322_v57  ;;  %v6855_v38 = vadd.f32 %v14554_v62, %v14580_v43 }
 0x9c9   :  { %v7649_v9 = vpop.f32.mrb[176].mxu1 }
 0x9ca   :  { %v7650_v8 = vpop.f32.mrb[177].mxu1 }
 0x9cb   :  { %v14560_v2 = vadd.f32 %v7650_v8, %v7649_v9  ;;  %v7652_v7 = vpop.f32.mrb[178].mxu1 }
 0x9cc   :  { %v7653_v52 = vpop.f32.mrb[179].mxu1 }
 0x9cd   :  { %v14562_v17 = vadd.f32 %v7653_v52, %v7652_v7  ;;  %6783 = vmatmul.mubr.bf16.gmra.mrb[188].mxu0 %v14332_v23 }
 0x9ce   :  { %7173 = vmatmul.mubr.bf16.gmra.mrb[28].mxu1 %v14332_v23 }
 0x9cf   :  { %v6863_v56 = vadd.f32 %v14562_v17, %v14580_v43 }
 0x9d1   :  { %v7655_v59 = vpop.f32.mrb[180].mxu1 }
 0x9d2   :  { %v7656_v53 = vpop.f32.mrb[181].mxu1 }
 0x9d3   :  { %v14566_v30 = vadd.f32 %v7656_v53, %v7655_v59  ;;  %v7658_v36 = vpop.f32.mrb[182].mxu1 }
 0x9d4   :  { %v7659_v20 = vpop.f32.mrb[183].mxu1 }
 0x9d5   :  { %v14568_v21 = vadd.f32 %v7659_v20, %v7658_v36  ;;  %v6860_v36 = vadd.f32 %v14560_v2, %v14580_v43 }
 0x9d7   :  { %v6871_v2 = vadd.f32 %v14568_v21, %v14580_v43 }
 0x9d9   :  { %v7661_v57 = vpop.f32.mrb[184].mxu1 }
 0x9da   :  { %v7662_v16 = vpop.f32.mrb[185].mxu1 }
 0x9db   :  { %v14570_v3 = vadd.f32 %v7662_v16, %v7661_v57  ;;  %v7664_v25 = vpop.f32.mrb[186].mxu1 }
 0x9dc   :  { %v7665_v13 = vpop.f32.mrb[187].mxu1 }
 0x9dd   :  { %v14572_v22 = vadd.f32 %v7665_v13, %v7664_v25 }
 0x9e1   :  { %v7667_v46 = vpop.f32.mrb[188].mxu1 }
 0x9e2   :  { %v7668_v18 = vpop.f32.mrb[189].mxu1 }
 0x9e3   :  { %v14574_v47 = vadd.f32 %v7668_v18, %v7667_v46  ;;  %v7670_v23 = vpop.f32.mrb[190].mxu1 }
 0x9e4   :  { %v7671_v29 = vpop.f32.mrb[191].mxu1 }
 0x9e5   :  { %v14576_v19 = vadd.f32 %v7671_v29, %v7670_v23  ;;  %v6868_v23 = vadd.f32 %v14566_v30, %v14580_v43  ;;  %v6879_v30 = vadd.f32 %v14572_v22, %v14580_v43 }
 0x9e9   :  { %v7689_v31 = vpop.f32.mrb[192].mxu1 }
 0x9ea   :  { %v7690_v26 = vpop.f32.mrb[193].mxu1 }
 0x9eb   :  { %v7691_v49 = vadd.f32 %v7690_v26, %v7689_v31  ;;  %v7692_v33 = vpop.f32.mrb[194].mxu1 }
 0x9ec   :  { %v7693_v44 = vpop.f32.mrb[195].mxu1 }
 0x9ed   :  { %v14586_v35 = vadd.f32 %v7691_v49, %v6828_v12  ;;  %v7694_v1 = vadd.f32 %v7693_v44, %v7692_v33  ;;  %v6876_v44 = vadd.f32 %v14570_v3, %v14580_v43  ;;  %v6887_v3 = vadd.f32 %v14576_v19, %v14580_v43 }
 0x9ef   :  { %v14588_v27 = vadd.f32 %v7694_v1, %v6831_v32 }
 0x9f1   :  { %v7695_v42 = vpop.f32.mrb[196].mxu1 }
 0x9f2   :  { %v7696_v45 = vpop.f32.mrb[197].mxu1 }
 0x9f3   :  { %v7697_v14 = vadd.f32 %v7696_v45, %v7695_v42  ;;  %v7698_v10 = vpop.f32.mrb[198].mxu1 }
 0x9f4   :  { %v7699_v55 = vpop.f32.mrb[199].mxu1 }
 0x9f5   :  { %v14594_v61 = vadd.f32 %v7697_v14, %v6836_v63  ;;  %v7700_v48 = vadd.f32 %v7699_v55, %v7698_v10  ;;  %v6884_v55 = vadd.f32 %v14574_v47, %v14580_v43 }
 0x9f7   :  { %v14596_v54 = vadd.f32 %v7700_v48, %v6839_v4 }
 0x9f9   :  { %v7701_v40 = vpop.f32.mrb[200].mxu1 }
 0x9fa   :  { %v7702_v24 = vpop.f32.mrb[201].mxu1 }
 0x9fb   :  { %v7703_v15 = vadd.f32 %v7702_v24, %v7701_v40  ;;  %v7704_v41 = vpop.f32.mrb[202].mxu1 }
 0x9fc   :  { %v7705_v34 = vpop.f32.mrb[203].mxu1 }
 0x9fd   :  { %v14602_v50 = vadd.f32 %v7703_v15, %v6844_v39  ;;  %v7706_v60 = vadd.f32 %v7705_v34, %v7704_v41 }
 0x9ff   :  { %v14604_v58 = vadd.f32 %v7706_v60, %v6847_v37 }
 0xa01   :  { %v7707_v51 = vpop.f32.mrb[204].mxu1 }
 0xa02   :  { %v7708_v11 = vpop.f32.mrb[205].mxu1 }
 0xa03   :  { %v7709_v5 = vadd.f32 %v7708_v11, %v7707_v51  ;;  %v7710_v9 = vpop.f32.mrb[206].mxu1 }
 0xa04   :  { %v7711_v8 = vpop.f32.mrb[207].mxu1 }
 0xa05   :  { %v14610_v7 = vadd.f32 %v7709_v5, %v6852_v28  ;;  %v7712_v52 = vadd.f32 %v7711_v8, %v7710_v9 }
 0xa07   :  { %v14612_v6 = vadd.f32 %v7712_v52, %v6855_v38 }
 0xa09   :  { %v7713_v59 = vpop.f32.mrb[208].mxu1 }
 0xa0a   :  { %v7714_v53 = vpop.f32.mrb[209].mxu1 }
 0xa0b   :  { %v7715_v20 = vadd.f32 %v7714_v53, %v7713_v59  ;;  %v7716_v57 = vpop.f32.mrb[210].mxu1 }
 0xa0c   :  { %v7717_v16 = vpop.f32.mrb[211].mxu1 }
 0xa0d   :  { %v14618_v25 = vadd.f32 %v7715_v20, %v6860_v36  ;;  %v7718_v13 = vadd.f32 %v7717_v16, %v7716_v57 }
 0xa0f   :  { %v14620_v62 = vadd.f32 %v7718_v13, %v6863_v56 }
 0xa11   :  { %v7719_v46 = vpop.f32.mrb[212].mxu1 }
 0xa12   :  { %v7720_v18 = vpop.f32.mrb[213].mxu1 }
 0xa13   :  { %v7721_v29 = vadd.f32 %v7720_v18, %v7719_v46  ;;  %v7722_v0 = vpop.f32.mrb[214].mxu1 }
 0xa14   :  { %v7723_v31 = vpop.f32.mrb[215].mxu1 }
 0xa15   :  { %v14626_v26 = vadd.f32 %v7721_v29, %v6868_v23  ;;  %v7724_v12 = vadd.f32 %v7723_v31, %v7722_v0 }
 0xa17   :  { %v14628_v17 = vadd.f32 %v7724_v12, %v6871_v2 }
 0xa19   :  { %v7725_v49 = vpop.f32.mrb[216].mxu1 }
 0xa1a   :  { %v7726_v33 = vpop.f32.mrb[217].mxu1 }
 0xa1b   :  { %v7727_v32 = vadd.f32 %v7726_v33, %v7725_v49  ;;  %v7728_v1 = vpop.f32.mrb[218].mxu1 }
 0xa1c   :  { %v7729_v42 = vpop.f32.mrb[219].mxu1 }
 0xa1d   :  { %v14634_v45 = vadd.f32 %v7727_v32, %v6876_v44  ;;  %v7730_v63 = vadd.f32 %v7729_v42, %v7728_v1 }
 0xa1f   :  { %v14636_v21 = vadd.f32 %v7730_v63, %v6879_v30 }
 0xa21   :  { %v7731_v14 = vpop.f32.mrb[220].mxu1 }
 0xa22   :  { %v7732_v10 = vpop.f32.mrb[221].mxu1 }
 0xa23   :  { %v7733_v4 = vadd.f32 %v7732_v10, %v7731_v14  ;;  %v7734_v48 = vpop.f32.mrb[222].mxu1 }
 0xa24   :  { %v7735_v40 = vpop.f32.mrb[223].mxu1 }
 0xa25   :  { %v14642_v24 = vadd.f32 %v7733_v4, %v6884_v55  ;;  %v7736_v39 = vadd.f32 %v7735_v40, %v7734_v48 }
 0xa27   :  { %v14644_v22 = vadd.f32 %v7736_v39, %v6887_v3 }
 0xa29   :  { %v7753_v15 = vpop.f32.mrb[224].mxu1 }
 0xa2a   :  { %v7754_v41 = vpop.f32.mrb[225].mxu1 }
 0xa2b   :  { %v7755_v34 = vadd.f32 %v7754_v41, %v7753_v15  ;;  %v7756_v37 = vpop.f32.mrb[226].mxu1 }
 0xa2c   :  { %v7757_v60 = vpop.f32.mrb[227].mxu1 }
 0xa2d   :  { %v14647_v51 = vadd.f32 %v7755_v34, %v14586_v35  ;;  %v7758_v47 = vadd.f32 %v7757_v60, %v7756_v37  ;;  %v8932_v37 = vld [vmem:[#allocation28] sm:$0xff] }
 0xa2e   :  { %v16170_v60 = vld [vmem:[#allocation88_spill] sm:$0xff] }
 0xa2f   :  { %v14650_v11 = vadd.f32 %v7758_v47, %v14588_v27  ;;  %v14692_v47 = vrot.slane %v8932_v37, %v16170_v60 }
 0xa31   :  { %v7759_v28 = vpop.f32.mrb[228].mxu1 }
 0xa32   :  { %v7760_v5 = vpop.f32.mrb[229].mxu1 }
 0xa33   :  { %v7761_v19 = vadd.f32 %v7760_v5, %v7759_v28  ;;  %v7762_v43 = vpop.f32.mrb[230].mxu1  ;;  %v16171_v28 = vld [vmem:[#allocation53_spill] sm:$0xff] }
 0xa34   :  { %v7763_v9 = vpop.f32.mrb[231].mxu1  ;;  %v14698_v5 = vrot.slane %v8932_v37, %v16171_v28 }
 0xa35   :  { %v14653_v8 = vadd.f32 %v7761_v19, %v14594_v61  ;;  %v7764_v38 = vadd.f32 %v7763_v9, %v7762_v43 }
 0xa37   :  { %v14656_v52 = vadd.f32 %v7764_v38, %v14596_v54 }
 0xa39   :  { %v7765_v59 = vpop.f32.mrb[232].mxu1 }
 0xa3a   :  { %v7766_v53 = vpop.f32.mrb[233].mxu1 }
 0xa3b   :  { %v7767_v35 = vadd.f32 %v7766_v53, %v7765_v59  ;;  %v7768_v36 = vpop.f32.mrb[234].mxu1 }
 0xa3c   :  { %v7769_v20 = vpop.f32.mrb[235].mxu1 }
 0xa3d   :  { %v14659_v27 = vadd.f32 %v7767_v35, %v14602_v50  ;;  %v7770_v57 = vadd.f32 %v7769_v20, %v7768_v36 }
 0xa3f   :  { %v14662_v16 = vadd.f32 %v7770_v57, %v14604_v58 }
 0xa41   :  { %v7771_v56 = vpop.f32.mrb[236].mxu1 }
 0xa42   :  { %v7772_v13 = vpop.f32.mrb[237].mxu1 }
 0xa43   :  { %v7773_v61 = vadd.f32 %v7772_v13, %v7771_v56  ;;  %v7774_v46 = vpop.f32.mrb[238].mxu1 }
 0xa44   :  { %v7775_v18 = vpop.f32.mrb[239].mxu1 }
 0xa45   :  { %v14665_v54 = vadd.f32 %v7773_v61, %v14610_v7  ;;  %v7776_v23 = vadd.f32 %v7775_v18, %v7774_v46 }
 0xa47   :  { %v14668_v29 = vadd.f32 %v7776_v23, %v14612_v6 }
 0xa49   :  { %v7777_v0 = vpop.f32.mrb[240].mxu1 }
 0xa4a   :  { %v7778_v31 = vpop.f32.mrb[241].mxu1 }
 0xa4b   :  { %v7779_v50 = vadd.f32 %v7778_v31, %v7777_v0  ;;  %v7780_v2 = vpop.f32.mrb[242].mxu1 }
 0xa4c   :  { %v7781_v12 = vpop.f32.mrb[243].mxu1 }
 0xa4d   :  { %v14671_v58 = vadd.f32 %v7779_v50, %v14618_v25  ;;  %v7782_v49 = vadd.f32 %v7781_v12, %v7780_v2 }
 0xa4f   :  { %v14674_v33 = vadd.f32 %v7782_v49, %v14620_v62 }
 0xa51   :  { %v7783_v44 = vpop.f32.mrb[244].mxu1 }
 0xa52   :  { %v7784_v32 = vpop.f32.mrb[245].mxu1 }
 0xa53   :  { %v7785_v7 = vadd.f32 %v7784_v32, %v7783_v44  ;;  %v7786_v1 = vpop.f32.mrb[246].mxu1 }
 0xa54   :  { %v7787_v42 = vpop.f32.mrb[247].mxu1 }
 0xa55   :  { %v14677_v6 = vadd.f32 %v7785_v7, %v14626_v26  ;;  %v7788_v30 = vadd.f32 %v7787_v42, %v7786_v1 }
 0xa57   :  { %v14680_v63 = vadd.f32 %v7788_v30, %v14628_v17 }
 0xa59   :  { %v7789_v14 = vpop.f32.mrb[248].mxu1 }
 0xa5a   :  { %v7790_v10 = vpop.f32.mrb[249].mxu1 }
 0xa5b   :  { %v7791_v25 = vadd.f32 %v7790_v10, %v7789_v14  ;;  %v7792_v55 = vpop.f32.mrb[250].mxu1 }
 0xa5c   :  { %v7793_v4 = vpop.f32.mrb[251].mxu1 }
 0xa5d   :  { %v14683_v62 = vadd.f32 %v7791_v25, %v14634_v45  ;;  %v7794_v48 = vadd.f32 %v7793_v4, %v7792_v55 }
 0xa5f   :  { %v14686_v40 = vadd.f32 %v7794_v48, %v14636_v21 }
 0xa61   :  { %v7795_v3 = vpop.f32.mrb[252].mxu1 }
 0xa62   :  { %v7796_v39 = vpop.f32.mrb[253].mxu1 }
 0xa63   :  { %v7797_v26 = vadd.f32 %v7796_v39, %v7795_v3  ;;  %v7798_v15 = vpop.f32.mrb[254].mxu1 }
 0xa64   :  { %v7799_v41 = vpop.f32.mrb[255].mxu1 }
 0xa65   :  { %v14689_v17 = vadd.f32 %v7797_v26, %v14642_v24  ;;  %v7800_v34 = vadd.f32 %v7799_v41, %v7798_v15 }
 0xa67   :  { %v14695_v45 = vadd.f32 %v7800_v34, %v14644_v22 }
 0xa68   :  { %v6714_v21 = vpop.f32.mrb[160].mxu0 }
 0xa69   :  { %v7817_v19 = vpop.f32.mrb[0].mxu1  ;;  %v8057_v43 = vadd.f32 %v6714_v21, %v14692_v47  ;;  %v6716_v9 = vpop.f32.mrb[161].mxu0 }
 0xa6a   :  { %v7818_v38 = vpop.f32.mrb[1].mxu1  ;;  %v8058_v24 = vadd.f32 %v6716_v9, %v14698_v5  ;;  %v6718_v53 = vpop.f32.mrb[162].mxu0 }
 0xa6b   :  { %v7819_v59 = vadd.f32 %v7818_v38, %v7817_v19  ;;  %v7820_v35 = vpop.f32.mrb[2].mxu1  ;;  %8836 = vtanh.f32 %v8057_v43  ;;  %v8059_v36 = vadd.f32 %v6718_v53, %v14692_v47  ;;  %v6720_v20 = vpop.f32.mrb[163].mxu0 }
 0xa6c   :  { %v7821_v22 = vpop.f32.mrb[3].mxu1  ;;  %8838 = vtanh.f32 %v8058_v24  ;;  %v8060_v56 = vadd.f32 %v6720_v20, %v14698_v5 }
 0xa6d   :  { %v7119_v57 = vadd.f32 %v7819_v59, %v14647_v51  ;;  %v7822_v13 = vadd.f32 %v7821_v22, %v7820_v35  ;;  %8840 = vtanh.f32 %v8059_v36 }
 0xa6f   :  { %8842 = vtanh.f32 %v7119_v57  ;;  %v7122_v61 = vadd.f32 %v7822_v13, %v14650_v11 }
 0xa70   :  { %8844 = vtanh.f32 %v8060_v56  ;;  %v6724_v46 = vpop.f32.mrb[164].mxu0 }
 0xa71   :  { %8846 = vtanh.f32 %v7122_v61  ;;  %v7823_v18 = vpop.f32.mrb[4].mxu1  ;;  %v8061_v23 = vadd.f32 %v6724_v46, %v14692_v47  ;;  %v6726_v0 = vpop.f32.mrb[165].mxu0 }
 0xa72   :  { %v7824_v31 = vpop.f32.mrb[5].mxu1  ;;  %v8062_v50 = vadd.f32 %v6726_v0, %v14698_v5  ;;  %v6728_v12 = vpop.f32.mrb[166].mxu0 }
 0xa73   :  { %v7825_v2 = vadd.f32 %v7824_v31, %v7823_v18  ;;  %v7826_v51 = vpop.f32.mrb[6].mxu1  ;;  %8848 = vtanh.f32 %v8061_v23  ;;  %v8063_v49 = vadd.f32 %v6728_v12, %v14692_v47  ;;  %v6730_v44 = vpop.f32.mrb[167].mxu0 }
 0xa74   :  { %v7827_v32 = vpop.f32.mrb[7].mxu1  ;;  %8850 = vtanh.f32 %v8062_v50  ;;  %v8064_v7 = vadd.f32 %v6730_v44, %v14698_v5 }
 0xa75   :  { %v7127_v11 = vadd.f32 %v7825_v2, %v14653_v8  ;;  %v7828_v1 = vadd.f32 %v7827_v32, %v7826_v51  ;;  %v8837_v42 = vpop.eup %8836  ;;  %8852 = vtanh.f32 %v8063_v49 }
 0xa76   :  { %v8839_v30 = vpop.eup %8838  ;;  %7297 = vst [vmem:[#allocation29 + $0x20] sm:$0xff] %v8837_v42 }
 0xa77   :  { %8854 = vtanh.f32 %v7127_v11  ;;  %v7130_v14 = vadd.f32 %v7828_v1, %v14656_v52  ;;  %v8841_v10 = vpop.eup %8840  ;;  %7298 = vst [vmem:[#allocation29 + $0x28] sm:$0xff] %v8839_v30 }
 0xa78   :  { %8856 = vtanh.f32 %v8064_v7  ;;  %7304 = vst [vmem:[#allocation29 + $0x58] sm:$0xff] %v8841_v10  ;;  %v6734_v55 = vpop.f32.mrb[168].mxu0 }
 0xa79   :  { %v8843_v25 = vpop.eup %8842  ;;  %8858 = vtanh.f32 %v7130_v14  ;;  %v7829_v4 = vpop.f32.mrb[8].mxu1  ;;  %v8065_v8 = vadd.f32 %v6734_v55, %v14692_v47 }
 0xa7a   :  { %v8845_v48 = vpop.eup %8844  ;;  %7299 = vst [vmem:[#allocation29 + $0x30] sm:$0xff] %v8843_v25  ;;  %v6736_v3 = vpop.f32.mrb[169].mxu0 }
 0xa7b   :  { %v7830_v39 = vpop.f32.mrb[9].mxu1  ;;  %v8847_v26 = vpop.eup %8846  ;;  %7305 = vst [vmem:[#allocation29 + $0x60] sm:$0xff] %v8845_v48  ;;  %v8066_v15 = vadd.f32 %v6736_v3, %v14698_v5  ;;  %8860 = vtanh.f32 %v8065_v8 }
 0xa7c   :  { %v7831_v41 = vadd.f32 %v7830_v39, %v7829_v4  ;;  %v6738_v52 = vpop.f32.mrb[170].mxu0  ;;  %v7832_v34 = vpop.f32.mrb[10].mxu1  ;;  %7306 = vst [vmem:[#allocation29 + $0x68] sm:$0xff] %v8847_v26 }
 0xa7d   :  { %v8067_v37 = vadd.f32 %v6738_v52, %v14692_v47  ;;  %v6740_v60 = vpop.f32.mrb[171].mxu0  ;;  %v7833_v28 = vpop.f32.mrb[11].mxu1  ;;  %8862 = vtanh.f32 %v8066_v15 }
 0xa7e   :  { %v7135_v21 = vadd.f32 %v7831_v41, %v14659_v27  ;;  %v8068_v19 = vadd.f32 %v6740_v60, %v14698_v5  ;;  %v7834_v43 = vadd.f32 %v7833_v28, %v7832_v34  ;;  %v8849_v9 = vpop.eup %8848 }
 0xa7f   :  { %8864 = vtanh.f32 %v8067_v37  ;;  %v8851_v38 = vpop.eup %8850  ;;  %7311 = vst [vmem:[#allocation29 + $0x90] sm:$0xff] %v8849_v9 }
 0xa80   :  { %8866 = vtanh.f32 %v7135_v21  ;;  %v7138_v24 = vadd.f32 %v7834_v43, %v14662_v16  ;;  %v8853_v59 = vpop.eup %8852  ;;  %7312 = vst [vmem:[#allocation29 + $0x98] sm:$0xff] %v8851_v38  ;;  %v6744_v35 = vpop.f32.mrb[172].mxu0 }
 0xa81   :  { %8868 = vtanh.f32 %v8068_v19  ;;  %v8855_v53 = vpop.eup %8854  ;;  %7318 = vst [vmem:[#allocation29 + $0xc8] sm:$0xff] %v8853_v59  ;;  %v7835_v36 = vpop.f32.mrb[12].mxu1  ;;  %v8069_v27 = vadd.f32 %v6744_v35, %v14692_v47 }
 0xa82   :  { %8870 = vtanh.f32 %v7138_v24  ;;  %v8857_v20 = vpop.eup %8856  ;;  %7313 = vst [vmem:[#allocation29 + $0xa0] sm:$0xff] %v8855_v53  ;;  %v6746_v22 = vpop.f32.mrb[173].mxu0 }
 0xa83   :  { %v7836_v57 = vpop.f32.mrb[13].mxu1  ;;  %v8859_v56 = vpop.eup %8858  ;;  %7319 = vst [vmem:[#allocation29 + $0xd0] sm:$0xff] %v8857_v20  ;;  %v8070_v13 = vadd.f32 %v6746_v22, %v14698_v5  ;;  %8872 = vtanh.f32 %v8069_v27 }
 0xa84   :  { %v7837_v61 = vadd.f32 %v7836_v57, %v7835_v36  ;;  %v6748_v16 = vpop.f32.mrb[174].mxu0  ;;  %v7838_v46 = vpop.f32.mrb[14].mxu1  ;;  %7320 = vst [vmem:[#allocation29 + $0xd8] sm:$0xff] %v8859_v56 }
 0xa85   :  { %v8071_v18 = vadd.f32 %v6748_v16, %v14692_v47  ;;  %v6750_v23 = vpop.f32.mrb[175].mxu0  ;;  %v7839_v0 = vpop.f32.mrb[15].mxu1  ;;  %8874 = vtanh.f32 %v8070_v13 }
 0xa86   :  { %v7143_v31 = vadd.f32 %v7837_v61, %v14665_v54  ;;  %v8072_v50 = vadd.f32 %v6750_v23, %v14698_v5  ;;  %v7840_v2 = vadd.f32 %v7839_v0, %v7838_v46  ;;  %v8861_v12 = vpop.eup %8860 }
 0xa87   :  { %8876 = vtanh.f32 %v8071_v18  ;;  %v8863_v51 = vpop.eup %8862  ;;  %7325 = vst [vmem:[#allocation29 + $0x100] sm:$0xff] %v8861_v12 }
 0xa88   :  { %8878 = vtanh.f32 %v7143_v31  ;;  %v7146_v49 = vadd.f32 %v7840_v2, %v14668_v29  ;;  %7326 = vst [vmem:[#allocation29 + $0x108] sm:$0xff] %v8863_v51  ;;  %v6754_v11 = vpop.f32.mrb[176].mxu0 }
 0xa89   :  { %v8865_v44 = vpop.eup %8864  ;;  %8880 = vtanh.f32 %v8072_v50  ;;  %v7841_v7 = vpop.f32.mrb[16].mxu1  ;;  %v8073_v54 = vadd.f32 %v6754_v11, %v14692_v47 }
 0xa8a   :  { %v8867_v32 = vpop.eup %8866  ;;  %7332 = vst [vmem:[#allocation29 + $0x138] sm:$0xff] %v8865_v44  ;;  %8882 = vtanh.f32 %v7146_v49  ;;  %v6756_v42 = vpop.f32.mrb[177].mxu0 }
 0xa8b   :  { %v8869_v1 = vpop.eup %8868  ;;  %7327 = vst [vmem:[#allocation29 + $0x110] sm:$0xff] %v8867_v32  ;;  %v7842_v30 = vpop.f32.mrb[17].mxu1  ;;  %v8074_v10 = vadd.f32 %v6756_v42, %v14698_v5  ;;  %8884 = vtanh.f32 %v8073_v54 }
 0xa8c   :  { %v8871_v14 = vpop.eup %8870  ;;  %7333 = vst [vmem:[#allocation29 + $0x140] sm:$0xff] %v8869_v1  ;;  %v7843_v25 = vadd.f32 %v7842_v30, %v7841_v7  ;;  %v6758_v29 = vpop.f32.mrb[178].mxu0 }
 0xa8d   :  { %v7844_v55 = vpop.f32.mrb[18].mxu1  ;;  %7334 = vst [vmem:[#allocation29 + $0x148] sm:$0xff] %v8871_v14  ;;  %v8075_v4 = vadd.f32 %v6758_v29, %v14692_v47  ;;  %v6760_v48 = vpop.f32.mrb[179].mxu0  ;;  %8886 = vtanh.f32 %v8074_v10 }
 0xa8e   :  { %v7845_v8 = vpop.f32.mrb[19].mxu1  ;;  %v7151_v3 = vadd.f32 %v7843_v25, %v14671_v58  ;;  %v8076_v39 = vadd.f32 %v6760_v48, %v14698_v5  ;;  %v8873_v15 = vpop.eup %8872 }
 0xa8f   :  { %v7846_v26 = vadd.f32 %v7845_v8, %v7844_v55  ;;  %8888 = vtanh.f32 %v8075_v4  ;;  %v8875_v41 = vpop.eup %8874  ;;  %7339 = vst [vmem:[#allocation29 + $0x170] sm:$0xff] %v8873_v15 }
 0xa90   :  { %8890 = vtanh.f32 %v7151_v3  ;;  %7340 = vst [vmem:[#allocation29 + $0x178] sm:$0xff] %v8875_v41  ;;  %v6764_v60 = vpop.f32.mrb[180].mxu0 }
 0xa91   :  { %v7154_v52 = vadd.f32 %v7846_v26, %v14674_v33  ;;  %v8877_v34 = vpop.eup %8876  ;;  %8892 = vtanh.f32 %v8076_v39  ;;  %v7847_v28 = vpop.f32.mrb[20].mxu1  ;;  %v8077_v58 = vadd.f32 %v6764_v60, %v14692_v47 }
 0xa92   :  { %v8879_v37 = vpop.eup %8878  ;;  %7346 = vst [vmem:[#allocation29 + $0x1a8] sm:$0xff] %v8877_v34  ;;  %v6766_v19 = vpop.f32.mrb[181].mxu0 }
 0xa93   :  { %8894 = vtanh.f32 %v7154_v52  ;;  %v8881_v21 = vpop.eup %8880  ;;  %7341 = vst [vmem:[#allocation29 + $0x180] sm:$0xff] %v8879_v37  ;;  %v7848_v43 = vpop.f32.mrb[21].mxu1  ;;  %v8078_v38 = vadd.f32 %v6766_v19, %v14698_v5 }
 0xa94   :  { %v8883_v9 = vpop.eup %8882  ;;  %7347 = vst [vmem:[#allocation29 + $0x1b0] sm:$0xff] %v8881_v21  ;;  %v7849_v24 = vadd.f32 %v7848_v43, %v7847_v28  ;;  %v6768_v33 = vpop.f32.mrb[182].mxu0  ;;  %8896 = vtanh.f32 %v8077_v58 }
 0xa95   :  { %v7850_v59 = vpop.f32.mrb[22].mxu1  ;;  %7348 = vst [vmem:[#allocation29 + $0x1b8] sm:$0xff] %v8883_v9  ;;  %v8079_v53 = vadd.f32 %v6768_v33, %v14692_v47  ;;  %v6770_v35 = vpop.f32.mrb[183].mxu0  ;;  %8898 = vtanh.f32 %v8078_v38 }
 0xa96   :  { %v7851_v36 = vpop.f32.mrb[23].mxu1  ;;  %v7159_v20 = vadd.f32 %v7849_v24, %v14677_v6  ;;  %v8080_v27 = vadd.f32 %v6770_v35, %v14698_v5  ;;  %v8885_v57 = vpop.eup %8884 }
 0xa97   :  { %v7852_v22 = vadd.f32 %v7851_v36, %v7850_v59  ;;  %8900 = vtanh.f32 %v8079_v53  ;;  %v8887_v56 = vpop.eup %8886  ;;  %7353 = vst [vmem:[#allocation29 + $0x1e0] sm:$0xff] %v8885_v57 }
 0xa98   :  { %8902 = vtanh.f32 %v7159_v20  ;;  %7354 = vst [vmem:[#allocation29 + $0x1e8] sm:$0xff] %v8887_v56  ;;  %v6774_v46 = vpop.f32.mrb[184].mxu0 }
 0xa99   :  { %v7162_v13 = vadd.f32 %v7852_v22, %v14680_v63  ;;  %v8889_v61 = vpop.eup %8888  ;;  %8904 = vtanh.f32 %v8080_v27  ;;  %v7853_v18 = vpop.f32.mrb[24].mxu1  ;;  %v8081_v6 = vadd.f32 %v6774_v46, %v14692_v47 }
 0xa9a   :  { %v8891_v16 = vpop.eup %8890  ;;  %7360 = vst [vmem:[#allocation29 + $0x218] sm:$0xff] %v8889_v61  ;;  %v6776_v0 = vpop.f32.mrb[185].mxu0 }
 0xa9b   :  { %8906 = vtanh.f32 %v7162_v13  ;;  %v8893_v23 = vpop.eup %8892  ;;  %7355 = vst [vmem:[#allocation29 + $0x1f0] sm:$0xff] %v8891_v16  ;;  %v7854_v31 = vpop.f32.mrb[25].mxu1  ;;  %v8082_v2 = vadd.f32 %v6776_v0, %v14698_v5 }
 0xa9c   :  { %7361 = vst [vmem:[#allocation29 + $0x220] sm:$0xff] %v8893_v23  ;;  %v7855_v12 = vadd.f32 %v7854_v31, %v7853_v18  ;;  %v6778_v63 = vpop.f32.mrb[186].mxu0  ;;  %v7856_v51 = vpop.f32.mrb[26].mxu1  ;;  %8908 = vtanh.f32 %v8081_v6 }
 0xa9d   :  { %v8895_v50 = vpop.eup %8894  ;;  %v8083_v49 = vadd.f32 %v6778_v63, %v14692_v47  ;;  %v6780_v44 = vpop.f32.mrb[187].mxu0  ;;  %8910 = vtanh.f32 %v8082_v2 }
 0xa9e   :  { %7362 = vst [vmem:[#allocation29 + $0x228] sm:$0xff] %v8895_v50  ;;  %v7857_v32 = vpop.f32.mrb[27].mxu1  ;;  %v7167_v11 = vadd.f32 %v7855_v12, %v14683_v62  ;;  %v8084_v7 = vadd.f32 %v6780_v44, %v14698_v5  ;;  %v8897_v54 = vpop.eup %8896 }
 0xa9f   :  { %v7858_v1 = vadd.f32 %v7857_v32, %v7856_v51  ;;  %8912 = vtanh.f32 %v8083_v49  ;;  %v8899_v42 = vpop.eup %8898  ;;  %7367 = vst [vmem:[#allocation29 + $0x250] sm:$0xff] %v8897_v54 }
 0xaa0   :  { %8914 = vtanh.f32 %v7167_v11  ;;  %7368 = vst [vmem:[#allocation29 + $0x258] sm:$0xff] %v8899_v42  ;;  %v6784_v25 = vpop.f32.mrb[188].mxu0 }
 0xaa1   :  { %v7170_v30 = vadd.f32 %v7858_v1, %v14686_v40  ;;  %v8901_v14 = vpop.eup %8900  ;;  %8916 = vtanh.f32 %v8084_v7  ;;  %v7859_v29 = vpop.f32.mrb[28].mxu1  ;;  %v8085_v62 = vadd.f32 %v6784_v25, %v14692_v47 }
 0xaa2   :  { %v8903_v10 = vpop.eup %8902  ;;  %7374 = vst [vmem:[#allocation29 + $0x288] sm:$0xff] %v8901_v14  ;;  %v6786_v4 = vpop.f32.mrb[189].mxu0 }
 0xaa3   :  { %8918 = vtanh.f32 %v7170_v30  ;;  %v8905_v55 = vpop.eup %8904  ;;  %7369 = vst [vmem:[#allocation29 + $0x260] sm:$0xff] %v8903_v10  ;;  %v7860_v48 = vpop.f32.mrb[29].mxu1  ;;  %v8086_v3 = vadd.f32 %v6786_v4, %v14698_v5 }
 0xaa4   :  { %7375 = vst [vmem:[#allocation29 + $0x290] sm:$0xff] %v8905_v55  ;;  %v7861_v39 = vadd.f32 %v7860_v48, %v7859_v29  ;;  %v6788_v40 = vpop.f32.mrb[190].mxu0  ;;  %v7862_v26 = vpop.f32.mrb[30].mxu1  ;;  %8920 = vtanh.f32 %v8085_v62 }
 0xaa5   :  { %v8907_v8 = vpop.eup %8906  ;;  %v8087_v15 = vadd.f32 %v6788_v40, %v14692_v47  ;;  %v6790_v41 = vpop.f32.mrb[191].mxu0  ;;  %8922 = vtanh.f32 %v8086_v3 }
 0xaa6   :  { %7376 = vst [vmem:[#allocation29 + $0x298] sm:$0xff] %v8907_v8  ;;  %v7863_v52 = vpop.f32.mrb[31].mxu1  ;;  %v7175_v34 = vadd.f32 %v7861_v39, %v14689_v17  ;;  %v8088_v37 = vadd.f32 %v6790_v41, %v14698_v5  ;;  %v8909_v28 = vpop.eup %8908 }
 0xaa7   :  { %v7864_v60 = vadd.f32 %v7863_v52, %v7862_v26  ;;  %8924 = vtanh.f32 %v8087_v15  ;;  %v8911_v21 = vpop.eup %8910  ;;  %7381 = vst [vmem:[#allocation29 + $0x2c0] sm:$0xff] %v8909_v28 }
 0xaa8   :  { %8926 = vtanh.f32 %v7175_v34  ;;  %7382 = vst [vmem:[#allocation29 + $0x2c8] sm:$0xff] %v8911_v21 }
 0xaa9   :  { %v7178_v58 = vadd.f32 %v7864_v60, %v14695_v45  ;;  %v8913_v19 = vpop.eup %8912  ;;  %8928 = vtanh.f32 %v8088_v37 }
 0xaaa   :  { %v8915_v43 = vpop.eup %8914  ;;  %7388 = vst [vmem:[#allocation29 + $0x2f8] sm:$0xff] %v8913_v19 }
 0xaab   :  { %8930 = vtanh.f32 %v7178_v58  ;;  %v8917_v47 = vpop.eup %8916  ;;  %7383 = vst [vmem:[#allocation29 + $0x2d0] sm:$0xff] %v8915_v43 }
 0xaac   :  { %7389 = vst [vmem:[#allocation29 + $0x300] sm:$0xff] %v8917_v47 }
 0xaad   :  { %v8919_v9 = vpop.eup %8918 }
 0xaae   :  { %7390 = vst [vmem:[#allocation29 + $0x308] sm:$0xff] %v8919_v9  ;;  %v8921_v17 = vpop.eup %8920 }
 0xaaf   :  { %v8923_v5 = vpop.eup %8922  ;;  %7395 = vst [vmem:[#allocation29 + $0x330] sm:$0xff] %v8921_v17 }
 0xab0   :  { %7396 = vst [vmem:[#allocation29 + $0x338] sm:$0xff] %v8923_v5 }
 0xab1   :  { %v8925_v38 = vpop.eup %8924 }
 0xab2   :  { %v8927_v24 = vpop.eup %8926  ;;  %7402 = vst [vmem:[#allocation29 + $0x368] sm:$0xff] %v8925_v38 }
 0xab3   :  { %v8929_v45 = vpop.eup %8928  ;;  %7397 = vst [vmem:[#allocation29 + $0x340] sm:$0xff] %v8927_v24 }
 0xab4   :  { %7403 = vst [vmem:[#allocation29 + $0x370] sm:$0xff] %v8929_v45 }
 0xab5   :  { %v8931_v33 = vpop.eup %8930 }
 0xab6   :  { %7404 = vst [vmem:[#allocation29 + $0x378] sm:$0xff] %v8931_v33 }
 0xab7   :  { %9274 = shalt.err (!%p9271_p12)
}
 0xab8   :  { %s16172_s5 = sld [smem:[#allocation179_spill]] }
 0xabe   :  { %s9275_s8 = scalar_lea.hbm %s16172_s5, 14336 }
 0xabf   :  { %p9276_p13 = scmp.ne.s32.totalorder %s16172_s5, %s9275_s8  ;;  %p9279_p0 = scmp.lt.u32.totalorder %s9275_s8, %s16172_s5 }
 0xac1   :  { %p9281_p1 = pnand %p9279_p0, %p9276_p13 }
 0xac3   :  { %9284 = shalt.err (!%p9281_p1)
}
 0xac4   :  { %s9342_s14 = smov 56  }
 0xac5   :  { %7416 = dma.vmem_to_hbm [thread:$0]  %s7411_s20, 14336, %s16172_s5, [#allocation7], %s9334_s10, %s9334_s10, %s9342_s14  }
 0xac6   :  { %9305 = dma.done.wait [#allocation7], 14336  }
 0xac7   :  { %9306 = vsyncadd [#allocation7], 4294952960 }
 0xac8   :  { %7420 = vsyncpa [#allocation6], 1 }
 0xac9   :  { %7421 = vsyncpa [#allocation9], 1 }
 0xaca   :  { %7422 = vsyncpa [#allocation12], 1 }
 0xacb   :  { %7423 = vsyncpa [#allocation15], 1 }
 0xacc   :  { %7424 = vsyncpa [#allocation18], 1 }
 0xacd   :  { %7425 = vsyncpa [#allocation21], 1 }
 0xace   :  { %7426 = vsyncpa [#allocation24], 1 }
 0xacf   :  { %7427 = vsyncpa [#allocation27], 1 }
 0xad0   :  { %7428 = vsyncpa [#allocation7], 1 }
 0xad1   :  { %7429 = vsyncmov [#allocation4] }
 0xad4   :  { %s7430_s9 = vpop.sfrf %7429 }
 0xad5   :  { %p7543_p2 = scmp.ne.s32.totalorder %s7430_s9, 0 }
 0xad7   :  { %7434 = shalt.err (%p7543_p2)  }
 0xad8   :  { %7436 = vsyncmov [#allocation4 + $0x1] }
 0xadb   :  { %s7437_s2 = vpop.sfrf %7436 }
 0xadc   :  { %p7544_p3 = scmp.ne.s32.totalorder %s7437_s2, 0 }
 0xade   :  { %7441 = shalt.err (%p7544_p3)  }

</bundles_post_ra>
